<compile_context>
chip_gen: v5e
topology: v5e:2x2
jax: 0.10.0
libtpu: 0.0.40
codegen_flags: <defaults>
</compile_context>

<pallas_src>
import jax
import jax.numpy as jnp
from jax.experimental import pallas as pl

LANES = 128   # lane-dense channel padding target (one full MXU pass)
K1_PAD = 128  # conv1 contraction dim (9 taps) padded to one full lane tile


# ----------------------------- Pallas kernels ------------------------------

def conv_relu_pool_kernel(p_ref, w_ref, b_ref, o_ref):
    """Fused conv(as ONE matmul) + bias + ReLU + 2x2 max-pool, whole batch.

    p_ref : (4*G, K)  im2col patches; rows ordered (pool_pos, image, h2, w2)
    w_ref : (K, C)    flattened conv weights, C padded to 128 lanes
    b_ref : (1, C)    bias (zero in padded lanes)
    o_ref : (G, C)    pooled output, rows in (image, h2, w2) order
    """
    g = o_ref.shape[0]                      # static; multiple of 8
    y = jnp.dot(p_ref[...], w_ref[...], preferred_element_type=jnp.float32)
    y = jnp.maximum(y + b_ref[...], 0.0)    # ReLU before pool == pool then ReLU
    o_ref[...] = jnp.maximum(jnp.maximum(y[0:g], y[g:2 * g]),
                             jnp.maximum(y[2 * g:3 * g], y[3 * g:4 * g]))


def fc_kernel(x_ref, w1_ref, b1_ref, w2_ref, b2_ref, o_ref):
    """fc1 + ReLU + fc2 for the whole batch (all dims full (8,128) tiles)."""
    h = jnp.dot(x_ref[...], w1_ref[...], preferred_element_type=jnp.float32)
    h = jnp.maximum(h + b1_ref[...], 0.0)
    o_ref[...] = jnp.dot(h, w2_ref[...],
                         preferred_element_type=jnp.float32) + b2_ref[...]


# ------------------------------ pallas_call wrappers ------------------------

def conv_relu_pool(p, w, b):
    rows4 = p.shape[0]
    G = rows4 // 4
    C = w.shape[1]
    return pl.pallas_call(
        conv_relu_pool_kernel,
        out_shape=jax.ShapeDtypeStruct((G, C), jnp.float32),
    )(p, w, b)


def fc_forward(x, w1, b1, w2, b2):
    N = x.shape[0]
    return pl.pallas_call(
        fc_kernel,
        out_shape=jax.ShapeDtypeStruct((N, w2.shape[1]), jnp.float32),
    )(x, w1, b1, w2, b2)


# ------------------------------ host-side layout prep -----------------------

def pad_axis(a, axis, to):
    """Zero-pad `a` along `axis` up to size `to` (no-op if already >= to)."""
    pad = to - a.shape[axis]
    if pad <= 0:
        return a
    widths = [(0, 0)] * a.ndim
    widths[axis] = (0, pad)
    return jnp.pad(a, widths)


def im2col_pool_grouped(x_nhwc):
    """3x3/pad=1 im2col with rows grouped by 2x2 pool-window position.

    Returns (4*G, 9*C) with G = round_up(N*(H//2)*(W//2), 8).  Within each of
    the 4 groups, rows are in (n, h2, w2) order (trailing pad rows are zero).
    Patch ordering along the last axis: k = (dy*3 + dx)*C + ci.
    """
    N, H, W, C = x_nhwc.shape
    xp = jnp.pad(x_nhwc, ((0, 0), (1, 1), (1, 1), (0, 0)))
    cols = [xp[:, dy:dy + H, dx:dx + W, :] for dy in range(3) for dx in range(3)]
    patches = jnp.concatenate(cols, axis=-1)                # (N, H, W, 9C)
    H2, W2 = H // 2, W // 2
    patches = patches.reshape(N, H2, 2, W2, 2, 9 * C)
    patches = patches.transpose(2, 4, 0, 1, 3, 5)           # (py, px, N, H2, W2, 9C)
    G = N * H2 * W2
    patches = patches.reshape(4, G, 9 * C)
    pad = (-G) % 8                                          # 8-align the row groups
    if pad:
        patches = jnp.pad(patches, ((0, 0), (0, pad), (0, 0)))
        G += pad
    return patches.reshape(4 * G, 9 * C)


def pack_conv_weight(w, cin_pad, cout_pad):
    """(Cout, Cin, 3, 3) -> (9*cin_pad, cout_pad); row k=(dy*3+dx)*cin_pad+ci."""
    cout, cin = w.shape[0], w.shape[1]
    wm = jnp.transpose(w, (2, 3, 1, 0))                     # (3, 3, Cin, Cout)
    wm = jnp.pad(wm, ((0, 0), (0, 0), (0, cin_pad - cin), (0, cout_pad - cout)))
    return wm.reshape(9 * cin_pad, cout_pad)


def pack_fc1_weight(w, h2w2=49, cin=64, cin_pad=LANES):
    """Permute fc1 rows from PyTorch flatten order (c*49+s) to (s*128+c).

    This absorbs the NCHW flatten: the conv2 kernel output is already in
    (n, s, c) order, so no activation transpose is needed at runtime.
    """
    out = w.shape[1]
    wp = w.reshape(cin, h2w2, out).transpose(1, 0, 2)       # (s, c, out)
    wp = jnp.pad(wp, ((0, 0), (0, cin_pad - cin), (0, 0)))  # zero rows for pad c
    return wp.reshape(h2w2 * cin_pad, out)                  # (6272, 128)


def pad_bias(b, pad_to):
    return jnp.pad(b, (0, pad_to - b.shape[0])).reshape(1, pad_to)


# ------------------------------ forward pass --------------------------------

def cnn_forward(x_nchw, params):
    """Forward pass matching the PyTorch CNN module. Input: (N, 1, 28, 28)."""
    N = x_nchw.shape[0]
    x = x_nchw.reshape(N, 28, 28, 1)                        # NCHW -> NHWC (C=1)

    # Stage 1: conv1(1->32, padded to 128 ch) + ReLU + maxpool 2x2
    p1 = im2col_pool_grouped(x)                             # (4*G1, 9)
    p1 = pad_axis(p1, 1, K1_PAD)                            # (4*G1, 128) K aligned
    y1 = conv_relu_pool(p1, params["w1m"], params["b1"])    # (G1, 128)
    f1 = y1[: N * 14 * 14].reshape(N, 14, 14, LANES)        # padded ch are zero

    # Stage 2: conv2(32->64, padded 128->128 ch) + ReLU + maxpool 2x2
    p2 = im2col_pool_grouped(f1)                            # (4*G2, 1152)
    y2 = conv_relu_pool(p2, params["w2m"], params["b2"])    # (G2, 128)

    # Flatten: rows already in (n, h2*7+w2) order; fc1 weights were permuted.
    flat = y2[: N * 7 * 7].reshape(N, 7 * 7 * LANES)        # (N, 6272)
    Np = ((N + 7) // 8) * 8                                 # 8-align batch rows
    flat = pad_axis(flat, 0, Np)                            # (Np, 6272)

    # fc1 + ReLU + fc2 (output padded to 128 cols; valid logits are [:, :10])
    out = fc_forward(flat, params["fc1_w"], params["fc1_b"],
                     params["fc2_w"], params["fc2_b"])      # (Np, 128)
    return out[:N, :10]


def init_params(key):
    ks = jax.random.split(key, 8)
    conv1_w = jax.random.normal(ks[0], (32, 1, 3, 3), jnp.float32) * (1.0 / 3.0)
    conv1_b = jax.random.normal(ks[1], (32,), jnp.float32) * 0.05
    conv2_w = jax.random.normal(ks[2], (64, 32, 3, 3), jnp.float32) * (1.0 / 17.0)
    conv2_b = jax.random.normal(ks[3], (64,), jnp.float32) * 0.05
    fc1_w = jax.random.normal(ks[4], (64 * 7 * 7, 128), jnp.float32) * 0.018
    fc1_b = jax.random.normal(ks[5], (128,), jnp.float32) * 0.05
    fc2_w = jax.random.normal(ks[6], (128, 10), jnp.float32) * 0.088
    fc2_b = jax.random.normal(ks[7], (10,), jnp.float32) * 0.05
    return {
        # conv weights flattened & zero-padded to full (8,128) tiles; padding
        # carried into the next stage's K via zero rows (bit-exact).
        "w1m": pad_axis(pack_conv_weight(conv1_w, cin_pad=1, cout_pad=LANES),
                        0, K1_PAD),                                       # (128, 128)
        "b1": pad_bias(conv1_b, LANES),                                   # (1, 128)
        "w2m": pack_conv_weight(conv2_w, cin_pad=LANES, cout_pad=LANES),  # (1152, 128)
        "b2": pad_bias(conv2_b, LANES),                                   # (1, 128)
        "fc1_w": pack_fc1_weight(fc1_w),                                  # (6272, 128)
        "fc1_b": fc1_b.reshape(1, -1),                                    # (1, 128)
        "fc2_w": jnp.pad(fc2_w, ((0, 0), (0, LANES - fc2_w.shape[1]))),   # (128, 128)
        "fc2_b": pad_bias(fc2_b, LANES),                                  # (1, 128)
    }


if __name__ == "__main__":
    root = jax.random.PRNGKey(0)
    pkey, xkey = jax.random.split(root)
    params = init_params(pkey)
    # 28x28 input is implied by fc1 = Linear(64*7*7, 128) with two 2x2 pools.
    x = jax.random.normal(xkey, (2, 1, 28, 28), jnp.float32)

    fwd = jax.jit(cnn_forward)
    out = fwd(x, params)
    jax.block_until_ready(out)
    assert out.shape == (2, 10) and out.dtype == jnp.float32
    print("KERNEL_OK")
</pallas_src>

<mosaic_0001>
module attributes {stable_mosaic.version = 11 : i64} {
  func.func @conv_relu_pool_kernel(%arg0: memref<1568x128xf32, #tpu.memory_space<vmem>>, %arg1: memref<128x128xf32, #tpu.memory_space<vmem>>, %arg2: memref<1x128xf32, #tpu.memory_space<vmem>>, %arg3: memref<392x128xf32, #tpu.memory_space<vmem>>) attributes {dimension_semantics = [], scalar_prefetch = 0 : i64, scratch_operands = 0 : i64, tpu.core_type = #tpu.core_type<tc>} {
    %c0 = arith.constant 0 : index
    %c0_0 = arith.constant 0 : index
    %0 = vector.load %arg0[%c0, %c0_0] : memref<1568x128xf32, #tpu.memory_space<vmem>>, vector<1568x128xf32>
    %c0_1 = arith.constant 0 : index
    %c0_2 = arith.constant 0 : index
    %1 = vector.load %arg1[%c0_1, %c0_2] : memref<128x128xf32, #tpu.memory_space<vmem>>, vector<128x128xf32>
    %cst = arith.constant dense<0.000000e+00> : vector<1568x128xf32>
    %2 = tpu.matmul %0, %1, %cst {dimension_numbers = #tpu.dot_dimension_numbers<[1], [0], [0], [1], [0, 0, 1, 1], [], []>} : vector<1568x128xf32>, vector<128x128xf32>, vector<1568x128xf32> -> vector<1568x128xf32>
    %c0_3 = arith.constant 0 : index
    %c0_4 = arith.constant 0 : index
    %3 = vector.load %arg2[%c0_3, %c0_4] : memref<1x128xf32, #tpu.memory_space<vmem>>, vector<1x128xf32>
    %4 = vector.broadcast %3 : vector<1x128xf32> to vector<1568x128xf32>
    %5 = arith.addf %2, %4 : vector<1568x128xf32>
    %cst_5 = arith.constant 0.000000e+00 : f32
    %6 = vector.broadcast %cst_5 : f32 to vector<1568x128xf32>
    %7 = arith.maximumf %5, %6 : vector<1568x128xf32>
    %8 = vector.extract_strided_slice %7 {offsets = [0, 0], sizes = [392, 128], strides = [1, 1]} : vector<1568x128xf32> to vector<392x128xf32>
    %9 = vector.extract_strided_slice %7 {offsets = [392, 0], sizes = [392, 128], strides = [1, 1]} : vector<1568x128xf32> to vector<392x128xf32>
    %10 = arith.maximumf %8, %9 : vector<392x128xf32>
    %11 = vector.extract_strided_slice %7 {offsets = [784, 0], sizes = [392, 128], strides = [1, 1]} : vector<1568x128xf32> to vector<392x128xf32>
    %12 = vector.extract_strided_slice %7 {offsets = [1176, 0], sizes = [392, 128], strides = [1, 1]} : vector<1568x128xf32> to vector<392x128xf32>
    %13 = arith.maximumf %11, %12 : vector<392x128xf32>
    %14 = arith.maximumf %10, %13 : vector<392x128xf32>
    %c0_6 = arith.constant 0 : index
    %c0_7 = arith.constant 0 : index
    %15 = vector.load %arg3[%c0_6, %c0_7] : memref<392x128xf32, #tpu.memory_space<vmem>>, vector<392x128xf32>
    tpu.vector_store %arg3[%c0_6, %c0_7], %14 {strides = array<i32>} : memref<392x128xf32, #tpu.memory_space<vmem>>, vector<392x128xf32>,
    return
  }
}

module attributes {stable_mosaic.version = 11 : i64} {
  func.func @conv_relu_pool_kernel(%arg0: memref<416x1152xf32, #tpu.memory_space<vmem>>, %arg1: memref<1152x128xf32, #tpu.memory_space<vmem>>, %arg2: memref<1x128xf32, #tpu.memory_space<vmem>>, %arg3: memref<104x128xf32, #tpu.memory_space<vmem>>) attributes {dimension_semantics = [], scalar_prefetch = 0 : i64, scratch_operands = 0 : i64, tpu.core_type = #tpu.core_type<tc>} {
    %c0 = arith.constant 0 : index
    %c0_0 = arith.constant 0 : index
    %0 = vector.load %arg0[%c0, %c0_0] : memref<416x1152xf32, #tpu.memory_space<vmem>>, vector<416x1152xf32>
    %c0_1 = arith.constant 0 : index
    %c0_2 = arith.constant 0 : index
    %1 = vector.load %arg1[%c0_1, %c0_2] : memref<1152x128xf32, #tpu.memory_space<vmem>>, vector<1152x128xf32>
    %cst = arith.constant dense<0.000000e+00> : vector<416x128xf32>
    %2 = tpu.matmul %0, %1, %cst {dimension_numbers = #tpu.dot_dimension_numbers<[1], [0], [0], [1], [0, 0, 1, 1], [], []>} : vector<416x1152xf32>, vector<1152x128xf32>, vector<416x128xf32> -> vector<416x128xf32>
    %c0_3 = arith.constant 0 : index
    %c0_4 = arith.constant 0 : index
    %3 = vector.load %arg2[%c0_3, %c0_4] : memref<1x128xf32, #tpu.memory_space<vmem>>, vector<1x128xf32>
    %4 = vector.broadcast %3 : vector<1x128xf32> to vector<416x128xf32>
    %5 = arith.addf %2, %4 : vector<416x128xf32>
    %cst_5 = arith.constant 0.000000e+00 : f32
    %6 = vector.broadcast %cst_5 : f32 to vector<416x128xf32>
    %7 = arith.maximumf %5, %6 : vector<416x128xf32>
    %8 = vector.extract_strided_slice %7 {offsets = [0, 0], sizes = [104, 128], strides = [1, 1]} : vector<416x128xf32> to vector<104x128xf32>
    %9 = vector.extract_strided_slice %7 {offsets = [104, 0], sizes = [104, 128], strides = [1, 1]} : vector<416x128xf32> to vector<104x128xf32>
    %10 = arith.maximumf %8, %9 : vector<104x128xf32>
    %11 = vector.extract_strided_slice %7 {offsets = [208, 0], sizes = [104, 128], strides = [1, 1]} : vector<416x128xf32> to vector<104x128xf32>
    %12 = vector.extract_strided_slice %7 {offsets = [312, 0], sizes = [104, 128], strides = [1, 1]} : vector<416x128xf32> to vector<104x128xf32>
    %13 = arith.maximumf %11, %12 : vector<104x128xf32>
    %14 = arith.maximumf %10, %13 : vector<104x128xf32>
    %c0_6 = arith.constant 0 : index
    %c0_7 = arith.constant 0 : index
    %15 = vector.load %arg3[%c0_6, %c0_7] : memref<104x128xf32, #tpu.memory_space<vmem>>, vector<104x128xf32>
    tpu.vector_store %arg3[%c0_6, %c0_7], %14 {strides = array<i32>} : memref<104x128xf32, #tpu.memory_space<vmem>>, vector<104x128xf32>,
    return
  }
}

module attributes {stable_mosaic.version = 11 : i64} {
  func.func @fc_kernel(%arg0: memref<8x6272xf32, #tpu.memory_space<vmem>>, %arg1: memref<6272x128xf32, #tpu.memory_space<vmem>>, %arg2: memref<1x128xf32, #tpu.memory_space<vmem>>, %arg3: memref<128x128xf32, #tpu.memory_space<vmem>>, %arg4: memref<1x128xf32, #tpu.memory_space<vmem>>, %arg5: memref<8x128xf32, #tpu.memory_space<vmem>>) attributes {dimension_semantics = [], scalar_prefetch = 0 : i64, scratch_operands = 0 : i64, tpu.core_type = #tpu.core_type<tc>} {
    %c0 = arith.constant 0 : index
    %c0_0 = arith.constant 0 : index
    %0 = vector.load %arg0[%c0, %c0_0] : memref<8x6272xf32, #tpu.memory_space<vmem>>, vector<8x6272xf32>
    %c0_1 = arith.constant 0 : index
    %c0_2 = arith.constant 0 : index
    %1 = vector.load %arg1[%c0_1, %c0_2] : memref<6272x128xf32, #tpu.memory_space<vmem>>, vector<6272x128xf32>
    %cst = arith.constant dense<0.000000e+00> : vector<8x128xf32>
    %2 = tpu.matmul %0, %1, %cst {dimension_numbers = #tpu.dot_dimension_numbers<[1], [0], [0], [1], [0, 0, 1, 1], [], []>} : vector<8x6272xf32>, vector<6272x128xf32>, vector<8x128xf32> -> vector<8x128xf32>
    %c0_3 = arith.constant 0 : index
    %c0_4 = arith.constant 0 : index
    %3 = vector.load %arg2[%c0_3, %c0_4] : memref<1x128xf32, #tpu.memory_space<vmem>>, vector<1x128xf32>
    %4 = vector.broadcast %3 : vector<1x128xf32> to vector<8x128xf32>
    %5 = arith.addf %2, %4 : vector<8x128xf32>
    %cst_5 = arith.constant 0.000000e+00 : f32
    %6 = vector.broadcast %cst_5 : f32 to vector<8x128xf32>
    %7 = arith.maximumf %5, %6 : vector<8x128xf32>
    %c0_6 = arith.constant 0 : index
    %c0_7 = arith.constant 0 : index
    %8 = vector.load %arg3[%c0_6, %c0_7] : memref<128x128xf32, #tpu.memory_space<vmem>>, vector<128x128xf32>
    %cst_8 = arith.constant dense<0.000000e+00> : vector<8x128xf32>
    %9 = tpu.matmul %7, %8, %cst_8 {dimension_numbers = #tpu.dot_dimension_numbers<[1], [0], [0], [1], [0, 0, 1, 1], [], []>} : vector<8x128xf32>, vector<128x128xf32>, vector<8x128xf32> -> vector<8x128xf32>
    %c0_9 = arith.constant 0 : index
    %c0_10 = arith.constant 0 : index
    %10 = vector.load %arg4[%c0_9, %c0_10] : memref<1x128xf32, #tpu.memory_space<vmem>>, vector<1x128xf32>
    %11 = vector.broadcast %10 : vector<1x128xf32> to vector<8x128xf32>
    %12 = arith.addf %9, %11 : vector<8x128xf32>
    %c0_11 = arith.constant 0 : index
    %c0_12 = arith.constant 0 : index
    %13 = vector.load %arg5[%c0_11, %c0_12] : memref<8x128xf32, #tpu.memory_space<vmem>>, vector<8x128xf32>
    tpu.vector_store %arg5[%c0_11, %c0_12], %12 {strides = array<i32>} : memref<8x128xf32, #tpu.memory_space<vmem>>, vector<8x128xf32>,
    return
  }
}

</mosaic_0001>

<bundles_post_ra>
// kernel: cnn_forward.3
= control target key start
LH: loop header
LB: loop body
LE: loop exit
PB: predicated region body
PF: predicated region fallthrough
CT: control target
= control target key end

     0   :  { %s2288_s1 = inlined_call_operand.vmem [shape: f32[128,128], index: 1, kind: input, shape index: {}]   ;;  %s2289_s0 = inlined_call_operand.vmem [shape: f32[1568,128], index: 0, kind: input, shape index: {}]   ;;  %s2290_s2 = inlined_call_operand.vmem [shape: f32[1,128], index: 2, kind: input, shape index: {}]   ;;  %s2291_s3 = inlined_call_operand.vmem [shape: f32[392,128], index: 3, kind: output, shape index: {}]  }
   0x1   :  { %v225_v0 = vld [vmem:[%s2288_s1 + $0x78] sm:$0xff]  ;;  %v224_v1 = vld [vmem:[%s2288_s1 + $0x70] sm:$0xff]  ;;  %v223_v2 = vld [vmem:[%s2288_s1 + $0x68] sm:$0xff] }
   0x2   :  { %1232 = vmatpush.msra.mxu2 %v225_v0  ;;  %1233 = vmatpush.msra.mxu3 %v225_v0  ;;  %v222_v3 = vld [vmem:[%s2288_s1 + $0x60] sm:$0xff]  ;;  %v221_v4 = vld [vmem:[%s2288_s1 + $0x58] sm:$0xff]  ;;  %v220_v5 = vld [vmem:[%s2288_s1 + $0x50] sm:$0xff] }
   0x3   :  { %230 = vmatpush.msra.mxu0 %v225_v0  ;;  %1231 = vmatpush.msra.mxu1 %v225_v0  ;;  %v219_v6 = vld [vmem:[%s2288_s1 + $0x48] sm:$0xff]  ;;  %v218_v7 = vld [vmem:[%s2288_s1 + $0x40] sm:$0xff]  ;;  %v217_v8 = vld [vmem:[%s2288_s1 + $0x38] sm:$0xff] }
   0x4   :  { %1235 = vmatpush.msra.mxu2 %v224_v1  ;;  %1236 = vmatpush.msra.mxu3 %v224_v1  ;;  %v216_v9 = vld [vmem:[%s2288_s1 + $0x30] sm:$0xff]  ;;  %v215_v10 = vld [vmem:[%s2288_s1 + $0x28] sm:$0xff]  ;;  %v214_v11 = vld [vmem:[%s2288_s1 + $0x20] sm:$0xff] }
   0x5   :  { %231 = vmatpush.msra.mxu0 %v224_v1  ;;  %1234 = vmatpush.msra.mxu1 %v224_v1  ;;  %v213_v12 = vld [vmem:[%s2288_s1 + $0x18] sm:$0xff]  ;;  %v212_v13 = vld [vmem:[%s2288_s1 + $0x10] sm:$0xff]  ;;  %v211_v14 = vld [vmem:[%s2288_s1 + $0x8] sm:$0xff] }
   0x6   :  { %1238 = vmatpush.msra.mxu2 %v223_v2  ;;  %1239 = vmatpush.msra.mxu3 %v223_v2  ;;  %v210_v15 = vld [vmem:[%s2288_s1] sm:$0xff]  ;;  %v112_v16 = vld [vmem:[%s2289_s0 + $0x310] sm:$0xff]  ;;  %v161_v17 = vld [vmem:[%s2289_s0 + $0x498] sm:$0xff] }
   0x7   :  { %232 = vmatpush.msra.mxu0 %v223_v2  ;;  %1237 = vmatpush.msra.mxu1 %v223_v2  ;;  %v14_v18 = vld [vmem:[%s2289_s0] sm:$0xff]  ;;  %v63_v19 = vld [vmem:[%s2289_s0 + $0x188] sm:$0xff]  ;;  %v113_v20 = vld [vmem:[%s2289_s0 + $0x318] sm:$0xff] }
   0x8   :  { %1241 = vmatpush.msra.mxu2 %v222_v3  ;;  %1242 = vmatpush.msra.mxu3 %v222_v3  ;;  %v162_v21 = vld [vmem:[%s2289_s0 + $0x4a0] sm:$0xff]  ;;  %v15_v22 = vld [vmem:[%s2289_s0 + $0x8] sm:$0xff]  ;;  %v64_v23 = vld [vmem:[%s2289_s0 + $0x190] sm:$0xff] }
   0x9   :  { %233 = vmatpush.msra.mxu0 %v222_v3  ;;  %1240 = vmatpush.msra.mxu1 %v222_v3  ;;  %v114_v24 = vld [vmem:[%s2289_s0 + $0x320] sm:$0xff]  ;;  %v163_v25 = vld [vmem:[%s2289_s0 + $0x4a8] sm:$0xff]  ;;  %v16_v26 = vld [vmem:[%s2289_s0 + $0x10] sm:$0xff] }
   0xa   :  { %1244 = vmatpush.msra.mxu2 %v221_v4  ;;  %1245 = vmatpush.msra.mxu3 %v221_v4  ;;  %v65_v27 = vld [vmem:[%s2289_s0 + $0x198] sm:$0xff]  ;;  %v115_v28 = vld [vmem:[%s2289_s0 + $0x328] sm:$0xff]  ;;  %v164_v29 = vld [vmem:[%s2289_s0 + $0x4b0] sm:$0xff] }
   0xb   :  { %234 = vmatpush.msra.mxu0 %v221_v4  ;;  %1243 = vmatpush.msra.mxu1 %v221_v4  ;;  %v17_v30 = vld [vmem:[%s2289_s0 + $0x18] sm:$0xff]  ;;  %v66_v31 = vld [vmem:[%s2289_s0 + $0x1a0] sm:$0xff]  ;;  %v116_v32 = vld [vmem:[%s2289_s0 + $0x330] sm:$0xff] }
   0xc   :  { %1247 = vmatpush.msra.mxu2 %v220_v5  ;;  %1248 = vmatpush.msra.mxu3 %v220_v5  ;;  %v165_v33 = vld [vmem:[%s2289_s0 + $0x4b8] sm:$0xff]  ;;  %v18_v34 = vld [vmem:[%s2289_s0 + $0x20] sm:$0xff]  ;;  %v67_v35 = vld [vmem:[%s2289_s0 + $0x1a8] sm:$0xff] }
   0xd   :  { %235 = vmatpush.msra.mxu0 %v220_v5  ;;  %1246 = vmatpush.msra.mxu1 %v220_v5  ;;  %v117_v36 = vld [vmem:[%s2289_s0 + $0x338] sm:$0xff]  ;;  %v166_v37 = vld [vmem:[%s2289_s0 + $0x4c0] sm:$0xff]  ;;  %v19_v38 = vld [vmem:[%s2289_s0 + $0x28] sm:$0xff] }
   0xe   :  { %1250 = vmatpush.msra.mxu2 %v219_v6  ;;  %1251 = vmatpush.msra.mxu3 %v219_v6  ;;  %v68_v39 = vld [vmem:[%s2289_s0 + $0x1b0] sm:$0xff]  ;;  %v118_v40 = vld [vmem:[%s2289_s0 + $0x340] sm:$0xff]  ;;  %v167_v41 = vld [vmem:[%s2289_s0 + $0x4c8] sm:$0xff] }
   0xf   :  { %236 = vmatpush.msra.mxu0 %v219_v6  ;;  %1249 = vmatpush.msra.mxu1 %v219_v6  ;;  %v20_v42 = vld [vmem:[%s2289_s0 + $0x30] sm:$0xff]  ;;  %v69_v43 = vld [vmem:[%s2289_s0 + $0x1b8] sm:$0xff]  ;;  %v119_v44 = vld [vmem:[%s2289_s0 + $0x348] sm:$0xff] }
  0x10   :  { %1253 = vmatpush.msra.mxu2 %v218_v7  ;;  %1254 = vmatpush.msra.mxu3 %v218_v7  ;;  %v168_v45 = vld [vmem:[%s2289_s0 + $0x4d0] sm:$0xff]  ;;  %v21_v46 = vld [vmem:[%s2289_s0 + $0x38] sm:$0xff]  ;;  %v70_v47 = vld [vmem:[%s2289_s0 + $0x1c0] sm:$0xff] }
  0x11   :  { %237 = vmatpush.msra.mxu0 %v218_v7  ;;  %1252 = vmatpush.msra.mxu1 %v218_v7  ;;  %v120_v48 = vld [vmem:[%s2289_s0 + $0x350] sm:$0xff]  ;;  %v169_v49 = vld [vmem:[%s2289_s0 + $0x4d8] sm:$0xff]  ;;  %v22_v50 = vld [vmem:[%s2289_s0 + $0x40] sm:$0xff] }
  0x12   :  { %1256 = vmatpush.msra.mxu2 %v217_v8  ;;  %1257 = vmatpush.msra.mxu3 %v217_v8  ;;  %v71_v51 = vld [vmem:[%s2289_s0 + $0x1c8] sm:$0xff]  ;;  %v121_v52 = vld [vmem:[%s2289_s0 + $0x358] sm:$0xff]  ;;  %v170_v53 = vld [vmem:[%s2289_s0 + $0x4e0] sm:$0xff] }
  0x13   :  { %238 = vmatpush.msra.mxu0 %v217_v8  ;;  %1255 = vmatpush.msra.mxu1 %v217_v8  ;;  %v23_v54 = vld [vmem:[%s2289_s0 + $0x48] sm:$0xff]  ;;  %v72_v55 = vld [vmem:[%s2289_s0 + $0x1d0] sm:$0xff]  ;;  %v122_v56 = vld [vmem:[%s2289_s0 + $0x360] sm:$0xff] }
  0x14   :  { %1259 = vmatpush.msra.mxu2 %v216_v9  ;;  %1260 = vmatpush.msra.mxu3 %v216_v9  ;;  %v171_v57 = vld [vmem:[%s2289_s0 + $0x4e8] sm:$0xff]  ;;  %v24_v58 = vld [vmem:[%s2289_s0 + $0x50] sm:$0xff]  ;;  %v73_v59 = vld [vmem:[%s2289_s0 + $0x1d8] sm:$0xff] }
  0x15   :  { %239 = vmatpush.msra.mxu0 %v216_v9  ;;  %1258 = vmatpush.msra.mxu1 %v216_v9  ;;  %v123_v60 = vld [vmem:[%s2289_s0 + $0x368] sm:$0xff]  ;;  %v172_v61 = vld [vmem:[%s2289_s0 + $0x4f0] sm:$0xff]  ;;  %v25_v62 = vld [vmem:[%s2289_s0 + $0x58] sm:$0xff] }
  0x16   :  { %1262 = vmatpush.msra.mxu2 %v215_v10  ;;  %1263 = vmatpush.msra.mxu3 %v215_v10  ;;  %v74_v63 = vld [vmem:[%s2289_s0 + $0x1e0] sm:$0xff]  ;;  %v124_v0 = vld [vmem:[%s2289_s0 + $0x370] sm:$0xff]  ;;  %v173_v1 = vld [vmem:[%s2289_s0 + $0x4f8] sm:$0xff] }
  0x17   :  { %240 = vmatpush.msra.mxu0 %v215_v10  ;;  %1261 = vmatpush.msra.mxu1 %v215_v10  ;;  %v26_v2 = vld [vmem:[%s2289_s0 + $0x60] sm:$0xff]  ;;  %v75_v3 = vld [vmem:[%s2289_s0 + $0x1e8] sm:$0xff]  ;;  %v125_v4 = vld [vmem:[%s2289_s0 + $0x378] sm:$0xff] }
  0x18   :  { %1265 = vmatpush.msra.mxu2 %v214_v11  ;;  %1266 = vmatpush.msra.mxu3 %v214_v11  ;;  %v174_v5 = vld [vmem:[%s2289_s0 + $0x500] sm:$0xff]  ;;  %v27_v6 = vld [vmem:[%s2289_s0 + $0x68] sm:$0xff]  ;;  %v76_v7 = vld [vmem:[%s2289_s0 + $0x1f0] sm:$0xff] }
  0x19   :  { %241 = vmatpush.msra.mxu0 %v214_v11  ;;  %1264 = vmatpush.msra.mxu1 %v214_v11  ;;  %v126_v8 = vld [vmem:[%s2289_s0 + $0x380] sm:$0xff]  ;;  %v175_v9 = vld [vmem:[%s2289_s0 + $0x508] sm:$0xff]  ;;  %v28_v10 = vld [vmem:[%s2289_s0 + $0x70] sm:$0xff] }
  0x1a   :  { %1268 = vmatpush.msra.mxu2 %v213_v12  ;;  %1269 = vmatpush.msra.mxu3 %v213_v12  ;;  %v77_v11 = vld [vmem:[%s2289_s0 + $0x1f8] sm:$0xff] }
  0x1b   :  { %242 = vmatpush.msra.mxu0 %v213_v12  ;;  %1267 = vmatpush.msra.mxu1 %v213_v12  ;;  %v127_v12 = vld [vmem:[%s2289_s0 + $0x388] sm:$0xff] }
  0x1c   :  { %1271 = vmatpush.msra.mxu2 %v212_v13  ;;  %1272 = vmatpush.msra.mxu3 %v212_v13 }
  0x1d   :  { %243 = vmatpush.msra.mxu0 %v212_v13  ;;  %1270 = vmatpush.msra.mxu1 %v212_v13  ;;  %v176_v13 = vld [vmem:[%s2289_s0 + $0x510] sm:$0xff] }
  0x1e   :  { %1274 = vmatpush.msra.mxu2 %v211_v14  ;;  %1275 = vmatpush.msra.mxu3 %v211_v14 }
  0x1f   :  { %244 = vmatpush.msra.mxu0 %v211_v14  ;;  %1273 = vmatpush.msra.mxu1 %v211_v14  ;;  %v29_v14 = vld [vmem:[%s2289_s0 + $0x78] sm:$0xff] }
  0x20   :  { %1277 = vmatpush.msra.mxu2 %v210_v15  ;;  %1278 = vmatpush.msra.mxu3 %v210_v15 }
  0x21   :  { %540 = vmatmul.f32.vlgmr.msra.gmra.mxu2 %v112_v16  ;;  %687 = vmatmul.f32.vlgmr.msra.gmra.mxu3 %v161_v17  ;;  %v1545_v16 = vld [vmem:[%s2290_s2] ss:$0 sm:$0xff]  ;;  %v128_v17 = vld [vmem:[%s2289_s0 + $0x390] sm:$0xff] }
  0x22   :  { %245 = vmatpush.msra.mxu0 %v210_v15  ;;  %1276 = vmatpush.msra.mxu1 %v210_v15  ;;  %v78_v15 = vld [vmem:[%s2289_s0 + $0x200] sm:$0xff] }
  0x23   :  { %246 = vmatmul.f32.vlgmr.msra.gmra.mxu0 %v14_v18  ;;  %393 = vmatmul.f32.vlgmr.msra.gmra.mxu1 %v63_v19  ;;  %v177_v18 = vld [vmem:[%s2289_s0 + $0x518] sm:$0xff] }
  0x29   :  { %543 = vmatmul.f32.gmra.mxu2 %v113_v20  ;;  %690 = vmatmul.f32.gmra.mxu3 %v162_v21  ;;  %v30_v21 = vld [vmem:[%s2289_s0 + $0x80] sm:$0xff] }
  0x2b   :  { %249 = vmatmul.f32.gmra.mxu0 %v15_v22  ;;  %396 = vmatmul.f32.gmra.mxu1 %v64_v23  ;;  %v79_v22 = vld [vmem:[%s2289_s0 + $0x208] sm:$0xff] }
  0x31   :  { %546 = vmatmul.f32.gmra.mxu2 %v114_v24  ;;  %693 = vmatmul.f32.gmra.mxu3 %v163_v25 }
  0x33   :  { %252 = vmatmul.f32.gmra.mxu0 %v16_v26  ;;  %399 = vmatmul.f32.gmra.mxu1 %v65_v27 }
  0x39   :  { %549 = vmatmul.f32.gmra.mxu2 %v115_v28  ;;  %696 = vmatmul.f32.gmra.mxu3 %v164_v29 }
  0x3b   :  { %255 = vmatmul.f32.gmra.mxu0 %v17_v30  ;;  %402 = vmatmul.f32.gmra.mxu1 %v66_v31  ;;  %v129_v31 = vld [vmem:[%s2289_s0 + $0x398] sm:$0xff] }
  0x41   :  { %552 = vmatmul.f32.gmra.mxu2 %v116_v32  ;;  %699 = vmatmul.f32.gmra.mxu3 %v165_v33  ;;  %v178_v32 = vld [vmem:[%s2289_s0 + $0x520] sm:$0xff] }
  0x43   :  { %258 = vmatmul.f32.gmra.mxu0 %v18_v34  ;;  %405 = vmatmul.f32.gmra.mxu1 %v67_v35 }
  0x49   :  { %555 = vmatmul.f32.gmra.mxu2 %v117_v36  ;;  %702 = vmatmul.f32.gmra.mxu3 %v166_v37 }
  0x4b   :  { %261 = vmatmul.f32.gmra.mxu0 %v19_v38  ;;  %408 = vmatmul.f32.gmra.mxu1 %v68_v39  ;;  %v31_v38 = vld [vmem:[%s2289_s0 + $0x88] sm:$0xff]  ;;  %v80_v39 = vld [vmem:[%s2289_s0 + $0x210] sm:$0xff] }
  0x51   :  { %558 = vmatmul.f32.gmra.mxu2 %v118_v40  ;;  %705 = vmatmul.f32.gmra.mxu3 %v167_v41 }
  0x53   :  { %264 = vmatmul.f32.gmra.mxu0 %v20_v42  ;;  %411 = vmatmul.f32.gmra.mxu1 %v69_v43 }
  0x59   :  { %561 = vmatmul.f32.gmra.mxu2 %v119_v44  ;;  %708 = vmatmul.f32.gmra.mxu3 %v168_v45 }
  0x5b   :  { %267 = vmatmul.f32.gmra.mxu0 %v21_v46  ;;  %414 = vmatmul.f32.gmra.mxu1 %v70_v47 }
  0x61   :  { %564 = vmatmul.f32.gmra.mxu2 %v120_v48  ;;  %711 = vmatmul.f32.gmra.mxu3 %v169_v49 }
  0x63   :  { %270 = vmatmul.f32.gmra.mxu0 %v22_v50  ;;  %417 = vmatmul.f32.gmra.mxu1 %v71_v51  ;;  %v130_v50 = vld [vmem:[%s2289_s0 + $0x3a0] sm:$0xff]  ;;  %v179_v51 = vld [vmem:[%s2289_s0 + $0x528] sm:$0xff] }
  0x69   :  { %567 = vmatmul.f32.gmra.mxu2 %v121_v52  ;;  %714 = vmatmul.f32.gmra.mxu3 %v170_v53 }
  0x6b   :  { %273 = vmatmul.f32.gmra.mxu0 %v23_v54  ;;  %420 = vmatmul.f32.gmra.mxu1 %v72_v55 }
  0x71   :  { %570 = vmatmul.f32.gmra.mxu2 %v122_v56  ;;  %717 = vmatmul.f32.gmra.mxu3 %v171_v57  ;;  %v32_v57 = vld [vmem:[%s2289_s0 + $0x90] sm:$0xff] }
  0x73   :  { %276 = vmatmul.f32.gmra.mxu0 %v24_v58  ;;  %423 = vmatmul.f32.gmra.mxu1 %v73_v59  ;;  %v81_v58 = vld [vmem:[%s2289_s0 + $0x218] sm:$0xff] }
  0x79   :  { %573 = vmatmul.f32.gmra.mxu2 %v123_v60  ;;  %720 = vmatmul.f32.gmra.mxu3 %v172_v61 }
  0x7b   :  { %279 = vmatmul.f32.gmra.mxu0 %v25_v62  ;;  %426 = vmatmul.f32.gmra.mxu1 %v74_v63 }
  0x81   :  { %576 = vmatmul.f32.gmra.mxu2 %v124_v0  ;;  %723 = vmatmul.f32.gmra.mxu3 %v173_v1 }
  0x83   :  { %282 = vmatmul.f32.gmra.mxu0 %v26_v2  ;;  %429 = vmatmul.f32.gmra.mxu1 %v75_v3 }
  0x89   :  { %579 = vmatmul.f32.gmra.mxu2 %v125_v4  ;;  %726 = vmatmul.f32.gmra.mxu3 %v174_v5  ;;  %v131_v5 = vld [vmem:[%s2289_s0 + $0x3a8] sm:$0xff] }
  0x8b   :  { %285 = vmatmul.f32.gmra.mxu0 %v27_v6  ;;  %432 = vmatmul.f32.gmra.mxu1 %v76_v7  ;;  %v180_v6 = vld [vmem:[%s2289_s0 + $0x530] sm:$0xff] }
  0x91   :  { %582 = vmatmul.f32.gmra.mxu2 %v126_v8  ;;  %729 = vmatmul.f32.gmra.mxu3 %v175_v9 }
  0x93   :  { %288 = vmatmul.f32.gmra.mxu0 %v28_v10  ;;  %435 = vmatmul.f32.gmra.mxu1 %v77_v11 }
  0x99   :  { %585 = vmatmul.f32.gmra.mxu2 %v127_v12  ;;  %732 = vmatmul.f32.gmra.mxu3 %v176_v13  ;;  %v33_v12 = vld [vmem:[%s2289_s0 + $0x98] sm:$0xff]  ;;  %v82_v13 = vld [vmem:[%s2289_s0 + $0x220] sm:$0xff] }
  0x9b   :  { %291 = vmatmul.f32.gmra.mxu0 %v29_v14  ;;  %438 = vmatmul.f32.gmra.mxu1 %v78_v15 }
  0xa0   :  { %v247_v19 = vpop.f32.mrf.mxu0  ;;  %v394_v20 = vpop.f32.mrf.mxu1 }
  0xa1   :  { %588 = vmatmul.f32.gmra.mxu2 %v128_v17  ;;  %735 = vmatmul.f32.gmra.mxu3 %v177_v18  ;;  %v248_v23 = vadd.f32 %v1545_v16, %v247_v19  ;;  %v395_v24 = vadd.f32 %v1545_v16, %v394_v20 }
  0xa3   :  { %v835_v25 = vmax.f32 %v248_v23, 0.0  ;;  %v884_v26 = vmax.f32 %v395_v24, 0.0  ;;  %294 = vmatmul.f32.gmra.mxu0 %v30_v21  ;;  %441 = vmatmul.f32.gmra.mxu1 %v79_v22 }
  0xa4   :  { %v541_v27 = vpop.f32.mrf.mxu2  ;;  %v688_v28 = vpop.f32.mrf.mxu3 }
  0xa5   :  { %v542_v29 = vadd.f32 %v1545_v16, %v541_v27  ;;  %v689_v30 = vadd.f32 %v1545_v16, %v688_v28  ;;  %v1031_v33 = vmax.f32 %v835_v25, %v884_v26  ;;  %v132_v25 = vld [vmem:[%s2289_s0 + $0x3b0] sm:$0xff]  ;;  %v181_v26 = vld [vmem:[%s2289_s0 + $0x538] sm:$0xff] }
  0xa7   :  { %v933_v34 = vmax.f32 %v542_v29, 0.0  ;;  %v982_v35 = vmax.f32 %v689_v30, 0.0 }
  0xa8   :  { %v250_v36 = vpop.f32.mrf.mxu0  ;;  %v397_v37 = vpop.f32.mrf.mxu1 }
  0xa9   :  { %v1080_v40 = vmax.f32 %v933_v34, %v982_v35  ;;  %591 = vmatmul.f32.gmra.mxu2 %v129_v31  ;;  %738 = vmatmul.f32.gmra.mxu3 %v178_v32  ;;  %v251_v41 = vadd.f32 %v1545_v16, %v250_v36  ;;  %v398_v42 = vadd.f32 %v1545_v16, %v397_v37  ;;  %v34_v32 = vld [vmem:[%s2289_s0 + $0xa0] sm:$0xff] }
  0xab   :  { %v1129_v43 = vmax.f32 %v1031_v33, %v1080_v40  ;;  %v836_v44 = vmax.f32 %v251_v41, 0.0  ;;  %v885_v45 = vmax.f32 %v398_v42, 0.0  ;;  %297 = vmatmul.f32.gmra.mxu0 %v31_v38  ;;  %444 = vmatmul.f32.gmra.mxu1 %v80_v39  ;;  %v83_v33 = vld [vmem:[%s2289_s0 + $0x228] sm:$0xff] }
  0xac   :  { %v544_v46 = vpop.f32.mrf.mxu2  ;;  %v691_v47 = vpop.f32.mrf.mxu3 }
  0xad   :  { %1178 = vst [vmem:[%s2291_s3] sm:$0xff] %v1129_v43  ;;  %v545_v48 = vadd.f32 %v1545_v16, %v544_v46  ;;  %v692_v49 = vadd.f32 %v1545_v16, %v691_v47  ;;  %v1032_v52 = vmax.f32 %v836_v44, %v885_v45  ;;  %v133_v44 = vld [vmem:[%s2289_s0 + $0x3b8] sm:$0xff]  ;;  %v182_v45 = vld [vmem:[%s2289_s0 + $0x540] sm:$0xff] }
  0xaf   :  { %v934_v53 = vmax.f32 %v545_v48, 0.0  ;;  %v983_v54 = vmax.f32 %v692_v49, 0.0 }
  0xb0   :  { %v253_v55 = vpop.f32.mrf.mxu0  ;;  %v400_v56 = vpop.f32.mrf.mxu1 }
  0xb1   :  { %v1081_v59 = vmax.f32 %v934_v53, %v983_v54  ;;  %594 = vmatmul.f32.gmra.mxu2 %v130_v50  ;;  %741 = vmatmul.f32.gmra.mxu3 %v179_v51  ;;  %v254_v60 = vadd.f32 %v1545_v16, %v253_v55  ;;  %v401_v61 = vadd.f32 %v1545_v16, %v400_v56  ;;  %v35_v51 = vld [vmem:[%s2289_s0 + $0xa8] sm:$0xff] }
  0xb3   :  { %v1130_v62 = vmax.f32 %v1032_v52, %v1081_v59  ;;  %v837_v63 = vmax.f32 %v254_v60, 0.0  ;;  %v886_v0 = vmax.f32 %v401_v61, 0.0  ;;  %300 = vmatmul.f32.gmra.mxu0 %v32_v57  ;;  %447 = vmatmul.f32.gmra.mxu1 %v81_v58  ;;  %v84_v52 = vld [vmem:[%s2289_s0 + $0x230] sm:$0xff] }
  0xb4   :  { %v547_v1 = vpop.f32.mrf.mxu2  ;;  %v694_v2 = vpop.f32.mrf.mxu3 }
  0xb5   :  { %1179 = vst [vmem:[%s2291_s3 + $0x8] sm:$0xff] %v1130_v62  ;;  %v548_v3 = vadd.f32 %v1545_v16, %v547_v1  ;;  %v695_v4 = vadd.f32 %v1545_v16, %v694_v2  ;;  %v1033_v7 = vmax.f32 %v837_v63, %v886_v0  ;;  %v134_v63 = vld [vmem:[%s2289_s0 + $0x3c0] sm:$0xff]  ;;  %v183_v0 = vld [vmem:[%s2289_s0 + $0x548] sm:$0xff] }
  0xb7   :  { %v935_v8 = vmax.f32 %v548_v3, 0.0  ;;  %v984_v9 = vmax.f32 %v695_v4, 0.0 }
  0xb8   :  { %v256_v10 = vpop.f32.mrf.mxu0  ;;  %v403_v11 = vpop.f32.mrf.mxu1 }
  0xb9   :  { %v1082_v14 = vmax.f32 %v935_v8, %v984_v9  ;;  %597 = vmatmul.f32.gmra.mxu2 %v131_v5  ;;  %744 = vmatmul.f32.gmra.mxu3 %v180_v6  ;;  %v257_v15 = vadd.f32 %v1545_v16, %v256_v10  ;;  %v404_v17 = vadd.f32 %v1545_v16, %v403_v11  ;;  %v36_v6 = vld [vmem:[%s2289_s0 + $0xb0] sm:$0xff] }
  0xbb   :  { %v1131_v18 = vmax.f32 %v1033_v7, %v1082_v14  ;;  %v838_v19 = vmax.f32 %v257_v15, 0.0  ;;  %v887_v20 = vmax.f32 %v404_v17, 0.0  ;;  %303 = vmatmul.f32.gmra.mxu0 %v33_v12  ;;  %450 = vmatmul.f32.gmra.mxu1 %v82_v13  ;;  %v85_v7 = vld [vmem:[%s2289_s0 + $0x238] sm:$0xff] }
  0xbc   :  { %v550_v21 = vpop.f32.mrf.mxu2  ;;  %v697_v22 = vpop.f32.mrf.mxu3 }
  0xbd   :  { %1180 = vst [vmem:[%s2291_s3 + $0x10] sm:$0xff] %v1131_v18  ;;  %v551_v23 = vadd.f32 %v1545_v16, %v550_v21  ;;  %v698_v24 = vadd.f32 %v1545_v16, %v697_v22  ;;  %v1034_v27 = vmax.f32 %v838_v19, %v887_v20  ;;  %v135_v19 = vld [vmem:[%s2289_s0 + $0x3c8] sm:$0xff]  ;;  %v184_v20 = vld [vmem:[%s2289_s0 + $0x550] sm:$0xff] }
  0xbf   :  { %v936_v28 = vmax.f32 %v551_v23, 0.0  ;;  %v985_v29 = vmax.f32 %v698_v24, 0.0 }
  0xc0   :  { %v259_v30 = vpop.f32.mrf.mxu0  ;;  %v406_v31 = vpop.f32.mrf.mxu1 }
  0xc1   :  { %v1083_v34 = vmax.f32 %v936_v28, %v985_v29  ;;  %600 = vmatmul.f32.gmra.mxu2 %v132_v25  ;;  %747 = vmatmul.f32.gmra.mxu3 %v181_v26  ;;  %v260_v35 = vadd.f32 %v1545_v16, %v259_v30  ;;  %v407_v36 = vadd.f32 %v1545_v16, %v406_v31  ;;  %v37_v26 = vld [vmem:[%s2289_s0 + $0xb8] sm:$0xff] }
  0xc3   :  { %v1132_v37 = vmax.f32 %v1034_v27, %v1083_v34  ;;  %v839_v38 = vmax.f32 %v260_v35, 0.0  ;;  %v888_v39 = vmax.f32 %v407_v36, 0.0  ;;  %306 = vmatmul.f32.gmra.mxu0 %v34_v32  ;;  %453 = vmatmul.f32.gmra.mxu1 %v83_v33  ;;  %v86_v27 = vld [vmem:[%s2289_s0 + $0x240] sm:$0xff] }
  0xc4   :  { %v553_v40 = vpop.f32.mrf.mxu2  ;;  %v700_v41 = vpop.f32.mrf.mxu3 }
  0xc5   :  { %1181 = vst [vmem:[%s2291_s3 + $0x18] sm:$0xff] %v1132_v37  ;;  %v554_v42 = vadd.f32 %v1545_v16, %v553_v40  ;;  %v701_v43 = vadd.f32 %v1545_v16, %v700_v41  ;;  %v1035_v46 = vmax.f32 %v839_v38, %v888_v39  ;;  %v136_v38 = vld [vmem:[%s2289_s0 + $0x3d0] sm:$0xff]  ;;  %v185_v39 = vld [vmem:[%s2289_s0 + $0x558] sm:$0xff] }
  0xc7   :  { %v937_v47 = vmax.f32 %v554_v42, 0.0  ;;  %v986_v48 = vmax.f32 %v701_v43, 0.0 }
  0xc8   :  { %v262_v49 = vpop.f32.mrf.mxu0  ;;  %v409_v50 = vpop.f32.mrf.mxu1 }
  0xc9   :  { %v1084_v53 = vmax.f32 %v937_v47, %v986_v48  ;;  %603 = vmatmul.f32.gmra.mxu2 %v133_v44  ;;  %750 = vmatmul.f32.gmra.mxu3 %v182_v45  ;;  %v263_v54 = vadd.f32 %v1545_v16, %v262_v49  ;;  %v410_v55 = vadd.f32 %v1545_v16, %v409_v50  ;;  %v38_v45 = vld [vmem:[%s2289_s0 + $0xc0] sm:$0xff] }
  0xcb   :  { %v1133_v56 = vmax.f32 %v1035_v46, %v1084_v53  ;;  %v840_v57 = vmax.f32 %v263_v54, 0.0  ;;  %v889_v58 = vmax.f32 %v410_v55, 0.0  ;;  %309 = vmatmul.f32.gmra.mxu0 %v35_v51  ;;  %456 = vmatmul.f32.gmra.mxu1 %v84_v52  ;;  %v87_v46 = vld [vmem:[%s2289_s0 + $0x248] sm:$0xff] }
  0xcc   :  { %v556_v59 = vpop.f32.mrf.mxu2  ;;  %v703_v60 = vpop.f32.mrf.mxu3 }
  0xcd   :  { %1182 = vst [vmem:[%s2291_s3 + $0x20] sm:$0xff] %v1133_v56  ;;  %v557_v61 = vadd.f32 %v1545_v16, %v556_v59  ;;  %v704_v62 = vadd.f32 %v1545_v16, %v703_v60  ;;  %v1036_v1 = vmax.f32 %v840_v57, %v889_v58  ;;  %v137_v57 = vld [vmem:[%s2289_s0 + $0x3d8] sm:$0xff]  ;;  %v186_v58 = vld [vmem:[%s2289_s0 + $0x560] sm:$0xff] }
  0xcf   :  { %v938_v2 = vmax.f32 %v557_v61, 0.0  ;;  %v987_v3 = vmax.f32 %v704_v62, 0.0 }
  0xd0   :  { %v265_v4 = vpop.f32.mrf.mxu0  ;;  %v412_v5 = vpop.f32.mrf.mxu1 }
  0xd1   :  { %v1085_v8 = vmax.f32 %v938_v2, %v987_v3  ;;  %606 = vmatmul.f32.gmra.mxu2 %v134_v63  ;;  %753 = vmatmul.f32.gmra.mxu3 %v183_v0  ;;  %v266_v9 = vadd.f32 %v1545_v16, %v265_v4  ;;  %v413_v10 = vadd.f32 %v1545_v16, %v412_v5  ;;  %v39_v0 = vld [vmem:[%s2289_s0 + $0xc8] sm:$0xff] }
  0xd3   :  { %v1134_v11 = vmax.f32 %v1036_v1, %v1085_v8  ;;  %v841_v12 = vmax.f32 %v266_v9, 0.0  ;;  %v890_v13 = vmax.f32 %v413_v10, 0.0  ;;  %312 = vmatmul.f32.gmra.mxu0 %v36_v6  ;;  %459 = vmatmul.f32.gmra.mxu1 %v85_v7  ;;  %v88_v1 = vld [vmem:[%s2289_s0 + $0x250] sm:$0xff] }
  0xd4   :  { %v559_v14 = vpop.f32.mrf.mxu2  ;;  %v706_v15 = vpop.f32.mrf.mxu3 }
  0xd5   :  { %1183 = vst [vmem:[%s2291_s3 + $0x28] sm:$0xff] %v1134_v11  ;;  %v560_v17 = vadd.f32 %v1545_v16, %v559_v14  ;;  %v707_v18 = vadd.f32 %v1545_v16, %v706_v15  ;;  %v1037_v21 = vmax.f32 %v841_v12, %v890_v13  ;;  %v138_v12 = vld [vmem:[%s2289_s0 + $0x3e0] sm:$0xff]  ;;  %v187_v13 = vld [vmem:[%s2289_s0 + $0x568] sm:$0xff] }
  0xd7   :  { %v939_v22 = vmax.f32 %v560_v17, 0.0  ;;  %v988_v23 = vmax.f32 %v707_v18, 0.0 }
  0xd8   :  { %v268_v24 = vpop.f32.mrf.mxu0  ;;  %v415_v25 = vpop.f32.mrf.mxu1 }
  0xd9   :  { %v1086_v28 = vmax.f32 %v939_v22, %v988_v23  ;;  %609 = vmatmul.f32.gmra.mxu2 %v135_v19  ;;  %756 = vmatmul.f32.gmra.mxu3 %v184_v20  ;;  %v269_v29 = vadd.f32 %v1545_v16, %v268_v24  ;;  %v416_v30 = vadd.f32 %v1545_v16, %v415_v25  ;;  %v40_v20 = vld [vmem:[%s2289_s0 + $0xd0] sm:$0xff] }
  0xdb   :  { %v1135_v31 = vmax.f32 %v1037_v21, %v1086_v28  ;;  %v842_v32 = vmax.f32 %v269_v29, 0.0  ;;  %v891_v33 = vmax.f32 %v416_v30, 0.0  ;;  %315 = vmatmul.f32.gmra.mxu0 %v37_v26  ;;  %462 = vmatmul.f32.gmra.mxu1 %v86_v27  ;;  %v89_v21 = vld [vmem:[%s2289_s0 + $0x258] sm:$0xff] }
  0xdc   :  { %v562_v34 = vpop.f32.mrf.mxu2  ;;  %v709_v35 = vpop.f32.mrf.mxu3 }
  0xdd   :  { %1184 = vst [vmem:[%s2291_s3 + $0x30] sm:$0xff] %v1135_v31  ;;  %v563_v36 = vadd.f32 %v1545_v16, %v562_v34  ;;  %v710_v37 = vadd.f32 %v1545_v16, %v709_v35  ;;  %v1038_v40 = vmax.f32 %v842_v32, %v891_v33  ;;  %v139_v32 = vld [vmem:[%s2289_s0 + $0x3e8] sm:$0xff]  ;;  %v188_v33 = vld [vmem:[%s2289_s0 + $0x570] sm:$0xff] }
  0xdf   :  { %v940_v41 = vmax.f32 %v563_v36, 0.0  ;;  %v989_v42 = vmax.f32 %v710_v37, 0.0 }
  0xe0   :  { %v271_v43 = vpop.f32.mrf.mxu0  ;;  %v418_v44 = vpop.f32.mrf.mxu1 }
  0xe1   :  { %v1087_v47 = vmax.f32 %v940_v41, %v989_v42  ;;  %612 = vmatmul.f32.gmra.mxu2 %v136_v38  ;;  %759 = vmatmul.f32.gmra.mxu3 %v185_v39  ;;  %v272_v48 = vadd.f32 %v1545_v16, %v271_v43  ;;  %v419_v49 = vadd.f32 %v1545_v16, %v418_v44  ;;  %v41_v39 = vld [vmem:[%s2289_s0 + $0xd8] sm:$0xff] }
  0xe3   :  { %v1136_v50 = vmax.f32 %v1038_v40, %v1087_v47  ;;  %v843_v51 = vmax.f32 %v272_v48, 0.0  ;;  %v892_v52 = vmax.f32 %v419_v49, 0.0  ;;  %318 = vmatmul.f32.gmra.mxu0 %v38_v45  ;;  %465 = vmatmul.f32.gmra.mxu1 %v87_v46  ;;  %v90_v40 = vld [vmem:[%s2289_s0 + $0x260] sm:$0xff] }
  0xe4   :  { %v565_v53 = vpop.f32.mrf.mxu2  ;;  %v712_v54 = vpop.f32.mrf.mxu3 }
  0xe5   :  { %1185 = vst [vmem:[%s2291_s3 + $0x38] sm:$0xff] %v1136_v50  ;;  %v566_v55 = vadd.f32 %v1545_v16, %v565_v53  ;;  %v713_v56 = vadd.f32 %v1545_v16, %v712_v54  ;;  %v1039_v59 = vmax.f32 %v843_v51, %v892_v52  ;;  %v140_v51 = vld [vmem:[%s2289_s0 + $0x3f0] sm:$0xff]  ;;  %v189_v52 = vld [vmem:[%s2289_s0 + $0x578] sm:$0xff] }
  0xe7   :  { %v941_v60 = vmax.f32 %v566_v55, 0.0  ;;  %v990_v61 = vmax.f32 %v713_v56, 0.0 }
  0xe8   :  { %v274_v62 = vpop.f32.mrf.mxu0  ;;  %v421_v63 = vpop.f32.mrf.mxu1 }
  0xe9   :  { %v1088_v2 = vmax.f32 %v941_v60, %v990_v61  ;;  %615 = vmatmul.f32.gmra.mxu2 %v137_v57  ;;  %762 = vmatmul.f32.gmra.mxu3 %v186_v58  ;;  %v275_v3 = vadd.f32 %v1545_v16, %v274_v62  ;;  %v422_v4 = vadd.f32 %v1545_v16, %v421_v63  ;;  %v42_v58 = vld [vmem:[%s2289_s0 + $0xe0] sm:$0xff] }
  0xeb   :  { %v1137_v5 = vmax.f32 %v1039_v59, %v1088_v2  ;;  %v844_v6 = vmax.f32 %v275_v3, 0.0  ;;  %v893_v7 = vmax.f32 %v422_v4, 0.0  ;;  %321 = vmatmul.f32.gmra.mxu0 %v39_v0  ;;  %468 = vmatmul.f32.gmra.mxu1 %v88_v1  ;;  %v91_v59 = vld [vmem:[%s2289_s0 + $0x268] sm:$0xff] }
  0xec   :  { %v568_v8 = vpop.f32.mrf.mxu2  ;;  %v715_v9 = vpop.f32.mrf.mxu3 }
  0xed   :  { %1186 = vst [vmem:[%s2291_s3 + $0x40] sm:$0xff] %v1137_v5  ;;  %v569_v10 = vadd.f32 %v1545_v16, %v568_v8  ;;  %v716_v11 = vadd.f32 %v1545_v16, %v715_v9  ;;  %v1040_v14 = vmax.f32 %v844_v6, %v893_v7  ;;  %v141_v6 = vld [vmem:[%s2289_s0 + $0x3f8] sm:$0xff]  ;;  %v190_v7 = vld [vmem:[%s2289_s0 + $0x580] sm:$0xff] }
  0xef   :  { %v942_v15 = vmax.f32 %v569_v10, 0.0  ;;  %v991_v17 = vmax.f32 %v716_v11, 0.0 }
  0xf0   :  { %v277_v18 = vpop.f32.mrf.mxu0  ;;  %v424_v19 = vpop.f32.mrf.mxu1 }
  0xf1   :  { %v1089_v22 = vmax.f32 %v942_v15, %v991_v17  ;;  %618 = vmatmul.f32.gmra.mxu2 %v138_v12  ;;  %765 = vmatmul.f32.gmra.mxu3 %v187_v13  ;;  %v278_v23 = vadd.f32 %v1545_v16, %v277_v18  ;;  %v425_v24 = vadd.f32 %v1545_v16, %v424_v19  ;;  %v43_v13 = vld [vmem:[%s2289_s0 + $0xe8] sm:$0xff] }
  0xf3   :  { %v1138_v25 = vmax.f32 %v1040_v14, %v1089_v22  ;;  %v845_v26 = vmax.f32 %v278_v23, 0.0  ;;  %v894_v27 = vmax.f32 %v425_v24, 0.0  ;;  %324 = vmatmul.f32.gmra.mxu0 %v40_v20  ;;  %471 = vmatmul.f32.gmra.mxu1 %v89_v21  ;;  %v92_v14 = vld [vmem:[%s2289_s0 + $0x270] sm:$0xff] }
  0xf4   :  { %v571_v28 = vpop.f32.mrf.mxu2  ;;  %v718_v29 = vpop.f32.mrf.mxu3 }
  0xf5   :  { %1187 = vst [vmem:[%s2291_s3 + $0x48] sm:$0xff] %v1138_v25  ;;  %v572_v30 = vadd.f32 %v1545_v16, %v571_v28  ;;  %v719_v31 = vadd.f32 %v1545_v16, %v718_v29  ;;  %v1041_v34 = vmax.f32 %v845_v26, %v894_v27  ;;  %v142_v26 = vld [vmem:[%s2289_s0 + $0x400] sm:$0xff]  ;;  %v191_v27 = vld [vmem:[%s2289_s0 + $0x588] sm:$0xff] }
  0xf7   :  { %v943_v35 = vmax.f32 %v572_v30, 0.0  ;;  %v992_v36 = vmax.f32 %v719_v31, 0.0 }
  0xf8   :  { %v280_v37 = vpop.f32.mrf.mxu0  ;;  %v427_v38 = vpop.f32.mrf.mxu1 }
  0xf9   :  { %v1090_v41 = vmax.f32 %v943_v35, %v992_v36  ;;  %621 = vmatmul.f32.gmra.mxu2 %v139_v32  ;;  %768 = vmatmul.f32.gmra.mxu3 %v188_v33  ;;  %v281_v42 = vadd.f32 %v1545_v16, %v280_v37  ;;  %v428_v43 = vadd.f32 %v1545_v16, %v427_v38  ;;  %v44_v33 = vld [vmem:[%s2289_s0 + $0xf0] sm:$0xff] }
  0xfb   :  { %v1139_v44 = vmax.f32 %v1041_v34, %v1090_v41  ;;  %v846_v45 = vmax.f32 %v281_v42, 0.0  ;;  %v895_v46 = vmax.f32 %v428_v43, 0.0  ;;  %327 = vmatmul.f32.gmra.mxu0 %v41_v39  ;;  %474 = vmatmul.f32.gmra.mxu1 %v90_v40  ;;  %v93_v34 = vld [vmem:[%s2289_s0 + $0x278] sm:$0xff] }
  0xfc   :  { %v574_v47 = vpop.f32.mrf.mxu2  ;;  %v721_v48 = vpop.f32.mrf.mxu3 }
  0xfd   :  { %1188 = vst [vmem:[%s2291_s3 + $0x50] sm:$0xff] %v1139_v44  ;;  %v575_v49 = vadd.f32 %v1545_v16, %v574_v47  ;;  %v722_v50 = vadd.f32 %v1545_v16, %v721_v48  ;;  %v1042_v53 = vmax.f32 %v846_v45, %v895_v46  ;;  %v143_v45 = vld [vmem:[%s2289_s0 + $0x408] sm:$0xff]  ;;  %v192_v46 = vld [vmem:[%s2289_s0 + $0x590] sm:$0xff] }
  0xff   :  { %v944_v54 = vmax.f32 %v575_v49, 0.0  ;;  %v993_v55 = vmax.f32 %v722_v50, 0.0 }
 0x100   :  { %v283_v56 = vpop.f32.mrf.mxu0  ;;  %v430_v57 = vpop.f32.mrf.mxu1 }
 0x101   :  { %v1091_v60 = vmax.f32 %v944_v54, %v993_v55  ;;  %624 = vmatmul.f32.gmra.mxu2 %v140_v51  ;;  %771 = vmatmul.f32.gmra.mxu3 %v189_v52  ;;  %v284_v61 = vadd.f32 %v1545_v16, %v283_v56  ;;  %v431_v62 = vadd.f32 %v1545_v16, %v430_v57  ;;  %v45_v52 = vld [vmem:[%s2289_s0 + $0xf8] sm:$0xff] }
 0x103   :  { %v1140_v63 = vmax.f32 %v1042_v53, %v1091_v60  ;;  %v847_v0 = vmax.f32 %v284_v61, 0.0  ;;  %v896_v1 = vmax.f32 %v431_v62, 0.0  ;;  %330 = vmatmul.f32.gmra.mxu0 %v42_v58  ;;  %477 = vmatmul.f32.gmra.mxu1 %v91_v59  ;;  %v94_v53 = vld [vmem:[%s2289_s0 + $0x280] sm:$0xff] }
 0x104   :  { %v577_v2 = vpop.f32.mrf.mxu2  ;;  %v724_v3 = vpop.f32.mrf.mxu3 }
 0x105   :  { %1189 = vst [vmem:[%s2291_s3 + $0x58] sm:$0xff] %v1140_v63  ;;  %v578_v4 = vadd.f32 %v1545_v16, %v577_v2  ;;  %v725_v5 = vadd.f32 %v1545_v16, %v724_v3  ;;  %v1043_v8 = vmax.f32 %v847_v0, %v896_v1  ;;  %v144_v0 = vld [vmem:[%s2289_s0 + $0x410] sm:$0xff]  ;;  %v193_v1 = vld [vmem:[%s2289_s0 + $0x598] sm:$0xff] }
 0x107   :  { %v945_v9 = vmax.f32 %v578_v4, 0.0  ;;  %v994_v10 = vmax.f32 %v725_v5, 0.0 }
 0x108   :  { %v286_v11 = vpop.f32.mrf.mxu0  ;;  %v433_v12 = vpop.f32.mrf.mxu1 }
 0x109   :  { %v1092_v15 = vmax.f32 %v945_v9, %v994_v10  ;;  %627 = vmatmul.f32.gmra.mxu2 %v141_v6  ;;  %774 = vmatmul.f32.gmra.mxu3 %v190_v7  ;;  %v287_v17 = vadd.f32 %v1545_v16, %v286_v11  ;;  %v434_v18 = vadd.f32 %v1545_v16, %v433_v12  ;;  %v46_v7 = vld [vmem:[%s2289_s0 + $0x100] sm:$0xff] }
 0x10b   :  { %v1141_v19 = vmax.f32 %v1043_v8, %v1092_v15  ;;  %v848_v20 = vmax.f32 %v287_v17, 0.0  ;;  %v897_v21 = vmax.f32 %v434_v18, 0.0  ;;  %333 = vmatmul.f32.gmra.mxu0 %v43_v13  ;;  %480 = vmatmul.f32.gmra.mxu1 %v92_v14  ;;  %v95_v8 = vld [vmem:[%s2289_s0 + $0x288] sm:$0xff] }
 0x10c   :  { %v580_v22 = vpop.f32.mrf.mxu2  ;;  %v727_v23 = vpop.f32.mrf.mxu3 }
 0x10d   :  { %1190 = vst [vmem:[%s2291_s3 + $0x60] sm:$0xff] %v1141_v19  ;;  %v581_v24 = vadd.f32 %v1545_v16, %v580_v22  ;;  %v728_v25 = vadd.f32 %v1545_v16, %v727_v23  ;;  %v1044_v28 = vmax.f32 %v848_v20, %v897_v21  ;;  %v145_v20 = vld [vmem:[%s2289_s0 + $0x418] sm:$0xff]  ;;  %v194_v21 = vld [vmem:[%s2289_s0 + $0x5a0] sm:$0xff] }
 0x10f   :  { %v946_v29 = vmax.f32 %v581_v24, 0.0  ;;  %v995_v30 = vmax.f32 %v728_v25, 0.0 }
 0x110   :  { %v289_v31 = vpop.f32.mrf.mxu0  ;;  %v436_v32 = vpop.f32.mrf.mxu1 }
 0x111   :  { %v1093_v35 = vmax.f32 %v946_v29, %v995_v30  ;;  %630 = vmatmul.f32.gmra.mxu2 %v142_v26  ;;  %777 = vmatmul.f32.gmra.mxu3 %v191_v27  ;;  %v290_v36 = vadd.f32 %v1545_v16, %v289_v31  ;;  %v437_v37 = vadd.f32 %v1545_v16, %v436_v32  ;;  %v47_v27 = vld [vmem:[%s2289_s0 + $0x108] sm:$0xff] }
 0x113   :  { %v1142_v38 = vmax.f32 %v1044_v28, %v1093_v35  ;;  %v849_v39 = vmax.f32 %v290_v36, 0.0  ;;  %v898_v40 = vmax.f32 %v437_v37, 0.0  ;;  %336 = vmatmul.f32.gmra.mxu0 %v44_v33  ;;  %483 = vmatmul.f32.gmra.mxu1 %v93_v34  ;;  %v96_v28 = vld [vmem:[%s2289_s0 + $0x290] sm:$0xff] }
 0x114   :  { %v583_v41 = vpop.f32.mrf.mxu2  ;;  %v730_v42 = vpop.f32.mrf.mxu3 }
 0x115   :  { %1191 = vst [vmem:[%s2291_s3 + $0x68] sm:$0xff] %v1142_v38  ;;  %v584_v43 = vadd.f32 %v1545_v16, %v583_v41  ;;  %v731_v44 = vadd.f32 %v1545_v16, %v730_v42  ;;  %v1045_v47 = vmax.f32 %v849_v39, %v898_v40  ;;  %v146_v39 = vld [vmem:[%s2289_s0 + $0x420] sm:$0xff]  ;;  %v195_v40 = vld [vmem:[%s2289_s0 + $0x5a8] sm:$0xff] }
 0x117   :  { %v947_v48 = vmax.f32 %v584_v43, 0.0  ;;  %v996_v49 = vmax.f32 %v731_v44, 0.0 }
 0x118   :  { %v292_v50 = vpop.f32.mrf.mxu0  ;;  %v439_v51 = vpop.f32.mrf.mxu1 }
 0x119   :  { %v1094_v54 = vmax.f32 %v947_v48, %v996_v49  ;;  %633 = vmatmul.f32.gmra.mxu2 %v143_v45  ;;  %780 = vmatmul.f32.gmra.mxu3 %v192_v46  ;;  %v293_v55 = vadd.f32 %v1545_v16, %v292_v50  ;;  %v440_v56 = vadd.f32 %v1545_v16, %v439_v51  ;;  %v48_v46 = vld [vmem:[%s2289_s0 + $0x110] sm:$0xff] }
 0x11b   :  { %v1143_v57 = vmax.f32 %v1045_v47, %v1094_v54  ;;  %v850_v58 = vmax.f32 %v293_v55, 0.0  ;;  %v899_v59 = vmax.f32 %v440_v56, 0.0  ;;  %339 = vmatmul.f32.gmra.mxu0 %v45_v52  ;;  %486 = vmatmul.f32.gmra.mxu1 %v94_v53  ;;  %v97_v47 = vld [vmem:[%s2289_s0 + $0x298] sm:$0xff] }
 0x11c   :  { %v586_v60 = vpop.f32.mrf.mxu2  ;;  %v733_v61 = vpop.f32.mrf.mxu3 }
 0x11d   :  { %1192 = vst [vmem:[%s2291_s3 + $0x70] sm:$0xff] %v1143_v57  ;;  %v587_v62 = vadd.f32 %v1545_v16, %v586_v60  ;;  %v734_v63 = vadd.f32 %v1545_v16, %v733_v61  ;;  %v1046_v2 = vmax.f32 %v850_v58, %v899_v59  ;;  %v147_v58 = vld [vmem:[%s2289_s0 + $0x428] sm:$0xff]  ;;  %v196_v59 = vld [vmem:[%s2289_s0 + $0x5b0] sm:$0xff] }
 0x11f   :  { %v948_v3 = vmax.f32 %v587_v62, 0.0  ;;  %v997_v4 = vmax.f32 %v734_v63, 0.0 }
 0x120   :  { %v295_v5 = vpop.f32.mrf.mxu0  ;;  %v442_v6 = vpop.f32.mrf.mxu1 }
 0x121   :  { %v1095_v9 = vmax.f32 %v948_v3, %v997_v4  ;;  %636 = vmatmul.f32.gmra.mxu2 %v144_v0  ;;  %783 = vmatmul.f32.gmra.mxu3 %v193_v1  ;;  %v296_v10 = vadd.f32 %v1545_v16, %v295_v5  ;;  %v443_v11 = vadd.f32 %v1545_v16, %v442_v6  ;;  %v49_v1 = vld [vmem:[%s2289_s0 + $0x118] sm:$0xff] }
 0x123   :  { %v1144_v12 = vmax.f32 %v1046_v2, %v1095_v9  ;;  %v851_v13 = vmax.f32 %v296_v10, 0.0  ;;  %v900_v14 = vmax.f32 %v443_v11, 0.0  ;;  %342 = vmatmul.f32.gmra.mxu0 %v46_v7  ;;  %489 = vmatmul.f32.gmra.mxu1 %v95_v8  ;;  %v98_v2 = vld [vmem:[%s2289_s0 + $0x2a0] sm:$0xff] }
 0x124   :  { %v589_v15 = vpop.f32.mrf.mxu2  ;;  %v736_v17 = vpop.f32.mrf.mxu3 }
 0x125   :  { %1193 = vst [vmem:[%s2291_s3 + $0x78] sm:$0xff] %v1144_v12  ;;  %v590_v18 = vadd.f32 %v1545_v16, %v589_v15  ;;  %v737_v19 = vadd.f32 %v1545_v16, %v736_v17  ;;  %v1047_v22 = vmax.f32 %v851_v13, %v900_v14  ;;  %v148_v13 = vld [vmem:[%s2289_s0 + $0x430] sm:$0xff]  ;;  %v197_v14 = vld [vmem:[%s2289_s0 + $0x5b8] sm:$0xff] }
 0x127   :  { %v949_v23 = vmax.f32 %v590_v18, 0.0  ;;  %v998_v24 = vmax.f32 %v737_v19, 0.0 }
 0x128   :  { %v298_v25 = vpop.f32.mrf.mxu0  ;;  %v445_v26 = vpop.f32.mrf.mxu1 }
 0x129   :  { %v1096_v29 = vmax.f32 %v949_v23, %v998_v24  ;;  %639 = vmatmul.f32.gmra.mxu2 %v145_v20  ;;  %786 = vmatmul.f32.gmra.mxu3 %v194_v21  ;;  %v299_v30 = vadd.f32 %v1545_v16, %v298_v25  ;;  %v446_v31 = vadd.f32 %v1545_v16, %v445_v26  ;;  %v50_v21 = vld [vmem:[%s2289_s0 + $0x120] sm:$0xff] }
 0x12b   :  { %v1145_v32 = vmax.f32 %v1047_v22, %v1096_v29  ;;  %v852_v33 = vmax.f32 %v299_v30, 0.0  ;;  %v901_v34 = vmax.f32 %v446_v31, 0.0  ;;  %345 = vmatmul.f32.gmra.mxu0 %v47_v27  ;;  %492 = vmatmul.f32.gmra.mxu1 %v96_v28  ;;  %v99_v22 = vld [vmem:[%s2289_s0 + $0x2a8] sm:$0xff] }
 0x12c   :  { %v592_v35 = vpop.f32.mrf.mxu2  ;;  %v739_v36 = vpop.f32.mrf.mxu3 }
 0x12d   :  { %1194 = vst [vmem:[%s2291_s3 + $0x80] sm:$0xff] %v1145_v32  ;;  %v593_v37 = vadd.f32 %v1545_v16, %v592_v35  ;;  %v740_v38 = vadd.f32 %v1545_v16, %v739_v36  ;;  %v1048_v41 = vmax.f32 %v852_v33, %v901_v34  ;;  %v149_v33 = vld [vmem:[%s2289_s0 + $0x438] sm:$0xff]  ;;  %v198_v34 = vld [vmem:[%s2289_s0 + $0x5c0] sm:$0xff] }
 0x12f   :  { %v950_v42 = vmax.f32 %v593_v37, 0.0  ;;  %v999_v43 = vmax.f32 %v740_v38, 0.0 }
 0x130   :  { %v301_v44 = vpop.f32.mrf.mxu0  ;;  %v448_v45 = vpop.f32.mrf.mxu1 }
 0x131   :  { %v1097_v48 = vmax.f32 %v950_v42, %v999_v43  ;;  %642 = vmatmul.f32.gmra.mxu2 %v146_v39  ;;  %789 = vmatmul.f32.gmra.mxu3 %v195_v40  ;;  %v302_v49 = vadd.f32 %v1545_v16, %v301_v44  ;;  %v449_v50 = vadd.f32 %v1545_v16, %v448_v45  ;;  %v51_v40 = vld [vmem:[%s2289_s0 + $0x128] sm:$0xff]  ;;  %v1958_v42 = vld [vmem:[%s2290_s2] ss:$0 sm:$0xff] }
 0x133   :  { %v1146_v51 = vmax.f32 %v1048_v41, %v1097_v48  ;;  %v853_v52 = vmax.f32 %v302_v49, 0.0  ;;  %v902_v53 = vmax.f32 %v449_v50, 0.0  ;;  %348 = vmatmul.f32.gmra.mxu0 %v48_v46  ;;  %495 = vmatmul.f32.gmra.mxu1 %v97_v47 }
 0x134   :  { %v595_v54 = vpop.f32.mrf.mxu2  ;;  %v742_v55 = vpop.f32.mrf.mxu3 }
 0x135   :  { %1195 = vst [vmem:[%s2291_s3 + $0x88] sm:$0xff] %v1146_v51  ;;  %v596_v56 = vadd.f32 %v1545_v16, %v595_v54  ;;  %v743_v57 = vadd.f32 %v1545_v16, %v742_v55  ;;  %v1049_v60 = vmax.f32 %v853_v52, %v902_v53  ;;  %v150_v52 = vld [vmem:[%s2289_s0 + $0x440] sm:$0xff]  ;;  %v199_v53 = vld [vmem:[%s2289_s0 + $0x5c8] sm:$0xff] }
 0x137   :  { %v951_v61 = vmax.f32 %v596_v56, 0.0  ;;  %v1000_v62 = vmax.f32 %v743_v57, 0.0 }
 0x138   :  { %v304_v63 = vpop.f32.mrf.mxu0  ;;  %v451_v0 = vpop.f32.mrf.mxu1 }
 0x139   :  { %v1098_v3 = vmax.f32 %v951_v61, %v1000_v62  ;;  %645 = vmatmul.f32.gmra.mxu2 %v147_v58  ;;  %792 = vmatmul.f32.gmra.mxu3 %v196_v59  ;;  %v305_v4 = vadd.f32 %v1545_v16, %v304_v63  ;;  %v452_v5 = vadd.f32 %v1545_v16, %v451_v0  ;;  %v52_v59 = vld [vmem:[%s2289_s0 + $0x130] sm:$0xff] }
 0x13b   :  { %v1147_v6 = vmax.f32 %v1049_v60, %v1098_v3  ;;  %v854_v7 = vmax.f32 %v305_v4, 0.0  ;;  %v903_v8 = vmax.f32 %v452_v5, 0.0  ;;  %351 = vmatmul.f32.gmra.mxu0 %v49_v1  ;;  %498 = vmatmul.f32.gmra.mxu1 %v98_v2  ;;  %v101_v60 = vld [vmem:[%s2289_s0 + $0x2b8] sm:$0xff] }
 0x13c   :  { %v598_v9 = vpop.f32.mrf.mxu2  ;;  %v745_v10 = vpop.f32.mrf.mxu3 }
 0x13d   :  { %1196 = vst [vmem:[%s2291_s3 + $0x90] sm:$0xff] %v1147_v6  ;;  %v599_v11 = vadd.f32 %v1545_v16, %v598_v9  ;;  %v746_v12 = vadd.f32 %v1545_v16, %v745_v10  ;;  %v1050_v15 = vmax.f32 %v854_v7, %v903_v8  ;;  %v151_v7 = vld [vmem:[%s2289_s0 + $0x448] sm:$0xff]  ;;  %v200_v8 = vld [vmem:[%s2289_s0 + $0x5d0] sm:$0xff] }
 0x13f   :  { %v952_v17 = vmax.f32 %v599_v11, 0.0  ;;  %v1001_v18 = vmax.f32 %v746_v12, 0.0 }
 0x140   :  { %v307_v19 = vpop.f32.mrf.mxu0  ;;  %v454_v20 = vpop.f32.mrf.mxu1 }
 0x141   :  { %v1099_v23 = vmax.f32 %v952_v17, %v1001_v18  ;;  %648 = vmatmul.f32.gmra.mxu2 %v148_v13  ;;  %795 = vmatmul.f32.gmra.mxu3 %v197_v14  ;;  %v308_v24 = vadd.f32 %v1545_v16, %v307_v19  ;;  %v455_v25 = vadd.f32 %v1545_v16, %v454_v20  ;;  %v53_v14 = vld [vmem:[%s2289_s0 + $0x138] sm:$0xff] }
 0x143   :  { %v1148_v26 = vmax.f32 %v1050_v15, %v1099_v23  ;;  %v855_v27 = vmax.f32 %v308_v24, 0.0  ;;  %v904_v28 = vmax.f32 %v455_v25, 0.0  ;;  %354 = vmatmul.f32.gmra.mxu0 %v50_v21  ;;  %501 = vmatmul.f32.gmra.mxu1 %v99_v22  ;;  %v102_v15 = vld [vmem:[%s2289_s0 + $0x2c0] sm:$0xff] }
 0x144   :  { %v601_v29 = vpop.f32.mrf.mxu2  ;;  %v748_v30 = vpop.f32.mrf.mxu3 }
 0x145   :  { %1197 = vst [vmem:[%s2291_s3 + $0x98] sm:$0xff] %v1148_v26  ;;  %v602_v31 = vadd.f32 %v1545_v16, %v601_v29  ;;  %v749_v32 = vadd.f32 %v1545_v16, %v748_v30  ;;  %v1051_v35 = vmax.f32 %v855_v27, %v904_v28  ;;  %v100_v16 = vld [vmem:[%s2289_s0 + $0x2b0] sm:$0xff]  ;;  %v201_v28 = vld [vmem:[%s2289_s0 + $0x5d8] sm:$0xff] }
 0x146   :  { %v152_v27 = vld [vmem:[%s2289_s0 + $0x450] sm:$0xff] }
 0x147   :  { %v953_v36 = vmax.f32 %v602_v31, 0.0  ;;  %v1002_v37 = vmax.f32 %v749_v32, 0.0 }
 0x148   :  { %v310_v38 = vpop.f32.mrf.mxu0  ;;  %v457_v39 = vpop.f32.mrf.mxu1 }
 0x149   :  { %v1100_v41 = vmax.f32 %v953_v36, %v1002_v37  ;;  %651 = vmatmul.f32.gmra.mxu2 %v149_v33  ;;  %798 = vmatmul.f32.gmra.mxu3 %v198_v34  ;;  %v311_v43 = vadd.f32 %v1958_v42, %v310_v38  ;;  %v458_v44 = vadd.f32 %v1958_v42, %v457_v39  ;;  %v54_v34 = vld [vmem:[%s2289_s0 + $0x140] sm:$0xff] }
 0x14b   :  { %v1149_v45 = vmax.f32 %v1051_v35, %v1100_v41  ;;  %v856_v46 = vmax.f32 %v311_v43, 0.0  ;;  %v905_v47 = vmax.f32 %v458_v44, 0.0  ;;  %357 = vmatmul.f32.gmra.mxu0 %v51_v40  ;;  %504 = vmatmul.f32.gmra.mxu1 %v100_v16  ;;  %v103_v35 = vld [vmem:[%s2289_s0 + $0x2c8] sm:$0xff] }
 0x14c   :  { %v604_v48 = vpop.f32.mrf.mxu2  ;;  %v751_v49 = vpop.f32.mrf.mxu3 }
 0x14d   :  { %1198 = vst [vmem:[%s2291_s3 + $0xa0] sm:$0xff] %v1149_v45  ;;  %v605_v50 = vadd.f32 %v1958_v42, %v604_v48  ;;  %v752_v51 = vadd.f32 %v1958_v42, %v751_v49  ;;  %v1052_v54 = vmax.f32 %v856_v46, %v905_v47  ;;  %v153_v46 = vld [vmem:[%s2289_s0 + $0x458] sm:$0xff]  ;;  %v202_v47 = vld [vmem:[%s2289_s0 + $0x5e0] sm:$0xff] }
 0x14f   :  { %v954_v55 = vmax.f32 %v605_v50, 0.0  ;;  %v1003_v56 = vmax.f32 %v752_v51, 0.0 }
 0x150   :  { %v313_v57 = vpop.f32.mrf.mxu0  ;;  %v460_v58 = vpop.f32.mrf.mxu1 }
 0x151   :  { %v1101_v61 = vmax.f32 %v954_v55, %v1003_v56  ;;  %654 = vmatmul.f32.gmra.mxu2 %v150_v52  ;;  %801 = vmatmul.f32.gmra.mxu3 %v199_v53  ;;  %v314_v62 = vadd.f32 %v1958_v42, %v313_v57  ;;  %v461_v63 = vadd.f32 %v1958_v42, %v460_v58  ;;  %v55_v53 = vld [vmem:[%s2289_s0 + $0x148] sm:$0xff] }
 0x153   :  { %v1150_v0 = vmax.f32 %v1052_v54, %v1101_v61  ;;  %v857_v1 = vmax.f32 %v314_v62, 0.0  ;;  %v906_v2 = vmax.f32 %v461_v63, 0.0  ;;  %360 = vmatmul.f32.gmra.mxu0 %v52_v59  ;;  %507 = vmatmul.f32.gmra.mxu1 %v101_v60  ;;  %v104_v54 = vld [vmem:[%s2289_s0 + $0x2d0] sm:$0xff] }
 0x154   :  { %v607_v3 = vpop.f32.mrf.mxu2  ;;  %v754_v4 = vpop.f32.mrf.mxu3 }
 0x155   :  { %1199 = vst [vmem:[%s2291_s3 + $0xa8] sm:$0xff] %v1150_v0  ;;  %v608_v5 = vadd.f32 %v1958_v42, %v607_v3  ;;  %v755_v6 = vadd.f32 %v1958_v42, %v754_v4  ;;  %v1053_v9 = vmax.f32 %v857_v1, %v906_v2  ;;  %v154_v1 = vld [vmem:[%s2289_s0 + $0x460] sm:$0xff]  ;;  %v203_v2 = vld [vmem:[%s2289_s0 + $0x5e8] sm:$0xff] }
 0x157   :  { %v955_v10 = vmax.f32 %v608_v5, 0.0  ;;  %v1004_v11 = vmax.f32 %v755_v6, 0.0 }
 0x158   :  { %v316_v12 = vpop.f32.mrf.mxu0  ;;  %v463_v13 = vpop.f32.mrf.mxu1 }
 0x159   :  { %v1102_v17 = vmax.f32 %v955_v10, %v1004_v11  ;;  %657 = vmatmul.f32.gmra.mxu2 %v151_v7  ;;  %804 = vmatmul.f32.gmra.mxu3 %v200_v8  ;;  %v317_v18 = vadd.f32 %v1958_v42, %v316_v12  ;;  %v464_v19 = vadd.f32 %v1958_v42, %v463_v13  ;;  %v56_v8 = vld [vmem:[%s2289_s0 + $0x150] sm:$0xff] }
 0x15b   :  { %v1151_v20 = vmax.f32 %v1053_v9, %v1102_v17  ;;  %v858_v21 = vmax.f32 %v317_v18, 0.0  ;;  %v907_v22 = vmax.f32 %v464_v19, 0.0  ;;  %363 = vmatmul.f32.gmra.mxu0 %v53_v14  ;;  %510 = vmatmul.f32.gmra.mxu1 %v102_v15  ;;  %v105_v9 = vld [vmem:[%s2289_s0 + $0x2d8] sm:$0xff] }
 0x15c   :  { %v610_v23 = vpop.f32.mrf.mxu2  ;;  %v757_v24 = vpop.f32.mrf.mxu3 }
 0x15d   :  { %1200 = vst [vmem:[%s2291_s3 + $0xb0] sm:$0xff] %v1151_v20  ;;  %v611_v25 = vadd.f32 %v1958_v42, %v610_v23  ;;  %v758_v26 = vadd.f32 %v1958_v42, %v757_v24  ;;  %v1054_v29 = vmax.f32 %v858_v21, %v907_v22  ;;  %v155_v21 = vld [vmem:[%s2289_s0 + $0x468] sm:$0xff]  ;;  %v204_v22 = vld [vmem:[%s2289_s0 + $0x5f0] sm:$0xff] }
 0x15f   :  { %v956_v30 = vmax.f32 %v611_v25, 0.0  ;;  %v1005_v31 = vmax.f32 %v758_v26, 0.0 }
 0x160   :  { %v319_v32 = vpop.f32.mrf.mxu0  ;;  %v466_v33 = vpop.f32.mrf.mxu1 }
 0x161   :  { %v1103_v36 = vmax.f32 %v956_v30, %v1005_v31  ;;  %660 = vmatmul.f32.gmra.mxu2 %v152_v27  ;;  %807 = vmatmul.f32.gmra.mxu3 %v201_v28  ;;  %v320_v37 = vadd.f32 %v1958_v42, %v319_v32  ;;  %v467_v38 = vadd.f32 %v1958_v42, %v466_v33  ;;  %v57_v28 = vld [vmem:[%s2289_s0 + $0x158] sm:$0xff] }
 0x163   :  { %v1152_v39 = vmax.f32 %v1054_v29, %v1103_v36  ;;  %v859_v40 = vmax.f32 %v320_v37, 0.0  ;;  %v908_v16 = vmax.f32 %v467_v38, 0.0  ;;  %366 = vmatmul.f32.gmra.mxu0 %v54_v34  ;;  %513 = vmatmul.f32.gmra.mxu1 %v103_v35  ;;  %v106_v29 = vld [vmem:[%s2289_s0 + $0x2e0] sm:$0xff] }
 0x164   :  { %v613_v41 = vpop.f32.mrf.mxu2  ;;  %v760_v43 = vpop.f32.mrf.mxu3 }
 0x165   :  { %1201 = vst [vmem:[%s2291_s3 + $0xb8] sm:$0xff] %v1152_v39  ;;  %v614_v44 = vadd.f32 %v1958_v42, %v613_v41  ;;  %v761_v45 = vadd.f32 %v1958_v42, %v760_v43  ;;  %v1055_v48 = vmax.f32 %v859_v40, %v908_v16  ;;  %v156_v40 = vld [vmem:[%s2289_s0 + $0x470] sm:$0xff]  ;;  %v205_v16 = vld [vmem:[%s2289_s0 + $0x5f8] sm:$0xff] }
 0x167   :  { %v957_v49 = vmax.f32 %v614_v44, 0.0  ;;  %v1006_v50 = vmax.f32 %v761_v45, 0.0 }
 0x168   :  { %v322_v51 = vpop.f32.mrf.mxu0  ;;  %v469_v52 = vpop.f32.mrf.mxu1 }
 0x169   :  { %v1104_v55 = vmax.f32 %v957_v49, %v1006_v50  ;;  %663 = vmatmul.f32.gmra.mxu2 %v153_v46  ;;  %810 = vmatmul.f32.gmra.mxu3 %v202_v47  ;;  %v323_v56 = vadd.f32 %v1958_v42, %v322_v51  ;;  %v470_v57 = vadd.f32 %v1958_v42, %v469_v52  ;;  %v58_v47 = vld [vmem:[%s2289_s0 + $0x160] sm:$0xff] }
 0x16b   :  { %v1153_v58 = vmax.f32 %v1055_v48, %v1104_v55  ;;  %v860_v59 = vmax.f32 %v323_v56, 0.0  ;;  %v909_v60 = vmax.f32 %v470_v57, 0.0  ;;  %369 = vmatmul.f32.gmra.mxu0 %v55_v53  ;;  %516 = vmatmul.f32.gmra.mxu1 %v104_v54  ;;  %v107_v48 = vld [vmem:[%s2289_s0 + $0x2e8] sm:$0xff] }
 0x16c   :  { %v616_v61 = vpop.f32.mrf.mxu2  ;;  %v763_v62 = vpop.f32.mrf.mxu3 }
 0x16d   :  { %1202 = vst [vmem:[%s2291_s3 + $0xc0] sm:$0xff] %v1153_v58  ;;  %v617_v63 = vadd.f32 %v1958_v42, %v616_v61  ;;  %v764_v0 = vadd.f32 %v1958_v42, %v763_v62  ;;  %v1056_v3 = vmax.f32 %v860_v59, %v909_v60  ;;  %v157_v59 = vld [vmem:[%s2289_s0 + $0x478] sm:$0xff]  ;;  %v206_v60 = vld [vmem:[%s2289_s0 + $0x600] sm:$0xff] }
 0x16f   :  { %v958_v4 = vmax.f32 %v617_v63, 0.0  ;;  %v1007_v5 = vmax.f32 %v764_v0, 0.0 }
 0x170   :  { %v325_v6 = vpop.f32.mrf.mxu0  ;;  %v472_v7 = vpop.f32.mrf.mxu1 }
 0x171   :  { %v1105_v10 = vmax.f32 %v958_v4, %v1007_v5  ;;  %666 = vmatmul.f32.gmra.mxu2 %v154_v1  ;;  %813 = vmatmul.f32.gmra.mxu3 %v203_v2  ;;  %v326_v11 = vadd.f32 %v1958_v42, %v325_v6  ;;  %v473_v12 = vadd.f32 %v1958_v42, %v472_v7  ;;  %v59_v2 = vld [vmem:[%s2289_s0 + $0x168] sm:$0xff] }
 0x173   :  { %v1154_v13 = vmax.f32 %v1056_v3, %v1105_v10  ;;  %v861_v14 = vmax.f32 %v326_v11, 0.0  ;;  %v910_v15 = vmax.f32 %v473_v12, 0.0  ;;  %372 = vmatmul.f32.gmra.mxu0 %v56_v8  ;;  %519 = vmatmul.f32.gmra.mxu1 %v105_v9  ;;  %v108_v3 = vld [vmem:[%s2289_s0 + $0x2f0] sm:$0xff] }
 0x174   :  { %v619_v17 = vpop.f32.mrf.mxu2  ;;  %v766_v18 = vpop.f32.mrf.mxu3 }
 0x175   :  { %1203 = vst [vmem:[%s2291_s3 + $0xc8] sm:$0xff] %v1154_v13  ;;  %v620_v19 = vadd.f32 %v1958_v42, %v619_v17  ;;  %v767_v20 = vadd.f32 %v1958_v42, %v766_v18  ;;  %v1057_v23 = vmax.f32 %v861_v14, %v910_v15  ;;  %v158_v14 = vld [vmem:[%s2289_s0 + $0x480] sm:$0xff]  ;;  %v207_v15 = vld [vmem:[%s2289_s0 + $0x608] sm:$0xff] }
 0x177   :  { %v959_v24 = vmax.f32 %v620_v19, 0.0  ;;  %v1008_v25 = vmax.f32 %v767_v20, 0.0 }
 0x178   :  { %v328_v26 = vpop.f32.mrf.mxu0  ;;  %v475_v27 = vpop.f32.mrf.mxu1 }
 0x179   :  { %v1106_v30 = vmax.f32 %v959_v24, %v1008_v25  ;;  %669 = vmatmul.f32.gmra.mxu2 %v155_v21  ;;  %816 = vmatmul.f32.gmra.mxu3 %v204_v22  ;;  %v329_v31 = vadd.f32 %v1958_v42, %v328_v26  ;;  %v476_v32 = vadd.f32 %v1958_v42, %v475_v27  ;;  %v60_v22 = vld [vmem:[%s2289_s0 + $0x170] sm:$0xff] }
 0x17b   :  { %v1155_v33 = vmax.f32 %v1057_v23, %v1106_v30  ;;  %v862_v34 = vmax.f32 %v329_v31, 0.0  ;;  %v911_v35 = vmax.f32 %v476_v32, 0.0  ;;  %375 = vmatmul.f32.gmra.mxu0 %v57_v28  ;;  %522 = vmatmul.f32.gmra.mxu1 %v106_v29  ;;  %v109_v23 = vld [vmem:[%s2289_s0 + $0x2f8] sm:$0xff] }
 0x17c   :  { %v622_v36 = vpop.f32.mrf.mxu2  ;;  %v769_v37 = vpop.f32.mrf.mxu3 }
 0x17d   :  { %1204 = vst [vmem:[%s2291_s3 + $0xd0] sm:$0xff] %v1155_v33  ;;  %v623_v38 = vadd.f32 %v1958_v42, %v622_v36  ;;  %v770_v39 = vadd.f32 %v1958_v42, %v769_v37  ;;  %v1058_v41 = vmax.f32 %v862_v34, %v911_v35  ;;  %v159_v34 = vld [vmem:[%s2289_s0 + $0x488] sm:$0xff]  ;;  %v208_v35 = vld [vmem:[%s2289_s0 + $0x610] sm:$0xff] }
 0x17f   :  { %v960_v43 = vmax.f32 %v623_v38, 0.0  ;;  %v1009_v44 = vmax.f32 %v770_v39, 0.0 }
 0x180   :  { %v331_v45 = vpop.f32.mrf.mxu0  ;;  %v478_v46 = vpop.f32.mrf.mxu1 }
 0x181   :  { %v1107_v49 = vmax.f32 %v960_v43, %v1009_v44  ;;  %672 = vmatmul.f32.gmra.mxu2 %v156_v40  ;;  %819 = vmatmul.f32.gmra.mxu3 %v205_v16  ;;  %v332_v50 = vadd.f32 %v1958_v42, %v331_v45  ;;  %v479_v51 = vadd.f32 %v1958_v42, %v478_v46  ;;  %v61_v16 = vld [vmem:[%s2289_s0 + $0x178] sm:$0xff] }
 0x183   :  { %v1156_v52 = vmax.f32 %v1058_v41, %v1107_v49  ;;  %v863_v53 = vmax.f32 %v332_v50, 0.0  ;;  %v912_v54 = vmax.f32 %v479_v51, 0.0  ;;  %378 = vmatmul.f32.gmra.mxu0 %v58_v47  ;;  %525 = vmatmul.f32.gmra.mxu1 %v107_v48  ;;  %v110_v41 = vld [vmem:[%s2289_s0 + $0x300] sm:$0xff] }
 0x184   :  { %v625_v55 = vpop.f32.mrf.mxu2  ;;  %v772_v56 = vpop.f32.mrf.mxu3 }
 0x185   :  { %1205 = vst [vmem:[%s2291_s3 + $0xd8] sm:$0xff] %v1156_v52  ;;  %v626_v57 = vadd.f32 %v1958_v42, %v625_v55  ;;  %v773_v58 = vadd.f32 %v1958_v42, %v772_v56  ;;  %v1059_v61 = vmax.f32 %v863_v53, %v912_v54  ;;  %v160_v53 = vld [vmem:[%s2289_s0 + $0x490] sm:$0xff]  ;;  %v209_v54 = vld [vmem:[%s2289_s0 + $0x618] sm:$0xff] }
 0x187   :  { %v961_v62 = vmax.f32 %v626_v57, 0.0  ;;  %v1010_v63 = vmax.f32 %v773_v58, 0.0 }
 0x188   :  { %v334_v0 = vpop.f32.mrf.mxu0  ;;  %v481_v1 = vpop.f32.mrf.mxu1 }
 0x189   :  { %v1108_v4 = vmax.f32 %v961_v62, %v1010_v63  ;;  %675 = vmatmul.f32.gmra.mxu2 %v157_v59  ;;  %822 = vmatmul.f32.gmra.mxu3 %v206_v60  ;;  %v335_v5 = vadd.f32 %v1958_v42, %v334_v0  ;;  %v482_v6 = vadd.f32 %v1958_v42, %v481_v1  ;;  %v62_v60 = vld [vmem:[%s2289_s0 + $0x180] sm:$0xff] }
 0x18b   :  { %v1157_v7 = vmax.f32 %v1059_v61, %v1108_v4  ;;  %v864_v8 = vmax.f32 %v335_v5, 0.0  ;;  %v913_v9 = vmax.f32 %v482_v6, 0.0  ;;  %381 = vmatmul.f32.gmra.mxu0 %v59_v2  ;;  %528 = vmatmul.f32.gmra.mxu1 %v108_v3  ;;  %v111_v61 = vld [vmem:[%s2289_s0 + $0x308] sm:$0xff] }
 0x18c   :  { %v628_v10 = vpop.f32.mrf.mxu2  ;;  %v775_v11 = vpop.f32.mrf.mxu3 }
 0x18d   :  { %1206 = vst [vmem:[%s2291_s3 + $0xe0] sm:$0xff] %v1157_v7  ;;  %v629_v12 = vadd.f32 %v1958_v42, %v628_v10  ;;  %v776_v13 = vadd.f32 %v1958_v42, %v775_v11  ;;  %v1060_v17 = vmax.f32 %v864_v8, %v913_v9 }
 0x18f   :  { %v962_v18 = vmax.f32 %v629_v12, 0.0  ;;  %v1011_v19 = vmax.f32 %v776_v13, 0.0 }
 0x190   :  { %v337_v20 = vpop.f32.mrf.mxu0  ;;  %v484_v21 = vpop.f32.mrf.mxu1 }
 0x191   :  { %v1109_v24 = vmax.f32 %v962_v18, %v1011_v19  ;;  %678 = vmatmul.f32.gmra.mxu2 %v158_v14  ;;  %825 = vmatmul.f32.gmra.mxu3 %v207_v15  ;;  %v338_v25 = vadd.f32 %v1958_v42, %v337_v20  ;;  %v485_v26 = vadd.f32 %v1958_v42, %v484_v21 }
 0x193   :  { %v1158_v27 = vmax.f32 %v1060_v17, %v1109_v24  ;;  %v865_v28 = vmax.f32 %v338_v25, 0.0  ;;  %v914_v29 = vmax.f32 %v485_v26, 0.0  ;;  %384 = vmatmul.f32.gmra.mxu0 %v60_v22  ;;  %531 = vmatmul.f32.gmra.mxu1 %v109_v23 }
 0x194   :  { %v631_v30 = vpop.f32.mrf.mxu2  ;;  %v778_v31 = vpop.f32.mrf.mxu3 }
 0x195   :  { %1207 = vst [vmem:[%s2291_s3 + $0xe8] sm:$0xff] %v1158_v27  ;;  %v632_v32 = vadd.f32 %v1958_v42, %v631_v30  ;;  %v779_v33 = vadd.f32 %v1958_v42, %v778_v31  ;;  %v1061_v36 = vmax.f32 %v865_v28, %v914_v29 }
 0x197   :  { %v963_v37 = vmax.f32 %v632_v32, 0.0  ;;  %v1012_v38 = vmax.f32 %v779_v33, 0.0 }
 0x198   :  { %v340_v39 = vpop.f32.mrf.mxu0  ;;  %v487_v40 = vpop.f32.mrf.mxu1 }
 0x199   :  { %v1110_v43 = vmax.f32 %v963_v37, %v1012_v38  ;;  %681 = vmatmul.f32.gmra.mxu2 %v159_v34  ;;  %828 = vmatmul.f32.gmra.mxu3 %v208_v35  ;;  %v341_v44 = vadd.f32 %v1958_v42, %v340_v39  ;;  %v488_v45 = vadd.f32 %v1958_v42, %v487_v40 }
 0x19b   :  { %v1159_v46 = vmax.f32 %v1061_v36, %v1110_v43  ;;  %v866_v47 = vmax.f32 %v341_v44, 0.0  ;;  %v915_v48 = vmax.f32 %v488_v45, 0.0  ;;  %387 = vmatmul.f32.gmra.mxu0 %v61_v16  ;;  %534 = vmatmul.f32.gmra.mxu1 %v110_v41 }
 0x19c   :  { %v634_v49 = vpop.f32.mrf.mxu2  ;;  %v781_v50 = vpop.f32.mrf.mxu3 }
 0x19d   :  { %1208 = vst [vmem:[%s2291_s3 + $0xf0] sm:$0xff] %v1159_v46  ;;  %v635_v51 = vadd.f32 %v1958_v42, %v634_v49  ;;  %v782_v52 = vadd.f32 %v1958_v42, %v781_v50  ;;  %v1062_v55 = vmax.f32 %v866_v47, %v915_v48 }
 0x19f   :  { %v964_v56 = vmax.f32 %v635_v51, 0.0  ;;  %v1013_v57 = vmax.f32 %v782_v52, 0.0 }
 0x1a0   :  { %v343_v58 = vpop.f32.mrf.mxu0  ;;  %v490_v59 = vpop.f32.mrf.mxu1 }
 0x1a1   :  { %v1111_v62 = vmax.f32 %v964_v56, %v1013_v57  ;;  %684 = vmatmul.f32.gmra.mxu2 %v160_v53  ;;  %831 = vmatmul.f32.gmra.mxu3 %v209_v54  ;;  %v344_v63 = vadd.f32 %v1958_v42, %v343_v58  ;;  %v491_v0 = vadd.f32 %v1958_v42, %v490_v59 }
 0x1a3   :  { %v1160_v1 = vmax.f32 %v1062_v55, %v1111_v62  ;;  %v867_v2 = vmax.f32 %v344_v63, 0.0  ;;  %v916_v3 = vmax.f32 %v491_v0, 0.0  ;;  %390 = vmatmul.f32.gmra.mxu0 %v62_v60  ;;  %537 = vmatmul.f32.gmra.mxu1 %v111_v61 }
 0x1a4   :  { %v637_v4 = vpop.f32.mrf.mxu2  ;;  %v784_v5 = vpop.f32.mrf.mxu3 }
 0x1a5   :  { %1209 = vst [vmem:[%s2291_s3 + $0xf8] sm:$0xff] %v1160_v1  ;;  %v638_v6 = vadd.f32 %v1958_v42, %v637_v4  ;;  %v785_v7 = vadd.f32 %v1958_v42, %v784_v5  ;;  %v1063_v8 = vmax.f32 %v867_v2, %v916_v3 }
 0x1a7   :  { %v965_v9 = vmax.f32 %v638_v6, 0.0  ;;  %v1014_v10 = vmax.f32 %v785_v7, 0.0 }
 0x1a8   :  { %v346_v11 = vpop.f32.mrf.mxu0  ;;  %v493_v12 = vpop.f32.mrf.mxu1 }
 0x1a9   :  { %v1112_v13 = vmax.f32 %v965_v9, %v1014_v10  ;;  %v347_v14 = vadd.f32 %v1958_v42, %v346_v11  ;;  %v494_v15 = vadd.f32 %v1958_v42, %v493_v12 }
 0x1ab   :  { %v1161_v17 = vmax.f32 %v1063_v8, %v1112_v13  ;;  %v868_v18 = vmax.f32 %v347_v14, 0.0  ;;  %v917_v19 = vmax.f32 %v494_v15, 0.0 }
 0x1ac   :  { %v640_v20 = vpop.f32.mrf.mxu2  ;;  %v787_v21 = vpop.f32.mrf.mxu3 }
 0x1ad   :  { %1210 = vst [vmem:[%s2291_s3 + $0x100] sm:$0xff] %v1161_v17  ;;  %v641_v22 = vadd.f32 %v1958_v42, %v640_v20  ;;  %v788_v23 = vadd.f32 %v1958_v42, %v787_v21  ;;  %v1064_v24 = vmax.f32 %v868_v18, %v917_v19 }
 0x1af   :  { %v966_v25 = vmax.f32 %v641_v22, 0.0  ;;  %v1015_v26 = vmax.f32 %v788_v23, 0.0 }
 0x1b0   :  { %v349_v27 = vpop.f32.mrf.mxu0  ;;  %v496_v28 = vpop.f32.mrf.mxu1 }
 0x1b1   :  { %v1113_v29 = vmax.f32 %v966_v25, %v1015_v26  ;;  %v350_v30 = vadd.f32 %v1958_v42, %v349_v27  ;;  %v497_v31 = vadd.f32 %v1958_v42, %v496_v28 }
 0x1b3   :  { %v1162_v32 = vmax.f32 %v1064_v24, %v1113_v29  ;;  %v869_v33 = vmax.f32 %v350_v30, 0.0  ;;  %v918_v34 = vmax.f32 %v497_v31, 0.0 }
 0x1b4   :  { %v643_v35 = vpop.f32.mrf.mxu2  ;;  %v790_v36 = vpop.f32.mrf.mxu3 }
 0x1b5   :  { %1211 = vst [vmem:[%s2291_s3 + $0x108] sm:$0xff] %v1162_v32  ;;  %v644_v37 = vadd.f32 %v1958_v42, %v643_v35  ;;  %v791_v38 = vadd.f32 %v1958_v42, %v790_v36  ;;  %v1065_v39 = vmax.f32 %v869_v33, %v918_v34 }
 0x1b7   :  { %v967_v40 = vmax.f32 %v644_v37, 0.0  ;;  %v1016_v16 = vmax.f32 %v791_v38, 0.0 }
 0x1b8   :  { %v352_v41 = vpop.f32.mrf.mxu0  ;;  %v499_v43 = vpop.f32.mrf.mxu1 }
 0x1b9   :  { %v1114_v44 = vmax.f32 %v967_v40, %v1016_v16  ;;  %v353_v45 = vadd.f32 %v1958_v42, %v352_v41  ;;  %v500_v46 = vadd.f32 %v1958_v42, %v499_v43 }
 0x1bb   :  { %v1163_v47 = vmax.f32 %v1065_v39, %v1114_v44  ;;  %v870_v48 = vmax.f32 %v353_v45, 0.0  ;;  %v919_v49 = vmax.f32 %v500_v46, 0.0 }
 0x1bc   :  { %v646_v50 = vpop.f32.mrf.mxu2  ;;  %v793_v51 = vpop.f32.mrf.mxu3 }
 0x1bd   :  { %1212 = vst [vmem:[%s2291_s3 + $0x110] sm:$0xff] %v1163_v47  ;;  %v647_v52 = vadd.f32 %v1958_v42, %v646_v50  ;;  %v794_v53 = vadd.f32 %v1958_v42, %v793_v51  ;;  %v1066_v54 = vmax.f32 %v870_v48, %v919_v49 }
 0x1bf   :  { %v968_v55 = vmax.f32 %v647_v52, 0.0  ;;  %v1017_v56 = vmax.f32 %v794_v53, 0.0 }
 0x1c0   :  { %v355_v57 = vpop.f32.mrf.mxu0  ;;  %v502_v58 = vpop.f32.mrf.mxu1 }
 0x1c1   :  { %v1115_v59 = vmax.f32 %v968_v55, %v1017_v56  ;;  %v356_v60 = vadd.f32 %v1958_v42, %v355_v57  ;;  %v503_v61 = vadd.f32 %v1958_v42, %v502_v58 }
 0x1c3   :  { %v1164_v62 = vmax.f32 %v1066_v54, %v1115_v59  ;;  %v871_v63 = vmax.f32 %v356_v60, 0.0  ;;  %v920_v0 = vmax.f32 %v503_v61, 0.0 }
 0x1c4   :  { %v649_v1 = vpop.f32.mrf.mxu2  ;;  %v796_v2 = vpop.f32.mrf.mxu3 }
 0x1c5   :  { %1213 = vst [vmem:[%s2291_s3 + $0x118] sm:$0xff] %v1164_v62  ;;  %v650_v3 = vadd.f32 %v1958_v42, %v649_v1  ;;  %v797_v4 = vadd.f32 %v1958_v42, %v796_v2  ;;  %v1067_v5 = vmax.f32 %v871_v63, %v920_v0 }
 0x1c7   :  { %v969_v6 = vmax.f32 %v650_v3, 0.0  ;;  %v1018_v7 = vmax.f32 %v797_v4, 0.0 }
 0x1c8   :  { %v358_v8 = vpop.f32.mrf.mxu0  ;;  %v505_v9 = vpop.f32.mrf.mxu1 }
 0x1c9   :  { %v1116_v10 = vmax.f32 %v969_v6, %v1018_v7  ;;  %v359_v11 = vadd.f32 %v1958_v42, %v358_v8  ;;  %v506_v12 = vadd.f32 %v1958_v42, %v505_v9 }
 0x1cb   :  { %v1165_v13 = vmax.f32 %v1067_v5, %v1116_v10  ;;  %v872_v14 = vmax.f32 %v359_v11, 0.0  ;;  %v921_v15 = vmax.f32 %v506_v12, 0.0 }
 0x1cc   :  { %v652_v17 = vpop.f32.mrf.mxu2  ;;  %v799_v18 = vpop.f32.mrf.mxu3 }
 0x1cd   :  { %1214 = vst [vmem:[%s2291_s3 + $0x120] sm:$0xff] %v1165_v13  ;;  %v653_v19 = vadd.f32 %v1958_v42, %v652_v17  ;;  %v800_v20 = vadd.f32 %v1958_v42, %v799_v18  ;;  %v1068_v21 = vmax.f32 %v872_v14, %v921_v15 }
 0x1cf   :  { %v970_v22 = vmax.f32 %v653_v19, 0.0  ;;  %v1019_v23 = vmax.f32 %v800_v20, 0.0 }
 0x1d0   :  { %v361_v24 = vpop.f32.mrf.mxu0  ;;  %v508_v25 = vpop.f32.mrf.mxu1 }
 0x1d1   :  { %v1117_v26 = vmax.f32 %v970_v22, %v1019_v23  ;;  %v362_v27 = vadd.f32 %v1958_v42, %v361_v24  ;;  %v509_v28 = vadd.f32 %v1958_v42, %v508_v25 }
 0x1d3   :  { %v1166_v29 = vmax.f32 %v1068_v21, %v1117_v26  ;;  %v873_v30 = vmax.f32 %v362_v27, 0.0  ;;  %v922_v31 = vmax.f32 %v509_v28, 0.0 }
 0x1d4   :  { %v655_v32 = vpop.f32.mrf.mxu2  ;;  %v802_v33 = vpop.f32.mrf.mxu3 }
 0x1d5   :  { %1215 = vst [vmem:[%s2291_s3 + $0x128] sm:$0xff] %v1166_v29  ;;  %v656_v34 = vadd.f32 %v1958_v42, %v655_v32  ;;  %v803_v35 = vadd.f32 %v1958_v42, %v802_v33  ;;  %v1069_v36 = vmax.f32 %v873_v30, %v922_v31 }
 0x1d7   :  { %v971_v37 = vmax.f32 %v656_v34, 0.0  ;;  %v1020_v38 = vmax.f32 %v803_v35, 0.0 }
 0x1d8   :  { %v364_v39 = vpop.f32.mrf.mxu0  ;;  %v511_v40 = vpop.f32.mrf.mxu1 }
 0x1d9   :  { %v1118_v16 = vmax.f32 %v971_v37, %v1020_v38  ;;  %v365_v41 = vadd.f32 %v1958_v42, %v364_v39  ;;  %v512_v43 = vadd.f32 %v1958_v42, %v511_v40 }
 0x1db   :  { %v1167_v44 = vmax.f32 %v1069_v36, %v1118_v16  ;;  %v874_v45 = vmax.f32 %v365_v41, 0.0  ;;  %v923_v46 = vmax.f32 %v512_v43, 0.0 }
 0x1dc   :  { %v658_v47 = vpop.f32.mrf.mxu2  ;;  %v805_v48 = vpop.f32.mrf.mxu3 }
 0x1dd   :  { %1216 = vst [vmem:[%s2291_s3 + $0x130] sm:$0xff] %v1167_v44  ;;  %v659_v49 = vadd.f32 %v1958_v42, %v658_v47  ;;  %v806_v50 = vadd.f32 %v1958_v42, %v805_v48  ;;  %v1070_v51 = vmax.f32 %v874_v45, %v923_v46 }
 0x1df   :  { %v972_v52 = vmax.f32 %v659_v49, 0.0  ;;  %v1021_v53 = vmax.f32 %v806_v50, 0.0 }
 0x1e0   :  { %v367_v54 = vpop.f32.mrf.mxu0  ;;  %v514_v55 = vpop.f32.mrf.mxu1 }
 0x1e1   :  { %v1119_v56 = vmax.f32 %v972_v52, %v1021_v53  ;;  %v368_v57 = vadd.f32 %v1958_v42, %v367_v54  ;;  %v515_v58 = vadd.f32 %v1958_v42, %v514_v55 }
 0x1e3   :  { %v1168_v59 = vmax.f32 %v1070_v51, %v1119_v56  ;;  %v875_v60 = vmax.f32 %v368_v57, 0.0  ;;  %v924_v61 = vmax.f32 %v515_v58, 0.0 }
 0x1e4   :  { %v661_v62 = vpop.f32.mrf.mxu2  ;;  %v808_v63 = vpop.f32.mrf.mxu3 }
 0x1e5   :  { %1217 = vst [vmem:[%s2291_s3 + $0x138] sm:$0xff] %v1168_v59  ;;  %v662_v0 = vadd.f32 %v1958_v42, %v661_v62  ;;  %v809_v1 = vadd.f32 %v1958_v42, %v808_v63  ;;  %v1071_v2 = vmax.f32 %v875_v60, %v924_v61 }
 0x1e7   :  { %v973_v3 = vmax.f32 %v662_v0, 0.0  ;;  %v1022_v4 = vmax.f32 %v809_v1, 0.0 }
 0x1e8   :  { %v370_v5 = vpop.f32.mrf.mxu0  ;;  %v517_v6 = vpop.f32.mrf.mxu1 }
 0x1e9   :  { %v1120_v7 = vmax.f32 %v973_v3, %v1022_v4  ;;  %v371_v8 = vadd.f32 %v1958_v42, %v370_v5  ;;  %v518_v9 = vadd.f32 %v1958_v42, %v517_v6 }
 0x1eb   :  { %v1169_v10 = vmax.f32 %v1071_v2, %v1120_v7  ;;  %v876_v11 = vmax.f32 %v371_v8, 0.0  ;;  %v925_v12 = vmax.f32 %v518_v9, 0.0 }
 0x1ec   :  { %v664_v13 = vpop.f32.mrf.mxu2  ;;  %v811_v14 = vpop.f32.mrf.mxu3 }
 0x1ed   :  { %1218 = vst [vmem:[%s2291_s3 + $0x140] sm:$0xff] %v1169_v10  ;;  %v665_v15 = vadd.f32 %v1958_v42, %v664_v13  ;;  %v812_v17 = vadd.f32 %v1958_v42, %v811_v14  ;;  %v1072_v18 = vmax.f32 %v876_v11, %v925_v12 }
 0x1ef   :  { %v974_v19 = vmax.f32 %v665_v15, 0.0  ;;  %v1023_v20 = vmax.f32 %v812_v17, 0.0 }
 0x1f0   :  { %v373_v21 = vpop.f32.mrf.mxu0  ;;  %v520_v22 = vpop.f32.mrf.mxu1 }
 0x1f1   :  { %v1121_v23 = vmax.f32 %v974_v19, %v1023_v20  ;;  %v374_v24 = vadd.f32 %v1958_v42, %v373_v21  ;;  %v521_v25 = vadd.f32 %v1958_v42, %v520_v22 }
 0x1f3   :  { %v1170_v26 = vmax.f32 %v1072_v18, %v1121_v23  ;;  %v877_v27 = vmax.f32 %v374_v24, 0.0  ;;  %v926_v28 = vmax.f32 %v521_v25, 0.0 }
 0x1f4   :  { %v667_v29 = vpop.f32.mrf.mxu2  ;;  %v814_v30 = vpop.f32.mrf.mxu3 }
 0x1f5   :  { %1219 = vst [vmem:[%s2291_s3 + $0x148] sm:$0xff] %v1170_v26  ;;  %v668_v31 = vadd.f32 %v1958_v42, %v667_v29  ;;  %v815_v32 = vadd.f32 %v1958_v42, %v814_v30  ;;  %v1073_v33 = vmax.f32 %v877_v27, %v926_v28 }
 0x1f7   :  { %v975_v34 = vmax.f32 %v668_v31, 0.0  ;;  %v1024_v35 = vmax.f32 %v815_v32, 0.0 }
 0x1f8   :  { %v376_v36 = vpop.f32.mrf.mxu0  ;;  %v523_v37 = vpop.f32.mrf.mxu1 }
 0x1f9   :  { %v1122_v38 = vmax.f32 %v975_v34, %v1024_v35  ;;  %v377_v39 = vadd.f32 %v1958_v42, %v376_v36  ;;  %v524_v40 = vadd.f32 %v1958_v42, %v523_v37 }
 0x1fb   :  { %v1171_v16 = vmax.f32 %v1073_v33, %v1122_v38  ;;  %v878_v41 = vmax.f32 %v377_v39, 0.0  ;;  %v927_v43 = vmax.f32 %v524_v40, 0.0 }
 0x1fc   :  { %v670_v44 = vpop.f32.mrf.mxu2  ;;  %v817_v45 = vpop.f32.mrf.mxu3 }
 0x1fd   :  { %1220 = vst [vmem:[%s2291_s3 + $0x150] sm:$0xff] %v1171_v16  ;;  %v671_v46 = vadd.f32 %v1958_v42, %v670_v44  ;;  %v818_v47 = vadd.f32 %v1958_v42, %v817_v45  ;;  %v1074_v48 = vmax.f32 %v878_v41, %v927_v43  ;;  %v1281_v43 = vld [vmem:[%s2290_s2] ss:$0 sm:$0xff] }
 0x1ff   :  { %v976_v49 = vmax.f32 %v671_v46, 0.0  ;;  %v1025_v50 = vmax.f32 %v818_v47, 0.0 }
 0x200   :  { %v379_v51 = vpop.f32.mrf.mxu0  ;;  %v526_v52 = vpop.f32.mrf.mxu1 }
 0x201   :  { %v1123_v53 = vmax.f32 %v976_v49, %v1025_v50  ;;  %v380_v54 = vadd.f32 %v1958_v42, %v379_v51  ;;  %v527_v55 = vadd.f32 %v1958_v42, %v526_v52 }
 0x203   :  { %v1172_v56 = vmax.f32 %v1074_v48, %v1123_v53  ;;  %v879_v57 = vmax.f32 %v380_v54, 0.0  ;;  %v928_v58 = vmax.f32 %v527_v55, 0.0 }
 0x204   :  { %v673_v59 = vpop.f32.mrf.mxu2  ;;  %v820_v60 = vpop.f32.mrf.mxu3 }
 0x205   :  { %1221 = vst [vmem:[%s2291_s3 + $0x158] sm:$0xff] %v1172_v56  ;;  %v674_v61 = vadd.f32 %v1958_v42, %v673_v59  ;;  %v821_v62 = vadd.f32 %v1958_v42, %v820_v60  ;;  %v1075_v63 = vmax.f32 %v879_v57, %v928_v58 }
 0x207   :  { %v977_v0 = vmax.f32 %v674_v61, 0.0  ;;  %v1026_v1 = vmax.f32 %v821_v62, 0.0 }
 0x208   :  { %v382_v2 = vpop.f32.mrf.mxu0  ;;  %v529_v3 = vpop.f32.mrf.mxu1 }
 0x209   :  { %v1124_v4 = vmax.f32 %v977_v0, %v1026_v1  ;;  %v383_v5 = vadd.f32 %v1958_v42, %v382_v2  ;;  %v530_v6 = vadd.f32 %v1958_v42, %v529_v3 }
 0x20b   :  { %v1173_v7 = vmax.f32 %v1075_v63, %v1124_v4  ;;  %v880_v8 = vmax.f32 %v383_v5, 0.0  ;;  %v929_v9 = vmax.f32 %v530_v6, 0.0 }
 0x20c   :  { %v676_v10 = vpop.f32.mrf.mxu2  ;;  %v823_v11 = vpop.f32.mrf.mxu3 }
 0x20d   :  { %1222 = vst [vmem:[%s2291_s3 + $0x160] sm:$0xff] %v1173_v7  ;;  %v677_v12 = vadd.f32 %v1958_v42, %v676_v10  ;;  %v824_v13 = vadd.f32 %v1958_v42, %v823_v11  ;;  %v1076_v14 = vmax.f32 %v880_v8, %v929_v9 }
 0x20f   :  { %v978_v15 = vmax.f32 %v677_v12, 0.0  ;;  %v1027_v17 = vmax.f32 %v824_v13, 0.0 }
 0x210   :  { %v385_v18 = vpop.f32.mrf.mxu0  ;;  %v532_v19 = vpop.f32.mrf.mxu1 }
 0x211   :  { %v1125_v20 = vmax.f32 %v978_v15, %v1027_v17  ;;  %v386_v21 = vadd.f32 %v1958_v42, %v385_v18  ;;  %v533_v22 = vadd.f32 %v1958_v42, %v532_v19 }
 0x213   :  { %v1174_v23 = vmax.f32 %v1076_v14, %v1125_v20  ;;  %v881_v24 = vmax.f32 %v386_v21, 0.0  ;;  %v930_v25 = vmax.f32 %v533_v22, 0.0 }
 0x214   :  { %v679_v26 = vpop.f32.mrf.mxu2  ;;  %v826_v27 = vpop.f32.mrf.mxu3 }
 0x215   :  { %1223 = vst [vmem:[%s2291_s3 + $0x168] sm:$0xff] %v1174_v23  ;;  %v680_v28 = vadd.f32 %v1958_v42, %v679_v26  ;;  %v827_v29 = vadd.f32 %v1958_v42, %v826_v27  ;;  %v1077_v30 = vmax.f32 %v881_v24, %v930_v25 }
 0x217   :  { %v979_v31 = vmax.f32 %v680_v28, 0.0  ;;  %v1028_v32 = vmax.f32 %v827_v29, 0.0 }
 0x218   :  { %v388_v33 = vpop.f32.mrf.mxu0  ;;  %v535_v34 = vpop.f32.mrf.mxu1 }
 0x219   :  { %v1126_v35 = vmax.f32 %v979_v31, %v1028_v32  ;;  %v389_v36 = vadd.f32 %v1958_v42, %v388_v33  ;;  %v536_v37 = vadd.f32 %v1958_v42, %v535_v34 }
 0x21b   :  { %v1175_v38 = vmax.f32 %v1077_v30, %v1126_v35  ;;  %v882_v39 = vmax.f32 %v389_v36, 0.0  ;;  %v931_v40 = vmax.f32 %v536_v37, 0.0 }
 0x21c   :  { %v682_v16 = vpop.f32.mrf.mxu2  ;;  %v829_v41 = vpop.f32.mrf.mxu3 }
 0x21d   :  { %1224 = vst [vmem:[%s2291_s3 + $0x170] sm:$0xff] %v1175_v38  ;;  %v683_v44 = vadd.f32 %v1281_v43, %v682_v16  ;;  %v830_v45 = vadd.f32 %v1281_v43, %v829_v41  ;;  %v1078_v46 = vmax.f32 %v882_v39, %v931_v40 }
 0x21f   :  { %v980_v47 = vmax.f32 %v683_v44, 0.0  ;;  %v1029_v48 = vmax.f32 %v830_v45, 0.0 }
 0x220   :  { %v391_v49 = vpop.f32.mrf.mxu0  ;;  %v538_v42 = vpop.f32.mrf.mxu1 }
 0x221   :  { %v1127_v50 = vmax.f32 %v980_v47, %v1029_v48  ;;  %v392_v51 = vadd.f32 %v1281_v43, %v391_v49  ;;  %v539_v52 = vadd.f32 %v1281_v43, %v538_v42 }
 0x223   :  { %v1176_v53 = vmax.f32 %v1078_v46, %v1127_v50  ;;  %v883_v54 = vmax.f32 %v392_v51, 0.0  ;;  %v932_v55 = vmax.f32 %v539_v52, 0.0 }
 0x224   :  { %v685_v56 = vpop.f32.mrf.mxu2  ;;  %v832_v57 = vpop.f32.mrf.mxu3 }
 0x225   :  { %1225 = vst [vmem:[%s2291_s3 + $0x178] sm:$0xff] %v1176_v53  ;;  %v686_v58 = vadd.f32 %v1281_v43, %v685_v56  ;;  %v833_v59 = vadd.f32 %v1281_v43, %v832_v57  ;;  %v1079_v60 = vmax.f32 %v883_v54, %v932_v55 }
 0x227   :  { %v981_v61 = vmax.f32 %v686_v58, 0.0  ;;  %v1030_v62 = vmax.f32 %v833_v59, 0.0 }
 0x229   :  { %v1128_v63 = vmax.f32 %v981_v61, %v1030_v62 }
 0x22b   :  { %v1177_v0 = vmax.f32 %v1079_v60, %v1128_v63 }
 0x22d   :  { %1226 = vst [vmem:[%s2291_s3 + $0x180] sm:$0xff] %v1177_v0 }

// kernel: cnn_forward.4
= control target key start
LH: loop header
LB: loop body
LE: loop exit
PB: predicated region body
PF: predicated region fallthrough
CT: control target
= control target key end

     0   :  { %s4731_s1 = inlined_call_operand.vmem [shape: f32[1152,128], index: 1, kind: input, shape index: {}]   ;;  %s4732_s0 = inlined_call_operand.vmem [shape: f32[416,1152], index: 0, kind: input, shape index: {}]   ;;  %s4733_s2 = inlined_call_operand.vmem [shape: f32[1,128], index: 2, kind: input, shape index: {}]   ;;  %s4734_s3 = inlined_call_operand.vmem [shape: f32[104,128], index: 3, kind: output, shape index: {}]  }
   0x1   :  { %v497_v0 = vld [vmem:[%s4731_s1 + $0x78] sm:$0xff]  ;;  %v496_v1 = vld [vmem:[%s4731_s1 + $0x70] sm:$0xff]  ;;  %v495_v2 = vld [vmem:[%s4731_s1 + $0x68] sm:$0xff] }
   0x2   :  { %2295 = vmatpush.msra.mxu1 %v497_v0  ;;  %2296 = vmatpush.msra.mxu2 %v497_v0  ;;  %v494_v3 = vld [vmem:[%s4731_s1 + $0x60] sm:$0xff]  ;;  %v493_v4 = vld [vmem:[%s4731_s1 + $0x58] sm:$0xff]  ;;  %v492_v5 = vld [vmem:[%s4731_s1 + $0x50] sm:$0xff] }
   0x3   :  { %2297 = vmatpush.msra.mxu3 %v497_v0  ;;  %630 = vmatpush.msra.mxu0 %v497_v0  ;;  %v491_v6 = vld [vmem:[%s4731_s1 + $0x48] sm:$0xff]  ;;  %v490_v7 = vld [vmem:[%s4731_s1 + $0x40] sm:$0xff]  ;;  %v489_v8 = vld [vmem:[%s4731_s1 + $0x38] sm:$0xff] }
   0x4   :  { %2298 = vmatpush.msra.mxu1 %v496_v1  ;;  %2299 = vmatpush.msra.mxu2 %v496_v1  ;;  %v488_v9 = vld [vmem:[%s4731_s1 + $0x30] sm:$0xff]  ;;  %v487_v10 = vld [vmem:[%s4731_s1 + $0x28] sm:$0xff]  ;;  %v486_v11 = vld [vmem:[%s4731_s1 + $0x20] sm:$0xff] }
   0x5   :  { %2300 = vmatpush.msra.mxu3 %v496_v1  ;;  %631 = vmatpush.msra.mxu0 %v496_v1  ;;  %v485_v12 = vld [vmem:[%s4731_s1 + $0x18] sm:$0xff]  ;;  %v484_v13 = vld [vmem:[%s4731_s1 + $0x10] sm:$0xff]  ;;  %v483_v14 = vld [vmem:[%s4731_s1 + $0x8] sm:$0xff] }
   0x6   :  { %2301 = vmatpush.msra.mxu1 %v495_v2  ;;  %2302 = vmatpush.msra.mxu2 %v495_v2  ;;  %v482_v15 = vld [vmem:[%s4731_s1] sm:$0xff]  ;;  %v131_v16 = vld [vmem:[%s4732_s0 + $0x3a8] sm:$0xff]  ;;  %v248_v17 = vld [vmem:[%s4732_s0 + $0x750] sm:$0xff] }
   0x7   :  { %2303 = vmatpush.msra.mxu3 %v495_v2  ;;  %632 = vmatpush.msra.mxu0 %v495_v2  ;;  %v529_v18 = vld [vmem:[%s4731_s1 + $0x178] sm:$0xff]  ;;  %v528_v22 = vld [vmem:[%s4731_s1 + $0x170] sm:$0xff]  ;;  %v14_v25 = vld [vmem:[%s4732_s0] sm:$0xff] }
   0x8   :  { %2304 = vmatpush.msra.mxu1 %v494_v3  ;;  %2305 = vmatpush.msra.mxu2 %v494_v3  ;;  %v365_v19 = vld [vmem:[%s4732_s0 + $0xaf8] sm:$0xff]  ;;  %v512_v23 = vld [vmem:[%s4731_s1 + $0xf0] sm:$0xff]  ;;  %v527_v27 = vld [vmem:[%s4731_s1 + $0x168] sm:$0xff] }
   0x9   :  { %2306 = vmatpush.msra.mxu3 %v494_v3  ;;  %633 = vmatpush.msra.mxu0 %v494_v3  ;;  %v513_v20 = vld [vmem:[%s4731_s1 + $0xf8] sm:$0xff]  ;;  %v544_v24 = vld [vmem:[%s4731_s1 + $0x1f0] sm:$0xff]  ;;  %v543_v28 = vld [vmem:[%s4731_s1 + $0x1e8] sm:$0xff] }
   0xa   :  { %2307 = vmatpush.msra.mxu1 %v493_v4  ;;  %2308 = vmatpush.msra.mxu2 %v493_v4  ;;  %v545_v21 = vld [vmem:[%s4731_s1 + $0x1f8] sm:$0xff]  ;;  %v511_v29 = vld [vmem:[%s4731_s1 + $0xe8] sm:$0xff]  ;;  %v140_v30 = vld [vmem:[%s4732_s0 + $0x3f0] sm:$0xff] }
   0xb   :  { %2309 = vmatpush.msra.mxu3 %v493_v4  ;;  %634 = vmatpush.msra.mxu0 %v493_v4  ;;  %v561_v26 = vld [vmem:[%s4731_s1 + $0x278] sm:$0xff]  ;;  %v560_v32 = vld [vmem:[%s4731_s1 + $0x270] sm:$0xff]  ;;  %v526_v33 = vld [vmem:[%s4731_s1 + $0x160] sm:$0xff] }
   0xc   :  { %2310 = vmatpush.msra.mxu1 %v492_v5  ;;  %2311 = vmatpush.msra.mxu2 %v492_v5  ;;  %v257_v31 = vld [vmem:[%s4732_s0 + $0x798] sm:$0xff]  ;;  %v374_v34 = vld [vmem:[%s4732_s0 + $0xb40] sm:$0xff]  ;;  %v559_v37 = vld [vmem:[%s4731_s1 + $0x268] sm:$0xff] }
   0xd   :  { %2312 = vmatpush.msra.mxu3 %v492_v5  ;;  %635 = vmatpush.msra.mxu0 %v492_v5  ;;  %v510_v35 = vld [vmem:[%s4731_s1 + $0xe0] sm:$0xff]  ;;  %v525_v38 = vld [vmem:[%s4731_s1 + $0x158] sm:$0xff]  ;;  %v23_v40 = vld [vmem:[%s4732_s0 + $0x48] sm:$0xff] }
   0xe   :  { %2313 = vmatpush.msra.mxu1 %v491_v6  ;;  %2314 = vmatpush.msra.mxu2 %v491_v6  ;;  %v542_v36 = vld [vmem:[%s4731_s1 + $0x1e0] sm:$0xff]  ;;  %v509_v39 = vld [vmem:[%s4731_s1 + $0xd8] sm:$0xff]  ;;  %v524_v43 = vld [vmem:[%s4731_s1 + $0x150] sm:$0xff] }
   0xf   :  { %2315 = vmatpush.msra.mxu3 %v491_v6  ;;  %636 = vmatpush.msra.mxu0 %v491_v6  ;;  %v541_v41 = vld [vmem:[%s4731_s1 + $0x1d8] sm:$0xff]  ;;  %v558_v42 = vld [vmem:[%s4731_s1 + $0x260] sm:$0xff]  ;;  %v540_v44 = vld [vmem:[%s4731_s1 + $0x1d0] sm:$0xff] }
  0x10   :  { %2316 = vmatpush.msra.mxu1 %v490_v7  ;;  %2317 = vmatpush.msra.mxu2 %v490_v7  ;;  %v508_v45 = vld [vmem:[%s4731_s1 + $0xd0] sm:$0xff]  ;;  %v149_v46 = vld [vmem:[%s4732_s0 + $0x438] sm:$0xff]  ;;  %v266_v47 = vld [vmem:[%s4732_s0 + $0x7e0] sm:$0xff] }
  0x11   :  { %2318 = vmatpush.msra.mxu3 %v490_v7  ;;  %637 = vmatpush.msra.mxu0 %v490_v7  ;;  %v557_v48 = vld [vmem:[%s4731_s1 + $0x258] sm:$0xff]  ;;  %v523_v49 = vld [vmem:[%s4731_s1 + $0x148] sm:$0xff]  ;;  %v556_v53 = vld [vmem:[%s4731_s1 + $0x250] sm:$0xff] }
  0x12   :  { %2319 = vmatpush.msra.mxu1 %v489_v8  ;;  %2320 = vmatpush.msra.mxu2 %v489_v8  ;;  %v383_v50 = vld [vmem:[%s4732_s0 + $0xb88] sm:$0xff]  ;;  %v522_v54 = vld [vmem:[%s4731_s1 + $0x140] sm:$0xff]  ;;  %v32_v55 = vld [vmem:[%s4732_s0 + $0x90] sm:$0xff] }
  0x13   :  { %2321 = vmatpush.msra.mxu3 %v489_v8  ;;  %638 = vmatpush.msra.mxu0 %v489_v8  ;;  %v507_v51 = vld [vmem:[%s4731_s1 + $0xc8] sm:$0xff]  ;;  %v538_v56 = vld [vmem:[%s4731_s1 + $0x1c0] sm:$0xff]  ;;  %v521_v59 = vld [vmem:[%s4731_s1 + $0x138] sm:$0xff] }
  0x14   :  { %2322 = vmatpush.msra.mxu1 %v488_v9  ;;  %2323 = vmatpush.msra.mxu2 %v488_v9  ;;  %v539_v52 = vld [vmem:[%s4731_s1 + $0x1c8] sm:$0xff]  ;;  %v506_v57 = vld [vmem:[%s4731_s1 + $0xc0] sm:$0xff]  ;;  %v537_v60 = vld [vmem:[%s4731_s1 + $0x1b8] sm:$0xff] }
  0x15   :  { %2324 = vmatpush.msra.mxu3 %v488_v9  ;;  %639 = vmatpush.msra.mxu0 %v488_v9  ;;  %v555_v58 = vld [vmem:[%s4731_s1 + $0x248] sm:$0xff]  ;;  %v158_v61 = vld [vmem:[%s4732_s0 + $0x480] sm:$0xff]  ;;  %v392_v63 = vld [vmem:[%s4732_s0 + $0xbd0] sm:$0xff] }
  0x16   :  { %2325 = vmatpush.msra.mxu1 %v487_v10  ;;  %2326 = vmatpush.msra.mxu2 %v487_v10  ;;  %v275_v62 = vld [vmem:[%s4732_s0 + $0x828] sm:$0xff]  ;;  %v505_v0 = vld [vmem:[%s4731_s1 + $0xb8] sm:$0xff]  ;;  %v554_v1 = vld [vmem:[%s4731_s1 + $0x240] sm:$0xff] }
  0x17   :  { %2327 = vmatpush.msra.mxu3 %v487_v10  ;;  %640 = vmatpush.msra.mxu0 %v487_v10  ;;  %v41_v2 = vld [vmem:[%s4732_s0 + $0xd8] sm:$0xff]  ;;  %v520_v3 = vld [vmem:[%s4731_s1 + $0x130] sm:$0xff]  ;;  %v167_v7 = vld [vmem:[%s4732_s0 + $0x4c8] sm:$0xff] }
  0x18   :  { %2328 = vmatpush.msra.mxu1 %v486_v11  ;;  %2329 = vmatpush.msra.mxu2 %v486_v11  ;;  %v536_v4 = vld [vmem:[%s4731_s1 + $0x1b0] sm:$0xff]  ;;  %v553_v5 = vld [vmem:[%s4731_s1 + $0x238] sm:$0xff]  ;;  %v519_v10 = vld [vmem:[%s4731_s1 + $0x128] sm:$0xff] }
  0x19   :  { %2330 = vmatpush.msra.mxu3 %v486_v11  ;;  %641 = vmatpush.msra.mxu0 %v486_v11  ;;  %v504_v6 = vld [vmem:[%s4731_s1 + $0xb0] sm:$0xff]  ;;  %v401_v9 = vld [vmem:[%s4732_s0 + $0xc18] sm:$0xff]  ;;  %v50_v11 = vld [vmem:[%s4732_s0 + $0x120] sm:$0xff] }
  0x1a   :  { %2331 = vmatpush.msra.mxu1 %v485_v12  ;;  %2332 = vmatpush.msra.mxu2 %v485_v12  ;;  %v284_v8 = vld [vmem:[%s4732_s0 + $0x870] sm:$0xff] }
  0x1b   :  { %2333 = vmatpush.msra.mxu3 %v485_v12  ;;  %642 = vmatpush.msra.mxu0 %v485_v12  ;;  %v535_v12 = vld [vmem:[%s4731_s1 + $0x1a8] sm:$0xff] }
  0x1c   :  { %2334 = vmatpush.msra.mxu1 %v484_v13  ;;  %2335 = vmatpush.msra.mxu2 %v484_v13 }
  0x1d   :  { %2336 = vmatpush.msra.mxu3 %v484_v13  ;;  %643 = vmatpush.msra.mxu0 %v484_v13  ;;  %v503_v13 = vld [vmem:[%s4731_s1 + $0xa8] sm:$0xff] }
  0x1e   :  { %2337 = vmatpush.msra.mxu1 %v483_v14  ;;  %2338 = vmatpush.msra.mxu2 %v483_v14 }
  0x1f   :  { %2339 = vmatpush.msra.mxu3 %v483_v14  ;;  %644 = vmatpush.msra.mxu0 %v483_v14  ;;  %v552_v14 = vld [vmem:[%s4731_s1 + $0x230] sm:$0xff] }
  0x20   :  { %2340 = vmatpush.msra.mxu1 %v482_v15  ;;  %2341 = vmatpush.msra.mxu2 %v482_v15 }
  0x21   :  { %685 = vmatmul.f32.vlgmr.msra.gmra.mxu1 %v131_v16  ;;  %724 = vmatmul.f32.vlgmr.msra.gmra.mxu2 %v248_v17  ;;  %v293_v16 = vld [vmem:[%s4732_s0 + $0x8b8] sm:$0xff]  ;;  %v410_v17 = vld [vmem:[%s4732_s0 + $0xc60] sm:$0xff] }
  0x22   :  { %976 = vmatpush.msrb.mxu2 %v529_v18  ;;  %2342 = vmatpush.msra.mxu3 %v482_v15  ;;  %v518_v18 = vld [vmem:[%s4731_s1 + $0x120] sm:$0xff] }
  0x23   :  { %763 = vmatmul.f32.vlgmr.msra.gmra.mxu3 %v365_v19  ;;  %803 = vmatpush.msrb.mxu1 %v513_v20  ;;  %v59_v19 = vld [vmem:[%s4732_s0 + $0x168] sm:$0xff]  ;;  %v534_v20 = vld [vmem:[%s4731_s1 + $0x1a0] sm:$0xff] }
  0x24   :  { %1149 = vmatpush.msrb.mxu3 %v545_v21  ;;  %977 = vmatpush.msrb.mxu2 %v528_v22  ;;  %v551_v21 = vld [vmem:[%s4731_s1 + $0x228] sm:$0xff]  ;;  %v502_v22 = vld [vmem:[%s4731_s1 + $0xa0] sm:$0xff] }
  0x25   :  { %645 = vmatpush.msra.mxu0 %v482_v15  ;;  %804 = vmatpush.msrb.mxu1 %v512_v23  ;;  %v176_v15 = vld [vmem:[%s4732_s0 + $0x510] sm:$0xff]  ;;  %v517_v23 = vld [vmem:[%s4731_s1 + $0x118] sm:$0xff] }
  0x26   :  { %1150 = vmatpush.msrb.mxu3 %v544_v24  ;;  %646 = vmatmul.f32.vlgmr.msra.gmra.mxu0 %v14_v25  ;;  %v185_v24 = vld [vmem:[%s4732_s0 + $0x558] sm:$0xff]  ;;  %v302_v25 = vld [vmem:[%s4732_s0 + $0x900] sm:$0xff] }
  0x27   :  { %1322 = vmatpush.msrb.mxu0 %v561_v26  ;;  %978 = vmatpush.msrb.mxu2 %v527_v27  ;;  %v419_v26 = vld [vmem:[%s4732_s0 + $0xca8] sm:$0xff]  ;;  %v533_v27 = vld [vmem:[%s4731_s1 + $0x198] sm:$0xff] }
  0x28   :  { %1151 = vmatpush.msrb.mxu3 %v543_v28  ;;  %805 = vmatpush.msrb.mxu1 %v511_v29  ;;  %v68_v28 = vld [vmem:[%s4732_s0 + $0x1b0] sm:$0xff]  ;;  %v501_v29 = vld [vmem:[%s4731_s1 + $0x98] sm:$0xff] }
  0x29   :  { %688 = vmatmul.f32.gmra.mxu1 %v140_v30  ;;  %727 = vmatmul.f32.gmra.mxu2 %v257_v31  ;;  %v550_v30 = vld [vmem:[%s4731_s1 + $0x220] sm:$0xff]  ;;  %v516_v31 = vld [vmem:[%s4731_s1 + $0x110] sm:$0xff] }
  0x2a   :  { %1323 = vmatpush.msrb.mxu0 %v560_v32  ;;  %979 = vmatpush.msrb.mxu2 %v526_v33  ;;  %v532_v32 = vld [vmem:[%s4731_s1 + $0x190] sm:$0xff]  ;;  %v194_v33 = vld [vmem:[%s4732_s0 + $0x5a0] sm:$0xff] }
  0x2b   :  { %766 = vmatmul.f32.gmra.mxu3 %v374_v34  ;;  %806 = vmatpush.msrb.mxu1 %v510_v35  ;;  %v311_v34 = vld [vmem:[%s4732_s0 + $0x948] sm:$0xff]  ;;  %v428_v35 = vld [vmem:[%s4732_s0 + $0xcf0] sm:$0xff] }
  0x2c   :  { %1152 = vmatpush.msrb.mxu3 %v542_v36  ;;  %1324 = vmatpush.msrb.mxu0 %v559_v37  ;;  %v549_v36 = vld [vmem:[%s4731_s1 + $0x218] sm:$0xff]  ;;  %v500_v37 = vld [vmem:[%s4731_s1 + $0x90] sm:$0xff] }
  0x2d   :  { %980 = vmatpush.msrb.mxu2 %v525_v38  ;;  %807 = vmatpush.msrb.mxu1 %v509_v39  ;;  %v77_v38 = vld [vmem:[%s4732_s0 + $0x1f8] sm:$0xff]  ;;  %v515_v39 = vld [vmem:[%s4731_s1 + $0x108] sm:$0xff] }
  0x2e   :  { %649 = vmatmul.f32.gmra.mxu0 %v23_v40  ;;  %1153 = vmatpush.msrb.mxu3 %v541_v41  ;;  %v531_v40 = vld [vmem:[%s4731_s1 + $0x188] sm:$0xff] }
  0x2f   :  { %1325 = vmatpush.msrb.mxu0 %v558_v42  ;;  %981 = vmatpush.msrb.mxu2 %v524_v43  ;;  %v499_v41 = vld [vmem:[%s4731_s1 + $0x88] sm:$0xff]  ;;  %v548_v42 = vld [vmem:[%s4731_s1 + $0x210] sm:$0xff] }
  0x30   :  { %1154 = vmatpush.msrb.mxu3 %v540_v44  ;;  %808 = vmatpush.msrb.mxu1 %v508_v45  ;;  %v203_v43 = vld [vmem:[%s4732_s0 + $0x5e8] sm:$0xff]  ;;  %v320_v44 = vld [vmem:[%s4732_s0 + $0x990] sm:$0xff]  ;;  %v437_v45 = vld [vmem:[%s4732_s0 + $0xd38] sm:$0xff] }
  0x31   :  { %691 = vmatmul.f32.gmra.mxu1 %v149_v46  ;;  %730 = vmatmul.f32.gmra.mxu2 %v266_v47  ;;  %v86_v46 = vld [vmem:[%s4732_s0 + $0x240] sm:$0xff] }
  0x32   :  { %1326 = vmatpush.msrb.mxu0 %v557_v48  ;;  %982 = vmatpush.msrb.mxu2 %v523_v49  ;;  %v514_v47 = vld [vmem:[%s4731_s1 + $0x100] sm:$0xff]  ;;  %v547_v49 = vld [vmem:[%s4731_s1 + $0x208] sm:$0xff] }
  0x33   :  { %769 = vmatmul.f32.gmra.mxu3 %v383_v50  ;;  %809 = vmatpush.msrb.mxu1 %v507_v51  ;;  %v530_v48 = vld [vmem:[%s4731_s1 + $0x180] sm:$0xff]  ;;  %v212_v51 = vld [vmem:[%s4732_s0 + $0x630] sm:$0xff] }
  0x34   :  { %1155 = vmatpush.msrb.mxu3 %v539_v52  ;;  %1327 = vmatpush.msrb.mxu0 %v556_v53  ;;  %v498_v50 = vld [vmem:[%s4731_s1 + $0x80] sm:$0xff]  ;;  %v329_v52 = vld [vmem:[%s4732_s0 + $0x9d8] sm:$0xff] }
  0x35   :  { %983 = vmatpush.msrb.mxu2 %v522_v54  ;;  %810 = vmatpush.msrb.mxu1 %v506_v57  ;;  %v446_v53 = vld [vmem:[%s4732_s0 + $0xd80] sm:$0xff]  ;;  %v593_v54 = vld [vmem:[%s4731_s1 + $0x378] sm:$0xff] }
  0x36   :  { %652 = vmatmul.f32.gmra.mxu0 %v32_v55  ;;  %1156 = vmatpush.msrb.mxu3 %v538_v56  ;;  %v95_v55 = vld [vmem:[%s4732_s0 + $0x288] sm:$0xff]  ;;  %v609_v56 = vld [vmem:[%s4731_s1 + $0x3f8] sm:$0xff]  ;;  %v546_v57 = vld [vmem:[%s4731_s1 + $0x200] sm:$0xff] }
  0x37   :  { %1328 = vmatpush.msrb.mxu0 %v555_v58  ;;  %984 = vmatpush.msrb.mxu2 %v521_v59  ;;  %v577_v58 = vld [vmem:[%s4731_s1 + $0x2f8] sm:$0xff] }
  0x38   :  { %1157 = vmatpush.msrb.mxu3 %v537_v60  ;;  %811 = vmatpush.msrb.mxu1 %v505_v0  ;;  %v221_v59 = vld [vmem:[%s4732_s0 + $0x678] sm:$0xff]  ;;  %v338_v60 = vld [vmem:[%s4732_s0 + $0xa20] sm:$0xff] }
  0x39   :  { %694 = vmatmul.f32.gmra.mxu1 %v158_v61  ;;  %733 = vmatmul.f32.gmra.mxu2 %v275_v62  ;;  %v455_v61 = vld [vmem:[%s4732_s0 + $0xdc8] sm:$0xff]  ;;  %v104_v62 = vld [vmem:[%s4732_s0 + $0x2d0] sm:$0xff]  ;;  %v230_v0 = vld [vmem:[%s4732_s0 + $0x6c0] sm:$0xff] }
  0x3a   :  { %1329 = vmatpush.msrb.mxu0 %v554_v1  ;;  %985 = vmatpush.msrb.mxu2 %v520_v3  ;;  %v347_v1 = vld [vmem:[%s4732_s0 + $0xa68] sm:$0xff]  ;;  %v113_v3 = vld [vmem:[%s4732_s0 + $0x318] sm:$0xff] }
  0x3b   :  { %772 = vmatmul.f32.gmra.mxu3 %v392_v63  ;;  %812 = vmatpush.msrb.mxu1 %v504_v6  ;;  %v625_v63 = vld [vmem:[%s4731_s1 + $0x478] sm:$0xff] }
  0x3c   :  { %1158 = vmatpush.msrb.mxu3 %v536_v4  ;;  %1330 = vmatpush.msrb.mxu0 %v553_v5  ;;  %v239_v4 = vld [vmem:[%s4732_s0 + $0x708] sm:$0xff]  ;;  %v356_v5 = vld [vmem:[%s4732_s0 + $0xab0] sm:$0xff]  ;;  %v473_v6 = vld [vmem:[%s4732_s0 + $0xe58] sm:$0xff] }
  0x3d   :  { %986 = vmatpush.msrb.mxu2 %v519_v10  ;;  %813 = vmatpush.msrb.mxu1 %v503_v13  ;;  %v15_v10 = vld [vmem:[%s4732_s0 + $0x8] sm:$0xff]  ;;  %v17_v13 = vld [vmem:[%s4732_s0 + $0x18] sm:$0xff] }
  0x3e   :  { %655 = vmatmul.f32.gmra.mxu0 %v41_v2  ;;  %1159 = vmatpush.msrb.mxu3 %v535_v12  ;;  %v464_v2 = vld [vmem:[%s4732_s0 + $0xe10] sm:$0xff] }
  0x3f   :  { %1331 = vmatpush.msrb.mxu0 %v552_v14  ;;  %987 = vmatpush.msrb.mxu2 %v518_v18  ;;  %v576_v12 = vld [vmem:[%s4731_s1 + $0x2f0] sm:$0xff]  ;;  %v18_v14 = vld [vmem:[%s4732_s0 + $0x20] sm:$0xff] }
  0x40   :  { %1160 = vmatpush.msrb.mxu3 %v534_v20  ;;  %814 = vmatpush.msrb.mxu1 %v502_v22  ;;  %v26_v18 = vld [vmem:[%s4732_s0 + $0x60] sm:$0xff]  ;;  %v33_v20 = vld [vmem:[%s4732_s0 + $0x98] sm:$0xff]  ;;  %v35_v22 = vld [vmem:[%s4732_s0 + $0xa8] sm:$0xff] }
  0x41   :  { %697 = vmatmul.f32.gmra.mxu1 %v167_v7  ;;  %736 = vmatmul.f32.gmra.mxu2 %v284_v8  ;;  %v122_v7 = vld [vmem:[%s4732_s0 + $0x360] sm:$0xff]  ;;  %v592_v8 = vld [vmem:[%s4731_s1 + $0x370] sm:$0xff] }
  0x42   :  { %1332 = vmatpush.msrb.mxu0 %v551_v21  ;;  %988 = vmatpush.msrb.mxu2 %v517_v23  ;;  %v34_v21 = vld [vmem:[%s4732_s0 + $0xa0] sm:$0xff]  ;;  %v36_v23 = vld [vmem:[%s4732_s0 + $0xb0] sm:$0xff] }
  0x43   :  { %775 = vmatmul.f32.gmra.mxu3 %v401_v9  ;;  %815 = vmatpush.msrb.mxu1 %v501_v29  ;;  %v608_v9 = vld [vmem:[%s4731_s1 + $0x3f0] sm:$0xff] }
  0x44   :  { %1161 = vmatpush.msrb.mxu3 %v533_v27  ;;  %1333 = vmatpush.msrb.mxu0 %v550_v30  ;;  %v43_v27 = vld [vmem:[%s4732_s0 + $0xe8] sm:$0xff]  ;;  %v44_v29 = vld [vmem:[%s4732_s0 + $0xf0] sm:$0xff] }
  0x45   :  { %989 = vmatpush.msrb.mxu2 %v516_v31  ;;  %816 = vmatpush.msrb.mxu1 %v500_v37  ;;  %v575_v30 = vld [vmem:[%s4731_s1 + $0x2e8] sm:$0xff]  ;;  %v52_v37 = vld [vmem:[%s4732_s0 + $0x130] sm:$0xff] }
  0x46   :  { %658 = vmatmul.f32.gmra.mxu0 %v50_v11  ;;  %1162 = vmatpush.msrb.mxu3 %v532_v32  ;;  %v16_v11 = vld [vmem:[%s4732_s0 + $0x10] sm:$0xff]  ;;  %v45_v32 = vld [vmem:[%s4732_s0 + $0xf8] sm:$0xff] }
  0x47   :  { %1334 = vmatpush.msrb.mxu0 %v549_v36  ;;  %990 = vmatpush.msrb.mxu2 %v515_v39  ;;  %v51_v36 = vld [vmem:[%s4732_s0 + $0x128] sm:$0xff]  ;;  %v53_v39 = vld [vmem:[%s4732_s0 + $0x138] sm:$0xff] }
  0x48   :  { %1163 = vmatpush.msrb.mxu3 %v531_v40  ;;  %817 = vmatpush.msrb.mxu1 %v499_v41  ;;  %v54_v41 = vld [vmem:[%s4732_s0 + $0x140] sm:$0xff] }
  0x49   :  { %700 = vmatmul.f32.gmra.mxu1 %v176_v15  ;;  %739 = vmatmul.f32.gmra.mxu2 %v293_v16  ;;  %v624_v15 = vld [vmem:[%s4731_s1 + $0x470] sm:$0xff] }
  0x4a   :  { %1335 = vmatpush.msrb.mxu0 %v548_v42  ;;  %991 = vmatpush.msrb.mxu2 %v514_v47  ;;  %v24_v16 = vld [vmem:[%s4732_s0 + $0x50] sm:$0xff]  ;;  %v62_v47 = vld [vmem:[%s4732_s0 + $0x180] sm:$0xff] }
  0x4b   :  { %778 = vmatmul.f32.gmra.mxu3 %v410_v17  ;;  %818 = vmatpush.msrb.mxu1 %v498_v50  ;;  %v25_v17 = vld [vmem:[%s4732_s0 + $0x58] sm:$0xff] }
  0x4c   :  { %1164 = vmatpush.msrb.mxu3 %v530_v48  ;;  %1336 = vmatpush.msrb.mxu0 %v547_v49  ;;  %v63_v49 = vld [vmem:[%s4732_s0 + $0x188] sm:$0xff] }
  0x4d   :  { %1668 = vmatpush.msra.mxu2 %v593_v54  ;;  %1495 = vmatpush.msra.mxu1 %v577_v58  ;;  %v70_v54 = vld [vmem:[%s4732_s0 + $0x1c0] sm:$0xff] }
  0x4e   :  { %661 = vmatmul.f32.gmra.mxu0 %v59_v19  ;;  %1841 = vmatpush.msra.mxu3 %v609_v56  ;;  %v27_v19 = vld [vmem:[%s4732_s0 + $0x68] sm:$0xff] }
  0x4f   :  { %1337 = vmatpush.msrb.mxu0 %v546_v57  ;;  %1669 = vmatpush.msra.mxu2 %v592_v8  ;;  %v71_v56 = vld [vmem:[%s4732_s0 + $0x1c8] sm:$0xff]  ;;  %v606_v57 = vld [vmem:[%s4731_s1 + $0x3e0] sm:$0xff] }
  0x50   :  { %1842 = vmatpush.msra.mxu3 %v608_v9  ;;  %1496 = vmatpush.msra.mxu1 %v576_v12  ;;  %v87_v9 = vld [vmem:[%s4732_s0 + $0x248] sm:$0xff] }
  0x51   :  { %703 = vmatmul.f32.gmra.mxu1 %v185_v24  ;;  %742 = vmatmul.f32.gmra.mxu2 %v302_v25  ;;  %v591_v24 = vld [vmem:[%s4731_s1 + $0x368] sm:$0xff] }
  0x52   :  { %2014 = vmatpush.msra.mxu0 %v625_v63  ;;  %1670 = vmatpush.msra.mxu2 %v591_v24 }
  0x53   :  { %781 = vmatmul.f32.gmra.mxu3 %v419_v26  ;;  %v42_v26 = vld [vmem:[%s4732_s0 + $0xe0] sm:$0xff]  ;;  %1497 = vmatpush.msra.mxu1 %v575_v30 }
  0x54   :  { %2015 = vmatpush.msra.mxu0 %v624_v15  ;;  %v106_v30 = vld [vmem:[%s4732_s0 + $0x2e0] sm:$0xff] }
  0x56   :  { %664 = vmatmul.f32.gmra.mxu0 %v68_v28  ;;  %v607_v28 = vld [vmem:[%s4731_s1 + $0x3e8] sm:$0xff] }
  0x57   :  { %1843 = vmatpush.msra.mxu3 %v607_v28 }
  0x59   :  { %706 = vmatmul.f32.gmra.mxu1 %v194_v33  ;;  %745 = vmatmul.f32.gmra.mxu2 %v311_v34 }
  0x5a   :  { %1844 = vmatpush.msra.mxu3 %v606_v57 }
  0x5b   :  { %784 = vmatmul.f32.gmra.mxu3 %v428_v35 }
  0x5e   :  { %667 = vmatmul.f32.gmra.mxu0 %v77_v38  ;;  %v623_v38 = vld [vmem:[%s4731_s1 + $0x468] sm:$0xff] }
  0x5f   :  { %2016 = vmatpush.msra.mxu0 %v623_v38  ;;  %v621_v38 = vld [vmem:[%s4731_s1 + $0x458] sm:$0xff] }
  0x61   :  { %709 = vmatmul.f32.gmra.mxu1 %v203_v43  ;;  %748 = vmatmul.f32.gmra.mxu2 %v320_v44 }
  0x63   :  { %787 = vmatmul.f32.gmra.mxu3 %v437_v45  ;;  %v60_v45 = vld [vmem:[%s4732_s0 + $0x170] sm:$0xff] }
  0x66   :  { %670 = vmatmul.f32.gmra.mxu0 %v86_v46  ;;  %v61_v46 = vld [vmem:[%s4732_s0 + $0x178] sm:$0xff] }
  0x69   :  { %712 = vmatmul.f32.gmra.mxu1 %v212_v51  ;;  %751 = vmatmul.f32.gmra.mxu2 %v329_v52 }
  0x6b   :  { %790 = vmatmul.f32.gmra.mxu3 %v446_v53  ;;  %v69_v53 = vld [vmem:[%s4732_s0 + $0x1b8] sm:$0xff] }
  0x6e   :  { %673 = vmatmul.f32.gmra.mxu0 %v95_v55  ;;  %v590_v55 = vld [vmem:[%s4731_s1 + $0x360] sm:$0xff] }
  0x6f   :  { %1671 = vmatpush.msra.mxu2 %v590_v55 }
  0x71   :  { %715 = vmatmul.f32.gmra.mxu1 %v221_v59  ;;  %754 = vmatmul.f32.gmra.mxu2 %v338_v60  ;;  %v72_v59 = vld [vmem:[%s4732_s0 + $0x1d0] sm:$0xff]  ;;  %v574_v60 = vld [vmem:[%s4731_s1 + $0x2e0] sm:$0xff] }
  0x72   :  { %1498 = vmatpush.msra.mxu1 %v574_v60  ;;  %v124_v60 = vld [vmem:[%s4732_s0 + $0x370] sm:$0xff] }
  0x73   :  { %793 = vmatmul.f32.gmra.mxu3 %v455_v61 }
  0x76   :  { %676 = vmatmul.f32.gmra.mxu0 %v104_v62 }
  0x79   :  { %718 = vmatmul.f32.gmra.mxu1 %v230_v0  ;;  %757 = vmatmul.f32.gmra.mxu2 %v347_v1  ;;  %v78_v0 = vld [vmem:[%s4732_s0 + $0x200] sm:$0xff]  ;;  %v79_v1 = vld [vmem:[%s4732_s0 + $0x208] sm:$0xff] }
  0x7b   :  { %796 = vmatmul.f32.gmra.mxu3 %v464_v2  ;;  %v80_v2 = vld [vmem:[%s4732_s0 + $0x210] sm:$0xff] }
  0x7e   :  { %679 = vmatmul.f32.gmra.mxu0 %v113_v3  ;;  %v622_v3 = vld [vmem:[%s4731_s1 + $0x460] sm:$0xff] }
  0x7f   :  { %2017 = vmatpush.msra.mxu0 %v622_v3  ;;  %v588_v3 = vld [vmem:[%s4731_s1 + $0x350] sm:$0xff] }
  0x81   :  { %721 = vmatmul.f32.gmra.mxu1 %v239_v4  ;;  %760 = vmatmul.f32.gmra.mxu2 %v356_v5  ;;  %v81_v5 = vld [vmem:[%s4732_s0 + $0x218] sm:$0xff] }
  0x82   :  { %2018 = vmatpush.msra.mxu0 %v621_v38  ;;  %v143_v38 = vld [vmem:[%s4732_s0 + $0x408] sm:$0xff] }
  0x83   :  { %799 = vmatmul.f32.gmra.mxu3 %v473_v6 }
  0x86   :  { %682 = vmatmul.f32.gmra.mxu0 %v122_v7 }
  0x89   :  { %819 = vmatmul.f32.vlgmr.msrb.gmra.mxu1 %v15_v10  ;;  %992 = vmatmul.f32.vlgmr.msrb.gmra.mxu2 %v16_v11  ;;  %v88_v10 = vld [vmem:[%s4732_s0 + $0x250] sm:$0xff]  ;;  %v89_v11 = vld [vmem:[%s4732_s0 + $0x258] sm:$0xff] }
  0x8b   :  { %1165 = vmatmul.f32.vlgmr.msrb.gmra.mxu3 %v17_v13  ;;  %v90_v13 = vld [vmem:[%s4732_s0 + $0x260] sm:$0xff] }
  0x8e   :  { %1338 = vmatmul.f32.vlgmr.msrb.gmra.mxu0 %v18_v14 }
  0x91   :  { %822 = vmatmul.f32.gmra.mxu1 %v24_v16  ;;  %995 = vmatmul.f32.gmra.mxu2 %v25_v17  ;;  %v96_v17 = vld [vmem:[%s4732_s0 + $0x290] sm:$0xff] }
  0x93   :  { %1168 = vmatmul.f32.gmra.mxu3 %v26_v18  ;;  %v97_v18 = vld [vmem:[%s4732_s0 + $0x298] sm:$0xff] }
  0x96   :  { %1341 = vmatmul.f32.gmra.mxu0 %v27_v19  ;;  %v98_v19 = vld [vmem:[%s4732_s0 + $0x2a0] sm:$0xff] }
  0x99   :  { %825 = vmatmul.f32.gmra.mxu1 %v33_v20  ;;  %998 = vmatmul.f32.gmra.mxu2 %v34_v21  ;;  %v589_v20 = vld [vmem:[%s4731_s1 + $0x358] sm:$0xff] }
  0x9a   :  { %1672 = vmatpush.msra.mxu2 %v589_v20 }
  0x9b   :  { %1171 = vmatmul.f32.gmra.mxu3 %v35_v22  ;;  %v99_v22 = vld [vmem:[%s4732_s0 + $0x2a8] sm:$0xff] }
  0x9c   :  { %1673 = vmatpush.msra.mxu2 %v588_v3 }
  0x9e   :  { %v2824_v25 = vpop.f32.mrf.mxu1  ;;  %1344 = vmatmul.f32.gmra.mxu0 %v36_v23  ;;  %v605_v23 = vld [vmem:[%s4731_s1 + $0x3d8] sm:$0xff] }
  0x9f   :  { %1845 = vmatpush.msra.mxu3 %v605_v23 }
  0xa1   :  { %828 = vmatmul.f32.gmra.mxu1 %v42_v26  ;;  %1001 = vmatmul.f32.gmra.mxu2 %v43_v27  ;;  %v573_v26 = vld [vmem:[%s4731_s1 + $0x2d8] sm:$0xff] }
  0xa2   :  { %1499 = vmatpush.msra.mxu1 %v573_v26  ;;  %v620_v26 = vld [vmem:[%s4731_s1 + $0x450] sm:$0xff] }
  0xa3   :  { %1174 = vmatmul.f32.gmra.mxu3 %v44_v29  ;;  %v2841_v31 = vpop.f32.mrf.mxu0  ;;  %v105_v29 = vld [vmem:[%s4732_s0 + $0x2d8] sm:$0xff]  ;;  %2019 = vmatpush.msra.mxu0 %v620_v26  ;;  %v160_v26 = vld [vmem:[%s4732_s0 + $0x490] sm:$0xff] }
  0xa4   :  { %v2846_v33 = vpop.f32.mrf.mxu2 }
  0xa6   :  { %v2848_v34 = vpop.f32.mrf.mxu1  ;;  %v2850_v35 = vpop.f32.mrf.mxu3  ;;  %1347 = vmatmul.f32.gmra.mxu0 %v45_v32  ;;  %v107_v32 = vld [vmem:[%s4732_s0 + $0x2e8] sm:$0xff] }
  0xa9   :  { %831 = vmatmul.f32.gmra.mxu1 %v51_v36  ;;  %1004 = vmatmul.f32.gmra.mxu2 %v52_v37  ;;  %v108_v37 = vld [vmem:[%s4732_s0 + $0x2f0] sm:$0xff] }
  0xab   :  { %1177 = vmatmul.f32.gmra.mxu3 %v53_v39  ;;  %v2864_v40 = vpop.f32.mrf.mxu0 }
  0xac   :  { %v2869_v42 = vpop.f32.mrf.mxu2 }
  0xae   :  { %v2871_v43 = vpop.f32.mrf.mxu1  ;;  %v2873_v44 = vpop.f32.mrf.mxu3  ;;  %1350 = vmatmul.f32.gmra.mxu0 %v54_v41 }
  0xb1   :  { %834 = vmatmul.f32.gmra.mxu1 %v60_v45  ;;  %1007 = vmatmul.f32.gmra.mxu2 %v61_v46  ;;  %v114_v46 = vld [vmem:[%s4732_s0 + $0x320] sm:$0xff] }
  0xb3   :  { %1180 = vmatmul.f32.gmra.mxu3 %v62_v47  ;;  %v2884_v48 = vpop.f32.mrf.mxu0  ;;  %v115_v47 = vld [vmem:[%s4732_s0 + $0x328] sm:$0xff] }
  0xb4   :  { %v2889_v50 = vpop.f32.mrf.mxu2 }
  0xb6   :  { %v2891_v51 = vpop.f32.mrf.mxu1  ;;  %v2893_v52 = vpop.f32.mrf.mxu3  ;;  %1353 = vmatmul.f32.gmra.mxu0 %v63_v49  ;;  %v116_v49 = vld [vmem:[%s4732_s0 + $0x330] sm:$0xff] }
  0xb9   :  { %837 = vmatmul.f32.gmra.mxu1 %v69_v53  ;;  %1010 = vmatmul.f32.gmra.mxu2 %v70_v54  ;;  %v117_v54 = vld [vmem:[%s4732_s0 + $0x338] sm:$0xff] }
  0xbb   :  { %1183 = vmatmul.f32.gmra.mxu3 %v71_v56  ;;  %v2910_v58 = vpop.f32.mrf.mxu0 }
  0xbc   :  { %v2918_v61 = vpop.f32.mrf.mxu2 }
  0xbe   :  { %v2920_v62 = vpop.f32.mrf.mxu1  ;;  %v2922_v63 = vpop.f32.mrf.mxu3  ;;  %1356 = vmatmul.f32.gmra.mxu0 %v72_v59  ;;  %v123_v59 = vld [vmem:[%s4732_s0 + $0x368] sm:$0xff] }
  0xc1   :  { %840 = vmatmul.f32.gmra.mxu1 %v78_v0  ;;  %1013 = vmatmul.f32.gmra.mxu2 %v79_v1  ;;  %v125_v0 = vld [vmem:[%s4732_s0 + $0x378] sm:$0xff] }
  0xc3   :  { %1186 = vmatmul.f32.gmra.mxu3 %v80_v2  ;;  %v2936_v4 = vpop.f32.mrf.mxu0  ;;  %v126_v2 = vld [vmem:[%s4732_s0 + $0x380] sm:$0xff] }
  0xc4   :  { %v2941_v6 = vpop.f32.mrf.mxu2 }
  0xc6   :  { %v2943_v7 = vpop.f32.mrf.mxu1  ;;  %v2945_v8 = vpop.f32.mrf.mxu3  ;;  %1359 = vmatmul.f32.gmra.mxu0 %v81_v5 }
  0xc9   :  { %843 = vmatmul.f32.gmra.mxu1 %v87_v9  ;;  %1016 = vmatmul.f32.gmra.mxu2 %v88_v10  ;;  %v604_v9 = vld [vmem:[%s4731_s1 + $0x3d0] sm:$0xff] }
  0xca   :  { %1846 = vmatpush.msra.mxu3 %v604_v9  ;;  %v153_v9 = vld [vmem:[%s4732_s0 + $0x458] sm:$0xff] }
  0xcb   :  { %1189 = vmatmul.f32.gmra.mxu3 %v89_v11  ;;  %v2956_v12 = vpop.f32.mrf.mxu0 }
  0xcc   :  { %v2961_v14 = vpop.f32.mrf.mxu2 }
  0xce   :  { %v2963_v15 = vpop.f32.mrf.mxu1  ;;  %v2965_v16 = vpop.f32.mrf.mxu3  ;;  %1362 = vmatmul.f32.gmra.mxu0 %v90_v13  ;;  %v132_v13 = vld [vmem:[%s4732_s0 + $0x3b0] sm:$0xff] }
  0xd1   :  { %846 = vmatmul.f32.gmra.mxu1 %v96_v17  ;;  %1019 = vmatmul.f32.gmra.mxu2 %v97_v18  ;;  %v133_v17 = vld [vmem:[%s4732_s0 + $0x3b8] sm:$0xff]  ;;  %v572_v18 = vld [vmem:[%s4731_s1 + $0x2d0] sm:$0xff] }
  0xd2   :  { %1500 = vmatpush.msra.mxu1 %v572_v18 }
  0xd3   :  { %1192 = vmatmul.f32.gmra.mxu3 %v98_v19  ;;  %v2979_v21 = vpop.f32.mrf.mxu0  ;;  %v134_v19 = vld [vmem:[%s4732_s0 + $0x3c0] sm:$0xff] }
  0xd4   :  { %v2987_v24 = vpop.f32.mrf.mxu2 }
  0xd6   :  { %v2992_v27 = vpop.f32.mrf.mxu1  ;;  %v2994_v28 = vpop.f32.mrf.mxu3  ;;  %1365 = vmatmul.f32.gmra.mxu0 %v99_v22  ;;  %v135_v22 = vld [vmem:[%s4732_s0 + $0x3c8] sm:$0xff] }
  0xd9   :  { %849 = vmatmul.f32.gmra.mxu1 %v105_v29  ;;  %1022 = vmatmul.f32.gmra.mxu2 %v106_v30 }
  0xdb   :  { %1195 = vmatmul.f32.gmra.mxu3 %v107_v32  ;;  %v3005_v36 = vpop.f32.mrf.mxu0  ;;  %v141_v32 = vld [vmem:[%s4732_s0 + $0x3f8] sm:$0xff] }
  0xdc   :  { %v3013_v39 = vpop.f32.mrf.mxu2 }
  0xde   :  { %v3015_v41 = vpop.f32.mrf.mxu1  ;;  %v3017_v45 = vpop.f32.mrf.mxu3  ;;  %1368 = vmatmul.f32.gmra.mxu0 %v108_v37  ;;  %v142_v37 = vld [vmem:[%s4732_s0 + $0x400] sm:$0xff] }
  0xe1   :  { %852 = vmatmul.f32.gmra.mxu1 %v114_v46  ;;  %1025 = vmatmul.f32.gmra.mxu2 %v115_v47  ;;  %v144_v47 = vld [vmem:[%s4732_s0 + $0x410] sm:$0xff] }
  0xe3   :  { %1198 = vmatmul.f32.gmra.mxu3 %v116_v49  ;;  %v3028_v53 = vpop.f32.mrf.mxu0 }
  0xe4   :  { %v3033_v55 = vpop.f32.mrf.mxu2 }
  0xe6   :  { %v3035_v56 = vpop.f32.mrf.mxu1  ;;  %v3037_v57 = vpop.f32.mrf.mxu3  ;;  %1371 = vmatmul.f32.gmra.mxu0 %v117_v54 }
  0xe9   :  { %855 = vmatmul.f32.gmra.mxu1 %v123_v59  ;;  %1028 = vmatmul.f32.gmra.mxu2 %v124_v60  ;;  %v150_v60 = vld [vmem:[%s4732_s0 + $0x440] sm:$0xff] }
  0xeb   :  { %1201 = vmatmul.f32.gmra.mxu3 %v125_v0  ;;  %v3048_v1 = vpop.f32.mrf.mxu0  ;;  %v151_v0 = vld [vmem:[%s4732_s0 + $0x448] sm:$0xff] }
  0xec   :  { %v3056_v5 = vpop.f32.mrf.mxu2 }
  0xee   :  { %v3061_v10 = vpop.f32.mrf.mxu1  ;;  %v3063_v11 = vpop.f32.mrf.mxu3  ;;  %1374 = vmatmul.f32.gmra.mxu0 %v126_v2  ;;  %v152_v2 = vld [vmem:[%s4732_s0 + $0x450] sm:$0xff] }
  0xef   :  { %4735 = vst [vmem:[#allocation2_spill] sm:$0xff] %v3063_v11 }
  0xf1   :  { %858 = vmatmul.f32.gmra.mxu1 %v132_v13  ;;  %1031 = vmatmul.f32.gmra.mxu2 %v133_v17  ;;  %v587_v17 = vld [vmem:[%s4731_s1 + $0x348] sm:$0xff] }
  0xf2   :  { %1674 = vmatpush.msra.mxu2 %v587_v17 }
  0xf3   :  { %1204 = vmatmul.f32.gmra.mxu3 %v134_v19  ;;  %v3077_v20 = vpop.f32.mrf.mxu0 }
  0xf4   :  { %v3082_v23 = vpop.f32.mrf.mxu2 }
  0xf6   :  { %v3087_v29 = vpop.f32.mrf.mxu1  ;;  %v3089_v30 = vpop.f32.mrf.mxu3  ;;  %1377 = vmatmul.f32.gmra.mxu0 %v135_v22  ;;  %v159_v22 = vld [vmem:[%s4732_s0 + $0x488] sm:$0xff] }
  0xf7   :  { %4736 = vst [vmem:[#allocation3_spill] sm:$0xff] %v3089_v30 }
  0xf9   :  { %861 = vmatmul.f32.gmra.mxu1 %v141_v32  ;;  %1034 = vmatmul.f32.gmra.mxu2 %v142_v37  ;;  %v3141_v32 = vld [vmem:[%s4733_s2] ss:$0 sm:$0xff]  ;;  %v603_v37 = vld [vmem:[%s4731_s1 + $0x3c8] sm:$0xff] }
  0xfa   :  { %1847 = vmatpush.msra.mxu3 %v603_v37 }
  0xfb   :  { %1207 = vmatmul.f32.gmra.mxu3 %v143_v38  ;;  %v3100_v46 = vpop.f32.mrf.mxu0  ;;  %v161_v38 = vld [vmem:[%s4732_s0 + $0x498] sm:$0xff] }
  0xfc   :  { %v3105_v49 = vpop.f32.mrf.mxu2 }
  0xfe   :  { %v3107_v54 = vpop.f32.mrf.mxu1  ;;  %v3109_v59 = vpop.f32.mrf.mxu3  ;;  %1380 = vmatmul.f32.gmra.mxu0 %v144_v47  ;;  %v648_v47 = vadd.f32 %v3141_v32, %v2841_v31  ;;  %v168_v31 = vld [vmem:[%s4732_s0 + $0x4d0] sm:$0xff] }
  0xff   :  { %4737 = vst [vmem:[#allocation4_spill] sm:$0xff] %v3109_v59 }
 0x101   :  { %864 = vmatmul.f32.gmra.mxu1 %v150_v60  ;;  %1037 = vmatmul.f32.gmra.mxu2 %v151_v0  ;;  %v571_v60 = vld [vmem:[%s4731_s1 + $0x2c8] sm:$0xff] }
 0x102   :  { %1501 = vmatpush.msra.mxu1 %v571_v60 }
 0x103   :  { %1210 = vmatmul.f32.gmra.mxu3 %v152_v2  ;;  %v3120_v3 = vpop.f32.mrf.mxu0 }
 0x104   :  { %v3125_v13 = vpop.f32.mrf.mxu2 }
 0x106   :  { %v3130_v18 = vpop.f32.mrf.mxu3  ;;  %v820_v19 = vpop.f32.mrf.mxu1  ;;  %1383 = vmatmul.f32.gmra.mxu0 %v153_v9  ;;  %v162_v9 = vld [vmem:[%s4732_s0 + $0x4a0] sm:$0xff] }
 0x107   :  { %4738 = vst [vmem:[#allocation5_spill] sm:$0xff] %v3130_v18  ;;  %v821_v0 = vadd.f32 %v820_v19, %v648_v47  ;;  %v651_v47 = vadd.f32 %v3141_v32, %v2864_v40  ;;  %v178_v40 = vld [vmem:[%s4732_s0 + $0x520] sm:$0xff] }
 0x109   :  { %867 = vmatmul.f32.gmra.mxu1 %v159_v22  ;;  %1040 = vmatmul.f32.gmra.mxu2 %v160_v26  ;;  %v169_v22 = vld [vmem:[%s4732_s0 + $0x4d8] sm:$0xff]  ;;  %v619_v26 = vld [vmem:[%s4731_s1 + $0x448] sm:$0xff] }
 0x10a   :  { %2020 = vmatpush.msra.mxu0 %v619_v26  ;;  %v177_v26 = vld [vmem:[%s4732_s0 + $0x518] sm:$0xff] }
 0x10b   :  { %1213 = vmatmul.f32.gmra.mxu3 %v161_v38  ;;  %v1339_v2 = vpop.f32.mrf.mxu0  ;;  %v170_v38 = vld [vmem:[%s4732_s0 + $0x4e0] sm:$0xff] }
 0x10c   :  { %v993_v17 = vpop.f32.mrf.mxu2 }
 0x10d   :  { %v994_v18 = vadd.f32 %v993_v17, %v821_v0 }
 0x10e   :  { %v823_v37 = vpop.f32.mrf.mxu1  ;;  %v1166_v59 = vpop.f32.mrf.mxu3  ;;  %1386 = vmatmul.f32.gmra.mxu0 %v162_v9 }
 0x10f   :  { %v1167_v19 = vadd.f32 %v1166_v59, %v994_v18  ;;  %v824_v0 = vadd.f32 %v823_v37, %v651_v47  ;;  %v171_v59 = vld [vmem:[%s4732_s0 + $0x4e8] sm:$0xff]  ;;  %v180_v47 = vld [vmem:[%s4732_s0 + $0x530] sm:$0xff] }
 0x110   :  { %v179_v37 = vld [vmem:[%s4732_s0 + $0x528] sm:$0xff] }
 0x111   :  { %v3171_v60 = vadd.f32 %v1339_v2, %v1167_v19  ;;  %870 = vmatmul.f32.gmra.mxu1 %v168_v31  ;;  %1043 = vmatmul.f32.gmra.mxu2 %v169_v22  ;;  %v654_v31 = vadd.f32 %v3141_v32, %v2884_v48  ;;  %v187_v48 = vld [vmem:[%s4732_s0 + $0x568] sm:$0xff] }
 0x113   :  { %1216 = vmatmul.f32.gmra.mxu3 %v170_v38  ;;  %v1342_v9 = vpop.f32.mrf.mxu0 }
 0x114   :  { %v996_v18 = vpop.f32.mrf.mxu2 }
 0x115   :  { %v997_v17 = vadd.f32 %v996_v18, %v824_v0 }
 0x116   :  { %v826_v30 = vpop.f32.mrf.mxu1  ;;  %v1169_v11 = vpop.f32.mrf.mxu3  ;;  %1389 = vmatmul.f32.gmra.mxu0 %v171_v59 }
 0x117   :  { %v1170_v2 = vadd.f32 %v1169_v11, %v997_v17  ;;  %v827_v19 = vadd.f32 %v826_v30, %v654_v31  ;;  %v186_v17 = vld [vmem:[%s4732_s0 + $0x560] sm:$0xff] }
 0x119   :  { %v3187_v22 = vadd.f32 %v1342_v9, %v1170_v2  ;;  %873 = vmatmul.f32.gmra.mxu1 %v177_v26  ;;  %1046 = vmatmul.f32.gmra.mxu2 %v178_v40  ;;  %v586_v9 = vld [vmem:[%s4731_s1 + $0x340] sm:$0xff]  ;;  %v188_v26 = vld [vmem:[%s4732_s0 + $0x570] sm:$0xff]  ;;  %v657_v40 = vadd.f32 %v3141_v32, %v2910_v58 }
 0x11a   :  { %1675 = vmatpush.msra.mxu2 %v586_v9  ;;  %v570_v58 = vld [vmem:[%s4731_s1 + $0x2c0] sm:$0xff]  ;;  %v660_v9 = vadd.f32 %v3141_v32, %v2936_v4 }
 0x11b   :  { %1219 = vmatmul.f32.gmra.mxu3 %v179_v37  ;;  %v1345_v38 = vpop.f32.mrf.mxu0  ;;  %v602_v37 = vld [vmem:[%s4731_s1 + $0x3c0] sm:$0xff]  ;;  %1502 = vmatpush.msra.mxu1 %v570_v58 }
 0x11c   :  { %v999_v0 = vpop.f32.mrf.mxu2  ;;  %1848 = vmatpush.msra.mxu3 %v602_v37 }
 0x11d   :  { %v1000_v11 = vadd.f32 %v999_v0, %v827_v19 }
 0x11e   :  { %v829_v59 = vpop.f32.mrf.mxu1  ;;  %v1172_v18 = vpop.f32.mrf.mxu3  ;;  %1392 = vmatmul.f32.gmra.mxu0 %v180_v47  ;;  %v189_v47 = vld [vmem:[%s4732_s0 + $0x578] sm:$0xff] }
 0x11f   :  { %v1173_v30 = vadd.f32 %v1172_v18, %v1000_v11  ;;  %v830_v31 = vadd.f32 %v829_v59, %v657_v40  ;;  %v196_v59 = vld [vmem:[%s4732_s0 + $0x5b0] sm:$0xff]  ;;  %v618_v40 = vld [vmem:[%s4731_s1 + $0x440] sm:$0xff] }
 0x120   :  { %2021 = vmatpush.msra.mxu0 %v618_v40  ;;  %v207_v40 = vld [vmem:[%s4732_s0 + $0x608] sm:$0xff] }
 0x121   :  { %v3206_v2 = vadd.f32 %v1345_v38, %v1173_v30  ;;  %876 = vmatmul.f32.gmra.mxu1 %v186_v17  ;;  %1049 = vmatmul.f32.gmra.mxu2 %v187_v48  ;;  %v195_v17 = vld [vmem:[%s4732_s0 + $0x5a8] sm:$0xff]  ;;  %v197_v30 = vld [vmem:[%s4732_s0 + $0x5b8] sm:$0xff] }
 0x123   :  { %1222 = vmatmul.f32.gmra.mxu3 %v188_v26  ;;  %v1348_v19 = vpop.f32.mrf.mxu0 }
 0x124   :  { %v1002_v38 = vpop.f32.mrf.mxu2 }
 0x125   :  { %v1003_v0 = vadd.f32 %v1002_v38, %v830_v31 }
 0x126   :  { %v832_v11 = vpop.f32.mrf.mxu1  ;;  %v1175_v18 = vpop.f32.mrf.mxu3  ;;  %1395 = vmatmul.f32.gmra.mxu0 %v189_v47  ;;  %v198_v47 = vld [vmem:[%s4732_s0 + $0x5c0] sm:$0xff] }
 0x127   :  { %v1176_v48 = vadd.f32 %v1175_v18, %v1003_v0  ;;  %v833_v37 = vadd.f32 %v832_v11, %v660_v9  ;;  %v205_v18 = vld [vmem:[%s4732_s0 + $0x5f8] sm:$0xff] }
 0x129   :  { %v3228_v26 = vadd.f32 %v1348_v19, %v1176_v48  ;;  %879 = vmatmul.f32.gmra.mxu1 %v195_v17  ;;  %1052 = vmatmul.f32.gmra.mxu2 %v196_v59  ;;  %v204_v19 = vld [vmem:[%s4732_s0 + $0x5f0] sm:$0xff]  ;;  %v206_v17 = vld [vmem:[%s4732_s0 + $0x600] sm:$0xff]  ;;  %v663_v59 = vadd.f32 %v3141_v32, %v2956_v12 }
 0x12a   :  { %v214_v12 = vld [vmem:[%s4732_s0 + $0x640] sm:$0xff] }
 0x12b   :  { %1225 = vmatmul.f32.gmra.mxu3 %v197_v30  ;;  %v1351_v31 = vpop.f32.mrf.mxu0 }
 0x12c   :  { %v1005_v58 = vpop.f32.mrf.mxu2 }
 0x12d   :  { %v1006_v38 = vadd.f32 %v1005_v58, %v833_v37 }
 0x12e   :  { %v835_v0 = vpop.f32.mrf.mxu1  ;;  %v1178_v4 = vpop.f32.mrf.mxu3  ;;  %1398 = vmatmul.f32.gmra.mxu0 %v198_v47 }
 0x12f   :  { %v1179_v11 = vadd.f32 %v1178_v4, %v1006_v38  ;;  %v836_v30 = vadd.f32 %v835_v0, %v663_v59  ;;  %v213_v4 = vld [vmem:[%s4732_s0 + $0x638] sm:$0xff]  ;;  %v215_v0 = vld [vmem:[%s4732_s0 + $0x648] sm:$0xff] }
 0x131   :  { %v3247_v48 = vadd.f32 %v1351_v31, %v1179_v11  ;;  %882 = vmatmul.f32.gmra.mxu1 %v204_v19  ;;  %1055 = vmatmul.f32.gmra.mxu2 %v205_v18  ;;  %v666_v19 = vadd.f32 %v3141_v32, %v2979_v21  ;;  %v585_v11 = vld [vmem:[%s4731_s1 + $0x338] sm:$0xff] }
 0x132   :  { %1676 = vmatpush.msra.mxu2 %v585_v11  ;;  %v601_v21 = vld [vmem:[%s4731_s1 + $0x3b8] sm:$0xff] }
 0x133   :  { %1228 = vmatmul.f32.gmra.mxu3 %v206_v17  ;;  %v1354_v9 = vpop.f32.mrf.mxu0 }
 0x134   :  { %v1008_v37 = vpop.f32.mrf.mxu2  ;;  %1849 = vmatpush.msra.mxu3 %v601_v21  ;;  %v617_v21 = vld [vmem:[%s4731_s1 + $0x438] sm:$0xff] }
 0x135   :  { %v1009_v47 = vadd.f32 %v1008_v37, %v836_v30  ;;  %v216_v30 = vld [vmem:[%s4732_s0 + $0x650] sm:$0xff]  ;;  %v569_v37 = vld [vmem:[%s4731_s1 + $0x2b8] sm:$0xff]  ;;  %2022 = vmatpush.msra.mxu0 %v617_v21 }
 0x136   :  { %v838_v58 = vpop.f32.mrf.mxu1  ;;  %v1181_v38 = vpop.f32.mrf.mxu3  ;;  %1401 = vmatmul.f32.gmra.mxu0 %v207_v40  ;;  %1503 = vmatpush.msra.mxu1 %v569_v37 }
 0x137   :  { %v1182_v31 = vadd.f32 %v1181_v38, %v1009_v47  ;;  %v839_v17 = vadd.f32 %v838_v58, %v666_v19  ;;  %v222_v58 = vld [vmem:[%s4732_s0 + $0x680] sm:$0xff] }
 0x139   :  { %v3263_v18 = vadd.f32 %v1354_v9, %v1182_v31  ;;  %885 = vmatmul.f32.gmra.mxu1 %v213_v4  ;;  %1058 = vmatmul.f32.gmra.mxu2 %v214_v12  ;;  %v223_v4 = vld [vmem:[%s4732_s0 + $0x688] sm:$0xff]  ;;  %v224_v31 = vld [vmem:[%s4732_s0 + $0x690] sm:$0xff] }
 0x13b   :  { %1231 = vmatmul.f32.gmra.mxu3 %v215_v0  ;;  %v1357_v59 = vpop.f32.mrf.mxu0  ;;  %v669_v0 = vadd.f32 %v3141_v32, %v3005_v36 }
 0x13c   :  { %v1011_v9 = vpop.f32.mrf.mxu2 }
 0x13d   :  { %v1012_v40 = vadd.f32 %v1011_v9, %v839_v17 }
 0x13e   :  { %v841_v47 = vpop.f32.mrf.mxu1  ;;  %v1184_v38 = vpop.f32.mrf.mxu3  ;;  %1404 = vmatmul.f32.gmra.mxu0 %v216_v30  ;;  %v225_v30 = vld [vmem:[%s4732_s0 + $0x698] sm:$0xff] }
 0x13f   :  { %v1185_v12 = vadd.f32 %v1184_v38, %v1012_v40  ;;  %v842_v11 = vadd.f32 %v841_v47, %v669_v0  ;;  %v232_v47 = vld [vmem:[%s4732_s0 + $0x6d0] sm:$0xff] }
 0x141   :  { %v3288_v19 = vadd.f32 %v1357_v59, %v1185_v12  ;;  %888 = vmatmul.f32.gmra.mxu1 %v222_v58  ;;  %1061 = vmatmul.f32.gmra.mxu2 %v223_v4  ;;  %v231_v59 = vld [vmem:[%s4732_s0 + $0x6c8] sm:$0xff]  ;;  %v233_v58 = vld [vmem:[%s4732_s0 + $0x6d8] sm:$0xff]  ;;  %v672_v4 = vadd.f32 %v3141_v32, %v3028_v53 }
 0x142   :  { %v241_v53 = vld [vmem:[%s4732_s0 + $0x718] sm:$0xff] }
 0x143   :  { %1234 = vmatmul.f32.gmra.mxu3 %v224_v31  ;;  %v1360_v17 = vpop.f32.mrf.mxu0 }
 0x144   :  { %v1014_v9 = vpop.f32.mrf.mxu2 }
 0x145   :  { %v1015_v40 = vadd.f32 %v1014_v9, %v842_v11  ;;  %v234_v11 = vld [vmem:[%s4732_s0 + $0x6e0] sm:$0xff] }
 0x146   :  { %v844_v37 = vpop.f32.mrf.mxu1  ;;  %v1187_v36 = vpop.f32.mrf.mxu3  ;;  %1407 = vmatmul.f32.gmra.mxu0 %v225_v30 }
 0x147   :  { %v1188_v38 = vadd.f32 %v1187_v36, %v1015_v40  ;;  %v845_v31 = vadd.f32 %v844_v37, %v672_v4  ;;  %v240_v36 = vld [vmem:[%s4732_s0 + $0x710] sm:$0xff]  ;;  %v242_v37 = vld [vmem:[%s4732_s0 + $0x720] sm:$0xff]  ;;  %v243_v4 = vld [vmem:[%s4732_s0 + $0x728] sm:$0xff] }
 0x149   :  { %v3307_v12 = vadd.f32 %v1360_v17, %v1188_v38  ;;  %891 = vmatmul.f32.gmra.mxu1 %v231_v59  ;;  %1064 = vmatmul.f32.gmra.mxu2 %v232_v47  ;;  %v675_v59 = vadd.f32 %v3141_v32, %v3048_v1  ;;  %v600_v1 = vld [vmem:[%s4731_s1 + $0x3b0] sm:$0xff] }
 0x14a   :  { %1850 = vmatpush.msra.mxu3 %v600_v1  ;;  %v616_v1 = vld [vmem:[%s4731_s1 + $0x430] sm:$0xff] }
 0x14b   :  { %1237 = vmatmul.f32.gmra.mxu3 %v233_v58  ;;  %v1363_v0 = vpop.f32.mrf.mxu0  ;;  %2023 = vmatpush.msra.mxu0 %v616_v1 }
 0x14c   :  { %v1017_v30 = vpop.f32.mrf.mxu2 }
 0x14d   :  { %v1018_v21 = vadd.f32 %v1017_v30, %v845_v31  ;;  %v584_v31 = vld [vmem:[%s4731_s1 + $0x330] sm:$0xff] }
 0x14e   :  { %v847_v9 = vpop.f32.mrf.mxu1  ;;  %v1190_v40 = vpop.f32.mrf.mxu3  ;;  %1410 = vmatmul.f32.gmra.mxu0 %v234_v11  ;;  %1677 = vmatpush.msra.mxu2 %v584_v31  ;;  %v252_v31 = vld [vmem:[%s4732_s0 + $0x770] sm:$0xff] }
 0x14f   :  { %v1191_v17 = vadd.f32 %v1190_v40, %v1018_v21  ;;  %v848_v38 = vadd.f32 %v847_v9, %v675_v59  ;;  %v249_v9 = vld [vmem:[%s4732_s0 + $0x758] sm:$0xff]  ;;  %v250_v40 = vld [vmem:[%s4732_s0 + $0x760] sm:$0xff] }
 0x151   :  { %v3323_v47 = vadd.f32 %v1363_v0, %v1191_v17  ;;  %894 = vmatmul.f32.gmra.mxu1 %v240_v36  ;;  %1067 = vmatmul.f32.gmra.mxu2 %v241_v53  ;;  %v568_v53 = vld [vmem:[%s4731_s1 + $0x2b0] sm:$0xff]  ;;  %v251_v17 = vld [vmem:[%s4732_s0 + $0x768] sm:$0xff] }
 0x152   :  { %1504 = vmatpush.msra.mxu1 %v568_v53 }
 0x153   :  { %1240 = vmatmul.f32.gmra.mxu3 %v242_v37  ;;  %v1366_v58 = vpop.f32.mrf.mxu0  ;;  %v678_v37 = vadd.f32 %v3141_v32, %v3077_v20  ;;  %v258_v20 = vld [vmem:[%s4732_s0 + $0x7a0] sm:$0xff] }
 0x154   :  { %v1020_v11 = vpop.f32.mrf.mxu2 }
 0x155   :  { %v1021_v30 = vadd.f32 %v1020_v11, %v848_v38 }
 0x156   :  { %v850_v0 = vpop.f32.mrf.mxu1  ;;  %v1193_v21 = vpop.f32.mrf.mxu3  ;;  %1413 = vmatmul.f32.gmra.mxu0 %v243_v4 }
 0x157   :  { %v1194_v36 = vadd.f32 %v1193_v21, %v1021_v30  ;;  %v851_v38 = vadd.f32 %v850_v0, %v678_v37 }
 0x159   :  { %v3348_v59 = vadd.f32 %v1366_v58, %v1194_v36  ;;  %897 = vmatmul.f32.gmra.mxu1 %v249_v9  ;;  %1070 = vmatmul.f32.gmra.mxu2 %v250_v40  ;;  %v259_v58 = vld [vmem:[%s4732_s0 + $0x7a8] sm:$0xff]  ;;  %v260_v9 = vld [vmem:[%s4732_s0 + $0x7b0] sm:$0xff]  ;;  %v681_v40 = vadd.f32 %v3141_v32, %v3100_v46 }
 0x15a   :  { %v268_v46 = vld [vmem:[%s4732_s0 + $0x7f0] sm:$0xff] }
 0x15b   :  { %1243 = vmatmul.f32.gmra.mxu3 %v251_v17  ;;  %v1369_v4 = vpop.f32.mrf.mxu0 }
 0x15c   :  { %v1023_v11 = vpop.f32.mrf.mxu2 }
 0x15d   :  { %v1024_v30 = vadd.f32 %v1023_v11, %v851_v38  ;;  %v261_v38 = vld [vmem:[%s4732_s0 + $0x7b8] sm:$0xff] }
 0x15e   :  { %v853_v21 = vpop.f32.mrf.mxu1  ;;  %v1196_v53 = vpop.f32.mrf.mxu3  ;;  %1416 = vmatmul.f32.gmra.mxu0 %v252_v31 }
 0x15f   :  { %v1197_v0 = vadd.f32 %v1196_v53, %v1024_v30  ;;  %v854_v17 = vadd.f32 %v853_v21, %v681_v40  ;;  %v267_v53 = vld [vmem:[%s4732_s0 + $0x7e8] sm:$0xff]  ;;  %v269_v21 = vld [vmem:[%s4732_s0 + $0x7f8] sm:$0xff]  ;;  %v270_v40 = vld [vmem:[%s4732_s0 + $0x800] sm:$0xff] }
 0x161   :  { %v3367_v36 = vadd.f32 %v1369_v4, %v1197_v0  ;;  %900 = vmatmul.f32.gmra.mxu1 %v258_v20  ;;  %1073 = vmatmul.f32.gmra.mxu2 %v259_v58  ;;  %v684_v20 = vadd.f32 %v3141_v32, %v3120_v3  ;;  %v276_v3 = vld [vmem:[%s4732_s0 + $0x830] sm:$0xff] }
 0x163   :  { %1246 = vmatmul.f32.gmra.mxu3 %v260_v9  ;;  %v1372_v37 = vpop.f32.mrf.mxu0 }
 0x164   :  { %v1026_v31 = vpop.f32.mrf.mxu2 }
 0x165   :  { %v1027_v11 = vadd.f32 %v1026_v31, %v854_v17  ;;  %v583_v31 = vld [vmem:[%s4731_s1 + $0x328] sm:$0xff] }
 0x166   :  { %v856_v30 = vpop.f32.mrf.mxu1  ;;  %v1199_v1 = vpop.f32.mrf.mxu3  ;;  %1419 = vmatmul.f32.gmra.mxu0 %v261_v38  ;;  %1678 = vmatpush.msra.mxu2 %v583_v31 }
 0x167   :  { %v1200_v4 = vadd.f32 %v1199_v1, %v1027_v11  ;;  %v857_v0 = vadd.f32 %v856_v30, %v684_v20  ;;  %v567_v20 = vld [vmem:[%s4731_s1 + $0x2a8] sm:$0xff] }
 0x168   :  { %1505 = vmatpush.msra.mxu1 %v567_v20 }
 0x169   :  { %v3383_v58 = vadd.f32 %v1372_v37, %v1200_v4  ;;  %903 = vmatmul.f32.gmra.mxu1 %v267_v53  ;;  %1076 = vmatmul.f32.gmra.mxu2 %v268_v46  ;;  %v277_v37 = vld [vmem:[%s4732_s0 + $0x838] sm:$0xff]  ;;  %v599_v53 = vld [vmem:[%s4731_s1 + $0x3a8] sm:$0xff]  ;;  %v278_v46 = vld [vmem:[%s4732_s0 + $0x840] sm:$0xff]  ;;  %v687_v4 = vadd.f32 %v3141_v32, %v2824_v25 }
 0x16a   :  { %1851 = vmatpush.msra.mxu3 %v599_v53  ;;  %v690_v53 = vadd.f32 %v3141_v32, %v2848_v34  ;;  %v295_v34 = vld [vmem:[%s4732_s0 + $0x8c8] sm:$0xff] }
 0x16b   :  { %1249 = vmatmul.f32.gmra.mxu3 %v269_v21  ;;  %v1375_v9 = vpop.f32.mrf.mxu0 }
 0x16c   :  { %v1029_v17 = vpop.f32.mrf.mxu2 }
 0x16d   :  { %v1030_v38 = vadd.f32 %v1029_v17, %v857_v0  ;;  %v279_v17 = vld [vmem:[%s4732_s0 + $0x848] sm:$0xff] }
 0x16e   :  { %v859_v11 = vpop.f32.mrf.mxu1  ;;  %v1202_v1 = vpop.f32.mrf.mxu3  ;;  %1422 = vmatmul.f32.gmra.mxu0 %v270_v40 }
 0x16f   :  { %v1203_v30 = vadd.f32 %v1202_v1, %v1030_v38  ;;  %v860_v0 = vadd.f32 %v859_v11, %v687_v4 }
 0x171   :  { %v3405_v21 = vadd.f32 %v1375_v9, %v1203_v30  ;;  %906 = vmatmul.f32.gmra.mxu1 %v276_v3  ;;  %1079 = vmatmul.f32.gmra.mxu2 %v277_v37  ;;  %v285_v9 = vld [vmem:[%s4732_s0 + $0x878] sm:$0xff]  ;;  %v286_v3 = vld [vmem:[%s4732_s0 + $0x880] sm:$0xff]  ;;  %v615_v37 = vld [vmem:[%s4731_s1 + $0x428] sm:$0xff] }
 0x172   :  { %v287_v30 = vld [vmem:[%s4732_s0 + $0x888] sm:$0xff]  ;;  %2024 = vmatpush.msra.mxu0 %v615_v37  ;;  %v294_v37 = vld [vmem:[%s4732_s0 + $0x8c0] sm:$0xff] }
 0x173   :  { %1252 = vmatmul.f32.gmra.mxu3 %v278_v46  ;;  %v1378_v40 = vpop.f32.mrf.mxu0 }
 0x174   :  { %v1032_v38 = vpop.f32.mrf.mxu2 }
 0x175   :  { %v1033_v31 = vadd.f32 %v1032_v38, %v860_v0  ;;  %v288_v0 = vld [vmem:[%s4732_s0 + $0x890] sm:$0xff] }
 0x176   :  { %v862_v1 = vpop.f32.mrf.mxu1  ;;  %v1205_v25 = vpop.f32.mrf.mxu3  ;;  %1425 = vmatmul.f32.gmra.mxu0 %v279_v17 }
 0x177   :  { %v1206_v11 = vadd.f32 %v1205_v25, %v1033_v31  ;;  %v863_v4 = vadd.f32 %v862_v1, %v690_v53  ;;  %v296_v1 = vld [vmem:[%s4732_s0 + $0x8d0] sm:$0xff]  ;;  %v297_v53 = vld [vmem:[%s4732_s0 + $0x8d8] sm:$0xff] }
 0x179   :  { %v3427_v46 = vadd.f32 %v1378_v40, %v1206_v11  ;;  %909 = vmatmul.f32.gmra.mxu1 %v285_v9  ;;  %1082 = vmatmul.f32.gmra.mxu2 %v286_v3  ;;  %v693_v9 = vadd.f32 %v3141_v32, %v2871_v43  ;;  %v304_v43 = vld [vmem:[%s4732_s0 + $0x910] sm:$0xff] }
 0x17b   :  { %1255 = vmatmul.f32.gmra.mxu3 %v287_v30  ;;  %v1381_v20 = vpop.f32.mrf.mxu0 }
 0x17c   :  { %v1035_v17 = vpop.f32.mrf.mxu2 }
 0x17d   :  { %v1036_v38 = vadd.f32 %v1035_v17, %v863_v4 }
 0x17e   :  { %v865_v31 = vpop.f32.mrf.mxu1  ;;  %v1208_v25 = vpop.f32.mrf.mxu3  ;;  %1428 = vmatmul.f32.gmra.mxu0 %v288_v0 }
 0x17f   :  { %v1209_v40 = vadd.f32 %v1208_v25, %v1036_v38  ;;  %v866_v11 = vadd.f32 %v865_v31, %v693_v9  ;;  %v303_v25 = vld [vmem:[%s4732_s0 + $0x908] sm:$0xff]  ;;  %v582_v31 = vld [vmem:[%s4731_s1 + $0x320] sm:$0xff] }
 0x180   :  { %1679 = vmatpush.msra.mxu2 %v582_v31  ;;  %v699_v31 = vadd.f32 %v3141_v32, %v2920_v62 }
 0x181   :  { %v3443_v3 = vadd.f32 %v1381_v20, %v1209_v40  ;;  %912 = vmatmul.f32.gmra.mxu1 %v294_v37  ;;  %1085 = vmatmul.f32.gmra.mxu2 %v295_v34  ;;  %v305_v37 = vld [vmem:[%s4732_s0 + $0x918] sm:$0xff]  ;;  %v696_v34 = vadd.f32 %v3141_v32, %v2891_v51  ;;  %v566_v51 = vld [vmem:[%s4731_s1 + $0x2a0] sm:$0xff] }
 0x182   :  { %1506 = vmatpush.msra.mxu1 %v566_v51 }
 0x183   :  { %1258 = vmatmul.f32.gmra.mxu3 %v296_v1  ;;  %v1384_v30 = vpop.f32.mrf.mxu0  ;;  %v598_v1 = vld [vmem:[%s4731_s1 + $0x3a0] sm:$0xff] }
 0x184   :  { %v1038_v4 = vpop.f32.mrf.mxu2  ;;  %1852 = vmatpush.msra.mxu3 %v598_v1 }
 0x185   :  { %v1039_v0 = vadd.f32 %v1038_v4, %v866_v11 }
 0x186   :  { %v868_v17 = vpop.f32.mrf.mxu1  ;;  %v1211_v38 = vpop.f32.mrf.mxu3  ;;  %1431 = vmatmul.f32.gmra.mxu0 %v297_v53  ;;  %v306_v53 = vld [vmem:[%s4732_s0 + $0x920] sm:$0xff] }
 0x187   :  { %v1212_v20 = vadd.f32 %v1211_v38, %v1039_v0  ;;  %v869_v9 = vadd.f32 %v868_v17, %v696_v34  ;;  %v313_v17 = vld [vmem:[%s4732_s0 + $0x958] sm:$0xff]  ;;  %v614_v34 = vld [vmem:[%s4731_s1 + $0x420] sm:$0xff] }
 0x188   :  { %2025 = vmatpush.msra.mxu0 %v614_v34  ;;  %v324_v34 = vld [vmem:[%s4732_s0 + $0x9b0] sm:$0xff] }
 0x189   :  { %v3462_v40 = vadd.f32 %v1384_v30, %v1212_v20  ;;  %915 = vmatmul.f32.gmra.mxu1 %v303_v25  ;;  %1088 = vmatmul.f32.gmra.mxu2 %v304_v43  ;;  %v312_v25 = vld [vmem:[%s4732_s0 + $0x950] sm:$0xff]  ;;  %v314_v20 = vld [vmem:[%s4732_s0 + $0x960] sm:$0xff] }
 0x18b   :  { %1261 = vmatmul.f32.gmra.mxu3 %v305_v37  ;;  %v1387_v11 = vpop.f32.mrf.mxu0 }
 0x18c   :  { %v1041_v30 = vpop.f32.mrf.mxu2 }
 0x18d   :  { %v1042_v4 = vadd.f32 %v1041_v30, %v869_v9 }
 0x18e   :  { %v871_v0 = vpop.f32.mrf.mxu1  ;;  %v1214_v38 = vpop.f32.mrf.mxu3  ;;  %1434 = vmatmul.f32.gmra.mxu0 %v306_v53  ;;  %v315_v53 = vld [vmem:[%s4732_s0 + $0x968] sm:$0xff] }
 0x18f   :  { %v1215_v43 = vadd.f32 %v1214_v38, %v1042_v4  ;;  %v872_v1 = vadd.f32 %v871_v0, %v699_v31  ;;  %v322_v38 = vld [vmem:[%s4732_s0 + $0x9a0] sm:$0xff] }
 0x191   :  { %v3484_v37 = vadd.f32 %v1387_v11, %v1215_v43  ;;  %918 = vmatmul.f32.gmra.mxu1 %v312_v25  ;;  %1091 = vmatmul.f32.gmra.mxu2 %v313_v17  ;;  %v321_v11 = vld [vmem:[%s4732_s0 + $0x998] sm:$0xff]  ;;  %v323_v25 = vld [vmem:[%s4732_s0 + $0x9a8] sm:$0xff]  ;;  %v702_v17 = vadd.f32 %v3141_v32, %v2943_v7 }
 0x192   :  { %v331_v7 = vld [vmem:[%s4732_s0 + $0x9e8] sm:$0xff] }
 0x193   :  { %1264 = vmatmul.f32.gmra.mxu3 %v314_v20  ;;  %v1390_v9 = vpop.f32.mrf.mxu0 }
 0x194   :  { %v1044_v51 = vpop.f32.mrf.mxu2 }
 0x195   :  { %v1045_v30 = vadd.f32 %v1044_v51, %v872_v1 }
 0x196   :  { %v874_v4 = vpop.f32.mrf.mxu1  ;;  %v1217_v62 = vpop.f32.mrf.mxu3  ;;  %1437 = vmatmul.f32.gmra.mxu0 %v315_v53 }
 0x197   :  { %v1218_v0 = vadd.f32 %v1217_v62, %v1045_v30  ;;  %v875_v20 = vadd.f32 %v874_v4, %v702_v17  ;;  %v330_v62 = vld [vmem:[%s4732_s0 + $0x9e0] sm:$0xff]  ;;  %v332_v4 = vld [vmem:[%s4732_s0 + $0x9f0] sm:$0xff] }
 0x199   :  { %v3503_v43 = vadd.f32 %v1390_v9, %v1218_v0  ;;  %921 = vmatmul.f32.gmra.mxu1 %v321_v11  ;;  %1094 = vmatmul.f32.gmra.mxu2 %v322_v38  ;;  %v705_v11 = vadd.f32 %v3141_v32, %v2963_v15  ;;  %v581_v0 = vld [vmem:[%s4731_s1 + $0x318] sm:$0xff] }
 0x19a   :  { %1680 = vmatpush.msra.mxu2 %v581_v0  ;;  %v597_v15 = vld [vmem:[%s4731_s1 + $0x398] sm:$0xff] }
 0x19b   :  { %1267 = vmatmul.f32.gmra.mxu3 %v323_v25  ;;  %v1393_v31 = vpop.f32.mrf.mxu0 }
 0x19c   :  { %v1047_v1 = vpop.f32.mrf.mxu2  ;;  %1853 = vmatpush.msra.mxu3 %v597_v15  ;;  %v613_v15 = vld [vmem:[%s4731_s1 + $0x418] sm:$0xff] }
 0x19d   :  { %v1048_v53 = vadd.f32 %v1047_v1, %v875_v20  ;;  %v333_v20 = vld [vmem:[%s4732_s0 + $0x9f8] sm:$0xff]  ;;  %2026 = vmatpush.msra.mxu0 %v613_v15 }
 0x19e   :  { %v877_v51 = vpop.f32.mrf.mxu1  ;;  %v1220_v30 = vpop.f32.mrf.mxu3  ;;  %1440 = vmatmul.f32.gmra.mxu0 %v324_v34  ;;  %v565_v1 = vld [vmem:[%s4731_s1 + $0x298] sm:$0xff] }
 0x19f   :  { %v1221_v9 = vadd.f32 %v1220_v30, %v1048_v53  ;;  %v878_v25 = vadd.f32 %v877_v51, %v705_v11  ;;  %v339_v51 = vld [vmem:[%s4732_s0 + $0xa28] sm:$0xff]  ;;  %1507 = vmatpush.msra.mxu1 %v565_v1 }
 0x1a1   :  { %v3519_v38 = vadd.f32 %v1393_v31, %v1221_v9  ;;  %924 = vmatmul.f32.gmra.mxu1 %v330_v62  ;;  %1097 = vmatmul.f32.gmra.mxu2 %v331_v7  ;;  %v340_v62 = vld [vmem:[%s4732_s0 + $0xa30] sm:$0xff]  ;;  %v341_v9 = vld [vmem:[%s4732_s0 + $0xa38] sm:$0xff] }
 0x1a3   :  { %1270 = vmatmul.f32.gmra.mxu3 %v332_v4  ;;  %v1396_v17 = vpop.f32.mrf.mxu0  ;;  %v708_v4 = vadd.f32 %v3141_v32, %v2992_v27 }
 0x1a4   :  { %v1050_v31 = vpop.f32.mrf.mxu2 }
 0x1a5   :  { %v1051_v34 = vadd.f32 %v1050_v31, %v878_v25 }
 0x1a6   :  { %v880_v53 = vpop.f32.mrf.mxu1  ;;  %v1223_v30 = vpop.f32.mrf.mxu3  ;;  %1443 = vmatmul.f32.gmra.mxu0 %v333_v20  ;;  %v342_v20 = vld [vmem:[%s4732_s0 + $0xa40] sm:$0xff] }
 0x1a7   :  { %v1224_v7 = vadd.f32 %v1223_v30, %v1051_v34  ;;  %v881_v0 = vadd.f32 %v880_v53, %v708_v4  ;;  %v349_v53 = vld [vmem:[%s4732_s0 + $0xa78] sm:$0xff] }
 0x1a9   :  { %v3544_v11 = vadd.f32 %v1396_v17, %v1224_v7  ;;  %927 = vmatmul.f32.gmra.mxu1 %v339_v51  ;;  %1100 = vmatmul.f32.gmra.mxu2 %v340_v62  ;;  %v348_v17 = vld [vmem:[%s4732_s0 + $0xa70] sm:$0xff]  ;;  %v350_v51 = vld [vmem:[%s4732_s0 + $0xa80] sm:$0xff]  ;;  %v711_v62 = vadd.f32 %v3141_v32, %v3015_v41 }
 0x1aa   :  { %v358_v41 = vld [vmem:[%s4732_s0 + $0xac0] sm:$0xff] }
 0x1ab   :  { %1273 = vmatmul.f32.gmra.mxu3 %v341_v9  ;;  %v1399_v25 = vpop.f32.mrf.mxu0 }
 0x1ac   :  { %v1053_v31 = vpop.f32.mrf.mxu2 }
 0x1ad   :  { %v1054_v34 = vadd.f32 %v1053_v31, %v881_v0  ;;  %v351_v0 = vld [vmem:[%s4732_s0 + $0xa88] sm:$0xff] }
 0x1ae   :  { %v883_v1 = vpop.f32.mrf.mxu1  ;;  %v1226_v27 = vpop.f32.mrf.mxu3  ;;  %1446 = vmatmul.f32.gmra.mxu0 %v342_v20 }
 0x1af   :  { %v1227_v30 = vadd.f32 %v1226_v27, %v1054_v34  ;;  %v884_v9 = vadd.f32 %v883_v1, %v711_v62  ;;  %v357_v27 = vld [vmem:[%s4732_s0 + $0xab8] sm:$0xff]  ;;  %v359_v1 = vld [vmem:[%s4732_s0 + $0xac8] sm:$0xff]  ;;  %v360_v62 = vld [vmem:[%s4732_s0 + $0xad0] sm:$0xff] }
 0x1b1   :  { %v3563_v7 = vadd.f32 %v1399_v25, %v1227_v30  ;;  %930 = vmatmul.f32.gmra.mxu1 %v348_v17  ;;  %1103 = vmatmul.f32.gmra.mxu2 %v349_v53  ;;  %v714_v17 = vadd.f32 %v3141_v32, %v3035_v56  ;;  %v596_v56 = vld [vmem:[%s4731_s1 + $0x390] sm:$0xff] }
 0x1b2   :  { %1854 = vmatpush.msra.mxu3 %v596_v56  ;;  %v612_v56 = vld [vmem:[%s4731_s1 + $0x410] sm:$0xff] }
 0x1b3   :  { %1276 = vmatmul.f32.gmra.mxu3 %v350_v51  ;;  %v1402_v4 = vpop.f32.mrf.mxu0  ;;  %2027 = vmatpush.msra.mxu0 %v612_v56 }
 0x1b4   :  { %v1056_v20 = vpop.f32.mrf.mxu2 }
 0x1b5   :  { %v1057_v15 = vadd.f32 %v1056_v20, %v884_v9  ;;  %v580_v9 = vld [vmem:[%s4731_s1 + $0x310] sm:$0xff] }
 0x1b6   :  { %v886_v31 = vpop.f32.mrf.mxu1  ;;  %v1229_v34 = vpop.f32.mrf.mxu3  ;;  %1449 = vmatmul.f32.gmra.mxu0 %v351_v0  ;;  %1681 = vmatpush.msra.mxu2 %v580_v9  ;;  %v369_v9 = vld [vmem:[%s4732_s0 + $0xb18] sm:$0xff] }
 0x1b7   :  { %v1230_v25 = vadd.f32 %v1229_v34, %v1057_v15  ;;  %v887_v30 = vadd.f32 %v886_v31, %v714_v17  ;;  %v366_v31 = vld [vmem:[%s4732_s0 + $0xb00] sm:$0xff]  ;;  %v367_v34 = vld [vmem:[%s4732_s0 + $0xb08] sm:$0xff] }
 0x1b9   :  { %v3579_v53 = vadd.f32 %v1402_v4, %v1230_v25  ;;  %933 = vmatmul.f32.gmra.mxu1 %v357_v27  ;;  %1106 = vmatmul.f32.gmra.mxu2 %v358_v41  ;;  %v564_v41 = vld [vmem:[%s4731_s1 + $0x290] sm:$0xff] }
 0x1ba   :  { %v368_v25 = vld [vmem:[%s4732_s0 + $0xb10] sm:$0xff]  ;;  %1508 = vmatpush.msra.mxu1 %v564_v41 }
 0x1bb   :  { %1279 = vmatmul.f32.gmra.mxu3 %v359_v1  ;;  %v1405_v51 = vpop.f32.mrf.mxu0  ;;  %v717_v1 = vadd.f32 %v3141_v32, %v3061_v10  ;;  %v375_v10 = vld [vmem:[%s4732_s0 + $0xb48] sm:$0xff] }
 0x1bc   :  { %v1059_v0 = vpop.f32.mrf.mxu2 }
 0x1bd   :  { %v1060_v20 = vadd.f32 %v1059_v0, %v887_v30 }
 0x1be   :  { %v889_v4 = vpop.f32.mrf.mxu1  ;;  %v1232_v15 = vpop.f32.mrf.mxu3  ;;  %1452 = vmatmul.f32.gmra.mxu0 %v360_v62 }
 0x1bf   :  { %v1233_v27 = vadd.f32 %v1232_v15, %v1060_v20  ;;  %v890_v30 = vadd.f32 %v889_v4, %v717_v1 }
 0x1c1   :  { %v3604_v17 = vadd.f32 %v1405_v51, %v1233_v27  ;;  %936 = vmatmul.f32.gmra.mxu1 %v366_v31  ;;  %1109 = vmatmul.f32.gmra.mxu2 %v367_v34  ;;  %v376_v51 = vld [vmem:[%s4732_s0 + $0xb50] sm:$0xff]  ;;  %v377_v31 = vld [vmem:[%s4732_s0 + $0xb58] sm:$0xff]  ;;  %v720_v34 = vadd.f32 %v3141_v32, %v3087_v29 }
 0x1c2   :  { %v385_v29 = vld [vmem:[%s4732_s0 + $0xb98] sm:$0xff] }
 0x1c3   :  { %1282 = vmatmul.f32.gmra.mxu3 %v368_v25  ;;  %v1408_v62 = vpop.f32.mrf.mxu0 }
 0x1c4   :  { %v1062_v0 = vpop.f32.mrf.mxu2 }
 0x1c5   :  { %v1063_v20 = vadd.f32 %v1062_v0, %v890_v30  ;;  %v378_v30 = vld [vmem:[%s4732_s0 + $0xb60] sm:$0xff] }
 0x1c6   :  { %v892_v15 = vpop.f32.mrf.mxu1  ;;  %v1235_v41 = vpop.f32.mrf.mxu3  ;;  %1455 = vmatmul.f32.gmra.mxu0 %v369_v9 }
 0x1c7   :  { %v1236_v4 = vadd.f32 %v1235_v41, %v1063_v20  ;;  %v893_v25 = vadd.f32 %v892_v15, %v720_v34  ;;  %v384_v41 = vld [vmem:[%s4732_s0 + $0xb90] sm:$0xff]  ;;  %v386_v15 = vld [vmem:[%s4732_s0 + $0xba0] sm:$0xff]  ;;  %v387_v34 = vld [vmem:[%s4732_s0 + $0xba8] sm:$0xff] }
 0x1c9   :  { %v3623_v27 = vadd.f32 %v1408_v62, %v1236_v4  ;;  %939 = vmatmul.f32.gmra.mxu1 %v375_v10  ;;  %1112 = vmatmul.f32.gmra.mxu2 %v376_v51  ;;  %v723_v10 = vadd.f32 %v3141_v32, %v3107_v54  ;;  %v393_v54 = vld [vmem:[%s4732_s0 + $0xbd8] sm:$0xff] }
 0x1cb   :  { %1285 = vmatmul.f32.gmra.mxu3 %v377_v31  ;;  %v1411_v1 = vpop.f32.mrf.mxu0 }
 0x1cc   :  { %v1065_v9 = vpop.f32.mrf.mxu2 }
 0x1cd   :  { %v1066_v0 = vadd.f32 %v1065_v9, %v893_v25  ;;  %v579_v9 = vld [vmem:[%s4731_s1 + $0x308] sm:$0xff] }
 0x1ce   :  { %v895_v20 = vpop.f32.mrf.mxu1  ;;  %v1238_v56 = vpop.f32.mrf.mxu3  ;;  %1458 = vmatmul.f32.gmra.mxu0 %v378_v30  ;;  %1682 = vmatpush.msra.mxu2 %v579_v9 }
 0x1cf   :  { %v1239_v62 = vadd.f32 %v1238_v56, %v1066_v0  ;;  %v896_v4 = vadd.f32 %v895_v20, %v723_v10  ;;  %v563_v10 = vld [vmem:[%s4731_s1 + $0x288] sm:$0xff] }
 0x1d0   :  { %1509 = vmatpush.msra.mxu1 %v563_v10 }
 0x1d1   :  { %v3639_v51 = vadd.f32 %v1411_v1, %v1239_v62  ;;  %942 = vmatmul.f32.gmra.mxu1 %v384_v41  ;;  %1115 = vmatmul.f32.gmra.mxu2 %v385_v29  ;;  %v394_v1 = vld [vmem:[%s4732_s0 + $0xbe0] sm:$0xff]  ;;  %v595_v41 = vld [vmem:[%s4731_s1 + $0x388] sm:$0xff]  ;;  %v726_v62 = vadd.f32 %v3141_v32, %v2846_v33 }
 0x1d2   :  { %v395_v29 = vld [vmem:[%s4732_s0 + $0xbe8] sm:$0xff]  ;;  %1855 = vmatpush.msra.mxu3 %v595_v41  ;;  %v402_v32 = vld [vmem:[%s4732_s0 + $0xc20] sm:$0xff] }
 0x1d3   :  { %1288 = vmatmul.f32.gmra.mxu3 %v386_v15  ;;  %v1414_v31 = vpop.f32.mrf.mxu0 }
 0x1d4   :  { %v1068_v25 = vpop.f32.mrf.mxu2 }
 0x1d5   :  { %v1069_v30 = vadd.f32 %v1068_v25, %v896_v4  ;;  %v396_v25 = vld [vmem:[%s4732_s0 + $0xbf0] sm:$0xff] }
 0x1d6   :  { %v898_v0 = vpop.f32.mrf.mxu1  ;;  %v1241_v56 = vpop.f32.mrf.mxu3  ;;  %1461 = vmatmul.f32.gmra.mxu0 %v387_v34 }
 0x1d7   :  { %v1242_v20 = vadd.f32 %v1241_v56, %v1069_v30  ;;  %v899_v4 = vadd.f32 %v898_v0, %v726_v62 }
 0x1d9   :  { %v3661_v15 = vadd.f32 %v1414_v31, %v1242_v20  ;;  %945 = vmatmul.f32.gmra.mxu1 %v393_v54  ;;  %1118 = vmatmul.f32.gmra.mxu2 %v394_v1  ;;  %v403_v31 = vld [vmem:[%s4732_s0 + $0xc28] sm:$0xff]  ;;  %v404_v1 = vld [vmem:[%s4732_s0 + $0xc30] sm:$0xff]  ;;  %v3684_v20 = vld [vmem:[%s4733_s2] ss:$0 sm:$0xff] }
 0x1da   :  { %v611_v54 = vld [vmem:[%s4731_s1 + $0x408] sm:$0xff]  ;;  %v729_v41 = vadd.f32 %v3684_v20, %v2869_v42  ;;  %v412_v42 = vld [vmem:[%s4732_s0 + $0xc70] sm:$0xff] }
 0x1db   :  { %1291 = vmatmul.f32.gmra.mxu3 %v395_v29  ;;  %v1417_v34 = vpop.f32.mrf.mxu0  ;;  %2028 = vmatpush.msra.mxu0 %v611_v54  ;;  %v411_v54 = vld [vmem:[%s4732_s0 + $0xc68] sm:$0xff] }
 0x1dc   :  { %v1071_v30 = vpop.f32.mrf.mxu2 }
 0x1dd   :  { %v1072_v9 = vadd.f32 %v1071_v30, %v899_v4  ;;  %v405_v4 = vld [vmem:[%s4732_s0 + $0xc38] sm:$0xff] }
 0x1de   :  { %v901_v56 = vpop.f32.mrf.mxu1  ;;  %v1244_v33 = vpop.f32.mrf.mxu3  ;;  %1464 = vmatmul.f32.gmra.mxu0 %v396_v25 }
 0x1df   :  { %v1245_v0 = vadd.f32 %v1244_v33, %v1072_v9  ;;  %v902_v62 = vadd.f32 %v901_v56, %v729_v41  ;;  %v413_v56 = vld [vmem:[%s4732_s0 + $0xc78] sm:$0xff]  ;;  %v414_v41 = vld [vmem:[%s4732_s0 + $0xc80] sm:$0xff] }
 0x1e1   :  { %v3688_v29 = vadd.f32 %v1417_v34, %v1245_v0  ;;  %948 = vmatmul.f32.gmra.mxu1 %v402_v32  ;;  %1121 = vmatmul.f32.gmra.mxu2 %v403_v31  ;;  %v732_v32 = vadd.f32 %v3684_v20, %v2889_v50  ;;  %v421_v50 = vld [vmem:[%s4732_s0 + $0xcb8] sm:$0xff] }
 0x1e3   :  { %1294 = vmatmul.f32.gmra.mxu3 %v404_v1  ;;  %v1420_v10 = vpop.f32.mrf.mxu0 }
 0x1e4   :  { %v1074_v25 = vpop.f32.mrf.mxu2 }
 0x1e5   :  { %v1075_v30 = vadd.f32 %v1074_v25, %v902_v62 }
 0x1e6   :  { %v904_v9 = vpop.f32.mrf.mxu1  ;;  %v1247_v33 = vpop.f32.mrf.mxu3  ;;  %1467 = vmatmul.f32.gmra.mxu0 %v405_v4 }
 0x1e7   :  { %v1248_v34 = vadd.f32 %v1247_v33, %v1075_v30  ;;  %v905_v0 = vadd.f32 %v904_v9, %v732_v32  ;;  %v420_v33 = vld [vmem:[%s4732_s0 + $0xcb0] sm:$0xff]  ;;  %v578_v9 = vld [vmem:[%s4731_s1 + $0x300] sm:$0xff] }
 0x1e8   :  { %1683 = vmatpush.msra.mxu2 %v578_v9  ;;  %v738_v9 = vadd.f32 %v3684_v20, %v2941_v6 }
 0x1e9   :  { %v3704_v31 = vadd.f32 %v1420_v10, %v1248_v34  ;;  %951 = vmatmul.f32.gmra.mxu1 %v411_v54  ;;  %1124 = vmatmul.f32.gmra.mxu2 %v412_v42  ;;  %v422_v54 = vld [vmem:[%s4732_s0 + $0xcc0] sm:$0xff]  ;;  %v735_v42 = vadd.f32 %v3684_v20, %v2918_v61 }
 0x1ea   :  { %v562_v61 = vld [vmem:[%s4731_s1 + $0x280] sm:$0xff] }
 0x1eb   :  { %1297 = vmatmul.f32.gmra.mxu3 %v413_v56  ;;  %v1423_v1 = vpop.f32.mrf.mxu0  ;;  %v594_v56 = vld [vmem:[%s4731_s1 + $0x380] sm:$0xff]  ;;  %1510 = vmatpush.msra.mxu1 %v562_v61 }
 0x1ec   :  { %v1077_v62 = vpop.f32.mrf.mxu2  ;;  %1856 = vmatpush.msra.mxu3 %v594_v56 }
 0x1ed   :  { %v1078_v4 = vadd.f32 %v1077_v62, %v905_v0 }
 0x1ee   :  { %v907_v25 = vpop.f32.mrf.mxu1  ;;  %v1250_v30 = vpop.f32.mrf.mxu3  ;;  %1470 = vmatmul.f32.gmra.mxu0 %v414_v41  ;;  %v423_v41 = vld [vmem:[%s4732_s0 + $0xcc8] sm:$0xff] }
 0x1ef   :  { %v1251_v10 = vadd.f32 %v1250_v30, %v1078_v4  ;;  %v908_v32 = vadd.f32 %v907_v25, %v735_v42  ;;  %v430_v25 = vld [vmem:[%s4732_s0 + $0xd00] sm:$0xff] }
 0x1f0   :  { %v610_v42 = vld [vmem:[%s4731_s1 + $0x400] sm:$0xff] }
 0x1f1   :  { %v3723_v34 = vadd.f32 %v1423_v1, %v1251_v10  ;;  %954 = vmatmul.f32.gmra.mxu1 %v420_v33  ;;  %1127 = vmatmul.f32.gmra.mxu2 %v421_v50  ;;  %v429_v33 = vld [vmem:[%s4732_s0 + $0xcf8] sm:$0xff]  ;;  %v431_v10 = vld [vmem:[%s4732_s0 + $0xd08] sm:$0xff] }
 0x1f2   :  { %2029 = vmatpush.msra.mxu0 %v610_v42  ;;  %v441_v42 = vld [vmem:[%s4732_s0 + $0xd58] sm:$0xff] }
 0x1f3   :  { %1300 = vmatmul.f32.gmra.mxu3 %v422_v54  ;;  %v1426_v0 = vpop.f32.mrf.mxu0 }
 0x1f4   :  { %v1080_v1 = vpop.f32.mrf.mxu2 }
 0x1f5   :  { %v1081_v62 = vadd.f32 %v1080_v1, %v908_v32 }
 0x1f6   :  { %v910_v4 = vpop.f32.mrf.mxu1  ;;  %v1253_v30 = vpop.f32.mrf.mxu3  ;;  %1473 = vmatmul.f32.gmra.mxu0 %v423_v41  ;;  %v432_v41 = vld [vmem:[%s4732_s0 + $0xd10] sm:$0xff] }
 0x1f7   :  { %v1254_v50 = vadd.f32 %v1253_v30, %v1081_v62  ;;  %v911_v56 = vadd.f32 %v910_v4, %v738_v9  ;;  %v439_v30 = vld [vmem:[%s4732_s0 + $0xd48] sm:$0xff] }
 0x1f9   :  { %v3745_v54 = vadd.f32 %v1426_v0, %v1254_v50  ;;  %957 = vmatmul.f32.gmra.mxu1 %v429_v33  ;;  %1130 = vmatmul.f32.gmra.mxu2 %v430_v25  ;;  %v438_v0 = vld [vmem:[%s4732_s0 + $0xd40] sm:$0xff]  ;;  %v440_v33 = vld [vmem:[%s4732_s0 + $0xd50] sm:$0xff]  ;;  %v741_v25 = vadd.f32 %v3684_v20, %v2961_v14 }
 0x1fa   :  { %v448_v14 = vld [vmem:[%s4732_s0 + $0xd90] sm:$0xff] }
 0x1fb   :  { %1303 = vmatmul.f32.gmra.mxu3 %v431_v10  ;;  %v1429_v32 = vpop.f32.mrf.mxu0 }
 0x1fc   :  { %v1083_v61 = vpop.f32.mrf.mxu2 }
 0x1fd   :  { %v1084_v1 = vadd.f32 %v1083_v61, %v911_v56 }
 0x1fe   :  { %v913_v62 = vpop.f32.mrf.mxu1  ;;  %v1256_v6 = vpop.f32.mrf.mxu3  ;;  %1476 = vmatmul.f32.gmra.mxu0 %v432_v41 }
 0x1ff   :  { %v1257_v4 = vadd.f32 %v1256_v6, %v1084_v1  ;;  %v914_v10 = vadd.f32 %v913_v62, %v741_v25  ;;  %v447_v6 = vld [vmem:[%s4732_s0 + $0xd88] sm:$0xff]  ;;  %v449_v62 = vld [vmem:[%s4732_s0 + $0xd98] sm:$0xff]  ;;  %v450_v25 = vld [vmem:[%s4732_s0 + $0xda0] sm:$0xff] }
 0x201   :  { %v3764_v50 = vadd.f32 %v1429_v32, %v1257_v4  ;;  %960 = vmatmul.f32.gmra.mxu1 %v438_v0  ;;  %1133 = vmatmul.f32.gmra.mxu2 %v439_v30  ;;  %v744_v0 = vadd.f32 %v3684_v20, %v2987_v24  ;;  %v457_v24 = vld [vmem:[%s4732_s0 + $0xdd8] sm:$0xff] }
 0x203   :  { %1306 = vmatmul.f32.gmra.mxu3 %v440_v33  ;;  %v1432_v9 = vpop.f32.mrf.mxu0 }
 0x204   :  { %v1086_v56 = vpop.f32.mrf.mxu2 }
 0x205   :  { %v1087_v41 = vadd.f32 %v1086_v56, %v914_v10 }
 0x206   :  { %v916_v61 = vpop.f32.mrf.mxu1  ;;  %v1259_v1 = vpop.f32.mrf.mxu3  ;;  %1479 = vmatmul.f32.gmra.mxu0 %v441_v42 }
 0x207   :  { %v1260_v32 = vadd.f32 %v1259_v1, %v1087_v41  ;;  %v917_v4 = vadd.f32 %v916_v61, %v744_v0  ;;  %v456_v1 = vld [vmem:[%s4732_s0 + $0xdd0] sm:$0xff]  ;;  %v458_v61 = vld [vmem:[%s4732_s0 + $0xde0] sm:$0xff]  ;;  %v459_v0 = vld [vmem:[%s4732_s0 + $0xde8] sm:$0xff] }
 0x209   :  { %v3780_v30 = vadd.f32 %v1432_v9, %v1260_v32  ;;  %963 = vmatmul.f32.gmra.mxu1 %v447_v6  ;;  %1136 = vmatmul.f32.gmra.mxu2 %v448_v14  ;;  %v747_v6 = vadd.f32 %v3684_v20, %v3013_v39  ;;  %v466_v39 = vld [vmem:[%s4732_s0 + $0xe20] sm:$0xff] }
 0x20b   :  { %1309 = vmatmul.f32.gmra.mxu3 %v449_v62  ;;  %v1435_v33 = vpop.f32.mrf.mxu0 }
 0x20c   :  { %v1089_v10 = vpop.f32.mrf.mxu2 }
 0x20d   :  { %v1090_v42 = vadd.f32 %v1089_v10, %v917_v4 }
 0x20e   :  { %v919_v56 = vpop.f32.mrf.mxu1  ;;  %v1262_v41 = vpop.f32.mrf.mxu3  ;;  %1482 = vmatmul.f32.gmra.mxu0 %v450_v25 }
 0x20f   :  { %v1263_v9 = vadd.f32 %v1262_v41, %v1090_v42  ;;  %v920_v32 = vadd.f32 %v919_v56, %v747_v6  ;;  %v465_v41 = vld [vmem:[%s4732_s0 + $0xe18] sm:$0xff]  ;;  %v467_v56 = vld [vmem:[%s4732_s0 + $0xe28] sm:$0xff]  ;;  %v468_v6 = vld [vmem:[%s4732_s0 + $0xe30] sm:$0xff] }
 0x211   :  { %v3796_v14 = vadd.f32 %v1435_v33, %v1263_v9  ;;  %966 = vmatmul.f32.gmra.mxu1 %v456_v1  ;;  %1139 = vmatmul.f32.gmra.mxu2 %v457_v24  ;;  %v750_v1 = vadd.f32 %v3684_v20, %v3033_v55  ;;  %v475_v55 = vld [vmem:[%s4732_s0 + $0xe68] sm:$0xff] }
 0x213   :  { %1312 = vmatmul.f32.gmra.mxu3 %v458_v61  ;;  %v1438_v62 = vpop.f32.mrf.mxu0 }
 0x214   :  { %v1092_v4 = vpop.f32.mrf.mxu2 }
 0x215   :  { %v1093_v25 = vadd.f32 %v1092_v4, %v920_v32 }
 0x216   :  { %v922_v10 = vpop.f32.mrf.mxu1  ;;  %v1265_v42 = vpop.f32.mrf.mxu3  ;;  %1485 = vmatmul.f32.gmra.mxu0 %v459_v0 }
 0x217   :  { %v1266_v33 = vadd.f32 %v1265_v42, %v1093_v25  ;;  %v923_v9 = vadd.f32 %v922_v10, %v750_v1  ;;  %v474_v42 = vld [vmem:[%s4732_s0 + $0xe60] sm:$0xff]  ;;  %v476_v10 = vld [vmem:[%s4732_s0 + $0xe70] sm:$0xff]  ;;  %v477_v1 = vld [vmem:[%s4732_s0 + $0xe78] sm:$0xff] }
 0x219   :  { %v3812_v24 = vadd.f32 %v1438_v62, %v1266_v33  ;;  %969 = vmatmul.f32.gmra.mxu1 %v465_v41  ;;  %1142 = vmatmul.f32.gmra.mxu2 %v466_v39  ;;  %v753_v41 = vadd.f32 %v3684_v20, %v3056_v5  ;;  %v20_v5 = vld [vmem:[%s4732_s0 + $0x30] sm:$0xff] }
 0x21b   :  { %1315 = vmatmul.f32.gmra.mxu3 %v467_v56  ;;  %v1441_v61 = vpop.f32.mrf.mxu0 }
 0x21c   :  { %v1095_v32 = vpop.f32.mrf.mxu2 }
 0x21d   :  { %v1096_v0 = vadd.f32 %v1095_v32, %v923_v9 }
 0x21e   :  { %v925_v4 = vpop.f32.mrf.mxu1  ;;  %v1268_v25 = vpop.f32.mrf.mxu3  ;;  %1488 = vmatmul.f32.gmra.mxu0 %v468_v6 }
 0x21f   :  { %v1269_v62 = vadd.f32 %v1268_v25, %v1096_v0  ;;  %v926_v33 = vadd.f32 %v925_v4, %v753_v41  ;;  %v19_v25 = vld [vmem:[%s4732_s0 + $0x28] sm:$0xff]  ;;  %v21_v4 = vld [vmem:[%s4732_s0 + $0x38] sm:$0xff]  ;;  %v22_v41 = vld [vmem:[%s4732_s0 + $0x40] sm:$0xff] }
 0x221   :  { %v3828_v39 = vadd.f32 %v1441_v61, %v1269_v62  ;;  %972 = vmatmul.f32.gmra.mxu1 %v474_v42  ;;  %1145 = vmatmul.f32.gmra.mxu2 %v475_v55  ;;  %v756_v42 = vadd.f32 %v3684_v20, %v3082_v23  ;;  %v29_v23 = vld [vmem:[%s4732_s0 + $0x78] sm:$0xff] }
 0x223   :  { %1318 = vmatmul.f32.gmra.mxu3 %v476_v10  ;;  %v1444_v56 = vpop.f32.mrf.mxu0 }
 0x224   :  { %v1098_v9 = vpop.f32.mrf.mxu2 }
 0x225   :  { %v1099_v6 = vadd.f32 %v1098_v9, %v926_v33 }
 0x226   :  { %v928_v32 = vpop.f32.mrf.mxu1  ;;  %v1271_v0 = vpop.f32.mrf.mxu3  ;;  %1491 = vmatmul.f32.gmra.mxu0 %v477_v1 }
 0x227   :  { %v1272_v61 = vadd.f32 %v1271_v0, %v1099_v6  ;;  %v929_v62 = vadd.f32 %v928_v32, %v756_v42  ;;  %v28_v0 = vld [vmem:[%s4732_s0 + $0x70] sm:$0xff]  ;;  %v30_v32 = vld [vmem:[%s4732_s0 + $0x80] sm:$0xff]  ;;  %v31_v42 = vld [vmem:[%s4732_s0 + $0x88] sm:$0xff] }
 0x229   :  { %v3844_v55 = vadd.f32 %v1444_v56, %v1272_v61  ;;  %1511 = vmatmul.f32.vlgmr.msra.gmra.mxu1 %v19_v25  ;;  %1684 = vmatmul.f32.vlgmr.msra.gmra.mxu2 %v20_v5  ;;  %v759_v25 = vadd.f32 %v3684_v20, %v3105_v49  ;;  %v38_v49 = vld [vmem:[%s4732_s0 + $0xc0] sm:$0xff] }
 0x22b   :  { %1857 = vmatmul.f32.vlgmr.msra.gmra.mxu3 %v21_v4  ;;  %v1447_v10 = vpop.f32.mrf.mxu0 }
 0x22c   :  { %v1101_v33 = vpop.f32.mrf.mxu2 }
 0x22d   :  { %v1102_v1 = vadd.f32 %v1101_v33, %v929_v62 }
 0x22e   :  { %v931_v9 = vpop.f32.mrf.mxu1  ;;  %v1274_v6 = vpop.f32.mrf.mxu3  ;;  %2030 = vmatmul.f32.vlgmr.msra.gmra.mxu0 %v22_v41 }
 0x22f   :  { %v1275_v56 = vadd.f32 %v1274_v6, %v1102_v1  ;;  %v932_v61 = vadd.f32 %v931_v9, %v759_v25  ;;  %v37_v6 = vld [vmem:[%s4732_s0 + $0xb8] sm:$0xff]  ;;  %v39_v9 = vld [vmem:[%s4732_s0 + $0xc8] sm:$0xff]  ;;  %v40_v25 = vld [vmem:[%s4732_s0 + $0xd0] sm:$0xff] }
 0x231   :  { %v3860_v5 = vadd.f32 %v1447_v10, %v1275_v56  ;;  %1514 = vmatmul.f32.gmra.mxu1 %v28_v0  ;;  %1687 = vmatmul.f32.gmra.mxu2 %v29_v23  ;;  %v762_v0 = vadd.f32 %v3684_v20, %v3125_v13  ;;  %v47_v13 = vld [vmem:[%s4732_s0 + $0x108] sm:$0xff] }
 0x233   :  { %1860 = vmatmul.f32.gmra.mxu3 %v30_v32  ;;  %v1450_v4 = vpop.f32.mrf.mxu0 }
 0x234   :  { %v1104_v62 = vpop.f32.mrf.mxu2 }
 0x235   :  { %v1105_v41 = vadd.f32 %v1104_v62, %v932_v61 }
 0x236   :  { %v934_v33 = vpop.f32.mrf.mxu1  ;;  %v1277_v1 = vpop.f32.mrf.mxu3  ;;  %2033 = vmatmul.f32.gmra.mxu0 %v31_v42 }
 0x237   :  { %v1278_v10 = vadd.f32 %v1277_v1, %v1105_v41  ;;  %v935_v56 = vadd.f32 %v934_v33, %v762_v0  ;;  %v46_v1 = vld [vmem:[%s4732_s0 + $0x100] sm:$0xff]  ;;  %v48_v33 = vld [vmem:[%s4732_s0 + $0x110] sm:$0xff]  ;;  %v49_v0 = vld [vmem:[%s4732_s0 + $0x118] sm:$0xff] }
 0x239   :  { %v3876_v23 = vadd.f32 %v1450_v4, %v1278_v10  ;;  %1517 = vmatmul.f32.gmra.mxu1 %v37_v6  ;;  %1690 = vmatmul.f32.gmra.mxu2 %v38_v49  ;;  %v765_v6 = vadd.f32 %v3684_v20, %v2850_v35  ;;  %v56_v35 = vld [vmem:[%s4732_s0 + $0x150] sm:$0xff] }
 0x23b   :  { %1863 = vmatmul.f32.gmra.mxu3 %v39_v9  ;;  %v1453_v32 = vpop.f32.mrf.mxu0 }
 0x23c   :  { %v1107_v61 = vpop.f32.mrf.mxu2 }
 0x23d   :  { %v1108_v42 = vadd.f32 %v1107_v61, %v935_v56 }
 0x23e   :  { %v937_v62 = vpop.f32.mrf.mxu1  ;;  %v1280_v41 = vpop.f32.mrf.mxu3  ;;  %2036 = vmatmul.f32.gmra.mxu0 %v40_v25 }
 0x23f   :  { %v1281_v4 = vadd.f32 %v1280_v41, %v1108_v42  ;;  %v938_v10 = vadd.f32 %v937_v62, %v765_v6  ;;  %v55_v41 = vld [vmem:[%s4732_s0 + $0x148] sm:$0xff]  ;;  %v57_v62 = vld [vmem:[%s4732_s0 + $0x158] sm:$0xff]  ;;  %v58_v6 = vld [vmem:[%s4732_s0 + $0x160] sm:$0xff] }
 0x241   :  { %v3892_v49 = vadd.f32 %v1453_v32, %v1281_v4  ;;  %1520 = vmatmul.f32.gmra.mxu1 %v46_v1  ;;  %1693 = vmatmul.f32.gmra.mxu2 %v47_v13  ;;  %v768_v1 = vadd.f32 %v3684_v20, %v2873_v44  ;;  %v65_v44 = vld [vmem:[%s4732_s0 + $0x198] sm:$0xff] }
 0x243   :  { %1866 = vmatmul.f32.gmra.mxu3 %v48_v33  ;;  %v1456_v9 = vpop.f32.mrf.mxu0 }
 0x244   :  { %v1110_v56 = vpop.f32.mrf.mxu2 }
 0x245   :  { %v1111_v25 = vadd.f32 %v1110_v56, %v938_v10 }
 0x246   :  { %v940_v61 = vpop.f32.mrf.mxu1  ;;  %v1283_v42 = vpop.f32.mrf.mxu3  ;;  %2039 = vmatmul.f32.gmra.mxu0 %v49_v0 }
 0x247   :  { %v1284_v32 = vadd.f32 %v1283_v42, %v1111_v25  ;;  %v941_v4 = vadd.f32 %v940_v61, %v768_v1  ;;  %v64_v42 = vld [vmem:[%s4732_s0 + $0x190] sm:$0xff]  ;;  %v66_v61 = vld [vmem:[%s4732_s0 + $0x1a0] sm:$0xff]  ;;  %v67_v1 = vld [vmem:[%s4732_s0 + $0x1a8] sm:$0xff] }
 0x249   :  { %v3908_v13 = vadd.f32 %v1456_v9, %v1284_v32  ;;  %1523 = vmatmul.f32.gmra.mxu1 %v55_v41  ;;  %1696 = vmatmul.f32.gmra.mxu2 %v56_v35  ;;  %v771_v41 = vadd.f32 %v3684_v20, %v2893_v52  ;;  %v74_v52 = vld [vmem:[%s4732_s0 + $0x1e0] sm:$0xff] }
 0x24b   :  { %1869 = vmatmul.f32.gmra.mxu3 %v57_v62  ;;  %v1459_v33 = vpop.f32.mrf.mxu0 }
 0x24c   :  { %v1113_v10 = vpop.f32.mrf.mxu2 }
 0x24d   :  { %v1114_v0 = vadd.f32 %v1113_v10, %v941_v4 }
 0x24e   :  { %v943_v56 = vpop.f32.mrf.mxu1  ;;  %v1286_v25 = vpop.f32.mrf.mxu3  ;;  %2042 = vmatmul.f32.gmra.mxu0 %v58_v6 }
 0x24f   :  { %v1287_v9 = vadd.f32 %v1286_v25, %v1114_v0  ;;  %v944_v32 = vadd.f32 %v943_v56, %v771_v41  ;;  %v73_v25 = vld [vmem:[%s4732_s0 + $0x1d8] sm:$0xff]  ;;  %v75_v56 = vld [vmem:[%s4732_s0 + $0x1e8] sm:$0xff]  ;;  %v76_v41 = vld [vmem:[%s4732_s0 + $0x1f0] sm:$0xff] }
 0x251   :  { %v3924_v35 = vadd.f32 %v1459_v33, %v1287_v9  ;;  %1526 = vmatmul.f32.gmra.mxu1 %v64_v42  ;;  %1699 = vmatmul.f32.gmra.mxu2 %v65_v44  ;;  %v774_v42 = vadd.f32 %v3684_v20, %v2922_v63  ;;  %v83_v63 = vld [vmem:[%s4732_s0 + $0x228] sm:$0xff] }
 0x253   :  { %1872 = vmatmul.f32.gmra.mxu3 %v66_v61  ;;  %v1462_v62 = vpop.f32.mrf.mxu0 }
 0x254   :  { %v1116_v4 = vpop.f32.mrf.mxu2 }
 0x255   :  { %v1117_v6 = vadd.f32 %v1116_v4, %v944_v32 }
 0x256   :  { %v946_v10 = vpop.f32.mrf.mxu1  ;;  %v1289_v0 = vpop.f32.mrf.mxu3  ;;  %2045 = vmatmul.f32.gmra.mxu0 %v67_v1 }
 0x257   :  { %v1290_v33 = vadd.f32 %v1289_v0, %v1117_v6  ;;  %v947_v9 = vadd.f32 %v946_v10, %v774_v42  ;;  %v82_v0 = vld [vmem:[%s4732_s0 + $0x220] sm:$0xff]  ;;  %v84_v10 = vld [vmem:[%s4732_s0 + $0x230] sm:$0xff]  ;;  %v85_v42 = vld [vmem:[%s4732_s0 + $0x238] sm:$0xff] }
 0x259   :  { %v3940_v44 = vadd.f32 %v1462_v62, %v1290_v33  ;;  %1529 = vmatmul.f32.gmra.mxu1 %v73_v25  ;;  %1702 = vmatmul.f32.gmra.mxu2 %v74_v52  ;;  %v777_v25 = vadd.f32 %v3684_v20, %v2945_v8  ;;  %v92_v8 = vld [vmem:[%s4732_s0 + $0x270] sm:$0xff] }
 0x25b   :  { %1875 = vmatmul.f32.gmra.mxu3 %v75_v56  ;;  %v1465_v61 = vpop.f32.mrf.mxu0 }
 0x25c   :  { %v1119_v32 = vpop.f32.mrf.mxu2 }
 0x25d   :  { %v1120_v1 = vadd.f32 %v1119_v32, %v947_v9 }
 0x25e   :  { %v949_v4 = vpop.f32.mrf.mxu1  ;;  %v1292_v6 = vpop.f32.mrf.mxu3  ;;  %2048 = vmatmul.f32.gmra.mxu0 %v76_v41 }
 0x25f   :  { %v1293_v62 = vadd.f32 %v1292_v6, %v1120_v1  ;;  %v950_v33 = vadd.f32 %v949_v4, %v777_v25  ;;  %v91_v6 = vld [vmem:[%s4732_s0 + $0x268] sm:$0xff]  ;;  %v93_v4 = vld [vmem:[%s4732_s0 + $0x278] sm:$0xff]  ;;  %v94_v25 = vld [vmem:[%s4732_s0 + $0x280] sm:$0xff] }
 0x261   :  { %v3956_v52 = vadd.f32 %v1465_v61, %v1293_v62  ;;  %1532 = vmatmul.f32.gmra.mxu1 %v82_v0  ;;  %1705 = vmatmul.f32.gmra.mxu2 %v83_v63  ;;  %v780_v0 = vadd.f32 %v3684_v20, %v2965_v16  ;;  %v101_v16 = vld [vmem:[%s4732_s0 + $0x2b8] sm:$0xff] }
 0x263   :  { %1878 = vmatmul.f32.gmra.mxu3 %v84_v10  ;;  %v1468_v56 = vpop.f32.mrf.mxu0 }
 0x264   :  { %v1122_v9 = vpop.f32.mrf.mxu2 }
 0x265   :  { %v1123_v41 = vadd.f32 %v1122_v9, %v950_v33 }
 0x266   :  { %v952_v32 = vpop.f32.mrf.mxu1  ;;  %v1295_v1 = vpop.f32.mrf.mxu3  ;;  %2051 = vmatmul.f32.gmra.mxu0 %v85_v42 }
 0x267   :  { %v1296_v61 = vadd.f32 %v1295_v1, %v1123_v41  ;;  %v953_v62 = vadd.f32 %v952_v32, %v780_v0  ;;  %v100_v1 = vld [vmem:[%s4732_s0 + $0x2b0] sm:$0xff]  ;;  %v102_v32 = vld [vmem:[%s4732_s0 + $0x2c0] sm:$0xff]  ;;  %v103_v0 = vld [vmem:[%s4732_s0 + $0x2c8] sm:$0xff] }
 0x269   :  { %v3972_v63 = vadd.f32 %v1468_v56, %v1296_v61  ;;  %1535 = vmatmul.f32.gmra.mxu1 %v91_v6  ;;  %1708 = vmatmul.f32.gmra.mxu2 %v92_v8  ;;  %v783_v6 = vadd.f32 %v3684_v20, %v2994_v28  ;;  %v110_v28 = vld [vmem:[%s4732_s0 + $0x300] sm:$0xff] }
 0x26b   :  { %1881 = vmatmul.f32.gmra.mxu3 %v93_v4  ;;  %v1471_v10 = vpop.f32.mrf.mxu0 }
 0x26c   :  { %v1125_v33 = vpop.f32.mrf.mxu2 }
 0x26d   :  { %v1126_v42 = vadd.f32 %v1125_v33, %v953_v62 }
 0x26e   :  { %v955_v9 = vpop.f32.mrf.mxu1  ;;  %v1298_v41 = vpop.f32.mrf.mxu3  ;;  %2054 = vmatmul.f32.gmra.mxu0 %v94_v25 }
 0x26f   :  { %v1299_v56 = vadd.f32 %v1298_v41, %v1126_v42  ;;  %v956_v61 = vadd.f32 %v955_v9, %v783_v6  ;;  %v109_v41 = vld [vmem:[%s4732_s0 + $0x2f8] sm:$0xff]  ;;  %v111_v9 = vld [vmem:[%s4732_s0 + $0x308] sm:$0xff]  ;;  %v112_v6 = vld [vmem:[%s4732_s0 + $0x310] sm:$0xff] }
 0x271   :  { %v3988_v8 = vadd.f32 %v1471_v10, %v1299_v56  ;;  %1538 = vmatmul.f32.gmra.mxu1 %v100_v1  ;;  %1711 = vmatmul.f32.gmra.mxu2 %v101_v16  ;;  %v786_v1 = vadd.f32 %v3684_v20, %v3017_v45  ;;  %v119_v45 = vld [vmem:[%s4732_s0 + $0x348] sm:$0xff] }
 0x273   :  { %1884 = vmatmul.f32.gmra.mxu3 %v102_v32  ;;  %v1474_v4 = vpop.f32.mrf.mxu0 }
 0x274   :  { %v1128_v62 = vpop.f32.mrf.mxu2 }
 0x275   :  { %v1129_v25 = vadd.f32 %v1128_v62, %v956_v61 }
 0x276   :  { %v958_v33 = vpop.f32.mrf.mxu1  ;;  %v1301_v42 = vpop.f32.mrf.mxu3  ;;  %2057 = vmatmul.f32.gmra.mxu0 %v103_v0 }
 0x277   :  { %v1302_v10 = vadd.f32 %v1301_v42, %v1129_v25  ;;  %v959_v56 = vadd.f32 %v958_v33, %v786_v1  ;;  %v118_v42 = vld [vmem:[%s4732_s0 + $0x340] sm:$0xff]  ;;  %v120_v33 = vld [vmem:[%s4732_s0 + $0x350] sm:$0xff]  ;;  %v121_v1 = vld [vmem:[%s4732_s0 + $0x358] sm:$0xff] }
 0x279   :  { %v4004_v16 = vadd.f32 %v1474_v4, %v1302_v10  ;;  %1541 = vmatmul.f32.gmra.mxu1 %v109_v41  ;;  %1714 = vmatmul.f32.gmra.mxu2 %v110_v28  ;;  %v789_v41 = vadd.f32 %v3684_v20, %v3037_v57  ;;  %v128_v57 = vld [vmem:[%s4732_s0 + $0x390] sm:$0xff] }
 0x27b   :  { %1887 = vmatmul.f32.gmra.mxu3 %v111_v9  ;;  %v1477_v32 = vpop.f32.mrf.mxu0 }
 0x27c   :  { %v1131_v61 = vpop.f32.mrf.mxu2 }
 0x27d   :  { %v1132_v0 = vadd.f32 %v1131_v61, %v959_v56 }
 0x27e   :  { %v961_v62 = vpop.f32.mrf.mxu1  ;;  %v1304_v25 = vpop.f32.mrf.mxu3  ;;  %2060 = vmatmul.f32.gmra.mxu0 %v112_v6 }
 0x27f   :  { %v1305_v4 = vadd.f32 %v1304_v25, %v1132_v0  ;;  %v962_v10 = vadd.f32 %v961_v62, %v789_v41  ;;  %v127_v25 = vld [vmem:[%s4732_s0 + $0x388] sm:$0xff]  ;;  %v129_v62 = vld [vmem:[%s4732_s0 + $0x398] sm:$0xff] }
 0x281   :  { %v4020_v28 = vadd.f32 %v1477_v32, %v1305_v4  ;;  %1544 = vmatmul.f32.gmra.mxu1 %v118_v42  ;;  %1717 = vmatmul.f32.gmra.mxu2 %v119_v45  ;;  %v4740_v42 = vld [vmem:[#allocation2_spill] sm:$0xff] }
 0x282   :  { %v792_v45 = vadd.f32 %v3684_v20, %v4740_v42 }
 0x283   :  { %4739 = vst [vmem:[#allocation6_spill] sm:$0xff] %v4020_v28  ;;  %1890 = vmatmul.f32.gmra.mxu3 %v120_v33  ;;  %v1480_v9 = vpop.f32.mrf.mxu0  ;;  %v136_v28 = vld [vmem:[%s4732_s0 + $0x3d0] sm:$0xff] }
 0x284   :  { %v1134_v56 = vpop.f32.mrf.mxu2 }
 0x285   :  { %v1135_v6 = vadd.f32 %v1134_v56, %v962_v10  ;;  %v130_v10 = vld [vmem:[%s4732_s0 + $0x3a0] sm:$0xff] }
 0x286   :  { %v964_v61 = vpop.f32.mrf.mxu1  ;;  %v1307_v0 = vpop.f32.mrf.mxu3  ;;  %2063 = vmatmul.f32.gmra.mxu0 %v121_v1 }
 0x287   :  { %v1308_v32 = vadd.f32 %v1307_v0, %v1135_v6  ;;  %v965_v33 = vadd.f32 %v964_v61, %v792_v45 }
 0x289   :  { %v4036_v4 = vadd.f32 %v1480_v9, %v1308_v32  ;;  %1547 = vmatmul.f32.gmra.mxu1 %v127_v25  ;;  %1720 = vmatmul.f32.gmra.mxu2 %v128_v57  ;;  %v137_v9 = vld [vmem:[%s4732_s0 + $0x3d8] sm:$0xff]  ;;  %v138_v25 = vld [vmem:[%s4732_s0 + $0x3e0] sm:$0xff]  ;;  %v4742_v57 = vld [vmem:[#allocation3_spill] sm:$0xff] }
 0x28a   :  { %v795_v32 = vadd.f32 %v3684_v20, %v4742_v57 }
 0x28b   :  { %4741 = vst [vmem:[#allocation2_spill] sm:$0xff] %v4036_v4  ;;  %1893 = vmatmul.f32.gmra.mxu3 %v129_v62  ;;  %v1483_v41 = vpop.f32.mrf.mxu0  ;;  %v145_v4 = vld [vmem:[%s4732_s0 + $0x418] sm:$0xff] }
 0x28c   :  { %v1137_v1 = vpop.f32.mrf.mxu2 }
 0x28d   :  { %v1138_v56 = vadd.f32 %v1137_v1, %v965_v33  ;;  %v139_v33 = vld [vmem:[%s4732_s0 + $0x3e8] sm:$0xff] }
 0x28e   :  { %v967_v6 = vpop.f32.mrf.mxu1  ;;  %v1310_v0 = vpop.f32.mrf.mxu3  ;;  %2066 = vmatmul.f32.gmra.mxu0 %v130_v10 }
 0x28f   :  { %v1311_v61 = vadd.f32 %v1310_v0, %v1138_v56  ;;  %v968_v42 = vadd.f32 %v967_v6, %v795_v32  ;;  %v147_v6 = vld [vmem:[%s4732_s0 + $0x428] sm:$0xff] }
 0x291   :  { %v4052_v62 = vadd.f32 %v1483_v41, %v1311_v61  ;;  %1550 = vmatmul.f32.gmra.mxu1 %v136_v28  ;;  %1723 = vmatmul.f32.gmra.mxu2 %v137_v9  ;;  %v146_v28 = vld [vmem:[%s4732_s0 + $0x420] sm:$0xff]  ;;  %v4744_v9 = vld [vmem:[#allocation4_spill] sm:$0xff] }
 0x292   :  { %v798_v61 = vadd.f32 %v3684_v20, %v4744_v9 }
 0x293   :  { %4743 = vst [vmem:[#allocation3_spill] sm:$0xff] %v4052_v62  ;;  %1896 = vmatmul.f32.gmra.mxu3 %v138_v25  ;;  %v1486_v45 = vpop.f32.mrf.mxu0  ;;  %v154_v62 = vld [vmem:[%s4732_s0 + $0x460] sm:$0xff] }
 0x294   :  { %v1140_v10 = vpop.f32.mrf.mxu2 }
 0x295   :  { %v1141_v1 = vadd.f32 %v1140_v10, %v968_v42  ;;  %v148_v42 = vld [vmem:[%s4732_s0 + $0x430] sm:$0xff] }
 0x296   :  { %v970_v56 = vpop.f32.mrf.mxu1  ;;  %v1313_v0 = vpop.f32.mrf.mxu3  ;;  %2069 = vmatmul.f32.gmra.mxu0 %v139_v33 }
 0x297   :  { %v1314_v41 = vadd.f32 %v1313_v0, %v1141_v1  ;;  %v971_v57 = vadd.f32 %v970_v56, %v798_v61  ;;  %v156_v56 = vld [vmem:[%s4732_s0 + $0x470] sm:$0xff] }
 0x299   :  { %v4068_v25 = vadd.f32 %v1486_v45, %v1314_v41  ;;  %1553 = vmatmul.f32.gmra.mxu1 %v145_v4  ;;  %1726 = vmatmul.f32.gmra.mxu2 %v146_v28  ;;  %v155_v4 = vld [vmem:[%s4732_s0 + $0x468] sm:$0xff]  ;;  %v4746_v28 = vld [vmem:[#allocation5_spill] sm:$0xff] }
 0x29a   :  { %v801_v41 = vadd.f32 %v3684_v20, %v4746_v28  ;;  %v164_v20 = vld [vmem:[%s4732_s0 + $0x4b0] sm:$0xff] }
 0x29b   :  { %4745 = vst [vmem:[#allocation4_spill] sm:$0xff] %v4068_v25  ;;  %1899 = vmatmul.f32.gmra.mxu3 %v147_v6  ;;  %v1489_v32 = vpop.f32.mrf.mxu0  ;;  %v163_v25 = vld [vmem:[%s4732_s0 + $0x4a8] sm:$0xff] }
 0x29c   :  { %v1143_v33 = vpop.f32.mrf.mxu2 }
 0x29d   :  { %v1144_v10 = vadd.f32 %v1143_v33, %v971_v57  ;;  %v157_v57 = vld [vmem:[%s4732_s0 + $0x478] sm:$0xff] }
 0x29e   :  { %v973_v1 = vpop.f32.mrf.mxu1  ;;  %v1316_v0 = vpop.f32.mrf.mxu3  ;;  %2072 = vmatmul.f32.gmra.mxu0 %v148_v42 }
 0x29f   :  { %v1317_v45 = vadd.f32 %v1316_v0, %v1144_v10  ;;  %v974_v9 = vadd.f32 %v973_v1, %v801_v41 }
 0x2a1   :  { %v4084_v6 = vadd.f32 %v1489_v32, %v1317_v45  ;;  %1556 = vmatmul.f32.gmra.mxu1 %v154_v62  ;;  %1729 = vmatmul.f32.gmra.mxu2 %v155_v4  ;;  %v165_v32 = vld [vmem:[%s4732_s0 + $0x4b8] sm:$0xff] }
 0x2a3   :  { %1902 = vmatmul.f32.gmra.mxu3 %v156_v56  ;;  %v1492_v61 = vpop.f32.mrf.mxu0  ;;  %v166_v56 = vld [vmem:[%s4732_s0 + $0x4c0] sm:$0xff] }
 0x2a4   :  { %v1146_v42 = vpop.f32.mrf.mxu2 }
 0x2a5   :  { %v1147_v33 = vadd.f32 %v1146_v42, %v974_v9  ;;  %v172_v42 = vld [vmem:[%s4732_s0 + $0x4f0] sm:$0xff] }
 0x2a6   :  { %v1319_v10 = vpop.f32.mrf.mxu3  ;;  %v1512_v0 = vpop.f32.mrf.mxu1  ;;  %2075 = vmatmul.f32.gmra.mxu0 %v157_v57 }
 0x2a7   :  { %v1320_v62 = vadd.f32 %v1319_v10, %v1147_v33  ;;  %v1513_v4 = vadd.f32 %v1512_v0, %v3171_v60 }
 0x2a9   :  { %v4098_v1 = vadd.f32 %v1492_v61, %v1320_v62  ;;  %1559 = vmatmul.f32.gmra.mxu1 %v163_v25  ;;  %1732 = vmatmul.f32.gmra.mxu2 %v164_v20  ;;  %v173_v25 = vld [vmem:[%s4732_s0 + $0x4f8] sm:$0xff]  ;;  %v174_v61 = vld [vmem:[%s4732_s0 + $0x500] sm:$0xff]  ;;  %v175_v20 = vld [vmem:[%s4732_s0 + $0x508] sm:$0xff] }
 0x2ab   :  { %1905 = vmatmul.f32.gmra.mxu3 %v165_v32  ;;  %v2031_v45 = vpop.f32.mrf.mxu0 }
 0x2ac   :  { %v1685_v28 = vpop.f32.mrf.mxu2 }
 0x2ad   :  { %v1686_v41 = vadd.f32 %v1685_v28, %v1513_v4  ;;  %v181_v28 = vld [vmem:[%s4732_s0 + $0x538] sm:$0xff] }
 0x2ae   :  { %v1515_v9 = vpop.f32.mrf.mxu1  ;;  %v1858_v57 = vpop.f32.mrf.mxu3  ;;  %2078 = vmatmul.f32.gmra.mxu0 %v166_v56 }
 0x2af   :  { %v1859_v60 = vadd.f32 %v1858_v57, %v1686_v41  ;;  %v1516_v10 = vadd.f32 %v1515_v9, %v3187_v22  ;;  %v183_v41 = vld [vmem:[%s4732_s0 + $0x548] sm:$0xff] }
 0x2b1   :  { %v4113_v33 = vadd.f32 %v2031_v45, %v1859_v60  ;;  %1562 = vmatmul.f32.gmra.mxu1 %v172_v42  ;;  %1735 = vmatmul.f32.gmra.mxu2 %v173_v25  ;;  %v182_v45 = vld [vmem:[%s4732_s0 + $0x540] sm:$0xff]  ;;  %v184_v25 = vld [vmem:[%s4732_s0 + $0x550] sm:$0xff] }
 0x2b3   :  { %1908 = vmatmul.f32.gmra.mxu3 %v174_v61  ;;  %v2034_v0 = vpop.f32.mrf.mxu0 }
 0x2b4   :  { %v1688_v62 = vpop.f32.mrf.mxu2 }
 0x2b5   :  { %v1689_v32 = vadd.f32 %v1688_v62, %v1516_v10  ;;  %v190_v62 = vld [vmem:[%s4732_s0 + $0x580] sm:$0xff] }
 0x2b6   :  { %v1518_v4 = vpop.f32.mrf.mxu1  ;;  %v1861_v56 = vpop.f32.mrf.mxu3  ;;  %2081 = vmatmul.f32.gmra.mxu0 %v175_v20 }
 0x2b7   :  { %v1862_v22 = vadd.f32 %v1861_v56, %v1689_v32  ;;  %v1519_v57 = vadd.f32 %v1518_v4, %v3206_v2  ;;  %v192_v32 = vld [vmem:[%s4732_s0 + $0x590] sm:$0xff] }
 0x2b9   :  { %v4128_v9 = vadd.f32 %v2034_v0, %v1862_v22  ;;  %1565 = vmatmul.f32.gmra.mxu1 %v181_v28  ;;  %1738 = vmatmul.f32.gmra.mxu2 %v182_v45  ;;  %v191_v0 = vld [vmem:[%s4732_s0 + $0x588] sm:$0xff]  ;;  %v193_v45 = vld [vmem:[%s4732_s0 + $0x598] sm:$0xff] }
 0x2bb   :  { %1911 = vmatmul.f32.gmra.mxu3 %v183_v41  ;;  %v2037_v42 = vpop.f32.mrf.mxu0 }
 0x2bc   :  { %v1691_v60 = vpop.f32.mrf.mxu2 }
 0x2bd   :  { %v1692_v61 = vadd.f32 %v1691_v60, %v1519_v57  ;;  %v199_v60 = vld [vmem:[%s4732_s0 + $0x5c8] sm:$0xff] }
 0x2be   :  { %v1521_v10 = vpop.f32.mrf.mxu1  ;;  %v1864_v20 = vpop.f32.mrf.mxu3  ;;  %2084 = vmatmul.f32.gmra.mxu0 %v184_v25 }
 0x2bf   :  { %v1865_v2 = vadd.f32 %v1864_v20, %v1692_v61  ;;  %v1522_v56 = vadd.f32 %v1521_v10, %v3228_v26  ;;  %v201_v61 = vld [vmem:[%s4732_s0 + $0x5d8] sm:$0xff] }
 0x2c1   :  { %v4143_v4 = vadd.f32 %v2037_v42, %v1865_v2  ;;  %1568 = vmatmul.f32.gmra.mxu1 %v190_v62  ;;  %1741 = vmatmul.f32.gmra.mxu2 %v191_v0  ;;  %v200_v42 = vld [vmem:[%s4732_s0 + $0x5d0] sm:$0xff]  ;;  %v202_v0 = vld [vmem:[%s4732_s0 + $0x5e0] sm:$0xff] }
 0x2c3   :  { %1914 = vmatmul.f32.gmra.mxu3 %v192_v32  ;;  %v2040_v28 = vpop.f32.mrf.mxu0 }
 0x2c4   :  { %v1694_v22 = vpop.f32.mrf.mxu2 }
 0x2c5   :  { %v1695_v41 = vadd.f32 %v1694_v22, %v1522_v56  ;;  %v208_v22 = vld [vmem:[%s4732_s0 + $0x610] sm:$0xff] }
 0x2c6   :  { %v1524_v57 = vpop.f32.mrf.mxu1  ;;  %v1867_v25 = vpop.f32.mrf.mxu3  ;;  %2087 = vmatmul.f32.gmra.mxu0 %v193_v45 }
 0x2c7   :  { %v1868_v26 = vadd.f32 %v1867_v25, %v1695_v41  ;;  %v1525_v20 = vadd.f32 %v1524_v57, %v3247_v48  ;;  %v210_v41 = vld [vmem:[%s4732_s0 + $0x620] sm:$0xff] }
 0x2c9   :  { %v4158_v10 = vadd.f32 %v2040_v28, %v1868_v26  ;;  %1571 = vmatmul.f32.gmra.mxu1 %v199_v60  ;;  %1744 = vmatmul.f32.gmra.mxu2 %v200_v42  ;;  %v209_v28 = vld [vmem:[%s4732_s0 + $0x618] sm:$0xff]  ;;  %v211_v42 = vld [vmem:[%s4732_s0 + $0x628] sm:$0xff] }
 0x2cb   :  { %1917 = vmatmul.f32.gmra.mxu3 %v201_v61  ;;  %v2043_v62 = vpop.f32.mrf.mxu0 }
 0x2cc   :  { %v1697_v2 = vpop.f32.mrf.mxu2 }
 0x2cd   :  { %v1698_v32 = vadd.f32 %v1697_v2, %v1525_v20  ;;  %v217_v2 = vld [vmem:[%s4732_s0 + $0x658] sm:$0xff] }
 0x2ce   :  { %v1527_v56 = vpop.f32.mrf.mxu1  ;;  %v1870_v45 = vpop.f32.mrf.mxu3  ;;  %2090 = vmatmul.f32.gmra.mxu0 %v202_v0 }
 0x2cf   :  { %v1871_v48 = vadd.f32 %v1870_v45, %v1698_v32  ;;  %v1528_v25 = vadd.f32 %v1527_v56, %v3263_v18  ;;  %v219_v32 = vld [vmem:[%s4732_s0 + $0x668] sm:$0xff] }
 0x2d1   :  { %v4173_v57 = vadd.f32 %v2043_v62, %v1871_v48  ;;  %1574 = vmatmul.f32.gmra.mxu1 %v208_v22  ;;  %1747 = vmatmul.f32.gmra.mxu2 %v209_v28  ;;  %v218_v62 = vld [vmem:[%s4732_s0 + $0x660] sm:$0xff]  ;;  %v220_v28 = vld [vmem:[%s4732_s0 + $0x670] sm:$0xff] }
 0x2d3   :  { %1920 = vmatmul.f32.gmra.mxu3 %v210_v41  ;;  %v2046_v60 = vpop.f32.mrf.mxu0 }
 0x2d4   :  { %v1700_v26 = vpop.f32.mrf.mxu2 }
 0x2d5   :  { %v1701_v61 = vadd.f32 %v1700_v26, %v1528_v25  ;;  %v226_v26 = vld [vmem:[%s4732_s0 + $0x6a0] sm:$0xff] }
 0x2d6   :  { %v1530_v20 = vpop.f32.mrf.mxu1  ;;  %v1873_v0 = vpop.f32.mrf.mxu3  ;;  %2093 = vmatmul.f32.gmra.mxu0 %v211_v42 }
 0x2d7   :  { %v1874_v18 = vadd.f32 %v1873_v0, %v1701_v61  ;;  %v1531_v45 = vadd.f32 %v1530_v20, %v3288_v19  ;;  %v228_v61 = vld [vmem:[%s4732_s0 + $0x6b0] sm:$0xff] }
 0x2d9   :  { %v4188_v56 = vadd.f32 %v2046_v60, %v1874_v18  ;;  %1577 = vmatmul.f32.gmra.mxu1 %v217_v2  ;;  %1750 = vmatmul.f32.gmra.mxu2 %v218_v62  ;;  %v227_v60 = vld [vmem:[%s4732_s0 + $0x6a8] sm:$0xff]  ;;  %v229_v62 = vld [vmem:[%s4732_s0 + $0x6b8] sm:$0xff] }
 0x2db   :  { %1923 = vmatmul.f32.gmra.mxu3 %v219_v32  ;;  %v2049_v22 = vpop.f32.mrf.mxu0 }
 0x2dc   :  { %v1703_v48 = vpop.f32.mrf.mxu2 }
 0x2dd   :  { %v1704_v41 = vadd.f32 %v1703_v48, %v1531_v45  ;;  %v235_v48 = vld [vmem:[%s4732_s0 + $0x6e8] sm:$0xff] }
 0x2de   :  { %v1533_v25 = vpop.f32.mrf.mxu1  ;;  %v1876_v42 = vpop.f32.mrf.mxu3  ;;  %2096 = vmatmul.f32.gmra.mxu0 %v220_v28 }
 0x2df   :  { %v1877_v19 = vadd.f32 %v1876_v42, %v1704_v41  ;;  %v1534_v0 = vadd.f32 %v1533_v25, %v3307_v12  ;;  %v237_v41 = vld [vmem:[%s4732_s0 + $0x6f8] sm:$0xff] }
 0x2e1   :  { %v4203_v20 = vadd.f32 %v2049_v22, %v1877_v19  ;;  %1580 = vmatmul.f32.gmra.mxu1 %v226_v26  ;;  %1753 = vmatmul.f32.gmra.mxu2 %v227_v60  ;;  %v236_v22 = vld [vmem:[%s4732_s0 + $0x6f0] sm:$0xff]  ;;  %v238_v60 = vld [vmem:[%s4732_s0 + $0x700] sm:$0xff] }
 0x2e3   :  { %1926 = vmatmul.f32.gmra.mxu3 %v228_v61  ;;  %v2052_v2 = vpop.f32.mrf.mxu0 }
 0x2e4   :  { %v1706_v18 = vpop.f32.mrf.mxu2 }
 0x2e5   :  { %v1707_v32 = vadd.f32 %v1706_v18, %v1534_v0  ;;  %v244_v18 = vld [vmem:[%s4732_s0 + $0x730] sm:$0xff] }
 0x2e6   :  { %v1536_v45 = vpop.f32.mrf.mxu1  ;;  %v1879_v28 = vpop.f32.mrf.mxu3  ;;  %2099 = vmatmul.f32.gmra.mxu0 %v229_v62 }
 0x2e7   :  { %v1880_v12 = vadd.f32 %v1879_v28, %v1707_v32  ;;  %v1537_v42 = vadd.f32 %v1536_v45, %v3323_v47  ;;  %v246_v32 = vld [vmem:[%s4732_s0 + $0x740] sm:$0xff] }
 0x2e9   :  { %v4218_v25 = vadd.f32 %v2052_v2, %v1880_v12  ;;  %1583 = vmatmul.f32.gmra.mxu1 %v235_v48  ;;  %1756 = vmatmul.f32.gmra.mxu2 %v236_v22  ;;  %v245_v2 = vld [vmem:[%s4732_s0 + $0x738] sm:$0xff]  ;;  %v247_v22 = vld [vmem:[%s4732_s0 + $0x748] sm:$0xff] }
 0x2eb   :  { %1929 = vmatmul.f32.gmra.mxu3 %v237_v41  ;;  %v2055_v26 = vpop.f32.mrf.mxu0 }
 0x2ec   :  { %v1709_v19 = vpop.f32.mrf.mxu2 }
 0x2ed   :  { %v1710_v61 = vadd.f32 %v1709_v19, %v1537_v42  ;;  %v253_v19 = vld [vmem:[%s4732_s0 + $0x778] sm:$0xff] }
 0x2ee   :  { %v1539_v0 = vpop.f32.mrf.mxu1  ;;  %v1882_v62 = vpop.f32.mrf.mxu3  ;;  %2102 = vmatmul.f32.gmra.mxu0 %v238_v60 }
 0x2ef   :  { %v1883_v47 = vadd.f32 %v1882_v62, %v1710_v61  ;;  %v1540_v28 = vadd.f32 %v1539_v0, %v3348_v59  ;;  %v255_v61 = vld [vmem:[%s4732_s0 + $0x788] sm:$0xff] }
 0x2f1   :  { %v4233_v45 = vadd.f32 %v2055_v26, %v1883_v47  ;;  %1586 = vmatmul.f32.gmra.mxu1 %v244_v18  ;;  %1759 = vmatmul.f32.gmra.mxu2 %v245_v2  ;;  %v254_v26 = vld [vmem:[%s4732_s0 + $0x780] sm:$0xff]  ;;  %v256_v2 = vld [vmem:[%s4732_s0 + $0x790] sm:$0xff] }
 0x2f3   :  { %1932 = vmatmul.f32.gmra.mxu3 %v246_v32  ;;  %v2058_v48 = vpop.f32.mrf.mxu0 }
 0x2f4   :  { %v1712_v12 = vpop.f32.mrf.mxu2 }
 0x2f5   :  { %v1713_v41 = vadd.f32 %v1712_v12, %v1540_v28  ;;  %v262_v12 = vld [vmem:[%s4732_s0 + $0x7c0] sm:$0xff] }
 0x2f6   :  { %v1542_v42 = vpop.f32.mrf.mxu1  ;;  %v1885_v60 = vpop.f32.mrf.mxu3  ;;  %2105 = vmatmul.f32.gmra.mxu0 %v247_v22 }
 0x2f7   :  { %v1886_v59 = vadd.f32 %v1885_v60, %v1713_v41  ;;  %v1543_v62 = vadd.f32 %v1542_v42, %v3367_v36  ;;  %v264_v41 = vld [vmem:[%s4732_s0 + $0x7d0] sm:$0xff] }
 0x2f9   :  { %v4248_v0 = vadd.f32 %v2058_v48, %v1886_v59  ;;  %1589 = vmatmul.f32.gmra.mxu1 %v253_v19  ;;  %1762 = vmatmul.f32.gmra.mxu2 %v254_v26  ;;  %v263_v48 = vld [vmem:[%s4732_s0 + $0x7c8] sm:$0xff]  ;;  %v265_v26 = vld [vmem:[%s4732_s0 + $0x7d8] sm:$0xff] }
 0x2fb   :  { %1935 = vmatmul.f32.gmra.mxu3 %v255_v61  ;;  %v2061_v18 = vpop.f32.mrf.mxu0 }
 0x2fc   :  { %v1715_v47 = vpop.f32.mrf.mxu2 }
 0x2fd   :  { %v1716_v32 = vadd.f32 %v1715_v47, %v1543_v62  ;;  %v271_v47 = vld [vmem:[%s4732_s0 + $0x808] sm:$0xff] }
 0x2fe   :  { %v1545_v28 = vpop.f32.mrf.mxu1  ;;  %v1888_v22 = vpop.f32.mrf.mxu3  ;;  %2108 = vmatmul.f32.gmra.mxu0 %v256_v2 }
 0x2ff   :  { %v1889_v36 = vadd.f32 %v1888_v22, %v1716_v32  ;;  %v1546_v60 = vadd.f32 %v1545_v28, %v3383_v58  ;;  %v273_v32 = vld [vmem:[%s4732_s0 + $0x818] sm:$0xff] }
 0x301   :  { %v4263_v42 = vadd.f32 %v2061_v18, %v1889_v36  ;;  %1592 = vmatmul.f32.gmra.mxu1 %v262_v12  ;;  %1765 = vmatmul.f32.gmra.mxu2 %v263_v48  ;;  %v272_v18 = vld [vmem:[%s4732_s0 + $0x810] sm:$0xff]  ;;  %v274_v48 = vld [vmem:[%s4732_s0 + $0x820] sm:$0xff] }
 0x303   :  { %1938 = vmatmul.f32.gmra.mxu3 %v264_v41  ;;  %v2064_v19 = vpop.f32.mrf.mxu0 }
 0x304   :  { %v1718_v59 = vpop.f32.mrf.mxu2 }
 0x305   :  { %v1719_v61 = vadd.f32 %v1718_v59, %v1546_v60  ;;  %v280_v59 = vld [vmem:[%s4732_s0 + $0x850] sm:$0xff] }
 0x306   :  { %v1548_v62 = vpop.f32.mrf.mxu1  ;;  %v1891_v2 = vpop.f32.mrf.mxu3  ;;  %2111 = vmatmul.f32.gmra.mxu0 %v265_v26 }
 0x307   :  { %v1892_v58 = vadd.f32 %v1891_v2, %v1719_v61  ;;  %v1549_v22 = vadd.f32 %v1548_v62, %v3405_v21  ;;  %v282_v61 = vld [vmem:[%s4732_s0 + $0x860] sm:$0xff] }
 0x309   :  { %v4278_v28 = vadd.f32 %v2064_v19, %v1892_v58  ;;  %1595 = vmatmul.f32.gmra.mxu1 %v271_v47  ;;  %1768 = vmatmul.f32.gmra.mxu2 %v272_v18  ;;  %v281_v19 = vld [vmem:[%s4732_s0 + $0x858] sm:$0xff]  ;;  %v283_v18 = vld [vmem:[%s4732_s0 + $0x868] sm:$0xff] }
 0x30b   :  { %1941 = vmatmul.f32.gmra.mxu3 %v273_v32  ;;  %v2067_v12 = vpop.f32.mrf.mxu0 }
 0x30c   :  { %v1721_v36 = vpop.f32.mrf.mxu2 }
 0x30d   :  { %v1722_v41 = vadd.f32 %v1721_v36, %v1549_v22  ;;  %v289_v36 = vld [vmem:[%s4732_s0 + $0x898] sm:$0xff] }
 0x30e   :  { %v1551_v60 = vpop.f32.mrf.mxu1  ;;  %v1894_v26 = vpop.f32.mrf.mxu3  ;;  %2114 = vmatmul.f32.gmra.mxu0 %v274_v48 }
 0x30f   :  { %v1895_v21 = vadd.f32 %v1894_v26, %v1722_v41  ;;  %v1552_v2 = vadd.f32 %v1551_v60, %v3427_v46  ;;  %v291_v41 = vld [vmem:[%s4732_s0 + $0x8a8] sm:$0xff]  ;;  %v2187_v26 = vmax.f32 %v4113_v33, 0.0 }
 0x311   :  { %v4293_v62 = vadd.f32 %v2067_v12, %v1895_v21  ;;  %1598 = vmatmul.f32.gmra.mxu1 %v280_v59  ;;  %1771 = vmatmul.f32.gmra.mxu2 %v281_v19  ;;  %v290_v12 = vld [vmem:[%s4732_s0 + $0x8a0] sm:$0xff] }
 0x313   :  { %1944 = vmatmul.f32.gmra.mxu3 %v282_v61  ;;  %v2070_v47 = vpop.f32.mrf.mxu0  ;;  %v292_v61 = vld [vmem:[%s4732_s0 + $0x8b0] sm:$0xff] }
 0x314   :  { %v1724_v58 = vpop.f32.mrf.mxu2 }
 0x315   :  { %v1725_v32 = vadd.f32 %v1724_v58, %v1552_v2 }
 0x316   :  { %v1554_v22 = vpop.f32.mrf.mxu1  ;;  %v1897_v48 = vpop.f32.mrf.mxu3  ;;  %2117 = vmatmul.f32.gmra.mxu0 %v283_v18 }
 0x317   :  { %v1898_v46 = vadd.f32 %v1897_v48, %v1725_v32  ;;  %v1555_v59 = vadd.f32 %v1554_v22, %v3443_v3  ;;  %v299_v3 = vld [vmem:[%s4732_s0 + $0x8e8] sm:$0xff]  ;;  %v300_v22 = vld [vmem:[%s4732_s0 + $0x8f0] sm:$0xff] }
 0x319   :  { %v2071_v60 = vadd.f32 %v2070_v47, %v1898_v46  ;;  %1601 = vmatmul.f32.gmra.mxu1 %v289_v36  ;;  %1774 = vmatmul.f32.gmra.mxu2 %v290_v12  ;;  %v298_v47 = vld [vmem:[%s4732_s0 + $0x8e0] sm:$0xff]  ;;  %v2188_v12 = vmax.f32 %v4128_v9, 0.0 }
 0x31b   :  { %v2200_v19 = vmax.f32 %v2071_v60, 0.0  ;;  %1947 = vmatmul.f32.gmra.mxu3 %v291_v41  ;;  %v2073_v21 = vpop.f32.mrf.mxu0 }
 0x31c   :  { %v1727_v2 = vpop.f32.mrf.mxu2 }
 0x31d   :  { %v4313_v18 = vmax.f32 %v2187_v26, %v2200_v19  ;;  %v1728_v58 = vadd.f32 %v1727_v2, %v1555_v59  ;;  %v301_v26 = vld [vmem:[%s4732_s0 + $0x8f8] sm:$0xff] }
 0x31e   :  { %v1557_v32 = vpop.f32.mrf.mxu1  ;;  %v1900_v48 = vpop.f32.mrf.mxu3  ;;  %2120 = vmatmul.f32.gmra.mxu0 %v292_v61 }
 0x31f   :  { %v1901_v33 = vadd.f32 %v1900_v48, %v1728_v58  ;;  %v1558_v46 = vadd.f32 %v1557_v32, %v3462_v40  ;;  %v308_v40 = vld [vmem:[%s4732_s0 + $0x930] sm:$0xff]  ;;  %v309_v32 = vld [vmem:[%s4732_s0 + $0x938] sm:$0xff] }
 0x321   :  { %v2074_v36 = vadd.f32 %v2073_v21, %v1901_v33  ;;  %1604 = vmatmul.f32.gmra.mxu1 %v298_v47  ;;  %1777 = vmatmul.f32.gmra.mxu2 %v299_v3  ;;  %v307_v21 = vld [vmem:[%s4732_s0 + $0x928] sm:$0xff]  ;;  %v2189_v47 = vmax.f32 %v4143_v4, 0.0 }
 0x323   :  { %v2201_v41 = vmax.f32 %v2074_v36, 0.0  ;;  %1950 = vmatmul.f32.gmra.mxu3 %v300_v22  ;;  %v2076_v60 = vpop.f32.mrf.mxu0  ;;  %v310_v36 = vld [vmem:[%s4732_s0 + $0x940] sm:$0xff] }
 0x324   :  { %v1730_v59 = vpop.f32.mrf.mxu2 }
 0x325   :  { %v4329_v19 = vmax.f32 %v2188_v12, %v2201_v41  ;;  %v1731_v61 = vadd.f32 %v1730_v59, %v1558_v46 }
 0x326   :  { %v1560_v2 = vpop.f32.mrf.mxu1  ;;  %v1903_v58 = vpop.f32.mrf.mxu3  ;;  %2123 = vmatmul.f32.gmra.mxu0 %v301_v26 }
 0x327   :  { %v1904_v9 = vadd.f32 %v1903_v58, %v1731_v61  ;;  %v1561_v3 = vadd.f32 %v1560_v2, %v3484_v37  ;;  %v317_v37 = vld [vmem:[%s4732_s0 + $0x978] sm:$0xff]  ;;  %v318_v61 = vld [vmem:[%s4732_s0 + $0x980] sm:$0xff]  ;;  %v2190_v58 = vmax.f32 %v4158_v10, 0.0 }
 0x329   :  { %v2077_v48 = vadd.f32 %v2076_v60, %v1904_v9  ;;  %1607 = vmatmul.f32.gmra.mxu1 %v307_v21  ;;  %1780 = vmatmul.f32.gmra.mxu2 %v308_v40  ;;  %v316_v60 = vld [vmem:[%s4732_s0 + $0x970] sm:$0xff] }
 0x32b   :  { %v2202_v33 = vmax.f32 %v2077_v48, 0.0  ;;  %1953 = vmatmul.f32.gmra.mxu3 %v309_v32  ;;  %v2079_v22 = vpop.f32.mrf.mxu0  ;;  %v319_v32 = vld [vmem:[%s4732_s0 + $0x988] sm:$0xff] }
 0x32c   :  { %v1733_v12 = vpop.f32.mrf.mxu2 }
 0x32d   :  { %v4345_v46 = vmax.f32 %v2189_v47, %v2202_v33  ;;  %v1734_v41 = vadd.f32 %v1733_v12, %v1561_v3  ;;  %v327_v12 = vld [vmem:[%s4732_s0 + $0x9c8] sm:$0xff] }
 0x32e   :  { %v1563_v26 = vpop.f32.mrf.mxu1  ;;  %v1906_v59 = vpop.f32.mrf.mxu3  ;;  %2126 = vmatmul.f32.gmra.mxu0 %v310_v36 }
 0x32f   :  { %v1907_v4 = vadd.f32 %v1906_v59, %v1734_v41  ;;  %v1564_v21 = vadd.f32 %v1563_v26, %v3503_v43  ;;  %v326_v43 = vld [vmem:[%s4732_s0 + $0x9c0] sm:$0xff]  ;;  %v2191_v26 = vmax.f32 %v4173_v57, 0.0 }
 0x331   :  { %v2080_v2 = vadd.f32 %v2079_v22, %v1907_v4  ;;  %1610 = vmatmul.f32.gmra.mxu1 %v316_v60  ;;  %1783 = vmatmul.f32.gmra.mxu2 %v317_v37  ;;  %v325_v22 = vld [vmem:[%s4732_s0 + $0x9b8] sm:$0xff]  ;;  %v328_v4 = vld [vmem:[%s4732_s0 + $0x9d0] sm:$0xff] }
 0x333   :  { %v2203_v40 = vmax.f32 %v2080_v2, 0.0  ;;  %1956 = vmatmul.f32.gmra.mxu3 %v318_v61  ;;  %v2082_v9 = vpop.f32.mrf.mxu0 }
 0x334   :  { %v1736_v48 = vpop.f32.mrf.mxu2 }
 0x335   :  { %v4361_v47 = vmax.f32 %v2190_v58, %v2203_v40  ;;  %v1737_v3 = vadd.f32 %v1736_v48, %v1564_v21 }
 0x336   :  { %v1566_v33 = vpop.f32.mrf.mxu1  ;;  %v1909_v36 = vpop.f32.mrf.mxu3  ;;  %2129 = vmatmul.f32.gmra.mxu0 %v319_v32  ;;  %v336_v32 = vld [vmem:[%s4732_s0 + $0xa10] sm:$0xff] }
 0x337   :  { %v1910_v10 = vadd.f32 %v1909_v36, %v1737_v3  ;;  %v1567_v59 = vadd.f32 %v1566_v33, %v3519_v38  ;;  %v335_v38 = vld [vmem:[%s4732_s0 + $0xa08] sm:$0xff]  ;;  %v2192_v3 = vmax.f32 %v4188_v56, 0.0 }
 0x339   :  { %v2083_v41 = vadd.f32 %v2082_v9, %v1910_v10  ;;  %1613 = vmatmul.f32.gmra.mxu1 %v325_v22  ;;  %1786 = vmatmul.f32.gmra.mxu2 %v326_v43  ;;  %v334_v9 = vld [vmem:[%s4732_s0 + $0xa00] sm:$0xff]  ;;  %v337_v43 = vld [vmem:[%s4732_s0 + $0xa18] sm:$0xff] }
 0x33b   :  { %v2204_v60 = vmax.f32 %v2083_v41, 0.0  ;;  %1959 = vmatmul.f32.gmra.mxu3 %v327_v12  ;;  %v2085_v37 = vpop.f32.mrf.mxu0 }
 0x33c   :  { %v1739_v61 = vpop.f32.mrf.mxu2 }
 0x33d   :  { %v4377_v2 = vmax.f32 %v2191_v26, %v2204_v60  ;;  %v1740_v58 = vadd.f32 %v1739_v61, %v1567_v59  ;;  %v343_v60 = vld [vmem:[%s4732_s0 + $0xa48] sm:$0xff]  ;;  %v2193_v61 = vmax.f32 %v4203_v20, 0.0 }
 0x33e   :  { %v1569_v21 = vpop.f32.mrf.mxu1  ;;  %v1912_v40 = vpop.f32.mrf.mxu3  ;;  %2132 = vmatmul.f32.gmra.mxu0 %v328_v4 }
 0x33f   :  { %v1913_v57 = vadd.f32 %v1912_v40, %v1740_v58  ;;  %v1570_v33 = vadd.f32 %v1569_v21, %v3544_v11  ;;  %v344_v11 = vld [vmem:[%s4732_s0 + $0xa50] sm:$0xff] }
 0x341   :  { %v2086_v48 = vadd.f32 %v2085_v37, %v1913_v57  ;;  %1616 = vmatmul.f32.gmra.mxu1 %v334_v9  ;;  %1789 = vmatmul.f32.gmra.mxu2 %v335_v38  ;;  %v345_v37 = vld [vmem:[%s4732_s0 + $0xa58] sm:$0xff]  ;;  %v346_v9 = vld [vmem:[%s4732_s0 + $0xa60] sm:$0xff] }
 0x343   :  { %v2205_v36 = vmax.f32 %v2086_v48, 0.0  ;;  %1962 = vmatmul.f32.gmra.mxu3 %v336_v32  ;;  %v2088_v22 = vpop.f32.mrf.mxu0 }
 0x344   :  { %v1742_v10 = vpop.f32.mrf.mxu2 }
 0x345   :  { %v4393_v12 = vmax.f32 %v2192_v3, %v2205_v36  ;;  %v1743_v41 = vadd.f32 %v1742_v10, %v1570_v33  ;;  %v352_v33 = vld [vmem:[%s4732_s0 + $0xa90] sm:$0xff]  ;;  %v354_v36 = vld [vmem:[%s4732_s0 + $0xaa0] sm:$0xff] }
 0x346   :  { %v1572_v26 = vpop.f32.mrf.mxu1  ;;  %v1915_v59 = vpop.f32.mrf.mxu3  ;;  %2135 = vmatmul.f32.gmra.mxu0 %v337_v43  ;;  %v2194_v43 = vmax.f32 %v4218_v25, 0.0 }
 0x347   :  { %v1916_v56 = vadd.f32 %v1915_v59, %v1743_v41  ;;  %v1573_v58 = vadd.f32 %v1572_v26, %v3563_v7  ;;  %v353_v7 = vld [vmem:[%s4732_s0 + $0xa98] sm:$0xff]  ;;  %v355_v59 = vld [vmem:[%s4732_s0 + $0xaa8] sm:$0xff] }
 0x349   :  { %v2089_v4 = vadd.f32 %v2088_v22, %v1916_v56  ;;  %1619 = vmatmul.f32.gmra.mxu1 %v343_v60  ;;  %1792 = vmatmul.f32.gmra.mxu2 %v344_v11 }
 0x34b   :  { %v2206_v21 = vmax.f32 %v2089_v4, 0.0  ;;  %1965 = vmatmul.f32.gmra.mxu3 %v345_v37  ;;  %v2091_v40 = vpop.f32.mrf.mxu0 }
 0x34c   :  { %v1745_v38 = vpop.f32.mrf.mxu2 }
 0x34d   :  { %v4409_v57 = vmax.f32 %v2193_v61, %v2206_v21  ;;  %v1746_v32 = vadd.f32 %v1745_v38, %v1573_v58  ;;  %v361_v61 = vld [vmem:[%s4732_s0 + $0xad8] sm:$0xff]  ;;  %v363_v58 = vld [vmem:[%s4732_s0 + $0xae8] sm:$0xff] }
 0x34e   :  { %v1575_v48 = vpop.f32.mrf.mxu1  ;;  %v1918_v3 = vpop.f32.mrf.mxu3  ;;  %2138 = vmatmul.f32.gmra.mxu0 %v346_v9 }
 0x34f   :  { %v1919_v20 = vadd.f32 %v1918_v3, %v1746_v32  ;;  %v1576_v10 = vadd.f32 %v1575_v48, %v3579_v53  ;;  %v362_v53 = vld [vmem:[%s4732_s0 + $0xae0] sm:$0xff]  ;;  %v364_v48 = vld [vmem:[%s4732_s0 + $0xaf0] sm:$0xff] }
 0x351   :  { %v2092_v22 = vadd.f32 %v2091_v40, %v1919_v20  ;;  %1622 = vmatmul.f32.gmra.mxu1 %v352_v33  ;;  %1795 = vmatmul.f32.gmra.mxu2 %v353_v7  ;;  %v2195_v40 = vmax.f32 %v4233_v45, 0.0 }
 0x353   :  { %v2207_v41 = vmax.f32 %v2092_v22, 0.0  ;;  %1968 = vmatmul.f32.gmra.mxu3 %v354_v36  ;;  %v2094_v26 = vpop.f32.mrf.mxu0  ;;  %v370_v22 = vld [vmem:[%s4732_s0 + $0xb20] sm:$0xff] }
 0x354   :  { %v1748_v60 = vpop.f32.mrf.mxu2 }
 0x355   :  { %v4425_v11 = vmax.f32 %v2194_v43, %v2207_v41  ;;  %v1749_v56 = vadd.f32 %v1748_v60, %v1576_v10  ;;  %v372_v43 = vld [vmem:[%s4732_s0 + $0xb30] sm:$0xff]  ;;  %v2196_v41 = vmax.f32 %v4248_v0, 0.0 }
 0x356   :  { %v1578_v37 = vpop.f32.mrf.mxu1  ;;  %v1921_v4 = vpop.f32.mrf.mxu3  ;;  %2141 = vmatmul.f32.gmra.mxu0 %v355_v59 }
 0x357   :  { %v1922_v25 = vadd.f32 %v1921_v4, %v1749_v56  ;;  %v1579_v9 = vadd.f32 %v1578_v37, %v3604_v17  ;;  %v371_v17 = vld [vmem:[%s4732_s0 + $0xb28] sm:$0xff]  ;;  %v373_v56 = vld [vmem:[%s4732_s0 + $0xb38] sm:$0xff] }
 0x359   :  { %v2095_v21 = vadd.f32 %v2094_v26, %v1922_v25  ;;  %1625 = vmatmul.f32.gmra.mxu1 %v361_v61  ;;  %1798 = vmatmul.f32.gmra.mxu2 %v362_v53 }
 0x35b   :  { %v2208_v38 = vmax.f32 %v2095_v21, 0.0  ;;  %1971 = vmatmul.f32.gmra.mxu3 %v363_v58  ;;  %v2097_v32 = vpop.f32.mrf.mxu0  ;;  %v379_v58 = vld [vmem:[%s4732_s0 + $0xb68] sm:$0xff]  ;;  %v381_v21 = vld [vmem:[%s4732_s0 + $0xb78] sm:$0xff] }
 0x35c   :  { %v1751_v3 = vpop.f32.mrf.mxu2 }
 0x35d   :  { %v4441_v33 = vmax.f32 %v2195_v40, %v2208_v38  ;;  %v1752_v7 = vadd.f32 %v1751_v3, %v1579_v9  ;;  %v2197_v9 = vmax.f32 %v4263_v42, 0.0  ;;  %v382_v3 = vld [vmem:[%s4732_s0 + $0xb80] sm:$0xff] }
 0x35e   :  { %v1581_v20 = vpop.f32.mrf.mxu1  ;;  %v1924_v36 = vpop.f32.mrf.mxu3  ;;  %2144 = vmatmul.f32.gmra.mxu0 %v364_v48 }
 0x35f   :  { %v1925_v45 = vadd.f32 %v1924_v36, %v1752_v7  ;;  %v1582_v26 = vadd.f32 %v1581_v20, %v3623_v27  ;;  %v380_v27 = vld [vmem:[%s4732_s0 + $0xb70] sm:$0xff] }
 0x361   :  { %v2098_v10 = vadd.f32 %v2097_v32, %v1925_v45  ;;  %1628 = vmatmul.f32.gmra.mxu1 %v370_v22  ;;  %1801 = vmatmul.f32.gmra.mxu2 %v371_v17  ;;  %v388_v45 = vld [vmem:[%s4732_s0 + $0xbb0] sm:$0xff] }
 0x363   :  { %v2209_v59 = vmax.f32 %v2098_v10, 0.0  ;;  %1974 = vmatmul.f32.gmra.mxu3 %v372_v43  ;;  %v2100_v60 = vpop.f32.mrf.mxu0  ;;  %v390_v43 = vld [vmem:[%s4732_s0 + $0xbc0] sm:$0xff] }
 0x364   :  { %v1754_v37 = vpop.f32.mrf.mxu2 }
 0x365   :  { %v4457_v4 = vmax.f32 %v2196_v41, %v2209_v59  ;;  %v1755_v61 = vadd.f32 %v1754_v37, %v1582_v26  ;;  %v2198_v41 = vmax.f32 %v4278_v28, 0.0 }
 0x366   :  { %v1584_v53 = vpop.f32.mrf.mxu1  ;;  %v1927_v25 = vpop.f32.mrf.mxu3  ;;  %2147 = vmatmul.f32.gmra.mxu0 %v373_v56  ;;  %v391_v56 = vld [vmem:[%s4732_s0 + $0xbc8] sm:$0xff] }
 0x367   :  { %v1928_v0 = vadd.f32 %v1927_v25, %v1755_v61  ;;  %v1585_v38 = vadd.f32 %v1584_v53, %v3639_v51  ;;  %v389_v51 = vld [vmem:[%s4732_s0 + $0xbb8] sm:$0xff] }
 0x369   :  { %v2101_v40 = vadd.f32 %v2100_v60, %v1928_v0  ;;  %1631 = vmatmul.f32.gmra.mxu1 %v379_v58  ;;  %1804 = vmatmul.f32.gmra.mxu2 %v380_v27  ;;  %v397_v27 = vld [vmem:[%s4732_s0 + $0xbf8] sm:$0xff]  ;;  %v399_v0 = vld [vmem:[%s4732_s0 + $0xc08] sm:$0xff] }
 0x36b   :  { %v2210_v32 = vmax.f32 %v2101_v40, 0.0  ;;  %1977 = vmatmul.f32.gmra.mxu3 %v381_v21  ;;  %v2103_v48 = vpop.f32.mrf.mxu0  ;;  %v2199_v40 = vmax.f32 %v4293_v62, 0.0 }
 0x36c   :  { %v1757_v7 = vpop.f32.mrf.mxu2 }
 0x36d   :  { %v4473_v20 = vmax.f32 %v2197_v9, %v2210_v32  ;;  %v1758_v36 = vadd.f32 %v1757_v7, %v1585_v38 }
 0x36e   :  { %v1587_v22 = vpop.f32.mrf.mxu1  ;;  %v1930_v17 = vpop.f32.mrf.mxu3  ;;  %2150 = vmatmul.f32.gmra.mxu0 %v382_v3 }
 0x36f   :  { %v1931_v42 = vadd.f32 %v1930_v17, %v1758_v36  ;;  %v1588_v26 = vadd.f32 %v1587_v22, %v3661_v15  ;;  %v398_v15 = vld [vmem:[%s4732_s0 + $0xc00] sm:$0xff] }
 0x371   :  { %v2104_v10 = vadd.f32 %v2103_v48, %v1931_v42  ;;  %1634 = vmatmul.f32.gmra.mxu1 %v388_v45  ;;  %1807 = vmatmul.f32.gmra.mxu2 %v389_v51  ;;  %v400_v48 = vld [vmem:[%s4732_s0 + $0xc10] sm:$0xff]  ;;  %v406_v45 = vld [vmem:[%s4732_s0 + $0xc40] sm:$0xff] }
 0x372   :  { %v408_v51 = vld [vmem:[%s4732_s0 + $0xc50] sm:$0xff] }
 0x373   :  { %v2211_v59 = vmax.f32 %v2104_v10, 0.0  ;;  %1980 = vmatmul.f32.gmra.mxu3 %v390_v43  ;;  %v2106_v60 = vpop.f32.mrf.mxu0 }
 0x374   :  { %v1760_v37 = vpop.f32.mrf.mxu2 }
 0x375   :  { %v4489_v61 = vmax.f32 %v2198_v41, %v2211_v59  ;;  %v1761_v53 = vadd.f32 %v1760_v37, %v1588_v26  ;;  %v409_v41 = vld [vmem:[%s4732_s0 + $0xc58] sm:$0xff]  ;;  %v415_v37 = vld [vmem:[%s4732_s0 + $0xc88] sm:$0xff] }
 0x376   :  { %v1590_v25 = vpop.f32.mrf.mxu1  ;;  %v1933_v58 = vpop.f32.mrf.mxu3  ;;  %2153 = vmatmul.f32.gmra.mxu0 %v391_v56 }
 0x377   :  { %v1934_v28 = vadd.f32 %v1933_v58, %v1761_v53  ;;  %v1591_v9 = vadd.f32 %v1590_v25, %v3688_v29  ;;  %v407_v29 = vld [vmem:[%s4732_s0 + $0xc48] sm:$0xff]  ;;  %v416_v53 = vld [vmem:[%s4732_s0 + $0xc90] sm:$0xff]  ;;  %v417_v58 = vld [vmem:[%s4732_s0 + $0xc98] sm:$0xff] }
 0x379   :  { %v2107_v21 = vadd.f32 %v2106_v60, %v1934_v28  ;;  %1637 = vmatmul.f32.gmra.mxu1 %v397_v27  ;;  %1810 = vmatmul.f32.gmra.mxu2 %v398_v15  ;;  %v418_v28 = vld [vmem:[%s4732_s0 + $0xca0] sm:$0xff] }
 0x37b   :  { %v2212_v38 = vmax.f32 %v2107_v21, 0.0  ;;  %1983 = vmatmul.f32.gmra.mxu3 %v399_v0  ;;  %v2109_v32 = vpop.f32.mrf.mxu0 }
 0x37c   :  { %v1763_v3 = vpop.f32.mrf.mxu2 }
 0x37d   :  { %v4505_v7 = vmax.f32 %v2199_v40, %v2212_v38  ;;  %v1764_v36 = vadd.f32 %v1763_v3, %v1591_v9  ;;  %v425_v38 = vld [vmem:[%s4732_s0 + $0xcd8] sm:$0xff]  ;;  %v426_v3 = vld [vmem:[%s4732_s0 + $0xce0] sm:$0xff] }
 0x37e   :  { %v1593_v22 = vpop.f32.mrf.mxu1  ;;  %v1936_v17 = vpop.f32.mrf.mxu3  ;;  %2156 = vmatmul.f32.gmra.mxu0 %v400_v48 }
 0x37f   :  { %v1937_v62 = vadd.f32 %v1936_v17, %v1764_v36  ;;  %v1594_v43 = vadd.f32 %v1593_v22, %v3704_v31  ;;  %v427_v17 = vld [vmem:[%s4732_s0 + $0xce8] sm:$0xff] }
 0x381   :  { %v4516_v42 = vadd.f32 %v2109_v32, %v1937_v62  ;;  %1640 = vmatmul.f32.gmra.mxu1 %v406_v45  ;;  %1813 = vmatmul.f32.gmra.mxu2 %v407_v29 }
 0x383   :  { %1986 = vmatmul.f32.gmra.mxu3 %v408_v51  ;;  %v2112_v10 = vpop.f32.mrf.mxu0 }
 0x384   :  { %v1766_v26 = vpop.f32.mrf.mxu2 }
 0x385   :  { %v1767_v59 = vadd.f32 %v1766_v26, %v1594_v43  ;;  %v434_v43 = vld [vmem:[%s4732_s0 + $0xd20] sm:$0xff]  ;;  %v435_v26 = vld [vmem:[%s4732_s0 + $0xd28] sm:$0xff] }
 0x386   :  { %v1596_v60 = vpop.f32.mrf.mxu1  ;;  %v1939_v56 = vpop.f32.mrf.mxu3  ;;  %2159 = vmatmul.f32.gmra.mxu0 %v409_v41 }
 0x387   :  { %v1597_v31 = vadd.f32 %v1596_v60, %v3723_v34  ;;  %v1940_v25 = vadd.f32 %v1939_v56, %v1767_v59  ;;  %v424_v34 = vld [vmem:[%s4732_s0 + $0xcd0] sm:$0xff] }
 0x388   :  { %v436_v56 = vld [vmem:[%s4732_s0 + $0xd30] sm:$0xff] }
 0x389   :  { %v4532_v27 = vadd.f32 %v2112_v10, %v1940_v25  ;;  %1643 = vmatmul.f32.gmra.mxu1 %v415_v37  ;;  %1816 = vmatmul.f32.gmra.mxu2 %v416_v53 }
 0x38b   :  { %1989 = vmatmul.f32.gmra.mxu3 %v417_v58  ;;  %v2115_v15 = vpop.f32.mrf.mxu0  ;;  %v443_v58 = vld [vmem:[%s4732_s0 + $0xd68] sm:$0xff] }
 0x38c   :  { %v1769_v0 = vpop.f32.mrf.mxu2 }
 0x38d   :  { %v1770_v21 = vadd.f32 %v1769_v0, %v1597_v31  ;;  %v444_v0 = vld [vmem:[%s4732_s0 + $0xd70] sm:$0xff] }
 0x38e   :  { %v1599_v40 = vpop.f32.mrf.mxu1  ;;  %v1942_v9 = vpop.f32.mrf.mxu3  ;;  %2162 = vmatmul.f32.gmra.mxu0 %v418_v28 }
 0x38f   :  { %v1600_v32 = vadd.f32 %v1599_v40, %v3745_v54  ;;  %v1943_v48 = vadd.f32 %v1942_v9, %v1770_v21  ;;  %v433_v54 = vld [vmem:[%s4732_s0 + $0xd18] sm:$0xff] }
 0x390   :  { %v445_v9 = vld [vmem:[%s4732_s0 + $0xd78] sm:$0xff] }
 0x391   :  { %v4547_v36 = vadd.f32 %v2115_v15, %v1943_v48  ;;  %1646 = vmatmul.f32.gmra.mxu1 %v424_v34  ;;  %1819 = vmatmul.f32.gmra.mxu2 %v425_v38 }
 0x393   :  { %1992 = vmatmul.f32.gmra.mxu3 %v426_v3  ;;  %v2118_v22 = vpop.f32.mrf.mxu0  ;;  %v452_v3 = vld [vmem:[%s4732_s0 + $0xdb0] sm:$0xff] }
 0x394   :  { %v1772_v45 = vpop.f32.mrf.mxu2 }
 0x395   :  { %v1773_v29 = vadd.f32 %v1772_v45, %v1600_v32  ;;  %v453_v45 = vld [vmem:[%s4732_s0 + $0xdb8] sm:$0xff] }
 0x396   :  { %v1602_v62 = vpop.f32.mrf.mxu1  ;;  %v1945_v51 = vpop.f32.mrf.mxu3  ;;  %2165 = vmatmul.f32.gmra.mxu0 %v427_v17 }
 0x397   :  { %v1603_v10 = vadd.f32 %v1602_v62, %v3764_v50  ;;  %v1946_v41 = vadd.f32 %v1945_v51, %v1773_v29  ;;  %v442_v50 = vld [vmem:[%s4732_s0 + $0xd60] sm:$0xff] }
 0x398   :  { %v454_v51 = vld [vmem:[%s4732_s0 + $0xdc0] sm:$0xff] }
 0x399   :  { %v4562_v59 = vadd.f32 %v2118_v22, %v1946_v41  ;;  %1649 = vmatmul.f32.gmra.mxu1 %v433_v54  ;;  %1822 = vmatmul.f32.gmra.mxu2 %v434_v43 }
 0x39b   :  { %1995 = vmatmul.f32.gmra.mxu3 %v435_v26  ;;  %v2121_v60 = vpop.f32.mrf.mxu0  ;;  %v461_v26 = vld [vmem:[%s4732_s0 + $0xdf8] sm:$0xff] }
 0x39c   :  { %v1775_v37 = vpop.f32.mrf.mxu2 }
 0x39d   :  { %v1776_v53 = vadd.f32 %v1775_v37, %v1603_v10  ;;  %v462_v37 = vld [vmem:[%s4732_s0 + $0xe00] sm:$0xff] }
 0x39e   :  { %v1605_v31 = vpop.f32.mrf.mxu1  ;;  %v1948_v25 = vpop.f32.mrf.mxu3  ;;  %2168 = vmatmul.f32.gmra.mxu0 %v436_v56 }
 0x39f   :  { %v1606_v15 = vadd.f32 %v1605_v31, %v3780_v30  ;;  %v1949_v28 = vadd.f32 %v1948_v25, %v1776_v53  ;;  %v451_v30 = vld [vmem:[%s4732_s0 + $0xda8] sm:$0xff] }
 0x3a0   :  { %v463_v25 = vld [vmem:[%s4732_s0 + $0xe08] sm:$0xff] }
 0x3a1   :  { %v4577_v21 = vadd.f32 %v2121_v60, %v1949_v28  ;;  %1652 = vmatmul.f32.gmra.mxu1 %v442_v50  ;;  %1825 = vmatmul.f32.gmra.mxu2 %v443_v58 }
 0x3a3   :  { %1998 = vmatmul.f32.gmra.mxu3 %v444_v0  ;;  %v2124_v40 = vpop.f32.mrf.mxu0  ;;  %v470_v0 = vld [vmem:[%s4732_s0 + $0xe40] sm:$0xff] }
 0x3a4   :  { %v1778_v34 = vpop.f32.mrf.mxu2 }
 0x3a5   :  { %v1779_v38 = vadd.f32 %v1778_v34, %v1606_v15  ;;  %v471_v34 = vld [vmem:[%s4732_s0 + $0xe48] sm:$0xff] }
 0x3a6   :  { %v1608_v32 = vpop.f32.mrf.mxu1  ;;  %v1951_v48 = vpop.f32.mrf.mxu3  ;;  %2171 = vmatmul.f32.gmra.mxu0 %v445_v9 }
 0x3a7   :  { %v1609_v22 = vadd.f32 %v1608_v32, %v3796_v14  ;;  %v1952_v17 = vadd.f32 %v1951_v48, %v1779_v38  ;;  %v460_v14 = vld [vmem:[%s4732_s0 + $0xdf0] sm:$0xff] }
 0x3a8   :  { %v472_v48 = vld [vmem:[%s4732_s0 + $0xe50] sm:$0xff] }
 0x3a9   :  { %v4592_v29 = vadd.f32 %v2124_v40, %v1952_v17  ;;  %1655 = vmatmul.f32.gmra.mxu1 %v451_v30  ;;  %1828 = vmatmul.f32.gmra.mxu2 %v452_v3 }
 0x3ab   :  { %2001 = vmatmul.f32.gmra.mxu3 %v453_v45  ;;  %v2127_v62 = vpop.f32.mrf.mxu0  ;;  %v479_v45 = vld [vmem:[%s4732_s0 + $0xe88] sm:$0xff] }
 0x3ac   :  { %v1781_v54 = vpop.f32.mrf.mxu2 }
 0x3ad   :  { %v1782_v43 = vadd.f32 %v1781_v54, %v1609_v22  ;;  %v480_v54 = vld [vmem:[%s4732_s0 + $0xe90] sm:$0xff] }
 0x3ae   :  { %v1611_v10 = vpop.f32.mrf.mxu1  ;;  %v1954_v41 = vpop.f32.mrf.mxu3  ;;  %2174 = vmatmul.f32.gmra.mxu0 %v454_v51 }
 0x3af   :  { %v1612_v60 = vadd.f32 %v1611_v10, %v3812_v24  ;;  %v1955_v56 = vadd.f32 %v1954_v41, %v1782_v43  ;;  %v469_v24 = vld [vmem:[%s4732_s0 + $0xe38] sm:$0xff] }
 0x3b0   :  { %v481_v41 = vld [vmem:[%s4732_s0 + $0xe98] sm:$0xff] }
 0x3b1   :  { %v4607_v53 = vadd.f32 %v2127_v62, %v1955_v56  ;;  %1658 = vmatmul.f32.gmra.mxu1 %v460_v14  ;;  %1831 = vmatmul.f32.gmra.mxu2 %v461_v26 }
 0x3b3   :  { %2004 = vmatmul.f32.gmra.mxu3 %v462_v37  ;;  %v2130_v31 = vpop.f32.mrf.mxu0 }
 0x3b4   :  { %v1784_v50 = vpop.f32.mrf.mxu2 }
 0x3b5   :  { %v1785_v58 = vadd.f32 %v1784_v50, %v1612_v60 }
 0x3b6   :  { %v1614_v15 = vpop.f32.mrf.mxu1  ;;  %v1957_v28 = vpop.f32.mrf.mxu3  ;;  %2177 = vmatmul.f32.gmra.mxu0 %v463_v25 }
 0x3b7   :  { %v1615_v40 = vadd.f32 %v1614_v15, %v3828_v39  ;;  %v1958_v9 = vadd.f32 %v1957_v28, %v1785_v58  ;;  %v478_v39 = vld [vmem:[%s4732_s0 + $0xe80] sm:$0xff] }
 0x3b9   :  { %v4622_v38 = vadd.f32 %v2130_v31, %v1958_v9  ;;  %1661 = vmatmul.f32.gmra.mxu1 %v469_v24  ;;  %1834 = vmatmul.f32.gmra.mxu2 %v470_v0 }
 0x3bb   :  { %2007 = vmatmul.f32.gmra.mxu3 %v471_v34  ;;  %v2133_v32 = vpop.f32.mrf.mxu0 }
 0x3bc   :  { %v1787_v30 = vpop.f32.mrf.mxu2 }
 0x3bd   :  { %v1788_v3 = vadd.f32 %v1787_v30, %v1615_v40 }
 0x3be   :  { %v1617_v22 = vpop.f32.mrf.mxu1  ;;  %v1960_v17 = vpop.f32.mrf.mxu3  ;;  %2180 = vmatmul.f32.gmra.mxu0 %v472_v48 }
 0x3bf   :  { %v1618_v62 = vadd.f32 %v1617_v22, %v3844_v55  ;;  %v1961_v51 = vadd.f32 %v1960_v17, %v1788_v3 }
 0x3c1   :  { %v4637_v43 = vadd.f32 %v2133_v32, %v1961_v51  ;;  %1664 = vmatmul.f32.gmra.mxu1 %v478_v39  ;;  %1837 = vmatmul.f32.gmra.mxu2 %v479_v45 }
 0x3c3   :  { %2010 = vmatmul.f32.gmra.mxu3 %v480_v54  ;;  %v2136_v10 = vpop.f32.mrf.mxu0 }
 0x3c4   :  { %v1790_v14 = vpop.f32.mrf.mxu2 }
 0x3c5   :  { %v1791_v26 = vadd.f32 %v1790_v14, %v1618_v62 }
 0x3c6   :  { %v1620_v60 = vpop.f32.mrf.mxu1  ;;  %v1963_v56 = vpop.f32.mrf.mxu3  ;;  %2183 = vmatmul.f32.gmra.mxu0 %v481_v41 }
 0x3c7   :  { %v1621_v55 = vadd.f32 %v1620_v60, %v3860_v5  ;;  %v1964_v37 = vadd.f32 %v1963_v56, %v1791_v26 }
 0x3c9   :  { %v4643_v31 = vadd.f32 %v2136_v10, %v1964_v37  ;;  %v2213_v37 = vmax.f32 %v4516_v42, 0.0 }
 0x3cb   :  { %v2139_v25 = vpop.f32.mrf.mxu0 }
 0x3cc   :  { %v1793_v50 = vpop.f32.mrf.mxu2 }
 0x3cd   :  { %v1794_v58 = vadd.f32 %v1793_v50, %v1621_v55 }
 0x3ce   :  { %v1623_v15 = vpop.f32.mrf.mxu1  ;;  %v1966_v28 = vpop.f32.mrf.mxu3 }
 0x3cf   :  { %v1624_v24 = vadd.f32 %v1623_v15, %v3876_v23  ;;  %v1967_v0 = vadd.f32 %v1966_v28, %v1794_v58 }
 0x3d1   :  { %v4646_v40 = vadd.f32 %v2139_v25, %v1967_v0 }
 0x3d3   :  { %v2142_v9 = vpop.f32.mrf.mxu0 }
 0x3d4   :  { %v1796_v34 = vpop.f32.mrf.mxu2 }
 0x3d5   :  { %v1797_v32 = vadd.f32 %v1796_v34, %v1624_v24 }
 0x3d6   :  { %v1626_v48 = vpop.f32.mrf.mxu1  ;;  %v1969_v30 = vpop.f32.mrf.mxu3 }
 0x3d7   :  { %v1627_v5 = vadd.f32 %v1626_v48, %v3892_v49  ;;  %v1970_v3 = vadd.f32 %v1969_v30, %v1797_v32  ;;  %v2214_v48 = vmax.f32 %v4532_v27, 0.0 }
 0x3d9   :  { %v4649_v22 = vadd.f32 %v2142_v9, %v1970_v3 }
 0x3db   :  { %v2145_v17 = vpop.f32.mrf.mxu0 }
 0x3dc   :  { %v1799_v39 = vpop.f32.mrf.mxu2 }
 0x3dd   :  { %v1800_v45 = vadd.f32 %v1799_v39, %v1627_v5 }
 0x3de   :  { %v1629_v62 = vpop.f32.mrf.mxu1  ;;  %v1972_v51 = vpop.f32.mrf.mxu3 }
 0x3df   :  { %v1973_v54 = vadd.f32 %v1972_v51, %v1800_v45  ;;  %v1630_v10 = vadd.f32 %v1629_v62, %v3908_v13 }
 0x3e1   :  { %v4651_v23 = vadd.f32 %v2145_v17, %v1973_v54  ;;  %v2215_v54 = vmax.f32 %v4547_v36, 0.0 }
 0x3e3   :  { %v2148_v41 = vpop.f32.mrf.mxu0 }
 0x3e4   :  { %v1802_v14 = vpop.f32.mrf.mxu2 }
 0x3e5   :  { %v1803_v26 = vadd.f32 %v1802_v14, %v1630_v10 }
 0x3e6   :  { %v1632_v60 = vpop.f32.mrf.mxu1  ;;  %v1975_v56 = vpop.f32.mrf.mxu3 }
 0x3e7   :  { %v1976_v55 = vadd.f32 %v1975_v56, %v1803_v26  ;;  %v1633_v25 = vadd.f32 %v1632_v60, %v3924_v35 }
 0x3e9   :  { %v2149_v49 = vadd.f32 %v2148_v41, %v1976_v55 }
 0x3eb   :  { %v2226_v50 = vmax.f32 %v2149_v49, 0.0  ;;  %v2151_v58 = vpop.f32.mrf.mxu0 }
 0x3ec   :  { %v1805_v15 = vpop.f32.mrf.mxu2 }
 0x3ed   :  { %v2252_v28 = vmax.f32 %v2213_v37, %v2226_v50  ;;  %v1806_v24 = vadd.f32 %v1805_v15, %v1633_v25  ;;  %v2216_v37 = vmax.f32 %v4562_v59, 0.0 }
 0x3ee   :  { %v1635_v0 = vpop.f32.mrf.mxu1  ;;  %v1978_v9 = vpop.f32.mrf.mxu3 }
 0x3ef   :  { %v2265_v13 = vmax.f32 %v4313_v18, %v2252_v28  ;;  %v1979_v34 = vadd.f32 %v1978_v9, %v1806_v24  ;;  %v1636_v42 = vadd.f32 %v1635_v0, %v3940_v44 }
 0x3f1   :  { %2278 = vst [vmem:[%s4734_s3] sm:$0xff] %v2265_v13  ;;  %v2152_v32 = vadd.f32 %v2151_v58, %v1979_v34  ;;  %v2217_v13 = vmax.f32 %v4577_v21, 0.0 }
 0x3f3   :  { %v2227_v35 = vmax.f32 %v2152_v32, 0.0  ;;  %v2154_v30 = vpop.f32.mrf.mxu0 }
 0x3f4   :  { %v1808_v5 = vpop.f32.mrf.mxu2 }
 0x3f5   :  { %v2253_v3 = vmax.f32 %v2214_v48, %v2227_v35  ;;  %v1809_v17 = vadd.f32 %v1808_v5, %v1636_v42 }
 0x3f6   :  { %v1638_v39 = vpop.f32.mrf.mxu1  ;;  %v1981_v45 = vpop.f32.mrf.mxu3 }
 0x3f7   :  { %v2266_v62 = vmax.f32 %v4329_v19, %v2253_v3  ;;  %v1982_v18 = vadd.f32 %v1981_v45, %v1809_v17  ;;  %v1639_v27 = vadd.f32 %v1638_v39, %v3956_v52  ;;  %v2218_v17 = vmax.f32 %v4592_v29, 0.0  ;;  %v4747_v29 = vld [vmem:[#allocation6_spill] sm:$0xff] }
 0x3f9   :  { %2279 = vst [vmem:[%s4734_s3 + $0x8] sm:$0xff] %v2266_v62  ;;  %v2155_v51 = vadd.f32 %v2154_v30, %v1982_v18 }
 0x3fb   :  { %v2228_v44 = vmax.f32 %v2155_v51, 0.0  ;;  %v2157_v10 = vpop.f32.mrf.mxu0 }
 0x3fc   :  { %v1811_v41 = vpop.f32.mrf.mxu2 }
 0x3fd   :  { %v2254_v14 = vmax.f32 %v2215_v54, %v2228_v44  ;;  %v1812_v26 = vadd.f32 %v1811_v41, %v1639_v27 }
 0x3fe   :  { %v1641_v60 = vpop.f32.mrf.mxu1  ;;  %v1984_v56 = vpop.f32.mrf.mxu3 }
 0x3ff   :  { %v2267_v55 = vmax.f32 %v4345_v46, %v2254_v14  ;;  %v1985_v19 = vadd.f32 %v1984_v56, %v1812_v26  ;;  %v1642_v36 = vadd.f32 %v1641_v60, %v3972_v63 }
 0x401   :  { %2280 = vst [vmem:[%s4734_s3 + $0x10] sm:$0xff] %v2267_v55  ;;  %v2158_v49 = vadd.f32 %v2157_v10, %v1985_v19  ;;  %v2219_v10 = vmax.f32 %v4607_v53, 0.0  ;;  %v4748_v53 = vld [vmem:[#allocation2_spill] sm:$0xff] }
 0x403   :  { %v2229_v52 = vmax.f32 %v2158_v49, 0.0  ;;  %v2160_v25 = vpop.f32.mrf.mxu0 }
 0x404   :  { %v1814_v50 = vpop.f32.mrf.mxu2 }
 0x405   :  { %v2255_v58 = vmax.f32 %v2216_v37, %v2229_v52  ;;  %v1815_v15 = vadd.f32 %v1814_v50, %v1642_v36  ;;  %v2220_v36 = vmax.f32 %v4622_v38, 0.0  ;;  %v4749_v38 = vld [vmem:[#allocation3_spill] sm:$0xff] }
 0x406   :  { %v1644_v28 = vpop.f32.mrf.mxu1  ;;  %v1987_v24 = vpop.f32.mrf.mxu3 }
 0x407   :  { %v2268_v0 = vmax.f32 %v4361_v47, %v2255_v58  ;;  %v1988_v46 = vadd.f32 %v1987_v24, %v1815_v15  ;;  %v1645_v59 = vadd.f32 %v1644_v28, %v3988_v8 }
 0x409   :  { %2281 = vst [vmem:[%s4734_s3 + $0x18] sm:$0xff] %v2268_v0  ;;  %v2161_v9 = vadd.f32 %v2160_v25, %v1988_v46 }
 0x40b   :  { %v2230_v63 = vmax.f32 %v2161_v9, 0.0  ;;  %v2163_v34 = vpop.f32.mrf.mxu0 }
 0x40c   :  { %v1817_v32 = vpop.f32.mrf.mxu2 }
 0x40d   :  { %v2256_v48 = vmax.f32 %v2217_v13, %v2230_v63  ;;  %v1818_v42 = vadd.f32 %v1817_v32, %v1645_v59  ;;  %v2221_v13 = vmax.f32 %v4637_v43, 0.0  ;;  %v4750_v43 = vld [vmem:[#allocation4_spill] sm:$0xff] }
 0x40e   :  { %v1647_v35 = vpop.f32.mrf.mxu1  ;;  %v1990_v30 = vpop.f32.mrf.mxu3 }
 0x40f   :  { %v2269_v5 = vmax.f32 %v4377_v2, %v2256_v48  ;;  %v1991_v47 = vadd.f32 %v1990_v30, %v1818_v42  ;;  %v1648_v21 = vadd.f32 %v1647_v35, %v4004_v16 }
 0x411   :  { %2282 = vst [vmem:[%s4734_s3 + $0x20] sm:$0xff] %v2269_v5  ;;  %v2164_v3 = vadd.f32 %v2163_v34, %v1991_v47 }
 0x413   :  { %v2231_v8 = vmax.f32 %v2164_v3, 0.0  ;;  %v2166_v39 = vpop.f32.mrf.mxu0  ;;  %v2222_v3 = vmax.f32 %v4643_v31, 0.0 }
 0x414   :  { %v1820_v45 = vpop.f32.mrf.mxu2 }
 0x415   :  { %v2257_v62 = vmax.f32 %v2218_v17, %v2231_v8  ;;  %v1821_v18 = vadd.f32 %v1820_v45, %v1648_v21 }
 0x416   :  { %v1650_v51 = vpop.f32.mrf.mxu1  ;;  %v1993_v54 = vpop.f32.mrf.mxu3 }
 0x417   :  { %v2270_v27 = vmax.f32 %v4393_v12, %v2257_v62  ;;  %v1994_v2 = vadd.f32 %v1993_v54, %v1821_v18  ;;  %v1651_v41 = vadd.f32 %v1650_v51, %v4747_v29 }
 0x419   :  { %2283 = vst [vmem:[%s4734_s3 + $0x28] sm:$0xff] %v2270_v27  ;;  %v2167_v44 = vadd.f32 %v2166_v39, %v1994_v2  ;;  %v2223_v2 = vmax.f32 %v4646_v40, 0.0 }
 0x41b   :  { %v2232_v16 = vmax.f32 %v2167_v44, 0.0  ;;  %v2169_v14 = vpop.f32.mrf.mxu0 }
 0x41c   :  { %v1823_v26 = vpop.f32.mrf.mxu2 }
 0x41d   :  { %v2258_v60 = vmax.f32 %v2219_v10, %v2232_v16  ;;  %v1824_v56 = vadd.f32 %v1823_v26, %v1651_v41 }
 0x41e   :  { %v1653_v55 = vpop.f32.mrf.mxu1  ;;  %v1996_v19 = vpop.f32.mrf.mxu3 }
 0x41f   :  { %v2271_v49 = vmax.f32 %v4409_v57, %v2258_v60  ;;  %v1997_v12 = vadd.f32 %v1996_v19, %v1824_v56  ;;  %v1654_v52 = vadd.f32 %v1653_v55, %v4748_v53  ;;  %v2224_v55 = vmax.f32 %v4649_v22, 0.0 }
 0x421   :  { %2284 = vst [vmem:[%s4734_s3 + $0x30] sm:$0xff] %v2271_v49  ;;  %v2170_v37 = vadd.f32 %v2169_v14, %v1997_v12 }
 0x423   :  { %v2233_v25 = vmax.f32 %v2170_v37, 0.0  ;;  %v2172_v50 = vpop.f32.mrf.mxu0 }
 0x424   :  { %v1826_v58 = vpop.f32.mrf.mxu2 }
 0x425   :  { %v2259_v15 = vmax.f32 %v2220_v36, %v2233_v25  ;;  %v1827_v28 = vadd.f32 %v1826_v58, %v1654_v52  ;;  %v2225_v25 = vmax.f32 %v4651_v23, 0.0 }
 0x426   :  { %v1656_v24 = vpop.f32.mrf.mxu1  ;;  %v1999_v0 = vpop.f32.mrf.mxu3 }
 0x427   :  { %v2272_v46 = vmax.f32 %v4425_v11, %v2259_v15  ;;  %v2000_v57 = vadd.f32 %v1999_v0, %v1827_v28  ;;  %v1657_v59 = vadd.f32 %v1656_v24, %v4749_v38 }
 0x429   :  { %2285 = vst [vmem:[%s4734_s3 + $0x38] sm:$0xff] %v2272_v46  ;;  %v2173_v9 = vadd.f32 %v2172_v50, %v2000_v57 }
 0x42b   :  { %v2234_v63 = vmax.f32 %v2173_v9, 0.0  ;;  %v2175_v34 = vpop.f32.mrf.mxu0 }
 0x42c   :  { %v1829_v32 = vpop.f32.mrf.mxu2 }
 0x42d   :  { %v2260_v48 = vmax.f32 %v2221_v13, %v2234_v63  ;;  %v1830_v42 = vadd.f32 %v1829_v32, %v1657_v59 }
 0x42e   :  { %v1659_v35 = vpop.f32.mrf.mxu1  ;;  %v2002_v30 = vpop.f32.mrf.mxu3 }
 0x42f   :  { %v2273_v5 = vmax.f32 %v4441_v33, %v2260_v48  ;;  %v2003_v11 = vadd.f32 %v2002_v30, %v1830_v42  ;;  %v1660_v17 = vadd.f32 %v1659_v35, %v4750_v43 }
 0x431   :  { %2286 = vst [vmem:[%s4734_s3 + $0x40] sm:$0xff] %v2273_v5  ;;  %v2176_v47 = vadd.f32 %v2175_v34, %v2003_v11 }
 0x433   :  { %v2235_v21 = vmax.f32 %v2176_v47, 0.0  ;;  %v2178_v8 = vpop.f32.mrf.mxu0 }
 0x434   :  { %v1832_v39 = vpop.f32.mrf.mxu2 }
 0x435   :  { %v2261_v45 = vmax.f32 %v2222_v3, %v2235_v21  ;;  %v1833_v62 = vadd.f32 %v1832_v39, %v1660_v17 }
 0x436   :  { %v1662_v18 = vpop.f32.mrf.mxu1  ;;  %v2005_v51 = vpop.f32.mrf.mxu3 }
 0x437   :  { %v2274_v54 = vmax.f32 %v4457_v4, %v2261_v45  ;;  %v2006_v33 = vadd.f32 %v2005_v51, %v1833_v62  ;;  %v1663_v31 = vadd.f32 %v1662_v18, %v4084_v6 }
 0x439   :  { %2287 = vst [vmem:[%s4734_s3 + $0x48] sm:$0xff] %v2274_v54  ;;  %v2179_v27 = vadd.f32 %v2178_v8, %v2006_v33 }
 0x43b   :  { %v2236_v44 = vmax.f32 %v2179_v27, 0.0  ;;  %v2181_v29 = vpop.f32.mrf.mxu0 }
 0x43c   :  { %v1835_v10 = vpop.f32.mrf.mxu2 }
 0x43d   :  { %v2262_v41 = vmax.f32 %v2223_v2, %v2236_v44  ;;  %v1836_v16 = vadd.f32 %v1835_v10, %v1663_v31 }
 0x43e   :  { %v2008_v14 = vpop.f32.mrf.mxu3  ;;  %v1665_v4 = vpop.f32.mrf.mxu1 }
 0x43f   :  { %v2275_v26 = vmax.f32 %v4473_v20, %v2262_v41  ;;  %v2009_v60 = vadd.f32 %v2008_v14, %v1836_v16  ;;  %v1666_v40 = vadd.f32 %v1665_v4, %v4098_v1 }
 0x441   :  { %2288 = vst [vmem:[%s4734_s3 + $0x50] sm:$0xff] %v2275_v26  ;;  %v2182_v56 = vadd.f32 %v2181_v29, %v2009_v60 }
 0x443   :  { %v2237_v6 = vmax.f32 %v2182_v56, 0.0  ;;  %v2184_v36 = vpop.f32.mrf.mxu0 }
 0x444   :  { %v1838_v19 = vpop.f32.mrf.mxu2 }
 0x445   :  { %v2263_v49 = vmax.f32 %v2224_v55, %v2237_v6  ;;  %v1839_v12 = vadd.f32 %v1838_v19, %v1666_v40 }
 0x446   :  { %v2011_v37 = vpop.f32.mrf.mxu3 }
 0x447   :  { %v2276_v53 = vmax.f32 %v4489_v61, %v2263_v49  ;;  %v2012_v20 = vadd.f32 %v2011_v37, %v1839_v12 }
 0x449   :  { %2289 = vst [vmem:[%s4734_s3 + $0x58] sm:$0xff] %v2276_v53  ;;  %v2185_v52 = vadd.f32 %v2184_v36, %v2012_v20 }
 0x44b   :  { %v2238_v50 = vmax.f32 %v2185_v52, 0.0 }
 0x44d   :  { %v2264_v22 = vmax.f32 %v2225_v25, %v2238_v50 }
 0x44f   :  { %v2277_v1 = vmax.f32 %v4505_v7, %v2264_v22 }
 0x451   :  { %2290 = vst [vmem:[%s4734_s3 + $0x60] sm:$0xff] %v2277_v1 }

// kernel: cnn_forward.5
= control target key start
LH: loop header
LB: loop body
LE: loop exit
PB: predicated region body
PF: predicated region fallthrough
CT: control target
= control target key end

     0   :  { %s4471_s1 = inlined_call_operand.vmem [shape: f32[6272,128], index: 1, kind: input, shape index: {}]   ;;  %s4472_s0 = inlined_call_operand.vmem [shape: f32[8,6272], index: 0, kind: input, shape index: {}]   ;;  %s4473_s2 = inlined_call_operand.vmem [shape: f32[1,128], index: 2, kind: input, shape index: {}]   ;;  %s4474_s4 = inlined_call_operand.vmem [shape: f32[1,128], index: 4, kind: input, shape index: {}]   ;;  %s4475_s3 = inlined_call_operand.vmem [shape: f32[128,128], index: 3, kind: input, shape index: {}]   ;;  %s4476_s5 = inlined_call_operand.vmem [shape: f32[8,128], index: 5, kind: output, shape index: {}]  }
   0x1   :  { %v84_v0 = vld [vmem:[%s4471_s1 + $0x78] sm:$0xff]  ;;  %v83_v2 = vld [vmem:[%s4471_s1 + $0x70] sm:$0xff]  ;;  %v82_v6 = vld [vmem:[%s4471_s1 + $0x68] sm:$0xff] }
   0x2   :  { %v116_v1 = vld [vmem:[%s4471_s1 + $0x178] sm:$0xff]  ;;  %857 = vmatpush.msra.mxu0 %v84_v0  ;;  %v115_v4 = vld [vmem:[%s4471_s1 + $0x170] sm:$0xff]  ;;  %v114_v8 = vld [vmem:[%s4471_s1 + $0x168] sm:$0xff] }
   0x3   :  { %897 = vmatpush.msra.mxu2 %v116_v1  ;;  %v100_v3 = vld [vmem:[%s4471_s1 + $0xf8] sm:$0xff]  ;;  %v99_v7 = vld [vmem:[%s4471_s1 + $0xf0] sm:$0xff]  ;;  %v98_v10 = vld [vmem:[%s4471_s1 + $0xe8] sm:$0xff] }
   0x4   :  { %v132_v5 = vld [vmem:[%s4471_s1 + $0x1f8] sm:$0xff]  ;;  %877 = vmatpush.msra.mxu1 %v100_v3  ;;  %858 = vmatpush.msra.mxu0 %v83_v2  ;;  %v131_v9 = vld [vmem:[%s4471_s1 + $0x1f0] sm:$0xff]  ;;  %v81_v11 = vld [vmem:[%s4471_s1 + $0x60] sm:$0xff] }
   0x5   :  { %917 = vmatpush.msra.mxu3 %v132_v5  ;;  %898 = vmatpush.msra.mxu2 %v115_v4  ;;  %v113_v12 = vld [vmem:[%s4471_s1 + $0x160] sm:$0xff]  ;;  %v130_v13 = vld [vmem:[%s4471_s1 + $0x1e8] sm:$0xff]  ;;  %v80_v16 = vld [vmem:[%s4471_s1 + $0x58] sm:$0xff] }
   0x6   :  { %878 = vmatpush.msra.mxu1 %v99_v7  ;;  %859 = vmatpush.msra.mxu0 %v82_v6  ;;  %v97_v14 = vld [vmem:[%s4471_s1 + $0xe0] sm:$0xff]  ;;  %v112_v17 = vld [vmem:[%s4471_s1 + $0x158] sm:$0xff]  ;;  %v79_v20 = vld [vmem:[%s4471_s1 + $0x50] sm:$0xff] }
   0x7   :  { %918 = vmatpush.msra.mxu3 %v131_v9  ;;  %899 = vmatpush.msra.mxu2 %v114_v8  ;;  %v129_v15 = vld [vmem:[%s4471_s1 + $0x1e0] sm:$0xff]  ;;  %v96_v18 = vld [vmem:[%s4471_s1 + $0xd8] sm:$0xff]  ;;  %v111_v21 = vld [vmem:[%s4471_s1 + $0x150] sm:$0xff] }
   0x8   :  { %879 = vmatpush.msra.mxu1 %v98_v10  ;;  %860 = vmatpush.msra.mxu0 %v81_v11  ;;  %v128_v19 = vld [vmem:[%s4471_s1 + $0x1d8] sm:$0xff]  ;;  %v95_v22 = vld [vmem:[%s4471_s1 + $0xd0] sm:$0xff]  ;;  %v78_v24 = vld [vmem:[%s4471_s1 + $0x48] sm:$0xff] }
   0x9   :  { %919 = vmatpush.msra.mxu3 %v130_v13  ;;  %900 = vmatpush.msra.mxu2 %v113_v12  ;;  %v127_v23 = vld [vmem:[%s4471_s1 + $0x1d0] sm:$0xff]  ;;  %v110_v25 = vld [vmem:[%s4471_s1 + $0x148] sm:$0xff]  ;;  %v77_v28 = vld [vmem:[%s4471_s1 + $0x40] sm:$0xff] }
   0xa   :  { %880 = vmatpush.msra.mxu1 %v97_v14  ;;  %861 = vmatpush.msra.mxu0 %v80_v16  ;;  %v94_v26 = vld [vmem:[%s4471_s1 + $0xc8] sm:$0xff]  ;;  %v109_v29 = vld [vmem:[%s4471_s1 + $0x140] sm:$0xff]  ;;  %v76_v32 = vld [vmem:[%s4471_s1 + $0x38] sm:$0xff] }
   0xb   :  { %920 = vmatpush.msra.mxu3 %v129_v15  ;;  %901 = vmatpush.msra.mxu2 %v112_v17  ;;  %v126_v27 = vld [vmem:[%s4471_s1 + $0x1c8] sm:$0xff]  ;;  %v93_v30 = vld [vmem:[%s4471_s1 + $0xc0] sm:$0xff]  ;;  %v108_v33 = vld [vmem:[%s4471_s1 + $0x138] sm:$0xff] }
   0xc   :  { %881 = vmatpush.msra.mxu1 %v96_v18  ;;  %862 = vmatpush.msra.mxu0 %v79_v20  ;;  %v125_v31 = vld [vmem:[%s4471_s1 + $0x1c0] sm:$0xff]  ;;  %v92_v34 = vld [vmem:[%s4471_s1 + $0xb8] sm:$0xff]  ;;  %v75_v36 = vld [vmem:[%s4471_s1 + $0x30] sm:$0xff] }
   0xd   :  { %921 = vmatpush.msra.mxu3 %v128_v19  ;;  %902 = vmatpush.msra.mxu2 %v111_v21  ;;  %v124_v35 = vld [vmem:[%s4471_s1 + $0x1b8] sm:$0xff]  ;;  %v107_v37 = vld [vmem:[%s4471_s1 + $0x130] sm:$0xff]  ;;  %v74_v40 = vld [vmem:[%s4471_s1 + $0x28] sm:$0xff] }
   0xe   :  { %882 = vmatpush.msra.mxu1 %v95_v22  ;;  %863 = vmatpush.msra.mxu0 %v78_v24  ;;  %v91_v38 = vld [vmem:[%s4471_s1 + $0xb0] sm:$0xff]  ;;  %v106_v41 = vld [vmem:[%s4471_s1 + $0x128] sm:$0xff]  ;;  %v73_v44 = vld [vmem:[%s4471_s1 + $0x20] sm:$0xff] }
   0xf   :  { %922 = vmatpush.msra.mxu3 %v127_v23  ;;  %903 = vmatpush.msra.mxu2 %v110_v25  ;;  %v123_v39 = vld [vmem:[%s4471_s1 + $0x1b0] sm:$0xff]  ;;  %v90_v42 = vld [vmem:[%s4471_s1 + $0xa8] sm:$0xff]  ;;  %v105_v45 = vld [vmem:[%s4471_s1 + $0x120] sm:$0xff] }
  0x10   :  { %883 = vmatpush.msra.mxu1 %v94_v26  ;;  %864 = vmatpush.msra.mxu0 %v77_v28  ;;  %v122_v43 = vld [vmem:[%s4471_s1 + $0x1a8] sm:$0xff]  ;;  %v89_v46 = vld [vmem:[%s4471_s1 + $0xa0] sm:$0xff]  ;;  %v72_v48 = vld [vmem:[%s4471_s1 + $0x18] sm:$0xff] }
  0x11   :  { %923 = vmatpush.msra.mxu3 %v126_v27  ;;  %904 = vmatpush.msra.mxu2 %v109_v29  ;;  %v121_v47 = vld [vmem:[%s4471_s1 + $0x1a0] sm:$0xff]  ;;  %v104_v49 = vld [vmem:[%s4471_s1 + $0x118] sm:$0xff]  ;;  %v71_v52 = vld [vmem:[%s4471_s1 + $0x10] sm:$0xff] }
  0x12   :  { %884 = vmatpush.msra.mxu1 %v93_v30  ;;  %865 = vmatpush.msra.mxu0 %v76_v32  ;;  %v88_v50 = vld [vmem:[%s4471_s1 + $0x98] sm:$0xff]  ;;  %v103_v53 = vld [vmem:[%s4471_s1 + $0x110] sm:$0xff]  ;;  %v70_v56 = vld [vmem:[%s4471_s1 + $0x8] sm:$0xff] }
  0x13   :  { %924 = vmatpush.msra.mxu3 %v125_v31  ;;  %905 = vmatpush.msra.mxu2 %v108_v33  ;;  %v120_v51 = vld [vmem:[%s4471_s1 + $0x198] sm:$0xff]  ;;  %v87_v54 = vld [vmem:[%s4471_s1 + $0x90] sm:$0xff]  ;;  %v102_v57 = vld [vmem:[%s4471_s1 + $0x108] sm:$0xff] }
  0x14   :  { %885 = vmatpush.msra.mxu1 %v92_v34  ;;  %866 = vmatpush.msra.mxu0 %v75_v36  ;;  %v119_v55 = vld [vmem:[%s4471_s1 + $0x190] sm:$0xff]  ;;  %v86_v58 = vld [vmem:[%s4471_s1 + $0x88] sm:$0xff]  ;;  %v69_v60 = vld [vmem:[%s4471_s1] sm:$0xff] }
  0x15   :  { %925 = vmatpush.msra.mxu3 %v124_v35  ;;  %906 = vmatpush.msra.mxu2 %v107_v37  ;;  %v118_v59 = vld [vmem:[%s4471_s1 + $0x188] sm:$0xff]  ;;  %v101_v61 = vld [vmem:[%s4471_s1 + $0x100] sm:$0xff]  ;;  %v148_v62 = vld [vmem:[%s4471_s1 + $0x278] sm:$0xff] }
  0x16   :  { %886 = vmatpush.msra.mxu1 %v91_v38  ;;  %867 = vmatpush.msra.mxu0 %v74_v40  ;;  %v180_v63 = vld [vmem:[%s4471_s1 + $0x378] sm:$0xff]  ;;  %v85_v0 = vld [vmem:[%s4471_s1 + $0x80] sm:$0xff]  ;;  %v147_v2 = vld [vmem:[%s4471_s1 + $0x270] sm:$0xff] }
  0x17   :  { %926 = vmatpush.msra.mxu3 %v123_v39  ;;  %907 = vmatpush.msra.mxu2 %v106_v41  ;;  %v117_v1 = vld [vmem:[%s4471_s1 + $0x180] sm:$0xff]  ;;  %v164_v3 = vld [vmem:[%s4471_s1 + $0x2f8] sm:$0xff]  ;;  %v179_v4 = vld [vmem:[%s4471_s1 + $0x370] sm:$0xff] }
  0x18   :  { %887 = vmatpush.msra.mxu1 %v90_v42  ;;  %868 = vmatpush.msra.mxu0 %v73_v44  ;;  %v196_v5 = vld [vmem:[%s4471_s1 + $0x3f8] sm:$0xff]  ;;  %v146_v6 = vld [vmem:[%s4471_s1 + $0x268] sm:$0xff]  ;;  %v163_v7 = vld [vmem:[%s4471_s1 + $0x2f0] sm:$0xff] }
  0x19   :  { %927 = vmatpush.msra.mxu3 %v122_v43  ;;  %908 = vmatpush.msra.mxu2 %v105_v45  ;;  %v178_v8 = vld [vmem:[%s4471_s1 + $0x368] sm:$0xff]  ;;  %v195_v9 = vld [vmem:[%s4471_s1 + $0x3f0] sm:$0xff]  ;;  %v145_v10 = vld [vmem:[%s4471_s1 + $0x260] sm:$0xff] }
  0x1a   :  { %888 = vmatpush.msra.mxu1 %v89_v46  ;;  %869 = vmatpush.msra.mxu0 %v72_v48  ;;  %v162_v11 = vld [vmem:[%s4471_s1 + $0x2e8] sm:$0xff]  ;;  %v177_v12 = vld [vmem:[%s4471_s1 + $0x360] sm:$0xff]  ;;  %v144_v14 = vld [vmem:[%s4471_s1 + $0x258] sm:$0xff] }
  0x1b   :  { %928 = vmatpush.msra.mxu3 %v121_v47  ;;  %909 = vmatpush.msra.mxu2 %v104_v49  ;;  %v194_v13 = vld [vmem:[%s4471_s1 + $0x3e8] sm:$0xff]  ;;  %v161_v15 = vld [vmem:[%s4471_s1 + $0x2e0] sm:$0xff]  ;;  %v176_v16 = vld [vmem:[%s4471_s1 + $0x358] sm:$0xff] }
  0x1c   :  { %889 = vmatpush.msra.mxu1 %v88_v50  ;;  %870 = vmatpush.msra.mxu0 %v71_v52  ;;  %v193_v17 = vld [vmem:[%s4471_s1 + $0x3e0] sm:$0xff]  ;;  %v143_v18 = vld [vmem:[%s4471_s1 + $0x250] sm:$0xff]  ;;  %v160_v19 = vld [vmem:[%s4471_s1 + $0x2d8] sm:$0xff] }
  0x1d   :  { %929 = vmatpush.msra.mxu3 %v120_v51  ;;  %910 = vmatpush.msra.mxu2 %v103_v53  ;;  %v175_v20 = vld [vmem:[%s4471_s1 + $0x350] sm:$0xff]  ;;  %v192_v21 = vld [vmem:[%s4471_s1 + $0x3d8] sm:$0xff]  ;;  %v142_v22 = vld [vmem:[%s4471_s1 + $0x248] sm:$0xff] }
  0x1e   :  { %890 = vmatpush.msra.mxu1 %v87_v54  ;;  %871 = vmatpush.msra.mxu0 %v70_v56  ;;  %v159_v23 = vld [vmem:[%s4471_s1 + $0x2d0] sm:$0xff]  ;;  %v174_v24 = vld [vmem:[%s4471_s1 + $0x348] sm:$0xff]  ;;  %v141_v26 = vld [vmem:[%s4471_s1 + $0x240] sm:$0xff] }
  0x1f   :  { %930 = vmatpush.msra.mxu3 %v119_v55  ;;  %911 = vmatpush.msra.mxu2 %v102_v57  ;;  %v191_v25 = vld [vmem:[%s4471_s1 + $0x3d0] sm:$0xff]  ;;  %v158_v27 = vld [vmem:[%s4471_s1 + $0x2c8] sm:$0xff]  ;;  %v173_v28 = vld [vmem:[%s4471_s1 + $0x340] sm:$0xff] }
  0x20   :  { %891 = vmatpush.msra.mxu1 %v86_v58  ;;  %872 = vmatpush.msra.mxu0 %v69_v60  ;;  %v190_v29 = vld [vmem:[%s4471_s1 + $0x3c8] sm:$0xff]  ;;  %v140_v30 = vld [vmem:[%s4471_s1 + $0x238] sm:$0xff]  ;;  %v157_v31 = vld [vmem:[%s4471_s1 + $0x2c0] sm:$0xff] }
  0x21   :  { %931 = vmatpush.msra.mxu3 %v118_v59  ;;  %912 = vmatpush.msra.mxu2 %v101_v61  ;;  %v172_v32 = vld [vmem:[%s4471_s1 + $0x338] sm:$0xff]  ;;  %v189_v33 = vld [vmem:[%s4471_s1 + $0x3c0] sm:$0xff]  ;;  %v139_v34 = vld [vmem:[%s4471_s1 + $0x230] sm:$0xff] }
  0x22   :  { %937 = vmatpush.msrb.mxu0 %v148_v62  ;;  %892 = vmatpush.msra.mxu1 %v85_v0  ;;  %v156_v35 = vld [vmem:[%s4471_s1 + $0x2b8] sm:$0xff]  ;;  %v171_v36 = vld [vmem:[%s4471_s1 + $0x330] sm:$0xff]  ;;  %v138_v38 = vld [vmem:[%s4471_s1 + $0x228] sm:$0xff] }
  0x23   :  { %977 = vmatpush.msrb.mxu2 %v180_v63  ;;  %932 = vmatpush.msra.mxu3 %v117_v1  ;;  %v188_v37 = vld [vmem:[%s4471_s1 + $0x3b8] sm:$0xff]  ;;  %v155_v39 = vld [vmem:[%s4471_s1 + $0x2b0] sm:$0xff]  ;;  %v170_v40 = vld [vmem:[%s4471_s1 + $0x328] sm:$0xff] }
  0x24   :  { %938 = vmatpush.msrb.mxu0 %v147_v2  ;;  %957 = vmatpush.msrb.mxu1 %v164_v3  ;;  %v187_v41 = vld [vmem:[%s4471_s1 + $0x3b0] sm:$0xff]  ;;  %v137_v42 = vld [vmem:[%s4471_s1 + $0x220] sm:$0xff]  ;;  %v154_v43 = vld [vmem:[%s4471_s1 + $0x2a8] sm:$0xff] }
  0x25   :  { %978 = vmatpush.msrb.mxu2 %v179_v4  ;;  %997 = vmatpush.msrb.mxu3 %v196_v5  ;;  %v169_v44 = vld [vmem:[%s4471_s1 + $0x320] sm:$0xff]  ;;  %v186_v45 = vld [vmem:[%s4471_s1 + $0x3a8] sm:$0xff]  ;;  %v136_v46 = vld [vmem:[%s4471_s1 + $0x218] sm:$0xff] }
  0x26   :  { %939 = vmatpush.msrb.mxu0 %v146_v6  ;;  %958 = vmatpush.msrb.mxu1 %v163_v7  ;;  %v153_v47 = vld [vmem:[%s4471_s1 + $0x2a0] sm:$0xff]  ;;  %v168_v48 = vld [vmem:[%s4471_s1 + $0x318] sm:$0xff]  ;;  %v135_v50 = vld [vmem:[%s4471_s1 + $0x210] sm:$0xff] }
  0x27   :  { %979 = vmatpush.msrb.mxu2 %v178_v8  ;;  %998 = vmatpush.msrb.mxu3 %v195_v9  ;;  %v185_v49 = vld [vmem:[%s4471_s1 + $0x3a0] sm:$0xff]  ;;  %v152_v51 = vld [vmem:[%s4471_s1 + $0x298] sm:$0xff]  ;;  %v167_v52 = vld [vmem:[%s4471_s1 + $0x310] sm:$0xff] }
  0x28   :  { %940 = vmatpush.msrb.mxu0 %v145_v10  ;;  %959 = vmatpush.msrb.mxu1 %v162_v11  ;;  %v184_v53 = vld [vmem:[%s4471_s1 + $0x398] sm:$0xff]  ;;  %v134_v54 = vld [vmem:[%s4471_s1 + $0x208] sm:$0xff]  ;;  %v151_v55 = vld [vmem:[%s4471_s1 + $0x290] sm:$0xff] }
  0x29   :  { %980 = vmatpush.msrb.mxu2 %v177_v12  ;;  %999 = vmatpush.msrb.mxu3 %v194_v13  ;;  %v166_v56 = vld [vmem:[%s4471_s1 + $0x308] sm:$0xff]  ;;  %v183_v57 = vld [vmem:[%s4471_s1 + $0x390] sm:$0xff]  ;;  %v133_v59 = vld [vmem:[%s4471_s1 + $0x200] sm:$0xff] }
  0x2a   :  { %941 = vmatpush.msrb.mxu0 %v144_v14  ;;  %960 = vmatpush.msrb.mxu1 %v161_v15  ;;  %v22_v58 = vld [vmem:[%s4472_s0 + $0x10] sm:$0xff]  ;;  %v150_v60 = vld [vmem:[%s4471_s1 + $0x288] sm:$0xff]  ;;  %v165_v61 = vld [vmem:[%s4471_s1 + $0x300] sm:$0xff] }
  0x2b   :  { %981 = vmatpush.msrb.mxu2 %v176_v16  ;;  %1000 = vmatpush.msrb.mxu3 %v193_v17  ;;  %v182_v62 = vld [vmem:[%s4471_s1 + $0x388] sm:$0xff]  ;;  %v20_v63 = vld [vmem:[%s4472_s0] sm:$0xff]  ;;  %v23_v0 = vld [vmem:[%s4472_s0 + $0x18] sm:$0xff] }
  0x2c   :  { %942 = vmatpush.msrb.mxu0 %v143_v18  ;;  %961 = vmatpush.msrb.mxu1 %v160_v19  ;;  %v212_v1 = vld [vmem:[%s4471_s1 + $0x478] sm:$0xff]  ;;  %v149_v3 = vld [vmem:[%s4471_s1 + $0x280] sm:$0xff]  ;;  %v21_v5 = vld [vmem:[%s4472_s0 + $0x8] sm:$0xff] }
  0x2d   :  { %982 = vmatpush.msrb.mxu2 %v175_v20  ;;  %1001 = vmatpush.msrb.mxu3 %v192_v21  ;;  %v244_v2 = vld [vmem:[%s4471_s1 + $0x578] sm:$0xff]  ;;  %v181_v4 = vld [vmem:[%s4471_s1 + $0x380] sm:$0xff]  ;;  %v211_v6 = vld [vmem:[%s4471_s1 + $0x470] sm:$0xff] }
  0x2e   :  { %943 = vmatpush.msrb.mxu0 %v142_v22  ;;  %962 = vmatpush.msrb.mxu1 %v159_v23  ;;  %v228_v7 = vld [vmem:[%s4471_s1 + $0x4f8] sm:$0xff]  ;;  %v243_v8 = vld [vmem:[%s4471_s1 + $0x570] sm:$0xff]  ;;  %v210_v10 = vld [vmem:[%s4471_s1 + $0x468] sm:$0xff] }
  0x2f   :  { %983 = vmatpush.msrb.mxu2 %v174_v24  ;;  %1002 = vmatpush.msrb.mxu3 %v191_v25  ;;  %v260_v9 = vld [vmem:[%s4471_s1 + $0x5f8] sm:$0xff]  ;;  %v227_v11 = vld [vmem:[%s4471_s1 + $0x4f0] sm:$0xff]  ;;  %v242_v12 = vld [vmem:[%s4471_s1 + $0x568] sm:$0xff] }
  0x30   :  { %944 = vmatpush.msrb.mxu0 %v141_v26  ;;  %963 = vmatpush.msrb.mxu1 %v158_v27  ;;  %v259_v13 = vld [vmem:[%s4471_s1 + $0x5f0] sm:$0xff]  ;;  %v209_v15 = vld [vmem:[%s4471_s1 + $0x460] sm:$0xff]  ;;  %v226_v16 = vld [vmem:[%s4471_s1 + $0x4e8] sm:$0xff] }
  0x31   :  { %984 = vmatpush.msrb.mxu2 %v173_v28  ;;  %1003 = vmatpush.msrb.mxu3 %v190_v29  ;;  %v26_v14 = vld [vmem:[%s4472_s0 + $0x30] sm:$0xff]  ;;  %v241_v17 = vld [vmem:[%s4471_s1 + $0x560] sm:$0xff]  ;;  %v258_v18 = vld [vmem:[%s4471_s1 + $0x5e8] sm:$0xff] }
  0x32   :  { %945 = vmatpush.msrb.mxu0 %v140_v30  ;;  %964 = vmatpush.msrb.mxu1 %v157_v31  ;;  %v24_v19 = vld [vmem:[%s4472_s0 + $0x20] sm:$0xff]  ;;  %v27_v20 = vld [vmem:[%s4472_s0 + $0x38] sm:$0xff]  ;;  %v25_v25 = vld [vmem:[%s4472_s0 + $0x28] sm:$0xff] }
  0x33   :  { %985 = vmatpush.msrb.mxu2 %v172_v32  ;;  %1004 = vmatpush.msrb.mxu3 %v189_v33  ;;  %v208_v21 = vld [vmem:[%s4471_s1 + $0x458] sm:$0xff]  ;;  %v225_v22 = vld [vmem:[%s4471_s1 + $0x4e0] sm:$0xff]  ;;  %v207_v26 = vld [vmem:[%s4471_s1 + $0x450] sm:$0xff] }
  0x34   :  { %946 = vmatpush.msrb.mxu0 %v139_v34  ;;  %965 = vmatpush.msrb.mxu1 %v156_v35  ;;  %v240_v23 = vld [vmem:[%s4471_s1 + $0x558] sm:$0xff]  ;;  %v257_v24 = vld [vmem:[%s4471_s1 + $0x5e0] sm:$0xff]  ;;  %v239_v28 = vld [vmem:[%s4471_s1 + $0x550] sm:$0xff] }
  0x35   :  { %986 = vmatpush.msrb.mxu2 %v171_v36  ;;  %1005 = vmatpush.msrb.mxu3 %v188_v37  ;;  %v224_v27 = vld [vmem:[%s4471_s1 + $0x4d8] sm:$0xff]  ;;  %v206_v30 = vld [vmem:[%s4471_s1 + $0x448] sm:$0xff]  ;;  %v223_v31 = vld [vmem:[%s4471_s1 + $0x4d0] sm:$0xff] }
  0x36   :  { %947 = vmatpush.msrb.mxu0 %v138_v38  ;;  %966 = vmatpush.msrb.mxu1 %v155_v39  ;;  %v256_v29 = vld [vmem:[%s4471_s1 + $0x5d8] sm:$0xff]  ;;  %v238_v32 = vld [vmem:[%s4471_s1 + $0x548] sm:$0xff]  ;;  %v255_v33 = vld [vmem:[%s4471_s1 + $0x5d0] sm:$0xff] }
  0x37   :  { %987 = vmatpush.msrb.mxu2 %v170_v40  ;;  %1006 = vmatpush.msrb.mxu3 %v187_v41  ;;  %v205_v34 = vld [vmem:[%s4471_s1 + $0x440] sm:$0xff]  ;;  %v222_v35 = vld [vmem:[%s4471_s1 + $0x4c8] sm:$0xff]  ;;  %v204_v38 = vld [vmem:[%s4471_s1 + $0x438] sm:$0xff] }
  0x38   :  { %948 = vmatpush.msrb.mxu0 %v137_v42  ;;  %967 = vmatpush.msrb.mxu1 %v154_v43  ;;  %v237_v36 = vld [vmem:[%s4471_s1 + $0x540] sm:$0xff]  ;;  %v254_v37 = vld [vmem:[%s4471_s1 + $0x5c8] sm:$0xff]  ;;  %v236_v40 = vld [vmem:[%s4471_s1 + $0x538] sm:$0xff] }
  0x39   :  { %988 = vmatpush.msrb.mxu2 %v169_v44  ;;  %1007 = vmatpush.msrb.mxu3 %v186_v45  ;;  %v221_v39 = vld [vmem:[%s4471_s1 + $0x4c0] sm:$0xff]  ;;  %v203_v42 = vld [vmem:[%s4471_s1 + $0x430] sm:$0xff]  ;;  %v220_v43 = vld [vmem:[%s4471_s1 + $0x4b8] sm:$0xff] }
  0x3a   :  { %949 = vmatpush.msrb.mxu0 %v136_v46  ;;  %968 = vmatpush.msrb.mxu1 %v153_v47  ;;  %v253_v41 = vld [vmem:[%s4471_s1 + $0x5c0] sm:$0xff]  ;;  %v235_v44 = vld [vmem:[%s4471_s1 + $0x530] sm:$0xff]  ;;  %v252_v45 = vld [vmem:[%s4471_s1 + $0x5b8] sm:$0xff] }
  0x3b   :  { %989 = vmatpush.msrb.mxu2 %v168_v48  ;;  %1008 = vmatpush.msrb.mxu3 %v185_v49  ;;  %v202_v46 = vld [vmem:[%s4471_s1 + $0x428] sm:$0xff]  ;;  %v219_v47 = vld [vmem:[%s4471_s1 + $0x4b0] sm:$0xff] }
  0x3c   :  { %950 = vmatpush.msrb.mxu0 %v135_v50  ;;  %969 = vmatpush.msrb.mxu1 %v152_v51  ;;  %v234_v48 = vld [vmem:[%s4471_s1 + $0x528] sm:$0xff]  ;;  %v251_v49 = vld [vmem:[%s4471_s1 + $0x5b0] sm:$0xff]  ;;  %v201_v50 = vld [vmem:[%s4471_s1 + $0x420] sm:$0xff] }
  0x3d   :  { %990 = vmatpush.msrb.mxu2 %v167_v52  ;;  %1009 = vmatpush.msrb.mxu3 %v184_v53  ;;  %v218_v51 = vld [vmem:[%s4471_s1 + $0x4a8] sm:$0xff]  ;;  %v233_v52 = vld [vmem:[%s4471_s1 + $0x520] sm:$0xff] }
  0x3e   :  { %951 = vmatpush.msrb.mxu0 %v134_v54  ;;  %970 = vmatpush.msrb.mxu1 %v151_v55  ;;  %v250_v53 = vld [vmem:[%s4471_s1 + $0x5a8] sm:$0xff]  ;;  %v200_v54 = vld [vmem:[%s4471_s1 + $0x418] sm:$0xff]  ;;  %v217_v55 = vld [vmem:[%s4471_s1 + $0x4a0] sm:$0xff] }
  0x3f   :  { %991 = vmatpush.msrb.mxu2 %v166_v56  ;;  %1010 = vmatpush.msrb.mxu3 %v183_v57  ;;  %v232_v56 = vld [vmem:[%s4471_s1 + $0x518] sm:$0xff]  ;;  %v249_v57 = vld [vmem:[%s4471_s1 + $0x5a0] sm:$0xff] }
  0x40   :  { %913 = vmatmul.f32.vlgmr.msra.gmra.mxu2 %v22_v58  ;;  %952 = vmatpush.msrb.mxu0 %v133_v59  ;;  %v199_v58 = vld [vmem:[%s4471_s1 + $0x410] sm:$0xff]  ;;  %v216_v59 = vld [vmem:[%s4471_s1 + $0x498] sm:$0xff] }
  0x41   :  { %971 = vmatpush.msrb.mxu1 %v150_v60  ;;  %992 = vmatpush.msrb.mxu2 %v165_v61  ;;  %v231_v60 = vld [vmem:[%s4471_s1 + $0x510] sm:$0xff]  ;;  %v248_v61 = vld [vmem:[%s4471_s1 + $0x598] sm:$0xff] }
  0x42   :  { %1011 = vmatpush.msrb.mxu3 %v182_v62  ;;  %873 = vmatmul.f32.vlgmr.msra.gmra.mxu0 %v20_v63  ;;  %v198_v62 = vld [vmem:[%s4471_s1 + $0x408] sm:$0xff]  ;;  %v215_v63 = vld [vmem:[%s4471_s1 + $0x490] sm:$0xff] }
  0x43   :  { %933 = vmatmul.f32.vlgmr.msra.gmra.mxu3 %v23_v0  ;;  %1017 = vmatpush.msra.mxu0 %v212_v1  ;;  %v230_v0 = vld [vmem:[%s4471_s1 + $0x508] sm:$0xff]  ;;  %v247_v1 = vld [vmem:[%s4471_s1 + $0x590] sm:$0xff] }
  0x44   :  { %1057 = vmatpush.msra.mxu2 %v244_v2  ;;  %972 = vmatpush.msrb.mxu1 %v149_v3  ;;  %v197_v2 = vld [vmem:[%s4471_s1 + $0x400] sm:$0xff]  ;;  %v214_v3 = vld [vmem:[%s4471_s1 + $0x488] sm:$0xff] }
  0x45   :  { %1012 = vmatpush.msrb.mxu3 %v181_v4  ;;  %893 = vmatmul.f32.vlgmr.msra.gmra.mxu1 %v21_v5  ;;  %v229_v4 = vld [vmem:[%s4471_s1 + $0x500] sm:$0xff]  ;;  %v246_v5 = vld [vmem:[%s4471_s1 + $0x588] sm:$0xff] }
  0x46   :  { %1018 = vmatpush.msra.mxu0 %v211_v6  ;;  %1037 = vmatpush.msra.mxu1 %v228_v7  ;;  %v28_v6 = vld [vmem:[%s4472_s0 + $0x40] sm:$0xff]  ;;  %v30_v7 = vld [vmem:[%s4472_s0 + $0x50] sm:$0xff] }
  0x47   :  { %1058 = vmatpush.msra.mxu2 %v243_v8  ;;  %1077 = vmatpush.msra.mxu3 %v260_v9  ;;  %v276_v8 = vld [vmem:[%s4471_s1 + $0x678] sm:$0xff] }
  0x48   :  { %1019 = vmatpush.msra.mxu0 %v210_v10  ;;  %1038 = vmatpush.msra.mxu1 %v227_v11  ;;  %v308_v9 = vld [vmem:[%s4471_s1 + $0x778] sm:$0xff]  ;;  %v213_v10 = vld [vmem:[%s4471_s1 + $0x480] sm:$0xff] }
  0x49   :  { %1059 = vmatpush.msra.mxu2 %v242_v12  ;;  %1078 = vmatpush.msra.mxu3 %v259_v13  ;;  %v245_v11 = vld [vmem:[%s4471_s1 + $0x580] sm:$0xff]  ;;  %v29_v12 = vld [vmem:[%s4472_s0 + $0x48] sm:$0xff]  ;;  %v31_v13 = vld [vmem:[%s4472_s0 + $0x58] sm:$0xff] }
  0x4a   :  { %993 = vmatmul.f32.vlgmr.msrb.gmra.mxu2 %v26_v14  ;;  %1020 = vmatpush.msra.mxu0 %v209_v15  ;;  %v275_v14 = vld [vmem:[%s4471_s1 + $0x670] sm:$0xff]  ;;  %v292_v15 = vld [vmem:[%s4471_s1 + $0x6f8] sm:$0xff] }
  0x4b   :  { %1039 = vmatpush.msra.mxu1 %v226_v16  ;;  %1060 = vmatpush.msra.mxu2 %v241_v17  ;;  %v307_v16 = vld [vmem:[%s4471_s1 + $0x770] sm:$0xff]  ;;  %v324_v17 = vld [vmem:[%s4471_s1 + $0x7f8] sm:$0xff] }
  0x4c   :  { %1079 = vmatpush.msra.mxu3 %v258_v18  ;;  %953 = vmatmul.f32.vlgmr.msrb.gmra.mxu0 %v24_v19  ;;  %v274_v18 = vld [vmem:[%s4471_s1 + $0x668] sm:$0xff]  ;;  %v291_v19 = vld [vmem:[%s4471_s1 + $0x6f0] sm:$0xff] }
  0x4d   :  { %1013 = vmatmul.f32.vlgmr.msrb.gmra.mxu3 %v27_v20  ;;  %1021 = vmatpush.msra.mxu0 %v208_v21  ;;  %v306_v20 = vld [vmem:[%s4471_s1 + $0x768] sm:$0xff]  ;;  %v323_v21 = vld [vmem:[%s4471_s1 + $0x7f0] sm:$0xff] }
  0x4e   :  { %1040 = vmatpush.msra.mxu1 %v225_v22  ;;  %1061 = vmatpush.msra.mxu2 %v240_v23  ;;  %v273_v22 = vld [vmem:[%s4471_s1 + $0x660] sm:$0xff]  ;;  %v290_v23 = vld [vmem:[%s4471_s1 + $0x6e8] sm:$0xff] }
  0x4f   :  { %1080 = vmatpush.msra.mxu3 %v257_v24  ;;  %973 = vmatmul.f32.vlgmr.msrb.gmra.mxu1 %v25_v25  ;;  %v305_v24 = vld [vmem:[%s4471_s1 + $0x760] sm:$0xff]  ;;  %v322_v25 = vld [vmem:[%s4471_s1 + $0x7e8] sm:$0xff] }
  0x50   :  { %1022 = vmatpush.msra.mxu0 %v207_v26  ;;  %1041 = vmatpush.msra.mxu1 %v224_v27  ;;  %v272_v26 = vld [vmem:[%s4471_s1 + $0x658] sm:$0xff]  ;;  %v289_v27 = vld [vmem:[%s4471_s1 + $0x6e0] sm:$0xff] }
  0x51   :  { %1062 = vmatpush.msra.mxu2 %v239_v28  ;;  %1081 = vmatpush.msra.mxu3 %v256_v29  ;;  %v304_v28 = vld [vmem:[%s4471_s1 + $0x758] sm:$0xff]  ;;  %v321_v29 = vld [vmem:[%s4471_s1 + $0x7e0] sm:$0xff] }
  0x52   :  { %1023 = vmatpush.msra.mxu0 %v206_v30  ;;  %1042 = vmatpush.msra.mxu1 %v223_v31  ;;  %v271_v30 = vld [vmem:[%s4471_s1 + $0x650] sm:$0xff]  ;;  %v288_v31 = vld [vmem:[%s4471_s1 + $0x6d8] sm:$0xff] }
  0x53   :  { %1063 = vmatpush.msra.mxu2 %v238_v32  ;;  %1082 = vmatpush.msra.mxu3 %v255_v33  ;;  %v303_v32 = vld [vmem:[%s4471_s1 + $0x750] sm:$0xff]  ;;  %v320_v33 = vld [vmem:[%s4471_s1 + $0x7d8] sm:$0xff] }
  0x54   :  { %1024 = vmatpush.msra.mxu0 %v205_v34  ;;  %1043 = vmatpush.msra.mxu1 %v222_v35  ;;  %v270_v34 = vld [vmem:[%s4471_s1 + $0x648] sm:$0xff]  ;;  %v287_v35 = vld [vmem:[%s4471_s1 + $0x6d0] sm:$0xff] }
  0x55   :  { %1064 = vmatpush.msra.mxu2 %v237_v36  ;;  %1083 = vmatpush.msra.mxu3 %v254_v37  ;;  %v302_v36 = vld [vmem:[%s4471_s1 + $0x748] sm:$0xff]  ;;  %v319_v37 = vld [vmem:[%s4471_s1 + $0x7d0] sm:$0xff] }
  0x56   :  { %1025 = vmatpush.msra.mxu0 %v204_v38  ;;  %1044 = vmatpush.msra.mxu1 %v221_v39  ;;  %v269_v38 = vld [vmem:[%s4471_s1 + $0x640] sm:$0xff]  ;;  %v286_v39 = vld [vmem:[%s4471_s1 + $0x6c8] sm:$0xff] }
  0x57   :  { %1065 = vmatpush.msra.mxu2 %v236_v40  ;;  %1084 = vmatpush.msra.mxu3 %v253_v41  ;;  %v301_v40 = vld [vmem:[%s4471_s1 + $0x740] sm:$0xff]  ;;  %v318_v41 = vld [vmem:[%s4471_s1 + $0x7c8] sm:$0xff] }
  0x58   :  { %1026 = vmatpush.msra.mxu0 %v203_v42  ;;  %1045 = vmatpush.msra.mxu1 %v220_v43  ;;  %v268_v42 = vld [vmem:[%s4471_s1 + $0x638] sm:$0xff]  ;;  %v285_v43 = vld [vmem:[%s4471_s1 + $0x6c0] sm:$0xff] }
  0x59   :  { %1066 = vmatpush.msra.mxu2 %v235_v44  ;;  %1085 = vmatpush.msra.mxu3 %v252_v45  ;;  %v300_v44 = vld [vmem:[%s4471_s1 + $0x738] sm:$0xff]  ;;  %v317_v45 = vld [vmem:[%s4471_s1 + $0x7c0] sm:$0xff] }
  0x5a   :  { %1027 = vmatpush.msra.mxu0 %v202_v46  ;;  %1046 = vmatpush.msra.mxu1 %v219_v47  ;;  %v267_v46 = vld [vmem:[%s4471_s1 + $0x630] sm:$0xff]  ;;  %v284_v47 = vld [vmem:[%s4471_s1 + $0x6b8] sm:$0xff] }
  0x5b   :  { %1067 = vmatpush.msra.mxu2 %v234_v48  ;;  %1086 = vmatpush.msra.mxu3 %v251_v49  ;;  %v299_v48 = vld [vmem:[%s4471_s1 + $0x730] sm:$0xff]  ;;  %v316_v49 = vld [vmem:[%s4471_s1 + $0x7b8] sm:$0xff] }
  0x5c   :  { %1028 = vmatpush.msra.mxu0 %v201_v50  ;;  %1047 = vmatpush.msra.mxu1 %v218_v51  ;;  %v266_v50 = vld [vmem:[%s4471_s1 + $0x628] sm:$0xff]  ;;  %v283_v51 = vld [vmem:[%s4471_s1 + $0x6b0] sm:$0xff] }
  0x5d   :  { %1068 = vmatpush.msra.mxu2 %v233_v52  ;;  %1087 = vmatpush.msra.mxu3 %v250_v53  ;;  %v298_v52 = vld [vmem:[%s4471_s1 + $0x728] sm:$0xff]  ;;  %v315_v53 = vld [vmem:[%s4471_s1 + $0x7b0] sm:$0xff] }
  0x5e   :  { %1029 = vmatpush.msra.mxu0 %v200_v54  ;;  %1048 = vmatpush.msra.mxu1 %v217_v55  ;;  %v265_v54 = vld [vmem:[%s4471_s1 + $0x620] sm:$0xff]  ;;  %v282_v55 = vld [vmem:[%s4471_s1 + $0x6a8] sm:$0xff] }
  0x5f   :  { %1069 = vmatpush.msra.mxu2 %v232_v56  ;;  %1088 = vmatpush.msra.mxu3 %v249_v57  ;;  %v297_v56 = vld [vmem:[%s4471_s1 + $0x720] sm:$0xff]  ;;  %v314_v57 = vld [vmem:[%s4471_s1 + $0x7a8] sm:$0xff] }
  0x60   :  { %1030 = vmatpush.msra.mxu0 %v199_v58  ;;  %1049 = vmatpush.msra.mxu1 %v216_v59  ;;  %v264_v58 = vld [vmem:[%s4471_s1 + $0x618] sm:$0xff]  ;;  %v281_v59 = vld [vmem:[%s4471_s1 + $0x6a0] sm:$0xff] }
  0x61   :  { %1070 = vmatpush.msra.mxu2 %v231_v60  ;;  %1089 = vmatpush.msra.mxu3 %v248_v61  ;;  %v296_v60 = vld [vmem:[%s4471_s1 + $0x718] sm:$0xff]  ;;  %v313_v61 = vld [vmem:[%s4471_s1 + $0x7a0] sm:$0xff] }
  0x62   :  { %1031 = vmatpush.msra.mxu0 %v198_v62  ;;  %1050 = vmatpush.msra.mxu1 %v215_v63  ;;  %v263_v62 = vld [vmem:[%s4471_s1 + $0x610] sm:$0xff]  ;;  %v280_v63 = vld [vmem:[%s4471_s1 + $0x698] sm:$0xff] }
  0x63   :  { %1071 = vmatpush.msra.mxu2 %v230_v0  ;;  %1090 = vmatpush.msra.mxu3 %v247_v1  ;;  %v295_v0 = vld [vmem:[%s4471_s1 + $0x710] sm:$0xff]  ;;  %v312_v1 = vld [vmem:[%s4471_s1 + $0x798] sm:$0xff] }
  0x64   :  { %1032 = vmatpush.msra.mxu0 %v197_v2  ;;  %1051 = vmatpush.msra.mxu1 %v214_v3  ;;  %v262_v2 = vld [vmem:[%s4471_s1 + $0x608] sm:$0xff]  ;;  %v279_v3 = vld [vmem:[%s4471_s1 + $0x690] sm:$0xff] }
  0x65   :  { %1072 = vmatpush.msra.mxu2 %v229_v4  ;;  %1091 = vmatpush.msra.mxu3 %v246_v5  ;;  %v294_v4 = vld [vmem:[%s4471_s1 + $0x708] sm:$0xff]  ;;  %v311_v5 = vld [vmem:[%s4471_s1 + $0x790] sm:$0xff] }
  0x66   :  { %1033 = vmatmul.f32.vlgmr.msra.gmra.mxu0 %v28_v6  ;;  %1073 = vmatmul.f32.vlgmr.msra.gmra.mxu2 %v30_v7  ;;  %v261_v6 = vld [vmem:[%s4471_s1 + $0x600] sm:$0xff]  ;;  %v278_v7 = vld [vmem:[%s4471_s1 + $0x688] sm:$0xff] }
  0x67   :  { %1097 = vmatpush.msrb.mxu0 %v276_v8  ;;  %1137 = vmatpush.msrb.mxu2 %v308_v9  ;;  %v293_v8 = vld [vmem:[%s4471_s1 + $0x700] sm:$0xff]  ;;  %v310_v9 = vld [vmem:[%s4471_s1 + $0x788] sm:$0xff] }
  0x68   :  { %1052 = vmatpush.msra.mxu1 %v213_v10  ;;  %1092 = vmatpush.msra.mxu3 %v245_v11  ;;  %v32_v10 = vld [vmem:[%s4472_s0 + $0x60] sm:$0xff]  ;;  %v34_v11 = vld [vmem:[%s4472_s0 + $0x70] sm:$0xff] }
  0x69   :  { %1053 = vmatmul.f32.vlgmr.msra.gmra.mxu1 %v29_v12  ;;  %1093 = vmatmul.f32.vlgmr.msra.gmra.mxu3 %v31_v13  ;;  %v340_v12 = vld [vmem:[%s4471_s1 + $0x878] sm:$0xff] }
  0x6a   :  { %1098 = vmatpush.msrb.mxu0 %v275_v14  ;;  %1117 = vmatpush.msrb.mxu1 %v292_v15  ;;  %v372_v13 = vld [vmem:[%s4471_s1 + $0x978] sm:$0xff]  ;;  %v277_v14 = vld [vmem:[%s4471_s1 + $0x680] sm:$0xff] }
  0x6b   :  { %1138 = vmatpush.msrb.mxu2 %v307_v16  ;;  %1157 = vmatpush.msrb.mxu3 %v324_v17  ;;  %v309_v15 = vld [vmem:[%s4471_s1 + $0x780] sm:$0xff]  ;;  %v33_v16 = vld [vmem:[%s4472_s0 + $0x68] sm:$0xff]  ;;  %v35_v17 = vld [vmem:[%s4472_s0 + $0x78] sm:$0xff] }
  0x6c   :  { %1099 = vmatpush.msrb.mxu0 %v274_v18  ;;  %1118 = vmatpush.msrb.mxu1 %v291_v19  ;;  %v339_v18 = vld [vmem:[%s4471_s1 + $0x870] sm:$0xff]  ;;  %v356_v19 = vld [vmem:[%s4471_s1 + $0x8f8] sm:$0xff] }
  0x6d   :  { %1139 = vmatpush.msrb.mxu2 %v306_v20  ;;  %1158 = vmatpush.msrb.mxu3 %v323_v21  ;;  %v371_v20 = vld [vmem:[%s4471_s1 + $0x970] sm:$0xff]  ;;  %v388_v21 = vld [vmem:[%s4471_s1 + $0x9f8] sm:$0xff] }
  0x6e   :  { %1100 = vmatpush.msrb.mxu0 %v273_v22  ;;  %1119 = vmatpush.msrb.mxu1 %v290_v23  ;;  %v338_v22 = vld [vmem:[%s4471_s1 + $0x868] sm:$0xff]  ;;  %v355_v23 = vld [vmem:[%s4471_s1 + $0x8f0] sm:$0xff] }
  0x6f   :  { %1140 = vmatpush.msrb.mxu2 %v305_v24  ;;  %1159 = vmatpush.msrb.mxu3 %v322_v25  ;;  %v370_v24 = vld [vmem:[%s4471_s1 + $0x968] sm:$0xff]  ;;  %v387_v25 = vld [vmem:[%s4471_s1 + $0x9f0] sm:$0xff] }
  0x70   :  { %1101 = vmatpush.msrb.mxu0 %v272_v26  ;;  %1120 = vmatpush.msrb.mxu1 %v289_v27  ;;  %v337_v26 = vld [vmem:[%s4471_s1 + $0x860] sm:$0xff]  ;;  %v354_v27 = vld [vmem:[%s4471_s1 + $0x8e8] sm:$0xff] }
  0x71   :  { %1141 = vmatpush.msrb.mxu2 %v304_v28  ;;  %1160 = vmatpush.msrb.mxu3 %v321_v29  ;;  %v369_v28 = vld [vmem:[%s4471_s1 + $0x960] sm:$0xff]  ;;  %v386_v29 = vld [vmem:[%s4471_s1 + $0x9e8] sm:$0xff] }
  0x72   :  { %1102 = vmatpush.msrb.mxu0 %v271_v30  ;;  %1121 = vmatpush.msrb.mxu1 %v288_v31  ;;  %v336_v30 = vld [vmem:[%s4471_s1 + $0x858] sm:$0xff]  ;;  %v353_v31 = vld [vmem:[%s4471_s1 + $0x8e0] sm:$0xff] }
  0x73   :  { %1142 = vmatpush.msrb.mxu2 %v303_v32  ;;  %1161 = vmatpush.msrb.mxu3 %v320_v33  ;;  %v368_v32 = vld [vmem:[%s4471_s1 + $0x958] sm:$0xff]  ;;  %v385_v33 = vld [vmem:[%s4471_s1 + $0x9e0] sm:$0xff] }
  0x74   :  { %1103 = vmatpush.msrb.mxu0 %v270_v34  ;;  %1122 = vmatpush.msrb.mxu1 %v287_v35  ;;  %v335_v34 = vld [vmem:[%s4471_s1 + $0x850] sm:$0xff]  ;;  %v352_v35 = vld [vmem:[%s4471_s1 + $0x8d8] sm:$0xff] }
  0x75   :  { %1143 = vmatpush.msrb.mxu2 %v302_v36  ;;  %1162 = vmatpush.msrb.mxu3 %v319_v37  ;;  %v367_v36 = vld [vmem:[%s4471_s1 + $0x950] sm:$0xff]  ;;  %v384_v37 = vld [vmem:[%s4471_s1 + $0x9d8] sm:$0xff] }
  0x76   :  { %1104 = vmatpush.msrb.mxu0 %v269_v38  ;;  %1123 = vmatpush.msrb.mxu1 %v286_v39  ;;  %v334_v38 = vld [vmem:[%s4471_s1 + $0x848] sm:$0xff]  ;;  %v351_v39 = vld [vmem:[%s4471_s1 + $0x8d0] sm:$0xff] }
  0x77   :  { %1144 = vmatpush.msrb.mxu2 %v301_v40  ;;  %1163 = vmatpush.msrb.mxu3 %v318_v41  ;;  %v366_v40 = vld [vmem:[%s4471_s1 + $0x948] sm:$0xff]  ;;  %v383_v41 = vld [vmem:[%s4471_s1 + $0x9d0] sm:$0xff] }
  0x78   :  { %1105 = vmatpush.msrb.mxu0 %v268_v42  ;;  %1124 = vmatpush.msrb.mxu1 %v285_v43  ;;  %v333_v42 = vld [vmem:[%s4471_s1 + $0x840] sm:$0xff]  ;;  %v350_v43 = vld [vmem:[%s4471_s1 + $0x8c8] sm:$0xff] }
  0x79   :  { %1145 = vmatpush.msrb.mxu2 %v300_v44  ;;  %1164 = vmatpush.msrb.mxu3 %v317_v45  ;;  %v365_v44 = vld [vmem:[%s4471_s1 + $0x940] sm:$0xff]  ;;  %v382_v45 = vld [vmem:[%s4471_s1 + $0x9c8] sm:$0xff] }
  0x7a   :  { %1106 = vmatpush.msrb.mxu0 %v267_v46  ;;  %1125 = vmatpush.msrb.mxu1 %v284_v47  ;;  %v332_v46 = vld [vmem:[%s4471_s1 + $0x838] sm:$0xff]  ;;  %v349_v47 = vld [vmem:[%s4471_s1 + $0x8c0] sm:$0xff] }
  0x7b   :  { %1146 = vmatpush.msrb.mxu2 %v299_v48  ;;  %1165 = vmatpush.msrb.mxu3 %v316_v49  ;;  %v364_v48 = vld [vmem:[%s4471_s1 + $0x938] sm:$0xff]  ;;  %v381_v49 = vld [vmem:[%s4471_s1 + $0x9c0] sm:$0xff] }
  0x7c   :  { %1107 = vmatpush.msrb.mxu0 %v266_v50  ;;  %1126 = vmatpush.msrb.mxu1 %v283_v51  ;;  %v331_v50 = vld [vmem:[%s4471_s1 + $0x830] sm:$0xff]  ;;  %v348_v51 = vld [vmem:[%s4471_s1 + $0x8b8] sm:$0xff] }
  0x7d   :  { %1147 = vmatpush.msrb.mxu2 %v298_v52  ;;  %1166 = vmatpush.msrb.mxu3 %v315_v53  ;;  %v363_v52 = vld [vmem:[%s4471_s1 + $0x930] sm:$0xff]  ;;  %v380_v53 = vld [vmem:[%s4471_s1 + $0x9b8] sm:$0xff] }
  0x7e   :  { %1108 = vmatpush.msrb.mxu0 %v265_v54  ;;  %1127 = vmatpush.msrb.mxu1 %v282_v55  ;;  %v330_v54 = vld [vmem:[%s4471_s1 + $0x828] sm:$0xff]  ;;  %v347_v55 = vld [vmem:[%s4471_s1 + $0x8b0] sm:$0xff] }
  0x7f   :  { %1148 = vmatpush.msrb.mxu2 %v297_v56  ;;  %1167 = vmatpush.msrb.mxu3 %v314_v57  ;;  %v362_v56 = vld [vmem:[%s4471_s1 + $0x928] sm:$0xff]  ;;  %v379_v57 = vld [vmem:[%s4471_s1 + $0x9b0] sm:$0xff] }
  0x80   :  { %1109 = vmatpush.msrb.mxu0 %v264_v58  ;;  %1128 = vmatpush.msrb.mxu1 %v281_v59  ;;  %v329_v58 = vld [vmem:[%s4471_s1 + $0x820] sm:$0xff]  ;;  %v346_v59 = vld [vmem:[%s4471_s1 + $0x8a8] sm:$0xff] }
  0x81   :  { %1149 = vmatpush.msrb.mxu2 %v296_v60  ;;  %1168 = vmatpush.msrb.mxu3 %v313_v61  ;;  %v361_v60 = vld [vmem:[%s4471_s1 + $0x920] sm:$0xff]  ;;  %v378_v61 = vld [vmem:[%s4471_s1 + $0x9a8] sm:$0xff] }
  0x82   :  { %1110 = vmatpush.msrb.mxu0 %v263_v62  ;;  %1129 = vmatpush.msrb.mxu1 %v280_v63  ;;  %v328_v62 = vld [vmem:[%s4471_s1 + $0x818] sm:$0xff]  ;;  %v345_v63 = vld [vmem:[%s4471_s1 + $0x8a0] sm:$0xff] }
  0x83   :  { %1150 = vmatpush.msrb.mxu2 %v295_v0  ;;  %1169 = vmatpush.msrb.mxu3 %v312_v1  ;;  %v360_v0 = vld [vmem:[%s4471_s1 + $0x918] sm:$0xff]  ;;  %v377_v1 = vld [vmem:[%s4471_s1 + $0x9a0] sm:$0xff] }
  0x84   :  { %1111 = vmatpush.msrb.mxu0 %v262_v2  ;;  %1130 = vmatpush.msrb.mxu1 %v279_v3  ;;  %v327_v2 = vld [vmem:[%s4471_s1 + $0x810] sm:$0xff]  ;;  %v344_v3 = vld [vmem:[%s4471_s1 + $0x898] sm:$0xff] }
  0x85   :  { %1151 = vmatpush.msrb.mxu2 %v294_v4  ;;  %1170 = vmatpush.msrb.mxu3 %v311_v5  ;;  %v359_v4 = vld [vmem:[%s4471_s1 + $0x910] sm:$0xff]  ;;  %v376_v5 = vld [vmem:[%s4471_s1 + $0x998] sm:$0xff] }
  0x86   :  { %1112 = vmatpush.msrb.mxu0 %v261_v6  ;;  %1131 = vmatpush.msrb.mxu1 %v278_v7  ;;  %v326_v6 = vld [vmem:[%s4471_s1 + $0x808] sm:$0xff]  ;;  %v343_v7 = vld [vmem:[%s4471_s1 + $0x890] sm:$0xff] }
  0x87   :  { %1152 = vmatpush.msrb.mxu2 %v293_v8  ;;  %1171 = vmatpush.msrb.mxu3 %v310_v9  ;;  %v358_v8 = vld [vmem:[%s4471_s1 + $0x908] sm:$0xff]  ;;  %v375_v9 = vld [vmem:[%s4471_s1 + $0x990] sm:$0xff] }
  0x88   :  { %1113 = vmatmul.f32.vlgmr.msrb.gmra.mxu0 %v32_v10  ;;  %1153 = vmatmul.f32.vlgmr.msrb.gmra.mxu2 %v34_v11  ;;  %v325_v10 = vld [vmem:[%s4471_s1 + $0x800] sm:$0xff]  ;;  %v342_v11 = vld [vmem:[%s4471_s1 + $0x888] sm:$0xff] }
  0x89   :  { %1177 = vmatpush.msra.mxu0 %v340_v12  ;;  %1217 = vmatpush.msra.mxu2 %v372_v13  ;;  %v357_v12 = vld [vmem:[%s4471_s1 + $0x900] sm:$0xff]  ;;  %v374_v13 = vld [vmem:[%s4471_s1 + $0x988] sm:$0xff] }
  0x8a   :  { %1132 = vmatpush.msrb.mxu1 %v277_v14  ;;  %1172 = vmatpush.msrb.mxu3 %v309_v15  ;;  %v36_v14 = vld [vmem:[%s4472_s0 + $0x80] sm:$0xff]  ;;  %v38_v15 = vld [vmem:[%s4472_s0 + $0x90] sm:$0xff] }
  0x8b   :  { %1133 = vmatmul.f32.vlgmr.msrb.gmra.mxu1 %v33_v16  ;;  %1173 = vmatmul.f32.vlgmr.msrb.gmra.mxu3 %v35_v17  ;;  %v404_v16 = vld [vmem:[%s4471_s1 + $0xa78] sm:$0xff] }
  0x8c   :  { %1178 = vmatpush.msra.mxu0 %v339_v18  ;;  %1197 = vmatpush.msra.mxu1 %v356_v19  ;;  %v436_v17 = vld [vmem:[%s4471_s1 + $0xb78] sm:$0xff]  ;;  %v341_v18 = vld [vmem:[%s4471_s1 + $0x880] sm:$0xff] }
  0x8d   :  { %1218 = vmatpush.msra.mxu2 %v371_v20  ;;  %1237 = vmatpush.msra.mxu3 %v388_v21  ;;  %v373_v19 = vld [vmem:[%s4471_s1 + $0x980] sm:$0xff]  ;;  %v37_v20 = vld [vmem:[%s4472_s0 + $0x88] sm:$0xff]  ;;  %v39_v21 = vld [vmem:[%s4472_s0 + $0x98] sm:$0xff] }
  0x8e   :  { %1179 = vmatpush.msra.mxu0 %v338_v22  ;;  %1198 = vmatpush.msra.mxu1 %v355_v23  ;;  %v403_v22 = vld [vmem:[%s4471_s1 + $0xa70] sm:$0xff]  ;;  %v420_v23 = vld [vmem:[%s4471_s1 + $0xaf8] sm:$0xff] }
  0x8f   :  { %1219 = vmatpush.msra.mxu2 %v370_v24  ;;  %1238 = vmatpush.msra.mxu3 %v387_v25  ;;  %v435_v24 = vld [vmem:[%s4471_s1 + $0xb70] sm:$0xff]  ;;  %v452_v25 = vld [vmem:[%s4471_s1 + $0xbf8] sm:$0xff] }
  0x90   :  { %1180 = vmatpush.msra.mxu0 %v337_v26  ;;  %1199 = vmatpush.msra.mxu1 %v354_v27  ;;  %v402_v26 = vld [vmem:[%s4471_s1 + $0xa68] sm:$0xff]  ;;  %v419_v27 = vld [vmem:[%s4471_s1 + $0xaf0] sm:$0xff] }
  0x91   :  { %1220 = vmatpush.msra.mxu2 %v369_v28  ;;  %1239 = vmatpush.msra.mxu3 %v386_v29  ;;  %v434_v28 = vld [vmem:[%s4471_s1 + $0xb68] sm:$0xff]  ;;  %v451_v29 = vld [vmem:[%s4471_s1 + $0xbf0] sm:$0xff] }
  0x92   :  { %1181 = vmatpush.msra.mxu0 %v336_v30  ;;  %1200 = vmatpush.msra.mxu1 %v353_v31  ;;  %v401_v30 = vld [vmem:[%s4471_s1 + $0xa60] sm:$0xff]  ;;  %v418_v31 = vld [vmem:[%s4471_s1 + $0xae8] sm:$0xff] }
  0x93   :  { %1221 = vmatpush.msra.mxu2 %v368_v32  ;;  %1240 = vmatpush.msra.mxu3 %v385_v33  ;;  %v433_v32 = vld [vmem:[%s4471_s1 + $0xb60] sm:$0xff]  ;;  %v450_v33 = vld [vmem:[%s4471_s1 + $0xbe8] sm:$0xff] }
  0x94   :  { %1182 = vmatpush.msra.mxu0 %v335_v34  ;;  %1201 = vmatpush.msra.mxu1 %v352_v35  ;;  %v400_v34 = vld [vmem:[%s4471_s1 + $0xa58] sm:$0xff]  ;;  %v417_v35 = vld [vmem:[%s4471_s1 + $0xae0] sm:$0xff] }
  0x95   :  { %1222 = vmatpush.msra.mxu2 %v367_v36  ;;  %1241 = vmatpush.msra.mxu3 %v384_v37  ;;  %v432_v36 = vld [vmem:[%s4471_s1 + $0xb58] sm:$0xff]  ;;  %v449_v37 = vld [vmem:[%s4471_s1 + $0xbe0] sm:$0xff] }
  0x96   :  { %1183 = vmatpush.msra.mxu0 %v334_v38  ;;  %1202 = vmatpush.msra.mxu1 %v351_v39  ;;  %v399_v38 = vld [vmem:[%s4471_s1 + $0xa50] sm:$0xff]  ;;  %v416_v39 = vld [vmem:[%s4471_s1 + $0xad8] sm:$0xff] }
  0x97   :  { %1223 = vmatpush.msra.mxu2 %v366_v40  ;;  %1242 = vmatpush.msra.mxu3 %v383_v41  ;;  %v431_v40 = vld [vmem:[%s4471_s1 + $0xb50] sm:$0xff]  ;;  %v448_v41 = vld [vmem:[%s4471_s1 + $0xbd8] sm:$0xff] }
  0x98   :  { %1184 = vmatpush.msra.mxu0 %v333_v42  ;;  %1203 = vmatpush.msra.mxu1 %v350_v43  ;;  %v398_v42 = vld [vmem:[%s4471_s1 + $0xa48] sm:$0xff]  ;;  %v415_v43 = vld [vmem:[%s4471_s1 + $0xad0] sm:$0xff] }
  0x99   :  { %1224 = vmatpush.msra.mxu2 %v365_v44  ;;  %1243 = vmatpush.msra.mxu3 %v382_v45  ;;  %v430_v44 = vld [vmem:[%s4471_s1 + $0xb48] sm:$0xff]  ;;  %v447_v45 = vld [vmem:[%s4471_s1 + $0xbd0] sm:$0xff] }
  0x9a   :  { %1185 = vmatpush.msra.mxu0 %v332_v46  ;;  %1204 = vmatpush.msra.mxu1 %v349_v47  ;;  %v397_v46 = vld [vmem:[%s4471_s1 + $0xa40] sm:$0xff]  ;;  %v414_v47 = vld [vmem:[%s4471_s1 + $0xac8] sm:$0xff] }
  0x9b   :  { %1225 = vmatpush.msra.mxu2 %v364_v48  ;;  %1244 = vmatpush.msra.mxu3 %v381_v49  ;;  %v429_v48 = vld [vmem:[%s4471_s1 + $0xb40] sm:$0xff]  ;;  %v446_v49 = vld [vmem:[%s4471_s1 + $0xbc8] sm:$0xff] }
  0x9c   :  { %1186 = vmatpush.msra.mxu0 %v331_v50  ;;  %1205 = vmatpush.msra.mxu1 %v348_v51  ;;  %v396_v50 = vld [vmem:[%s4471_s1 + $0xa38] sm:$0xff]  ;;  %v413_v51 = vld [vmem:[%s4471_s1 + $0xac0] sm:$0xff] }
  0x9d   :  { %1226 = vmatpush.msra.mxu2 %v363_v52  ;;  %1245 = vmatpush.msra.mxu3 %v380_v53  ;;  %v428_v52 = vld [vmem:[%s4471_s1 + $0xb38] sm:$0xff]  ;;  %v445_v53 = vld [vmem:[%s4471_s1 + $0xbc0] sm:$0xff] }
  0x9e   :  { %1187 = vmatpush.msra.mxu0 %v330_v54  ;;  %1206 = vmatpush.msra.mxu1 %v347_v55  ;;  %v395_v54 = vld [vmem:[%s4471_s1 + $0xa30] sm:$0xff]  ;;  %v412_v55 = vld [vmem:[%s4471_s1 + $0xab8] sm:$0xff] }
  0x9f   :  { %1227 = vmatpush.msra.mxu2 %v362_v56  ;;  %1246 = vmatpush.msra.mxu3 %v379_v57  ;;  %v427_v56 = vld [vmem:[%s4471_s1 + $0xb30] sm:$0xff]  ;;  %v444_v57 = vld [vmem:[%s4471_s1 + $0xbb8] sm:$0xff] }
  0xa0   :  { %1188 = vmatpush.msra.mxu0 %v329_v58  ;;  %1207 = vmatpush.msra.mxu1 %v346_v59  ;;  %v394_v58 = vld [vmem:[%s4471_s1 + $0xa28] sm:$0xff]  ;;  %v411_v59 = vld [vmem:[%s4471_s1 + $0xab0] sm:$0xff] }
  0xa1   :  { %1228 = vmatpush.msra.mxu2 %v361_v60  ;;  %1247 = vmatpush.msra.mxu3 %v378_v61  ;;  %v426_v60 = vld [vmem:[%s4471_s1 + $0xb28] sm:$0xff]  ;;  %v443_v61 = vld [vmem:[%s4471_s1 + $0xbb0] sm:$0xff] }
  0xa2   :  { %1189 = vmatpush.msra.mxu0 %v328_v62  ;;  %1208 = vmatpush.msra.mxu1 %v345_v63  ;;  %v393_v62 = vld [vmem:[%s4471_s1 + $0xa20] sm:$0xff]  ;;  %v410_v63 = vld [vmem:[%s4471_s1 + $0xaa8] sm:$0xff] }
  0xa3   :  { %1229 = vmatpush.msra.mxu2 %v360_v0  ;;  %1248 = vmatpush.msra.mxu3 %v377_v1  ;;  %v425_v0 = vld [vmem:[%s4471_s1 + $0xb20] sm:$0xff]  ;;  %v442_v1 = vld [vmem:[%s4471_s1 + $0xba8] sm:$0xff] }
  0xa4   :  { %1190 = vmatpush.msra.mxu0 %v327_v2  ;;  %1209 = vmatpush.msra.mxu1 %v344_v3  ;;  %v392_v2 = vld [vmem:[%s4471_s1 + $0xa18] sm:$0xff]  ;;  %v409_v3 = vld [vmem:[%s4471_s1 + $0xaa0] sm:$0xff] }
  0xa5   :  { %1230 = vmatpush.msra.mxu2 %v359_v4  ;;  %1249 = vmatpush.msra.mxu3 %v376_v5  ;;  %v424_v4 = vld [vmem:[%s4471_s1 + $0xb18] sm:$0xff]  ;;  %v441_v5 = vld [vmem:[%s4471_s1 + $0xba0] sm:$0xff] }
  0xa6   :  { %1191 = vmatpush.msra.mxu0 %v326_v6  ;;  %1210 = vmatpush.msra.mxu1 %v343_v7  ;;  %v391_v6 = vld [vmem:[%s4471_s1 + $0xa10] sm:$0xff]  ;;  %v408_v7 = vld [vmem:[%s4471_s1 + $0xa98] sm:$0xff] }
  0xa7   :  { %1231 = vmatpush.msra.mxu2 %v358_v8  ;;  %1250 = vmatpush.msra.mxu3 %v375_v9  ;;  %v423_v8 = vld [vmem:[%s4471_s1 + $0xb10] sm:$0xff]  ;;  %v440_v9 = vld [vmem:[%s4471_s1 + $0xb98] sm:$0xff] }
  0xa8   :  { %1192 = vmatpush.msra.mxu0 %v325_v10  ;;  %1211 = vmatpush.msra.mxu1 %v342_v11  ;;  %v390_v10 = vld [vmem:[%s4471_s1 + $0xa08] sm:$0xff]  ;;  %v407_v11 = vld [vmem:[%s4471_s1 + $0xa90] sm:$0xff] }
  0xa9   :  { %1232 = vmatpush.msra.mxu2 %v357_v12  ;;  %1251 = vmatpush.msra.mxu3 %v374_v13  ;;  %v422_v12 = vld [vmem:[%s4471_s1 + $0xb08] sm:$0xff]  ;;  %v439_v13 = vld [vmem:[%s4471_s1 + $0xb90] sm:$0xff] }
  0xaa   :  { %1193 = vmatmul.f32.vlgmr.msra.gmra.mxu0 %v36_v14  ;;  %1233 = vmatmul.f32.vlgmr.msra.gmra.mxu2 %v38_v15  ;;  %v389_v14 = vld [vmem:[%s4471_s1 + $0xa00] sm:$0xff]  ;;  %v406_v15 = vld [vmem:[%s4471_s1 + $0xa88] sm:$0xff] }
  0xab   :  { %1257 = vmatpush.msrb.mxu0 %v404_v16  ;;  %1297 = vmatpush.msrb.mxu2 %v436_v17  ;;  %v421_v16 = vld [vmem:[%s4471_s1 + $0xb00] sm:$0xff]  ;;  %v438_v17 = vld [vmem:[%s4471_s1 + $0xb88] sm:$0xff] }
  0xac   :  { %1212 = vmatpush.msra.mxu1 %v341_v18  ;;  %1252 = vmatpush.msra.mxu3 %v373_v19  ;;  %v40_v18 = vld [vmem:[%s4472_s0 + $0xa0] sm:$0xff]  ;;  %v42_v19 = vld [vmem:[%s4472_s0 + $0xb0] sm:$0xff] }
  0xad   :  { %1213 = vmatmul.f32.vlgmr.msra.gmra.mxu1 %v37_v20  ;;  %1253 = vmatmul.f32.vlgmr.msra.gmra.mxu3 %v39_v21  ;;  %v468_v20 = vld [vmem:[%s4471_s1 + $0xc78] sm:$0xff] }
  0xae   :  { %1258 = vmatpush.msrb.mxu0 %v403_v22  ;;  %1277 = vmatpush.msrb.mxu1 %v420_v23  ;;  %v500_v21 = vld [vmem:[%s4471_s1 + $0xd78] sm:$0xff]  ;;  %v405_v22 = vld [vmem:[%s4471_s1 + $0xa80] sm:$0xff] }
  0xaf   :  { %1298 = vmatpush.msrb.mxu2 %v435_v24  ;;  %1317 = vmatpush.msrb.mxu3 %v452_v25  ;;  %v437_v23 = vld [vmem:[%s4471_s1 + $0xb80] sm:$0xff]  ;;  %v41_v24 = vld [vmem:[%s4472_s0 + $0xa8] sm:$0xff]  ;;  %v43_v25 = vld [vmem:[%s4472_s0 + $0xb8] sm:$0xff] }
  0xb0   :  { %1259 = vmatpush.msrb.mxu0 %v402_v26  ;;  %1278 = vmatpush.msrb.mxu1 %v419_v27  ;;  %v467_v26 = vld [vmem:[%s4471_s1 + $0xc70] sm:$0xff]  ;;  %v484_v27 = vld [vmem:[%s4471_s1 + $0xcf8] sm:$0xff] }
  0xb1   :  { %1299 = vmatpush.msrb.mxu2 %v434_v28  ;;  %1318 = vmatpush.msrb.mxu3 %v451_v29  ;;  %v499_v28 = vld [vmem:[%s4471_s1 + $0xd70] sm:$0xff]  ;;  %v516_v29 = vld [vmem:[%s4471_s1 + $0xdf8] sm:$0xff] }
  0xb2   :  { %1260 = vmatpush.msrb.mxu0 %v401_v30  ;;  %1279 = vmatpush.msrb.mxu1 %v418_v31  ;;  %v466_v30 = vld [vmem:[%s4471_s1 + $0xc68] sm:$0xff]  ;;  %v483_v31 = vld [vmem:[%s4471_s1 + $0xcf0] sm:$0xff] }
  0xb3   :  { %1300 = vmatpush.msrb.mxu2 %v433_v32  ;;  %1319 = vmatpush.msrb.mxu3 %v450_v33  ;;  %v498_v32 = vld [vmem:[%s4471_s1 + $0xd68] sm:$0xff]  ;;  %v515_v33 = vld [vmem:[%s4471_s1 + $0xdf0] sm:$0xff] }
  0xb4   :  { %1261 = vmatpush.msrb.mxu0 %v400_v34  ;;  %1280 = vmatpush.msrb.mxu1 %v417_v35  ;;  %v465_v34 = vld [vmem:[%s4471_s1 + $0xc60] sm:$0xff]  ;;  %v482_v35 = vld [vmem:[%s4471_s1 + $0xce8] sm:$0xff] }
  0xb5   :  { %1301 = vmatpush.msrb.mxu2 %v432_v36  ;;  %1320 = vmatpush.msrb.mxu3 %v449_v37  ;;  %v497_v36 = vld [vmem:[%s4471_s1 + $0xd60] sm:$0xff]  ;;  %v514_v37 = vld [vmem:[%s4471_s1 + $0xde8] sm:$0xff] }
  0xb6   :  { %1262 = vmatpush.msrb.mxu0 %v399_v38  ;;  %1281 = vmatpush.msrb.mxu1 %v416_v39  ;;  %v464_v38 = vld [vmem:[%s4471_s1 + $0xc58] sm:$0xff]  ;;  %v481_v39 = vld [vmem:[%s4471_s1 + $0xce0] sm:$0xff] }
  0xb7   :  { %1302 = vmatpush.msrb.mxu2 %v431_v40  ;;  %1321 = vmatpush.msrb.mxu3 %v448_v41  ;;  %v496_v40 = vld [vmem:[%s4471_s1 + $0xd58] sm:$0xff]  ;;  %v513_v41 = vld [vmem:[%s4471_s1 + $0xde0] sm:$0xff] }
  0xb8   :  { %1263 = vmatpush.msrb.mxu0 %v398_v42  ;;  %1282 = vmatpush.msrb.mxu1 %v415_v43  ;;  %v463_v42 = vld [vmem:[%s4471_s1 + $0xc50] sm:$0xff]  ;;  %v480_v43 = vld [vmem:[%s4471_s1 + $0xcd8] sm:$0xff] }
  0xb9   :  { %1303 = vmatpush.msrb.mxu2 %v430_v44  ;;  %1322 = vmatpush.msrb.mxu3 %v447_v45  ;;  %v495_v44 = vld [vmem:[%s4471_s1 + $0xd50] sm:$0xff]  ;;  %v512_v45 = vld [vmem:[%s4471_s1 + $0xdd8] sm:$0xff] }
  0xba   :  { %1264 = vmatpush.msrb.mxu0 %v397_v46  ;;  %1283 = vmatpush.msrb.mxu1 %v414_v47  ;;  %v462_v46 = vld [vmem:[%s4471_s1 + $0xc48] sm:$0xff]  ;;  %v479_v47 = vld [vmem:[%s4471_s1 + $0xcd0] sm:$0xff] }
  0xbb   :  { %1304 = vmatpush.msrb.mxu2 %v429_v48  ;;  %1323 = vmatpush.msrb.mxu3 %v446_v49  ;;  %v494_v48 = vld [vmem:[%s4471_s1 + $0xd48] sm:$0xff]  ;;  %v511_v49 = vld [vmem:[%s4471_s1 + $0xdd0] sm:$0xff] }
  0xbc   :  { %1265 = vmatpush.msrb.mxu0 %v396_v50  ;;  %1284 = vmatpush.msrb.mxu1 %v413_v51  ;;  %v461_v50 = vld [vmem:[%s4471_s1 + $0xc40] sm:$0xff]  ;;  %v478_v51 = vld [vmem:[%s4471_s1 + $0xcc8] sm:$0xff] }
  0xbd   :  { %1305 = vmatpush.msrb.mxu2 %v428_v52  ;;  %1324 = vmatpush.msrb.mxu3 %v445_v53  ;;  %v493_v52 = vld [vmem:[%s4471_s1 + $0xd40] sm:$0xff]  ;;  %v510_v53 = vld [vmem:[%s4471_s1 + $0xdc8] sm:$0xff] }
  0xbe   :  { %1266 = vmatpush.msrb.mxu0 %v395_v54  ;;  %1285 = vmatpush.msrb.mxu1 %v412_v55  ;;  %v460_v54 = vld [vmem:[%s4471_s1 + $0xc38] sm:$0xff]  ;;  %v477_v55 = vld [vmem:[%s4471_s1 + $0xcc0] sm:$0xff] }
  0xbf   :  { %1306 = vmatpush.msrb.mxu2 %v427_v56  ;;  %1325 = vmatpush.msrb.mxu3 %v444_v57  ;;  %v492_v56 = vld [vmem:[%s4471_s1 + $0xd38] sm:$0xff]  ;;  %v509_v57 = vld [vmem:[%s4471_s1 + $0xdc0] sm:$0xff] }
  0xc0   :  { %1267 = vmatpush.msrb.mxu0 %v394_v58  ;;  %1286 = vmatpush.msrb.mxu1 %v411_v59  ;;  %v459_v58 = vld [vmem:[%s4471_s1 + $0xc30] sm:$0xff]  ;;  %v476_v59 = vld [vmem:[%s4471_s1 + $0xcb8] sm:$0xff] }
  0xc1   :  { %1307 = vmatpush.msrb.mxu2 %v426_v60  ;;  %1326 = vmatpush.msrb.mxu3 %v443_v61  ;;  %v491_v60 = vld [vmem:[%s4471_s1 + $0xd30] sm:$0xff]  ;;  %v508_v61 = vld [vmem:[%s4471_s1 + $0xdb8] sm:$0xff] }
  0xc2   :  { %1268 = vmatpush.msrb.mxu0 %v393_v62  ;;  %1287 = vmatpush.msrb.mxu1 %v410_v63  ;;  %v458_v62 = vld [vmem:[%s4471_s1 + $0xc28] sm:$0xff]  ;;  %v475_v63 = vld [vmem:[%s4471_s1 + $0xcb0] sm:$0xff] }
  0xc3   :  { %1308 = vmatpush.msrb.mxu2 %v425_v0  ;;  %1327 = vmatpush.msrb.mxu3 %v442_v1  ;;  %v490_v0 = vld [vmem:[%s4471_s1 + $0xd28] sm:$0xff]  ;;  %v507_v1 = vld [vmem:[%s4471_s1 + $0xdb0] sm:$0xff] }
  0xc4   :  { %1269 = vmatpush.msrb.mxu0 %v392_v2  ;;  %1288 = vmatpush.msrb.mxu1 %v409_v3  ;;  %v457_v2 = vld [vmem:[%s4471_s1 + $0xc20] sm:$0xff]  ;;  %v474_v3 = vld [vmem:[%s4471_s1 + $0xca8] sm:$0xff] }
  0xc5   :  { %1309 = vmatpush.msrb.mxu2 %v424_v4  ;;  %1328 = vmatpush.msrb.mxu3 %v441_v5  ;;  %v489_v4 = vld [vmem:[%s4471_s1 + $0xd20] sm:$0xff]  ;;  %v506_v5 = vld [vmem:[%s4471_s1 + $0xda8] sm:$0xff] }
  0xc6   :  { %1270 = vmatpush.msrb.mxu0 %v391_v6  ;;  %1289 = vmatpush.msrb.mxu1 %v408_v7  ;;  %v456_v6 = vld [vmem:[%s4471_s1 + $0xc18] sm:$0xff]  ;;  %v473_v7 = vld [vmem:[%s4471_s1 + $0xca0] sm:$0xff] }
  0xc7   :  { %1310 = vmatpush.msrb.mxu2 %v423_v8  ;;  %1329 = vmatpush.msrb.mxu3 %v440_v9  ;;  %v488_v8 = vld [vmem:[%s4471_s1 + $0xd18] sm:$0xff]  ;;  %v505_v9 = vld [vmem:[%s4471_s1 + $0xda0] sm:$0xff] }
  0xc8   :  { %1271 = vmatpush.msrb.mxu0 %v390_v10  ;;  %1290 = vmatpush.msrb.mxu1 %v407_v11  ;;  %v455_v10 = vld [vmem:[%s4471_s1 + $0xc10] sm:$0xff]  ;;  %v472_v11 = vld [vmem:[%s4471_s1 + $0xc98] sm:$0xff] }
  0xc9   :  { %1311 = vmatpush.msrb.mxu2 %v422_v12  ;;  %1330 = vmatpush.msrb.mxu3 %v439_v13  ;;  %v487_v12 = vld [vmem:[%s4471_s1 + $0xd10] sm:$0xff]  ;;  %v504_v13 = vld [vmem:[%s4471_s1 + $0xd98] sm:$0xff] }
  0xca   :  { %1272 = vmatpush.msrb.mxu0 %v389_v14  ;;  %1291 = vmatpush.msrb.mxu1 %v406_v15  ;;  %v454_v14 = vld [vmem:[%s4471_s1 + $0xc08] sm:$0xff]  ;;  %v471_v15 = vld [vmem:[%s4471_s1 + $0xc90] sm:$0xff] }
  0xcb   :  { %1312 = vmatpush.msrb.mxu2 %v421_v16  ;;  %1331 = vmatpush.msrb.mxu3 %v438_v17  ;;  %v486_v16 = vld [vmem:[%s4471_s1 + $0xd08] sm:$0xff]  ;;  %v503_v17 = vld [vmem:[%s4471_s1 + $0xd90] sm:$0xff] }
  0xcc   :  { %1273 = vmatmul.f32.vlgmr.msrb.gmra.mxu0 %v40_v18  ;;  %1313 = vmatmul.f32.vlgmr.msrb.gmra.mxu2 %v42_v19  ;;  %v453_v18 = vld [vmem:[%s4471_s1 + $0xc00] sm:$0xff]  ;;  %v470_v19 = vld [vmem:[%s4471_s1 + $0xc88] sm:$0xff] }
  0xcd   :  { %1337 = vmatpush.msra.mxu0 %v468_v20  ;;  %1377 = vmatpush.msra.mxu2 %v500_v21  ;;  %v485_v20 = vld [vmem:[%s4471_s1 + $0xd00] sm:$0xff]  ;;  %v502_v21 = vld [vmem:[%s4471_s1 + $0xd88] sm:$0xff] }
  0xce   :  { %1292 = vmatpush.msrb.mxu1 %v405_v22  ;;  %1332 = vmatpush.msrb.mxu3 %v437_v23  ;;  %v44_v22 = vld [vmem:[%s4472_s0 + $0xc0] sm:$0xff]  ;;  %v46_v23 = vld [vmem:[%s4472_s0 + $0xd0] sm:$0xff] }
  0xcf   :  { %1293 = vmatmul.f32.vlgmr.msrb.gmra.mxu1 %v41_v24  ;;  %1333 = vmatmul.f32.vlgmr.msrb.gmra.mxu3 %v43_v25  ;;  %v532_v24 = vld [vmem:[%s4471_s1 + $0xe78] sm:$0xff] }
  0xd0   :  { %1338 = vmatpush.msra.mxu0 %v467_v26  ;;  %1357 = vmatpush.msra.mxu1 %v484_v27  ;;  %v564_v25 = vld [vmem:[%s4471_s1 + $0xf78] sm:$0xff]  ;;  %v469_v26 = vld [vmem:[%s4471_s1 + $0xc80] sm:$0xff] }
  0xd1   :  { %1378 = vmatpush.msra.mxu2 %v499_v28  ;;  %1397 = vmatpush.msra.mxu3 %v516_v29  ;;  %v501_v27 = vld [vmem:[%s4471_s1 + $0xd80] sm:$0xff]  ;;  %v45_v28 = vld [vmem:[%s4472_s0 + $0xc8] sm:$0xff]  ;;  %v47_v29 = vld [vmem:[%s4472_s0 + $0xd8] sm:$0xff] }
  0xd2   :  { %1339 = vmatpush.msra.mxu0 %v466_v30  ;;  %1358 = vmatpush.msra.mxu1 %v483_v31  ;;  %v531_v30 = vld [vmem:[%s4471_s1 + $0xe70] sm:$0xff]  ;;  %v548_v31 = vld [vmem:[%s4471_s1 + $0xef8] sm:$0xff] }
  0xd3   :  { %1379 = vmatpush.msra.mxu2 %v498_v32  ;;  %1398 = vmatpush.msra.mxu3 %v515_v33  ;;  %v563_v32 = vld [vmem:[%s4471_s1 + $0xf70] sm:$0xff]  ;;  %v580_v33 = vld [vmem:[%s4471_s1 + $0xff8] sm:$0xff] }
  0xd4   :  { %1340 = vmatpush.msra.mxu0 %v465_v34  ;;  %1359 = vmatpush.msra.mxu1 %v482_v35  ;;  %v530_v34 = vld [vmem:[%s4471_s1 + $0xe68] sm:$0xff]  ;;  %v547_v35 = vld [vmem:[%s4471_s1 + $0xef0] sm:$0xff] }
  0xd5   :  { %1380 = vmatpush.msra.mxu2 %v497_v36  ;;  %1399 = vmatpush.msra.mxu3 %v514_v37  ;;  %v562_v36 = vld [vmem:[%s4471_s1 + $0xf68] sm:$0xff]  ;;  %v579_v37 = vld [vmem:[%s4471_s1 + $0xff0] sm:$0xff] }
  0xd6   :  { %1341 = vmatpush.msra.mxu0 %v464_v38  ;;  %1360 = vmatpush.msra.mxu1 %v481_v39  ;;  %v529_v38 = vld [vmem:[%s4471_s1 + $0xe60] sm:$0xff]  ;;  %v546_v39 = vld [vmem:[%s4471_s1 + $0xee8] sm:$0xff] }
  0xd7   :  { %1381 = vmatpush.msra.mxu2 %v496_v40  ;;  %1400 = vmatpush.msra.mxu3 %v513_v41  ;;  %v561_v40 = vld [vmem:[%s4471_s1 + $0xf60] sm:$0xff]  ;;  %v578_v41 = vld [vmem:[%s4471_s1 + $0xfe8] sm:$0xff] }
  0xd8   :  { %1342 = vmatpush.msra.mxu0 %v463_v42  ;;  %1361 = vmatpush.msra.mxu1 %v480_v43  ;;  %v528_v42 = vld [vmem:[%s4471_s1 + $0xe58] sm:$0xff]  ;;  %v545_v43 = vld [vmem:[%s4471_s1 + $0xee0] sm:$0xff] }
  0xd9   :  { %1382 = vmatpush.msra.mxu2 %v495_v44  ;;  %1401 = vmatpush.msra.mxu3 %v512_v45  ;;  %v560_v44 = vld [vmem:[%s4471_s1 + $0xf58] sm:$0xff]  ;;  %v577_v45 = vld [vmem:[%s4471_s1 + $0xfe0] sm:$0xff] }
  0xda   :  { %1343 = vmatpush.msra.mxu0 %v462_v46  ;;  %1362 = vmatpush.msra.mxu1 %v479_v47  ;;  %v527_v46 = vld [vmem:[%s4471_s1 + $0xe50] sm:$0xff]  ;;  %v544_v47 = vld [vmem:[%s4471_s1 + $0xed8] sm:$0xff] }
  0xdb   :  { %1383 = vmatpush.msra.mxu2 %v494_v48  ;;  %1402 = vmatpush.msra.mxu3 %v511_v49  ;;  %v559_v48 = vld [vmem:[%s4471_s1 + $0xf50] sm:$0xff]  ;;  %v576_v49 = vld [vmem:[%s4471_s1 + $0xfd8] sm:$0xff] }
  0xdc   :  { %1344 = vmatpush.msra.mxu0 %v461_v50  ;;  %1363 = vmatpush.msra.mxu1 %v478_v51  ;;  %v526_v50 = vld [vmem:[%s4471_s1 + $0xe48] sm:$0xff]  ;;  %v543_v51 = vld [vmem:[%s4471_s1 + $0xed0] sm:$0xff] }
  0xdd   :  { %1384 = vmatpush.msra.mxu2 %v493_v52  ;;  %1403 = vmatpush.msra.mxu3 %v510_v53  ;;  %v558_v52 = vld [vmem:[%s4471_s1 + $0xf48] sm:$0xff]  ;;  %v575_v53 = vld [vmem:[%s4471_s1 + $0xfd0] sm:$0xff] }
  0xde   :  { %1345 = vmatpush.msra.mxu0 %v460_v54  ;;  %1364 = vmatpush.msra.mxu1 %v477_v55  ;;  %v525_v54 = vld [vmem:[%s4471_s1 + $0xe40] sm:$0xff]  ;;  %v542_v55 = vld [vmem:[%s4471_s1 + $0xec8] sm:$0xff] }
  0xdf   :  { %1385 = vmatpush.msra.mxu2 %v492_v56  ;;  %1404 = vmatpush.msra.mxu3 %v509_v57  ;;  %v557_v56 = vld [vmem:[%s4471_s1 + $0xf40] sm:$0xff]  ;;  %v574_v57 = vld [vmem:[%s4471_s1 + $0xfc8] sm:$0xff] }
  0xe0   :  { %1346 = vmatpush.msra.mxu0 %v459_v58  ;;  %1365 = vmatpush.msra.mxu1 %v476_v59  ;;  %v524_v58 = vld [vmem:[%s4471_s1 + $0xe38] sm:$0xff]  ;;  %v541_v59 = vld [vmem:[%s4471_s1 + $0xec0] sm:$0xff] }
  0xe1   :  { %1386 = vmatpush.msra.mxu2 %v491_v60  ;;  %1405 = vmatpush.msra.mxu3 %v508_v61  ;;  %v556_v60 = vld [vmem:[%s4471_s1 + $0xf38] sm:$0xff]  ;;  %v573_v61 = vld [vmem:[%s4471_s1 + $0xfc0] sm:$0xff] }
  0xe2   :  { %1347 = vmatpush.msra.mxu0 %v458_v62  ;;  %1366 = vmatpush.msra.mxu1 %v475_v63  ;;  %v523_v62 = vld [vmem:[%s4471_s1 + $0xe30] sm:$0xff]  ;;  %v540_v63 = vld [vmem:[%s4471_s1 + $0xeb8] sm:$0xff] }
  0xe3   :  { %1387 = vmatpush.msra.mxu2 %v490_v0  ;;  %1406 = vmatpush.msra.mxu3 %v507_v1  ;;  %v555_v0 = vld [vmem:[%s4471_s1 + $0xf30] sm:$0xff]  ;;  %v572_v1 = vld [vmem:[%s4471_s1 + $0xfb8] sm:$0xff] }
  0xe4   :  { %1348 = vmatpush.msra.mxu0 %v457_v2  ;;  %1367 = vmatpush.msra.mxu1 %v474_v3  ;;  %v522_v2 = vld [vmem:[%s4471_s1 + $0xe28] sm:$0xff]  ;;  %v539_v3 = vld [vmem:[%s4471_s1 + $0xeb0] sm:$0xff] }
  0xe5   :  { %1388 = vmatpush.msra.mxu2 %v489_v4  ;;  %1407 = vmatpush.msra.mxu3 %v506_v5  ;;  %v554_v4 = vld [vmem:[%s4471_s1 + $0xf28] sm:$0xff]  ;;  %v571_v5 = vld [vmem:[%s4471_s1 + $0xfb0] sm:$0xff] }
  0xe6   :  { %1349 = vmatpush.msra.mxu0 %v456_v6  ;;  %1368 = vmatpush.msra.mxu1 %v473_v7  ;;  %v521_v6 = vld [vmem:[%s4471_s1 + $0xe20] sm:$0xff]  ;;  %v538_v7 = vld [vmem:[%s4471_s1 + $0xea8] sm:$0xff] }
  0xe7   :  { %1389 = vmatpush.msra.mxu2 %v488_v8  ;;  %1408 = vmatpush.msra.mxu3 %v505_v9  ;;  %v553_v8 = vld [vmem:[%s4471_s1 + $0xf20] sm:$0xff]  ;;  %v570_v9 = vld [vmem:[%s4471_s1 + $0xfa8] sm:$0xff] }
  0xe8   :  { %1350 = vmatpush.msra.mxu0 %v455_v10  ;;  %1369 = vmatpush.msra.mxu1 %v472_v11  ;;  %v520_v10 = vld [vmem:[%s4471_s1 + $0xe18] sm:$0xff]  ;;  %v537_v11 = vld [vmem:[%s4471_s1 + $0xea0] sm:$0xff] }
  0xe9   :  { %1390 = vmatpush.msra.mxu2 %v487_v12  ;;  %1409 = vmatpush.msra.mxu3 %v504_v13  ;;  %v552_v12 = vld [vmem:[%s4471_s1 + $0xf18] sm:$0xff]  ;;  %v569_v13 = vld [vmem:[%s4471_s1 + $0xfa0] sm:$0xff] }
  0xea   :  { %1351 = vmatpush.msra.mxu0 %v454_v14  ;;  %1370 = vmatpush.msra.mxu1 %v471_v15  ;;  %v519_v14 = vld [vmem:[%s4471_s1 + $0xe10] sm:$0xff]  ;;  %v536_v15 = vld [vmem:[%s4471_s1 + $0xe98] sm:$0xff] }
  0xeb   :  { %1391 = vmatpush.msra.mxu2 %v486_v16  ;;  %1410 = vmatpush.msra.mxu3 %v503_v17  ;;  %v551_v16 = vld [vmem:[%s4471_s1 + $0xf10] sm:$0xff]  ;;  %v568_v17 = vld [vmem:[%s4471_s1 + $0xf98] sm:$0xff] }
  0xec   :  { %1352 = vmatpush.msra.mxu0 %v453_v18  ;;  %1371 = vmatpush.msra.mxu1 %v470_v19  ;;  %v518_v18 = vld [vmem:[%s4471_s1 + $0xe08] sm:$0xff]  ;;  %v535_v19 = vld [vmem:[%s4471_s1 + $0xe90] sm:$0xff] }
  0xed   :  { %1392 = vmatpush.msra.mxu2 %v485_v20  ;;  %1411 = vmatpush.msra.mxu3 %v502_v21  ;;  %v550_v20 = vld [vmem:[%s4471_s1 + $0xf08] sm:$0xff]  ;;  %v567_v21 = vld [vmem:[%s4471_s1 + $0xf90] sm:$0xff] }
  0xee   :  { %1353 = vmatmul.f32.vlgmr.msra.gmra.mxu0 %v44_v22  ;;  %1393 = vmatmul.f32.vlgmr.msra.gmra.mxu2 %v46_v23  ;;  %v517_v22 = vld [vmem:[%s4471_s1 + $0xe00] sm:$0xff]  ;;  %v534_v23 = vld [vmem:[%s4471_s1 + $0xe88] sm:$0xff] }
  0xef   :  { %1417 = vmatpush.msrb.mxu0 %v532_v24  ;;  %1457 = vmatpush.msrb.mxu2 %v564_v25  ;;  %v549_v24 = vld [vmem:[%s4471_s1 + $0xf00] sm:$0xff]  ;;  %v566_v25 = vld [vmem:[%s4471_s1 + $0xf88] sm:$0xff] }
  0xf0   :  { %1372 = vmatpush.msra.mxu1 %v469_v26  ;;  %1412 = vmatpush.msra.mxu3 %v501_v27  ;;  %v48_v26 = vld [vmem:[%s4472_s0 + $0xe0] sm:$0xff]  ;;  %v50_v27 = vld [vmem:[%s4472_s0 + $0xf0] sm:$0xff] }
  0xf1   :  { %1373 = vmatmul.f32.vlgmr.msra.gmra.mxu1 %v45_v28  ;;  %1413 = vmatmul.f32.vlgmr.msra.gmra.mxu3 %v47_v29  ;;  %v596_v28 = vld [vmem:[%s4471_s1 + $0x1078] sm:$0xff] }
  0xf2   :  { %1418 = vmatpush.msrb.mxu0 %v531_v30  ;;  %1437 = vmatpush.msrb.mxu1 %v548_v31  ;;  %v628_v29 = vld [vmem:[%s4471_s1 + $0x1178] sm:$0xff]  ;;  %v533_v30 = vld [vmem:[%s4471_s1 + $0xe80] sm:$0xff] }
  0xf3   :  { %1458 = vmatpush.msrb.mxu2 %v563_v32  ;;  %1477 = vmatpush.msrb.mxu3 %v580_v33  ;;  %v565_v31 = vld [vmem:[%s4471_s1 + $0xf80] sm:$0xff]  ;;  %v49_v32 = vld [vmem:[%s4472_s0 + $0xe8] sm:$0xff]  ;;  %v51_v33 = vld [vmem:[%s4472_s0 + $0xf8] sm:$0xff] }
  0xf4   :  { %1419 = vmatpush.msrb.mxu0 %v530_v34  ;;  %1438 = vmatpush.msrb.mxu1 %v547_v35  ;;  %v595_v34 = vld [vmem:[%s4471_s1 + $0x1070] sm:$0xff]  ;;  %v612_v35 = vld [vmem:[%s4471_s1 + $0x10f8] sm:$0xff] }
  0xf5   :  { %1459 = vmatpush.msrb.mxu2 %v562_v36  ;;  %1478 = vmatpush.msrb.mxu3 %v579_v37  ;;  %v627_v36 = vld [vmem:[%s4471_s1 + $0x1170] sm:$0xff]  ;;  %v644_v37 = vld [vmem:[%s4471_s1 + $0x11f8] sm:$0xff] }
  0xf6   :  { %1420 = vmatpush.msrb.mxu0 %v529_v38  ;;  %1439 = vmatpush.msrb.mxu1 %v546_v39  ;;  %v594_v38 = vld [vmem:[%s4471_s1 + $0x1068] sm:$0xff]  ;;  %v611_v39 = vld [vmem:[%s4471_s1 + $0x10f0] sm:$0xff] }
  0xf7   :  { %1460 = vmatpush.msrb.mxu2 %v561_v40  ;;  %1479 = vmatpush.msrb.mxu3 %v578_v41  ;;  %v626_v40 = vld [vmem:[%s4471_s1 + $0x1168] sm:$0xff]  ;;  %v643_v41 = vld [vmem:[%s4471_s1 + $0x11f0] sm:$0xff] }
  0xf8   :  { %1421 = vmatpush.msrb.mxu0 %v528_v42  ;;  %1440 = vmatpush.msrb.mxu1 %v545_v43  ;;  %v593_v42 = vld [vmem:[%s4471_s1 + $0x1060] sm:$0xff]  ;;  %v610_v43 = vld [vmem:[%s4471_s1 + $0x10e8] sm:$0xff] }
  0xf9   :  { %1461 = vmatpush.msrb.mxu2 %v560_v44  ;;  %1480 = vmatpush.msrb.mxu3 %v577_v45  ;;  %v625_v44 = vld [vmem:[%s4471_s1 + $0x1160] sm:$0xff]  ;;  %v642_v45 = vld [vmem:[%s4471_s1 + $0x11e8] sm:$0xff] }
  0xfa   :  { %1422 = vmatpush.msrb.mxu0 %v527_v46  ;;  %1441 = vmatpush.msrb.mxu1 %v544_v47  ;;  %v592_v46 = vld [vmem:[%s4471_s1 + $0x1058] sm:$0xff]  ;;  %v609_v47 = vld [vmem:[%s4471_s1 + $0x10e0] sm:$0xff] }
  0xfb   :  { %1462 = vmatpush.msrb.mxu2 %v559_v48  ;;  %1481 = vmatpush.msrb.mxu3 %v576_v49  ;;  %v624_v48 = vld [vmem:[%s4471_s1 + $0x1158] sm:$0xff]  ;;  %v641_v49 = vld [vmem:[%s4471_s1 + $0x11e0] sm:$0xff] }
  0xfc   :  { %1423 = vmatpush.msrb.mxu0 %v526_v50  ;;  %1442 = vmatpush.msrb.mxu1 %v543_v51  ;;  %v591_v50 = vld [vmem:[%s4471_s1 + $0x1050] sm:$0xff]  ;;  %v608_v51 = vld [vmem:[%s4471_s1 + $0x10d8] sm:$0xff] }
  0xfd   :  { %1463 = vmatpush.msrb.mxu2 %v558_v52  ;;  %1482 = vmatpush.msrb.mxu3 %v575_v53  ;;  %v623_v52 = vld [vmem:[%s4471_s1 + $0x1150] sm:$0xff]  ;;  %v640_v53 = vld [vmem:[%s4471_s1 + $0x11d8] sm:$0xff] }
  0xfe   :  { %1424 = vmatpush.msrb.mxu0 %v525_v54  ;;  %1443 = vmatpush.msrb.mxu1 %v542_v55  ;;  %v590_v54 = vld [vmem:[%s4471_s1 + $0x1048] sm:$0xff]  ;;  %v607_v55 = vld [vmem:[%s4471_s1 + $0x10d0] sm:$0xff] }
  0xff   :  { %1464 = vmatpush.msrb.mxu2 %v557_v56  ;;  %1483 = vmatpush.msrb.mxu3 %v574_v57  ;;  %v622_v56 = vld [vmem:[%s4471_s1 + $0x1148] sm:$0xff]  ;;  %v639_v57 = vld [vmem:[%s4471_s1 + $0x11d0] sm:$0xff] }
 0x100   :  { %1425 = vmatpush.msrb.mxu0 %v524_v58  ;;  %1444 = vmatpush.msrb.mxu1 %v541_v59  ;;  %v589_v58 = vld [vmem:[%s4471_s1 + $0x1040] sm:$0xff]  ;;  %v606_v59 = vld [vmem:[%s4471_s1 + $0x10c8] sm:$0xff] }
 0x101   :  { %1465 = vmatpush.msrb.mxu2 %v556_v60  ;;  %1484 = vmatpush.msrb.mxu3 %v573_v61  ;;  %v621_v60 = vld [vmem:[%s4471_s1 + $0x1140] sm:$0xff]  ;;  %v638_v61 = vld [vmem:[%s4471_s1 + $0x11c8] sm:$0xff] }
 0x102   :  { %1426 = vmatpush.msrb.mxu0 %v523_v62  ;;  %1445 = vmatpush.msrb.mxu1 %v540_v63  ;;  %v588_v62 = vld [vmem:[%s4471_s1 + $0x1038] sm:$0xff]  ;;  %v605_v63 = vld [vmem:[%s4471_s1 + $0x10c0] sm:$0xff] }
 0x103   :  { %1466 = vmatpush.msrb.mxu2 %v555_v0  ;;  %1485 = vmatpush.msrb.mxu3 %v572_v1  ;;  %v620_v0 = vld [vmem:[%s4471_s1 + $0x1138] sm:$0xff]  ;;  %v637_v1 = vld [vmem:[%s4471_s1 + $0x11c0] sm:$0xff] }
 0x104   :  { %1427 = vmatpush.msrb.mxu0 %v522_v2  ;;  %1446 = vmatpush.msrb.mxu1 %v539_v3  ;;  %v587_v2 = vld [vmem:[%s4471_s1 + $0x1030] sm:$0xff]  ;;  %v604_v3 = vld [vmem:[%s4471_s1 + $0x10b8] sm:$0xff] }
 0x105   :  { %1467 = vmatpush.msrb.mxu2 %v554_v4  ;;  %1486 = vmatpush.msrb.mxu3 %v571_v5  ;;  %v619_v4 = vld [vmem:[%s4471_s1 + $0x1130] sm:$0xff]  ;;  %v636_v5 = vld [vmem:[%s4471_s1 + $0x11b8] sm:$0xff] }
 0x106   :  { %1428 = vmatpush.msrb.mxu0 %v521_v6  ;;  %1447 = vmatpush.msrb.mxu1 %v538_v7  ;;  %v586_v6 = vld [vmem:[%s4471_s1 + $0x1028] sm:$0xff]  ;;  %v603_v7 = vld [vmem:[%s4471_s1 + $0x10b0] sm:$0xff] }
 0x107   :  { %1468 = vmatpush.msrb.mxu2 %v553_v8  ;;  %1487 = vmatpush.msrb.mxu3 %v570_v9  ;;  %v618_v8 = vld [vmem:[%s4471_s1 + $0x1128] sm:$0xff]  ;;  %v635_v9 = vld [vmem:[%s4471_s1 + $0x11b0] sm:$0xff] }
 0x108   :  { %1429 = vmatpush.msrb.mxu0 %v520_v10  ;;  %1448 = vmatpush.msrb.mxu1 %v537_v11  ;;  %v585_v10 = vld [vmem:[%s4471_s1 + $0x1020] sm:$0xff]  ;;  %v602_v11 = vld [vmem:[%s4471_s1 + $0x10a8] sm:$0xff] }
 0x109   :  { %1469 = vmatpush.msrb.mxu2 %v552_v12  ;;  %1488 = vmatpush.msrb.mxu3 %v569_v13  ;;  %v617_v12 = vld [vmem:[%s4471_s1 + $0x1120] sm:$0xff]  ;;  %v634_v13 = vld [vmem:[%s4471_s1 + $0x11a8] sm:$0xff] }
 0x10a   :  { %1430 = vmatpush.msrb.mxu0 %v519_v14  ;;  %1449 = vmatpush.msrb.mxu1 %v536_v15  ;;  %v584_v14 = vld [vmem:[%s4471_s1 + $0x1018] sm:$0xff]  ;;  %v601_v15 = vld [vmem:[%s4471_s1 + $0x10a0] sm:$0xff] }
 0x10b   :  { %1470 = vmatpush.msrb.mxu2 %v551_v16  ;;  %1489 = vmatpush.msrb.mxu3 %v568_v17  ;;  %v616_v16 = vld [vmem:[%s4471_s1 + $0x1118] sm:$0xff]  ;;  %v633_v17 = vld [vmem:[%s4471_s1 + $0x11a0] sm:$0xff] }
 0x10c   :  { %1431 = vmatpush.msrb.mxu0 %v518_v18  ;;  %1450 = vmatpush.msrb.mxu1 %v535_v19  ;;  %v583_v18 = vld [vmem:[%s4471_s1 + $0x1010] sm:$0xff]  ;;  %v600_v19 = vld [vmem:[%s4471_s1 + $0x1098] sm:$0xff] }
 0x10d   :  { %1471 = vmatpush.msrb.mxu2 %v550_v20  ;;  %1490 = vmatpush.msrb.mxu3 %v567_v21  ;;  %v615_v20 = vld [vmem:[%s4471_s1 + $0x1110] sm:$0xff]  ;;  %v632_v21 = vld [vmem:[%s4471_s1 + $0x1198] sm:$0xff] }
 0x10e   :  { %1432 = vmatpush.msrb.mxu0 %v517_v22  ;;  %1451 = vmatpush.msrb.mxu1 %v534_v23  ;;  %v582_v22 = vld [vmem:[%s4471_s1 + $0x1008] sm:$0xff]  ;;  %v599_v23 = vld [vmem:[%s4471_s1 + $0x1090] sm:$0xff] }
 0x10f   :  { %1472 = vmatpush.msrb.mxu2 %v549_v24  ;;  %1491 = vmatpush.msrb.mxu3 %v566_v25  ;;  %v614_v24 = vld [vmem:[%s4471_s1 + $0x1108] sm:$0xff]  ;;  %v631_v25 = vld [vmem:[%s4471_s1 + $0x1190] sm:$0xff] }
 0x110   :  { %1433 = vmatmul.f32.vlgmr.msrb.gmra.mxu0 %v48_v26  ;;  %1473 = vmatmul.f32.vlgmr.msrb.gmra.mxu2 %v50_v27  ;;  %v581_v26 = vld [vmem:[%s4471_s1 + $0x1000] sm:$0xff]  ;;  %v598_v27 = vld [vmem:[%s4471_s1 + $0x1088] sm:$0xff] }
 0x111   :  { %1497 = vmatpush.msra.mxu0 %v596_v28  ;;  %1537 = vmatpush.msra.mxu2 %v628_v29  ;;  %v613_v28 = vld [vmem:[%s4471_s1 + $0x1100] sm:$0xff]  ;;  %v630_v29 = vld [vmem:[%s4471_s1 + $0x1188] sm:$0xff] }
 0x112   :  { %1452 = vmatpush.msrb.mxu1 %v533_v30  ;;  %1492 = vmatpush.msrb.mxu3 %v565_v31  ;;  %v52_v30 = vld [vmem:[%s4472_s0 + $0x100] sm:$0xff]  ;;  %v54_v31 = vld [vmem:[%s4472_s0 + $0x110] sm:$0xff] }
 0x113   :  { %1453 = vmatmul.f32.vlgmr.msrb.gmra.mxu1 %v49_v32  ;;  %1493 = vmatmul.f32.vlgmr.msrb.gmra.mxu3 %v51_v33  ;;  %v660_v32 = vld [vmem:[%s4471_s1 + $0x1278] sm:$0xff] }
 0x114   :  { %1498 = vmatpush.msra.mxu0 %v595_v34  ;;  %1517 = vmatpush.msra.mxu1 %v612_v35  ;;  %v692_v33 = vld [vmem:[%s4471_s1 + $0x1378] sm:$0xff]  ;;  %v597_v34 = vld [vmem:[%s4471_s1 + $0x1080] sm:$0xff] }
 0x115   :  { %1538 = vmatpush.msra.mxu2 %v627_v36  ;;  %1557 = vmatpush.msra.mxu3 %v644_v37  ;;  %v629_v35 = vld [vmem:[%s4471_s1 + $0x1180] sm:$0xff]  ;;  %v53_v36 = vld [vmem:[%s4472_s0 + $0x108] sm:$0xff]  ;;  %v55_v37 = vld [vmem:[%s4472_s0 + $0x118] sm:$0xff] }
 0x116   :  { %1499 = vmatpush.msra.mxu0 %v594_v38  ;;  %1518 = vmatpush.msra.mxu1 %v611_v39  ;;  %v659_v38 = vld [vmem:[%s4471_s1 + $0x1270] sm:$0xff]  ;;  %v676_v39 = vld [vmem:[%s4471_s1 + $0x12f8] sm:$0xff] }
 0x117   :  { %1539 = vmatpush.msra.mxu2 %v626_v40  ;;  %1558 = vmatpush.msra.mxu3 %v643_v41  ;;  %v691_v40 = vld [vmem:[%s4471_s1 + $0x1370] sm:$0xff]  ;;  %v708_v41 = vld [vmem:[%s4471_s1 + $0x13f8] sm:$0xff] }
 0x118   :  { %1500 = vmatpush.msra.mxu0 %v593_v42  ;;  %1519 = vmatpush.msra.mxu1 %v610_v43  ;;  %v658_v42 = vld [vmem:[%s4471_s1 + $0x1268] sm:$0xff]  ;;  %v675_v43 = vld [vmem:[%s4471_s1 + $0x12f0] sm:$0xff] }
 0x119   :  { %1540 = vmatpush.msra.mxu2 %v625_v44  ;;  %1559 = vmatpush.msra.mxu3 %v642_v45  ;;  %v690_v44 = vld [vmem:[%s4471_s1 + $0x1368] sm:$0xff]  ;;  %v707_v45 = vld [vmem:[%s4471_s1 + $0x13f0] sm:$0xff] }
 0x11a   :  { %1501 = vmatpush.msra.mxu0 %v592_v46  ;;  %1520 = vmatpush.msra.mxu1 %v609_v47  ;;  %v657_v46 = vld [vmem:[%s4471_s1 + $0x1260] sm:$0xff]  ;;  %v674_v47 = vld [vmem:[%s4471_s1 + $0x12e8] sm:$0xff] }
 0x11b   :  { %1541 = vmatpush.msra.mxu2 %v624_v48  ;;  %1560 = vmatpush.msra.mxu3 %v641_v49  ;;  %v689_v48 = vld [vmem:[%s4471_s1 + $0x1360] sm:$0xff]  ;;  %v706_v49 = vld [vmem:[%s4471_s1 + $0x13e8] sm:$0xff] }
 0x11c   :  { %1502 = vmatpush.msra.mxu0 %v591_v50  ;;  %1521 = vmatpush.msra.mxu1 %v608_v51  ;;  %v656_v50 = vld [vmem:[%s4471_s1 + $0x1258] sm:$0xff]  ;;  %v673_v51 = vld [vmem:[%s4471_s1 + $0x12e0] sm:$0xff] }
 0x11d   :  { %1542 = vmatpush.msra.mxu2 %v623_v52  ;;  %1561 = vmatpush.msra.mxu3 %v640_v53  ;;  %v688_v52 = vld [vmem:[%s4471_s1 + $0x1358] sm:$0xff]  ;;  %v705_v53 = vld [vmem:[%s4471_s1 + $0x13e0] sm:$0xff] }
 0x11e   :  { %1503 = vmatpush.msra.mxu0 %v590_v54  ;;  %1522 = vmatpush.msra.mxu1 %v607_v55  ;;  %v655_v54 = vld [vmem:[%s4471_s1 + $0x1250] sm:$0xff]  ;;  %v672_v55 = vld [vmem:[%s4471_s1 + $0x12d8] sm:$0xff] }
 0x11f   :  { %1543 = vmatpush.msra.mxu2 %v622_v56  ;;  %1562 = vmatpush.msra.mxu3 %v639_v57  ;;  %v687_v56 = vld [vmem:[%s4471_s1 + $0x1350] sm:$0xff]  ;;  %v704_v57 = vld [vmem:[%s4471_s1 + $0x13d8] sm:$0xff] }
 0x120   :  { %1504 = vmatpush.msra.mxu0 %v589_v58  ;;  %1523 = vmatpush.msra.mxu1 %v606_v59  ;;  %v654_v58 = vld [vmem:[%s4471_s1 + $0x1248] sm:$0xff]  ;;  %v671_v59 = vld [vmem:[%s4471_s1 + $0x12d0] sm:$0xff] }
 0x121   :  { %1544 = vmatpush.msra.mxu2 %v621_v60  ;;  %1563 = vmatpush.msra.mxu3 %v638_v61  ;;  %v686_v60 = vld [vmem:[%s4471_s1 + $0x1348] sm:$0xff]  ;;  %v703_v61 = vld [vmem:[%s4471_s1 + $0x13d0] sm:$0xff] }
 0x122   :  { %1505 = vmatpush.msra.mxu0 %v588_v62  ;;  %1524 = vmatpush.msra.mxu1 %v605_v63  ;;  %v653_v62 = vld [vmem:[%s4471_s1 + $0x1240] sm:$0xff]  ;;  %v670_v63 = vld [vmem:[%s4471_s1 + $0x12c8] sm:$0xff] }
 0x123   :  { %1545 = vmatpush.msra.mxu2 %v620_v0  ;;  %1564 = vmatpush.msra.mxu3 %v637_v1  ;;  %v685_v0 = vld [vmem:[%s4471_s1 + $0x1340] sm:$0xff]  ;;  %v702_v1 = vld [vmem:[%s4471_s1 + $0x13c8] sm:$0xff] }
 0x124   :  { %1506 = vmatpush.msra.mxu0 %v587_v2  ;;  %1525 = vmatpush.msra.mxu1 %v604_v3  ;;  %v652_v2 = vld [vmem:[%s4471_s1 + $0x1238] sm:$0xff]  ;;  %v669_v3 = vld [vmem:[%s4471_s1 + $0x12c0] sm:$0xff] }
 0x125   :  { %1546 = vmatpush.msra.mxu2 %v619_v4  ;;  %1565 = vmatpush.msra.mxu3 %v636_v5  ;;  %v684_v4 = vld [vmem:[%s4471_s1 + $0x1338] sm:$0xff]  ;;  %v701_v5 = vld [vmem:[%s4471_s1 + $0x13c0] sm:$0xff] }
 0x126   :  { %1507 = vmatpush.msra.mxu0 %v586_v6  ;;  %1526 = vmatpush.msra.mxu1 %v603_v7  ;;  %v651_v6 = vld [vmem:[%s4471_s1 + $0x1230] sm:$0xff]  ;;  %v668_v7 = vld [vmem:[%s4471_s1 + $0x12b8] sm:$0xff] }
 0x127   :  { %1547 = vmatpush.msra.mxu2 %v618_v8  ;;  %1566 = vmatpush.msra.mxu3 %v635_v9  ;;  %v683_v8 = vld [vmem:[%s4471_s1 + $0x1330] sm:$0xff]  ;;  %v700_v9 = vld [vmem:[%s4471_s1 + $0x13b8] sm:$0xff] }
 0x128   :  { %1508 = vmatpush.msra.mxu0 %v585_v10  ;;  %1527 = vmatpush.msra.mxu1 %v602_v11  ;;  %v650_v10 = vld [vmem:[%s4471_s1 + $0x1228] sm:$0xff]  ;;  %v667_v11 = vld [vmem:[%s4471_s1 + $0x12b0] sm:$0xff] }
 0x129   :  { %1548 = vmatpush.msra.mxu2 %v617_v12  ;;  %1567 = vmatpush.msra.mxu3 %v634_v13  ;;  %v682_v12 = vld [vmem:[%s4471_s1 + $0x1328] sm:$0xff]  ;;  %v699_v13 = vld [vmem:[%s4471_s1 + $0x13b0] sm:$0xff] }
 0x12a   :  { %1509 = vmatpush.msra.mxu0 %v584_v14  ;;  %1528 = vmatpush.msra.mxu1 %v601_v15  ;;  %v649_v14 = vld [vmem:[%s4471_s1 + $0x1220] sm:$0xff]  ;;  %v666_v15 = vld [vmem:[%s4471_s1 + $0x12a8] sm:$0xff] }
 0x12b   :  { %1549 = vmatpush.msra.mxu2 %v616_v16  ;;  %1568 = vmatpush.msra.mxu3 %v633_v17  ;;  %v681_v16 = vld [vmem:[%s4471_s1 + $0x1320] sm:$0xff]  ;;  %v698_v17 = vld [vmem:[%s4471_s1 + $0x13a8] sm:$0xff] }
 0x12c   :  { %1510 = vmatpush.msra.mxu0 %v583_v18  ;;  %1529 = vmatpush.msra.mxu1 %v600_v19  ;;  %v648_v18 = vld [vmem:[%s4471_s1 + $0x1218] sm:$0xff]  ;;  %v665_v19 = vld [vmem:[%s4471_s1 + $0x12a0] sm:$0xff] }
 0x12d   :  { %1550 = vmatpush.msra.mxu2 %v615_v20  ;;  %1569 = vmatpush.msra.mxu3 %v632_v21  ;;  %v680_v20 = vld [vmem:[%s4471_s1 + $0x1318] sm:$0xff]  ;;  %v697_v21 = vld [vmem:[%s4471_s1 + $0x13a0] sm:$0xff] }
 0x12e   :  { %1511 = vmatpush.msra.mxu0 %v582_v22  ;;  %1530 = vmatpush.msra.mxu1 %v599_v23  ;;  %v647_v22 = vld [vmem:[%s4471_s1 + $0x1210] sm:$0xff]  ;;  %v664_v23 = vld [vmem:[%s4471_s1 + $0x1298] sm:$0xff] }
 0x12f   :  { %1551 = vmatpush.msra.mxu2 %v614_v24  ;;  %1570 = vmatpush.msra.mxu3 %v631_v25  ;;  %v679_v24 = vld [vmem:[%s4471_s1 + $0x1310] sm:$0xff]  ;;  %v696_v25 = vld [vmem:[%s4471_s1 + $0x1398] sm:$0xff] }
 0x130   :  { %1512 = vmatpush.msra.mxu0 %v581_v26  ;;  %1531 = vmatpush.msra.mxu1 %v598_v27  ;;  %v646_v26 = vld [vmem:[%s4471_s1 + $0x1208] sm:$0xff]  ;;  %v663_v27 = vld [vmem:[%s4471_s1 + $0x1290] sm:$0xff] }
 0x131   :  { %1552 = vmatpush.msra.mxu2 %v613_v28  ;;  %1571 = vmatpush.msra.mxu3 %v630_v29  ;;  %v678_v28 = vld [vmem:[%s4471_s1 + $0x1308] sm:$0xff]  ;;  %v695_v29 = vld [vmem:[%s4471_s1 + $0x1390] sm:$0xff] }
 0x132   :  { %1513 = vmatmul.f32.vlgmr.msra.gmra.mxu0 %v52_v30  ;;  %1553 = vmatmul.f32.vlgmr.msra.gmra.mxu2 %v54_v31  ;;  %v645_v30 = vld [vmem:[%s4471_s1 + $0x1200] sm:$0xff]  ;;  %v662_v31 = vld [vmem:[%s4471_s1 + $0x1288] sm:$0xff] }
 0x133   :  { %1577 = vmatpush.msrb.mxu0 %v660_v32  ;;  %1617 = vmatpush.msrb.mxu2 %v692_v33  ;;  %v677_v32 = vld [vmem:[%s4471_s1 + $0x1300] sm:$0xff]  ;;  %v694_v33 = vld [vmem:[%s4471_s1 + $0x1388] sm:$0xff] }
 0x134   :  { %1532 = vmatpush.msra.mxu1 %v597_v34  ;;  %1572 = vmatpush.msra.mxu3 %v629_v35  ;;  %v56_v34 = vld [vmem:[%s4472_s0 + $0x120] sm:$0xff]  ;;  %v58_v35 = vld [vmem:[%s4472_s0 + $0x130] sm:$0xff] }
 0x135   :  { %1533 = vmatmul.f32.vlgmr.msra.gmra.mxu1 %v53_v36  ;;  %1573 = vmatmul.f32.vlgmr.msra.gmra.mxu3 %v55_v37  ;;  %v724_v36 = vld [vmem:[%s4471_s1 + $0x1478] sm:$0xff] }
 0x136   :  { %1578 = vmatpush.msrb.mxu0 %v659_v38  ;;  %1597 = vmatpush.msrb.mxu1 %v676_v39  ;;  %v756_v37 = vld [vmem:[%s4471_s1 + $0x1578] sm:$0xff]  ;;  %v661_v38 = vld [vmem:[%s4471_s1 + $0x1280] sm:$0xff] }
 0x137   :  { %1618 = vmatpush.msrb.mxu2 %v691_v40  ;;  %1637 = vmatpush.msrb.mxu3 %v708_v41  ;;  %v693_v39 = vld [vmem:[%s4471_s1 + $0x1380] sm:$0xff]  ;;  %v57_v40 = vld [vmem:[%s4472_s0 + $0x128] sm:$0xff]  ;;  %v59_v41 = vld [vmem:[%s4472_s0 + $0x138] sm:$0xff] }
 0x138   :  { %1579 = vmatpush.msrb.mxu0 %v658_v42  ;;  %1598 = vmatpush.msrb.mxu1 %v675_v43  ;;  %v723_v42 = vld [vmem:[%s4471_s1 + $0x1470] sm:$0xff]  ;;  %v740_v43 = vld [vmem:[%s4471_s1 + $0x14f8] sm:$0xff] }
 0x139   :  { %1619 = vmatpush.msrb.mxu2 %v690_v44  ;;  %1638 = vmatpush.msrb.mxu3 %v707_v45  ;;  %v755_v44 = vld [vmem:[%s4471_s1 + $0x1570] sm:$0xff]  ;;  %v772_v45 = vld [vmem:[%s4471_s1 + $0x15f8] sm:$0xff] }
 0x13a   :  { %1580 = vmatpush.msrb.mxu0 %v657_v46  ;;  %1599 = vmatpush.msrb.mxu1 %v674_v47  ;;  %v722_v46 = vld [vmem:[%s4471_s1 + $0x1468] sm:$0xff]  ;;  %v739_v47 = vld [vmem:[%s4471_s1 + $0x14f0] sm:$0xff] }
 0x13b   :  { %1620 = vmatpush.msrb.mxu2 %v689_v48  ;;  %1639 = vmatpush.msrb.mxu3 %v706_v49  ;;  %v754_v48 = vld [vmem:[%s4471_s1 + $0x1568] sm:$0xff]  ;;  %v771_v49 = vld [vmem:[%s4471_s1 + $0x15f0] sm:$0xff] }
 0x13c   :  { %1581 = vmatpush.msrb.mxu0 %v656_v50  ;;  %1600 = vmatpush.msrb.mxu1 %v673_v51  ;;  %v721_v50 = vld [vmem:[%s4471_s1 + $0x1460] sm:$0xff]  ;;  %v738_v51 = vld [vmem:[%s4471_s1 + $0x14e8] sm:$0xff] }
 0x13d   :  { %1621 = vmatpush.msrb.mxu2 %v688_v52  ;;  %1640 = vmatpush.msrb.mxu3 %v705_v53  ;;  %v753_v52 = vld [vmem:[%s4471_s1 + $0x1560] sm:$0xff]  ;;  %v770_v53 = vld [vmem:[%s4471_s1 + $0x15e8] sm:$0xff] }
 0x13e   :  { %1582 = vmatpush.msrb.mxu0 %v655_v54  ;;  %1601 = vmatpush.msrb.mxu1 %v672_v55  ;;  %v720_v54 = vld [vmem:[%s4471_s1 + $0x1458] sm:$0xff]  ;;  %v737_v55 = vld [vmem:[%s4471_s1 + $0x14e0] sm:$0xff] }
 0x13f   :  { %1622 = vmatpush.msrb.mxu2 %v687_v56  ;;  %1641 = vmatpush.msrb.mxu3 %v704_v57  ;;  %v752_v56 = vld [vmem:[%s4471_s1 + $0x1558] sm:$0xff]  ;;  %v769_v57 = vld [vmem:[%s4471_s1 + $0x15e0] sm:$0xff] }
 0x140   :  { %1583 = vmatpush.msrb.mxu0 %v654_v58  ;;  %1602 = vmatpush.msrb.mxu1 %v671_v59  ;;  %v719_v58 = vld [vmem:[%s4471_s1 + $0x1450] sm:$0xff]  ;;  %v736_v59 = vld [vmem:[%s4471_s1 + $0x14d8] sm:$0xff] }
 0x141   :  { %1623 = vmatpush.msrb.mxu2 %v686_v60  ;;  %1642 = vmatpush.msrb.mxu3 %v703_v61  ;;  %v751_v60 = vld [vmem:[%s4471_s1 + $0x1550] sm:$0xff]  ;;  %v768_v61 = vld [vmem:[%s4471_s1 + $0x15d8] sm:$0xff] }
 0x142   :  { %1584 = vmatpush.msrb.mxu0 %v653_v62  ;;  %1603 = vmatpush.msrb.mxu1 %v670_v63  ;;  %v718_v62 = vld [vmem:[%s4471_s1 + $0x1448] sm:$0xff]  ;;  %v735_v63 = vld [vmem:[%s4471_s1 + $0x14d0] sm:$0xff] }
 0x143   :  { %1624 = vmatpush.msrb.mxu2 %v685_v0  ;;  %1643 = vmatpush.msrb.mxu3 %v702_v1  ;;  %v750_v0 = vld [vmem:[%s4471_s1 + $0x1548] sm:$0xff]  ;;  %v767_v1 = vld [vmem:[%s4471_s1 + $0x15d0] sm:$0xff] }
 0x144   :  { %1585 = vmatpush.msrb.mxu0 %v652_v2  ;;  %1604 = vmatpush.msrb.mxu1 %v669_v3  ;;  %v717_v2 = vld [vmem:[%s4471_s1 + $0x1440] sm:$0xff]  ;;  %v734_v3 = vld [vmem:[%s4471_s1 + $0x14c8] sm:$0xff] }
 0x145   :  { %1625 = vmatpush.msrb.mxu2 %v684_v4  ;;  %1644 = vmatpush.msrb.mxu3 %v701_v5  ;;  %v749_v4 = vld [vmem:[%s4471_s1 + $0x1540] sm:$0xff]  ;;  %v766_v5 = vld [vmem:[%s4471_s1 + $0x15c8] sm:$0xff] }
 0x146   :  { %1586 = vmatpush.msrb.mxu0 %v651_v6  ;;  %1605 = vmatpush.msrb.mxu1 %v668_v7  ;;  %v716_v6 = vld [vmem:[%s4471_s1 + $0x1438] sm:$0xff]  ;;  %v733_v7 = vld [vmem:[%s4471_s1 + $0x14c0] sm:$0xff] }
 0x147   :  { %1626 = vmatpush.msrb.mxu2 %v683_v8  ;;  %1645 = vmatpush.msrb.mxu3 %v700_v9  ;;  %v748_v8 = vld [vmem:[%s4471_s1 + $0x1538] sm:$0xff]  ;;  %v765_v9 = vld [vmem:[%s4471_s1 + $0x15c0] sm:$0xff] }
 0x148   :  { %1587 = vmatpush.msrb.mxu0 %v650_v10  ;;  %1606 = vmatpush.msrb.mxu1 %v667_v11  ;;  %v715_v10 = vld [vmem:[%s4471_s1 + $0x1430] sm:$0xff]  ;;  %v732_v11 = vld [vmem:[%s4471_s1 + $0x14b8] sm:$0xff] }
 0x149   :  { %1627 = vmatpush.msrb.mxu2 %v682_v12  ;;  %1646 = vmatpush.msrb.mxu3 %v699_v13  ;;  %v747_v12 = vld [vmem:[%s4471_s1 + $0x1530] sm:$0xff]  ;;  %v764_v13 = vld [vmem:[%s4471_s1 + $0x15b8] sm:$0xff] }
 0x14a   :  { %1588 = vmatpush.msrb.mxu0 %v649_v14  ;;  %1607 = vmatpush.msrb.mxu1 %v666_v15  ;;  %v714_v14 = vld [vmem:[%s4471_s1 + $0x1428] sm:$0xff]  ;;  %v731_v15 = vld [vmem:[%s4471_s1 + $0x14b0] sm:$0xff] }
 0x14b   :  { %1628 = vmatpush.msrb.mxu2 %v681_v16  ;;  %1647 = vmatpush.msrb.mxu3 %v698_v17  ;;  %v746_v16 = vld [vmem:[%s4471_s1 + $0x1528] sm:$0xff]  ;;  %v763_v17 = vld [vmem:[%s4471_s1 + $0x15b0] sm:$0xff] }
 0x14c   :  { %1589 = vmatpush.msrb.mxu0 %v648_v18  ;;  %1608 = vmatpush.msrb.mxu1 %v665_v19  ;;  %v713_v18 = vld [vmem:[%s4471_s1 + $0x1420] sm:$0xff]  ;;  %v730_v19 = vld [vmem:[%s4471_s1 + $0x14a8] sm:$0xff] }
 0x14d   :  { %1629 = vmatpush.msrb.mxu2 %v680_v20  ;;  %1648 = vmatpush.msrb.mxu3 %v697_v21  ;;  %v745_v20 = vld [vmem:[%s4471_s1 + $0x1520] sm:$0xff]  ;;  %v762_v21 = vld [vmem:[%s4471_s1 + $0x15a8] sm:$0xff] }
 0x14e   :  { %1590 = vmatpush.msrb.mxu0 %v647_v22  ;;  %1609 = vmatpush.msrb.mxu1 %v664_v23  ;;  %v712_v22 = vld [vmem:[%s4471_s1 + $0x1418] sm:$0xff]  ;;  %v729_v23 = vld [vmem:[%s4471_s1 + $0x14a0] sm:$0xff] }
 0x14f   :  { %1630 = vmatpush.msrb.mxu2 %v679_v24  ;;  %1649 = vmatpush.msrb.mxu3 %v696_v25  ;;  %v744_v24 = vld [vmem:[%s4471_s1 + $0x1518] sm:$0xff]  ;;  %v761_v25 = vld [vmem:[%s4471_s1 + $0x15a0] sm:$0xff] }
 0x150   :  { %1591 = vmatpush.msrb.mxu0 %v646_v26  ;;  %1610 = vmatpush.msrb.mxu1 %v663_v27  ;;  %v711_v26 = vld [vmem:[%s4471_s1 + $0x1410] sm:$0xff]  ;;  %v728_v27 = vld [vmem:[%s4471_s1 + $0x1498] sm:$0xff] }
 0x151   :  { %1631 = vmatpush.msrb.mxu2 %v678_v28  ;;  %1650 = vmatpush.msrb.mxu3 %v695_v29  ;;  %v743_v28 = vld [vmem:[%s4471_s1 + $0x1510] sm:$0xff]  ;;  %v760_v29 = vld [vmem:[%s4471_s1 + $0x1598] sm:$0xff] }
 0x152   :  { %1592 = vmatpush.msrb.mxu0 %v645_v30  ;;  %1611 = vmatpush.msrb.mxu1 %v662_v31  ;;  %v710_v30 = vld [vmem:[%s4471_s1 + $0x1408] sm:$0xff]  ;;  %v727_v31 = vld [vmem:[%s4471_s1 + $0x1490] sm:$0xff] }
 0x153   :  { %1632 = vmatpush.msrb.mxu2 %v677_v32  ;;  %1651 = vmatpush.msrb.mxu3 %v694_v33  ;;  %v742_v32 = vld [vmem:[%s4471_s1 + $0x1508] sm:$0xff]  ;;  %v759_v33 = vld [vmem:[%s4471_s1 + $0x1590] sm:$0xff] }
 0x154   :  { %1593 = vmatmul.f32.vlgmr.msrb.gmra.mxu0 %v56_v34  ;;  %1633 = vmatmul.f32.vlgmr.msrb.gmra.mxu2 %v58_v35  ;;  %v709_v34 = vld [vmem:[%s4471_s1 + $0x1400] sm:$0xff]  ;;  %v726_v35 = vld [vmem:[%s4471_s1 + $0x1488] sm:$0xff] }
 0x155   :  { %1657 = vmatpush.msra.mxu0 %v724_v36  ;;  %1697 = vmatpush.msra.mxu2 %v756_v37  ;;  %v741_v36 = vld [vmem:[%s4471_s1 + $0x1500] sm:$0xff]  ;;  %v758_v37 = vld [vmem:[%s4471_s1 + $0x1588] sm:$0xff] }
 0x156   :  { %1612 = vmatpush.msrb.mxu1 %v661_v38  ;;  %1652 = vmatpush.msrb.mxu3 %v693_v39  ;;  %v60_v38 = vld [vmem:[%s4472_s0 + $0x140] sm:$0xff]  ;;  %v62_v39 = vld [vmem:[%s4472_s0 + $0x150] sm:$0xff] }
 0x157   :  { %1613 = vmatmul.f32.vlgmr.msrb.gmra.mxu1 %v57_v40  ;;  %1653 = vmatmul.f32.vlgmr.msrb.gmra.mxu3 %v59_v41  ;;  %v788_v40 = vld [vmem:[%s4471_s1 + $0x1678] sm:$0xff] }
 0x158   :  { %1658 = vmatpush.msra.mxu0 %v723_v42  ;;  %1677 = vmatpush.msra.mxu1 %v740_v43  ;;  %v820_v41 = vld [vmem:[%s4471_s1 + $0x1778] sm:$0xff]  ;;  %v725_v42 = vld [vmem:[%s4471_s1 + $0x1480] sm:$0xff] }
 0x159   :  { %1698 = vmatpush.msra.mxu2 %v755_v44  ;;  %1717 = vmatpush.msra.mxu3 %v772_v45  ;;  %v757_v43 = vld [vmem:[%s4471_s1 + $0x1580] sm:$0xff]  ;;  %v61_v44 = vld [vmem:[%s4472_s0 + $0x148] sm:$0xff]  ;;  %v63_v45 = vld [vmem:[%s4472_s0 + $0x158] sm:$0xff] }
 0x15a   :  { %1659 = vmatpush.msra.mxu0 %v722_v46  ;;  %1678 = vmatpush.msra.mxu1 %v739_v47  ;;  %v787_v46 = vld [vmem:[%s4471_s1 + $0x1670] sm:$0xff]  ;;  %v804_v47 = vld [vmem:[%s4471_s1 + $0x16f8] sm:$0xff] }
 0x15b   :  { %1699 = vmatpush.msra.mxu2 %v754_v48  ;;  %1718 = vmatpush.msra.mxu3 %v771_v49  ;;  %v819_v48 = vld [vmem:[%s4471_s1 + $0x1770] sm:$0xff]  ;;  %v836_v49 = vld [vmem:[%s4471_s1 + $0x17f8] sm:$0xff] }
 0x15c   :  { %1660 = vmatpush.msra.mxu0 %v721_v50  ;;  %1679 = vmatpush.msra.mxu1 %v738_v51  ;;  %v786_v50 = vld [vmem:[%s4471_s1 + $0x1668] sm:$0xff]  ;;  %v803_v51 = vld [vmem:[%s4471_s1 + $0x16f0] sm:$0xff] }
 0x15d   :  { %1700 = vmatpush.msra.mxu2 %v753_v52  ;;  %1719 = vmatpush.msra.mxu3 %v770_v53  ;;  %v818_v52 = vld [vmem:[%s4471_s1 + $0x1768] sm:$0xff]  ;;  %v835_v53 = vld [vmem:[%s4471_s1 + $0x17f0] sm:$0xff] }
 0x15e   :  { %1661 = vmatpush.msra.mxu0 %v720_v54  ;;  %1680 = vmatpush.msra.mxu1 %v737_v55  ;;  %v785_v54 = vld [vmem:[%s4471_s1 + $0x1660] sm:$0xff]  ;;  %v802_v55 = vld [vmem:[%s4471_s1 + $0x16e8] sm:$0xff] }
 0x15f   :  { %1701 = vmatpush.msra.mxu2 %v752_v56  ;;  %1720 = vmatpush.msra.mxu3 %v769_v57  ;;  %v817_v56 = vld [vmem:[%s4471_s1 + $0x1760] sm:$0xff]  ;;  %v834_v57 = vld [vmem:[%s4471_s1 + $0x17e8] sm:$0xff] }
 0x160   :  { %1662 = vmatpush.msra.mxu0 %v719_v58  ;;  %1681 = vmatpush.msra.mxu1 %v736_v59  ;;  %v784_v58 = vld [vmem:[%s4471_s1 + $0x1658] sm:$0xff]  ;;  %v801_v59 = vld [vmem:[%s4471_s1 + $0x16e0] sm:$0xff] }
 0x161   :  { %1702 = vmatpush.msra.mxu2 %v751_v60  ;;  %1721 = vmatpush.msra.mxu3 %v768_v61  ;;  %v816_v60 = vld [vmem:[%s4471_s1 + $0x1758] sm:$0xff]  ;;  %v833_v61 = vld [vmem:[%s4471_s1 + $0x17e0] sm:$0xff] }
 0x162   :  { %1663 = vmatpush.msra.mxu0 %v718_v62  ;;  %1682 = vmatpush.msra.mxu1 %v735_v63  ;;  %v783_v62 = vld [vmem:[%s4471_s1 + $0x1650] sm:$0xff]  ;;  %v800_v63 = vld [vmem:[%s4471_s1 + $0x16d8] sm:$0xff] }
 0x163   :  { %1703 = vmatpush.msra.mxu2 %v750_v0  ;;  %1722 = vmatpush.msra.mxu3 %v767_v1  ;;  %v815_v0 = vld [vmem:[%s4471_s1 + $0x1750] sm:$0xff]  ;;  %v832_v1 = vld [vmem:[%s4471_s1 + $0x17d8] sm:$0xff] }
 0x164   :  { %1664 = vmatpush.msra.mxu0 %v717_v2  ;;  %1683 = vmatpush.msra.mxu1 %v734_v3  ;;  %v782_v2 = vld [vmem:[%s4471_s1 + $0x1648] sm:$0xff]  ;;  %v799_v3 = vld [vmem:[%s4471_s1 + $0x16d0] sm:$0xff] }
 0x165   :  { %1704 = vmatpush.msra.mxu2 %v749_v4  ;;  %1723 = vmatpush.msra.mxu3 %v766_v5  ;;  %v814_v4 = vld [vmem:[%s4471_s1 + $0x1748] sm:$0xff]  ;;  %v831_v5 = vld [vmem:[%s4471_s1 + $0x17d0] sm:$0xff] }
 0x166   :  { %1665 = vmatpush.msra.mxu0 %v716_v6  ;;  %1684 = vmatpush.msra.mxu1 %v733_v7  ;;  %v781_v6 = vld [vmem:[%s4471_s1 + $0x1640] sm:$0xff]  ;;  %v798_v7 = vld [vmem:[%s4471_s1 + $0x16c8] sm:$0xff] }
 0x167   :  { %1705 = vmatpush.msra.mxu2 %v748_v8  ;;  %1724 = vmatpush.msra.mxu3 %v765_v9  ;;  %v813_v8 = vld [vmem:[%s4471_s1 + $0x1740] sm:$0xff]  ;;  %v830_v9 = vld [vmem:[%s4471_s1 + $0x17c8] sm:$0xff] }
 0x168   :  { %1666 = vmatpush.msra.mxu0 %v715_v10  ;;  %1685 = vmatpush.msra.mxu1 %v732_v11  ;;  %v780_v10 = vld [vmem:[%s4471_s1 + $0x1638] sm:$0xff]  ;;  %v797_v11 = vld [vmem:[%s4471_s1 + $0x16c0] sm:$0xff] }
 0x169   :  { %1706 = vmatpush.msra.mxu2 %v747_v12  ;;  %1725 = vmatpush.msra.mxu3 %v764_v13  ;;  %v812_v12 = vld [vmem:[%s4471_s1 + $0x1738] sm:$0xff]  ;;  %v829_v13 = vld [vmem:[%s4471_s1 + $0x17c0] sm:$0xff] }
 0x16a   :  { %1667 = vmatpush.msra.mxu0 %v714_v14  ;;  %1686 = vmatpush.msra.mxu1 %v731_v15  ;;  %v779_v14 = vld [vmem:[%s4471_s1 + $0x1630] sm:$0xff]  ;;  %v796_v15 = vld [vmem:[%s4471_s1 + $0x16b8] sm:$0xff] }
 0x16b   :  { %1707 = vmatpush.msra.mxu2 %v746_v16  ;;  %1726 = vmatpush.msra.mxu3 %v763_v17  ;;  %v811_v16 = vld [vmem:[%s4471_s1 + $0x1730] sm:$0xff]  ;;  %v828_v17 = vld [vmem:[%s4471_s1 + $0x17b8] sm:$0xff] }
 0x16c   :  { %1668 = vmatpush.msra.mxu0 %v713_v18  ;;  %1687 = vmatpush.msra.mxu1 %v730_v19  ;;  %v778_v18 = vld [vmem:[%s4471_s1 + $0x1628] sm:$0xff]  ;;  %v795_v19 = vld [vmem:[%s4471_s1 + $0x16b0] sm:$0xff] }
 0x16d   :  { %1708 = vmatpush.msra.mxu2 %v745_v20  ;;  %1727 = vmatpush.msra.mxu3 %v762_v21  ;;  %v810_v20 = vld [vmem:[%s4471_s1 + $0x1728] sm:$0xff]  ;;  %v827_v21 = vld [vmem:[%s4471_s1 + $0x17b0] sm:$0xff] }
 0x16e   :  { %1669 = vmatpush.msra.mxu0 %v712_v22  ;;  %1688 = vmatpush.msra.mxu1 %v729_v23  ;;  %v777_v22 = vld [vmem:[%s4471_s1 + $0x1620] sm:$0xff]  ;;  %v794_v23 = vld [vmem:[%s4471_s1 + $0x16a8] sm:$0xff] }
 0x16f   :  { %1709 = vmatpush.msra.mxu2 %v744_v24  ;;  %1728 = vmatpush.msra.mxu3 %v761_v25  ;;  %v809_v24 = vld [vmem:[%s4471_s1 + $0x1720] sm:$0xff]  ;;  %v826_v25 = vld [vmem:[%s4471_s1 + $0x17a8] sm:$0xff] }
 0x170   :  { %1670 = vmatpush.msra.mxu0 %v711_v26  ;;  %1689 = vmatpush.msra.mxu1 %v728_v27  ;;  %v776_v26 = vld [vmem:[%s4471_s1 + $0x1618] sm:$0xff]  ;;  %v793_v27 = vld [vmem:[%s4471_s1 + $0x16a0] sm:$0xff] }
 0x171   :  { %1710 = vmatpush.msra.mxu2 %v743_v28  ;;  %1729 = vmatpush.msra.mxu3 %v760_v29  ;;  %v808_v28 = vld [vmem:[%s4471_s1 + $0x1718] sm:$0xff]  ;;  %v825_v29 = vld [vmem:[%s4471_s1 + $0x17a0] sm:$0xff] }
 0x172   :  { %1671 = vmatpush.msra.mxu0 %v710_v30  ;;  %1690 = vmatpush.msra.mxu1 %v727_v31  ;;  %v775_v30 = vld [vmem:[%s4471_s1 + $0x1610] sm:$0xff]  ;;  %v792_v31 = vld [vmem:[%s4471_s1 + $0x1698] sm:$0xff] }
 0x173   :  { %1711 = vmatpush.msra.mxu2 %v742_v32  ;;  %1730 = vmatpush.msra.mxu3 %v759_v33  ;;  %v807_v32 = vld [vmem:[%s4471_s1 + $0x1710] sm:$0xff]  ;;  %v824_v33 = vld [vmem:[%s4471_s1 + $0x1798] sm:$0xff] }
 0x174   :  { %1672 = vmatpush.msra.mxu0 %v709_v34  ;;  %1691 = vmatpush.msra.mxu1 %v726_v35  ;;  %v774_v34 = vld [vmem:[%s4471_s1 + $0x1608] sm:$0xff]  ;;  %v791_v35 = vld [vmem:[%s4471_s1 + $0x1690] sm:$0xff] }
 0x175   :  { %1712 = vmatpush.msra.mxu2 %v741_v36  ;;  %1731 = vmatpush.msra.mxu3 %v758_v37  ;;  %v806_v36 = vld [vmem:[%s4471_s1 + $0x1708] sm:$0xff]  ;;  %v823_v37 = vld [vmem:[%s4471_s1 + $0x1790] sm:$0xff] }
 0x176   :  { %1673 = vmatmul.f32.vlgmr.msra.gmra.mxu0 %v60_v38  ;;  %1713 = vmatmul.f32.vlgmr.msra.gmra.mxu2 %v62_v39  ;;  %v773_v38 = vld [vmem:[%s4471_s1 + $0x1600] sm:$0xff]  ;;  %v790_v39 = vld [vmem:[%s4471_s1 + $0x1688] sm:$0xff] }
 0x177   :  { %1737 = vmatpush.msrb.mxu0 %v788_v40  ;;  %1777 = vmatpush.msrb.mxu2 %v820_v41  ;;  %v805_v40 = vld [vmem:[%s4471_s1 + $0x1700] sm:$0xff]  ;;  %v822_v41 = vld [vmem:[%s4471_s1 + $0x1788] sm:$0xff] }
 0x178   :  { %1692 = vmatpush.msra.mxu1 %v725_v42  ;;  %1732 = vmatpush.msra.mxu3 %v757_v43  ;;  %v64_v42 = vld [vmem:[%s4472_s0 + $0x160] sm:$0xff]  ;;  %v66_v43 = vld [vmem:[%s4472_s0 + $0x170] sm:$0xff] }
 0x179   :  { %1693 = vmatmul.f32.vlgmr.msra.gmra.mxu1 %v61_v44  ;;  %1733 = vmatmul.f32.vlgmr.msra.gmra.mxu3 %v63_v45  ;;  %v852_v44 = vld [vmem:[%s4471_s1 + $0x1878] sm:$0xff]  ;;  %v789_v45 = vld [vmem:[%s4471_s1 + $0x1680] sm:$0xff] }
 0x17a   :  { %1738 = vmatpush.msrb.mxu0 %v787_v46  ;;  %1757 = vmatpush.msrb.mxu1 %v804_v47  ;;  %v821_v46 = vld [vmem:[%s4471_s1 + $0x1780] sm:$0xff]  ;;  %v65_v47 = vld [vmem:[%s4472_s0 + $0x168] sm:$0xff] }
 0x17b   :  { %1778 = vmatpush.msrb.mxu2 %v819_v48  ;;  %1797 = vmatpush.msrb.mxu3 %v836_v49  ;;  %v67_v48 = vld [vmem:[%s4472_s0 + $0x178] sm:$0xff]  ;;  %v851_v49 = vld [vmem:[%s4471_s1 + $0x1870] sm:$0xff] }
 0x17c   :  { %1739 = vmatpush.msrb.mxu0 %v786_v50  ;;  %1758 = vmatpush.msrb.mxu1 %v803_v51  ;;  %v850_v50 = vld [vmem:[%s4471_s1 + $0x1868] sm:$0xff]  ;;  %v1883_v51 = vld [vmem:[%s4473_s2] ss:$0 sm:$0xff] }
 0x17d   :  { %1779 = vmatpush.msrb.mxu2 %v818_v52  ;;  %1798 = vmatpush.msrb.mxu3 %v835_v53  ;;  %v849_v52 = vld [vmem:[%s4471_s1 + $0x1860] sm:$0xff]  ;;  %v874_v53 = vpop.f32.mrf.mxu0 }
 0x17e   :  { %1740 = vmatpush.msrb.mxu0 %v785_v54  ;;  %1759 = vmatpush.msrb.mxu1 %v802_v55  ;;  %v848_v54 = vld [vmem:[%s4471_s1 + $0x1858] sm:$0xff]  ;;  %v875_v55 = vadd.f32 %v1883_v51, %v874_v53 }
 0x17f   :  { %1780 = vmatpush.msrb.mxu2 %v817_v56  ;;  %1799 = vmatpush.msrb.mxu3 %v834_v57  ;;  %v847_v56 = vld [vmem:[%s4471_s1 + $0x1850] sm:$0xff]  ;;  %v894_v57 = vpop.f32.mrf.mxu1 }
 0x180   :  { %1741 = vmatpush.msrb.mxu0 %v784_v58  ;;  %1760 = vmatpush.msrb.mxu1 %v801_v59  ;;  %v846_v58 = vld [vmem:[%s4471_s1 + $0x1848] sm:$0xff]  ;;  %v895_v59 = vadd.f32 %v894_v57, %v875_v55 }
 0x181   :  { %1781 = vmatpush.msrb.mxu2 %v816_v60  ;;  %1800 = vmatpush.msrb.mxu3 %v833_v61  ;;  %v845_v60 = vld [vmem:[%s4471_s1 + $0x1840] sm:$0xff]  ;;  %v914_v61 = vpop.f32.mrf.mxu2 }
 0x182   :  { %1742 = vmatpush.msrb.mxu0 %v783_v62  ;;  %1761 = vmatpush.msrb.mxu1 %v800_v63  ;;  %v844_v62 = vld [vmem:[%s4471_s1 + $0x1838] sm:$0xff]  ;;  %v915_v63 = vadd.f32 %v914_v61, %v895_v59 }
 0x183   :  { %1782 = vmatpush.msrb.mxu2 %v815_v0  ;;  %1801 = vmatpush.msrb.mxu3 %v832_v1  ;;  %v843_v0 = vld [vmem:[%s4471_s1 + $0x1830] sm:$0xff]  ;;  %v934_v1 = vpop.f32.mrf.mxu3  ;;  %v1853_v59 = vld [vmem:[%s4475_s3 + $0x78] sm:$0xff] }
 0x184   :  { %1743 = vmatpush.msrb.mxu0 %v782_v2  ;;  %1762 = vmatpush.msrb.mxu1 %v799_v3  ;;  %v842_v2 = vld [vmem:[%s4471_s1 + $0x1828] sm:$0xff]  ;;  %v935_v3 = vadd.f32 %v934_v1, %v915_v63 }
 0x185   :  { %1783 = vmatpush.msrb.mxu2 %v814_v4  ;;  %1802 = vmatpush.msrb.mxu3 %v831_v5  ;;  %v841_v4 = vld [vmem:[%s4471_s1 + $0x1820] sm:$0xff]  ;;  %v954_v5 = vpop.f32.mrf.mxu0  ;;  %v1851_v1 = vld [vmem:[%s4475_s3 + $0x68] sm:$0xff] }
 0x186   :  { %1744 = vmatpush.msrb.mxu0 %v781_v6  ;;  %1763 = vmatpush.msrb.mxu1 %v798_v7  ;;  %v840_v6 = vld [vmem:[%s4471_s1 + $0x1818] sm:$0xff]  ;;  %v955_v7 = vadd.f32 %v954_v5, %v935_v3 }
 0x187   :  { %1784 = vmatpush.msrb.mxu2 %v813_v8  ;;  %1803 = vmatpush.msrb.mxu3 %v830_v9  ;;  %v839_v8 = vld [vmem:[%s4471_s1 + $0x1810] sm:$0xff]  ;;  %v974_v9 = vpop.f32.mrf.mxu1 }
 0x188   :  { %1745 = vmatpush.msrb.mxu0 %v780_v10  ;;  %1764 = vmatpush.msrb.mxu1 %v797_v11  ;;  %v838_v10 = vld [vmem:[%s4471_s1 + $0x1808] sm:$0xff]  ;;  %v975_v11 = vadd.f32 %v974_v9, %v955_v7 }
 0x189   :  { %1785 = vmatpush.msrb.mxu2 %v812_v12  ;;  %1804 = vmatpush.msrb.mxu3 %v829_v13  ;;  %v837_v12 = vld [vmem:[%s4471_s1 + $0x1800] sm:$0xff]  ;;  %v994_v13 = vpop.f32.mrf.mxu2  ;;  %v1847_v9 = vld [vmem:[%s4475_s3 + $0x48] sm:$0xff] }
 0x18a   :  { %1746 = vmatpush.msrb.mxu0 %v779_v14  ;;  %1765 = vmatpush.msrb.mxu1 %v796_v15  ;;  %v68_v14 = vld [vmem:[%s4472_s0 + $0x180] sm:$0xff]  ;;  %v995_v15 = vadd.f32 %v994_v13, %v975_v11  ;;  %v1845_v13 = vld [vmem:[%s4475_s3 + $0x38] sm:$0xff] }
 0x18b   :  { %1786 = vmatpush.msrb.mxu2 %v811_v16  ;;  %1805 = vmatpush.msrb.mxu3 %v828_v17  ;;  %v1014_v16 = vpop.f32.mrf.mxu3  ;;  %v1846_v11 = vld [vmem:[%s4475_s3 + $0x40] sm:$0xff] }
 0x18c   :  { %1747 = vmatpush.msrb.mxu0 %v778_v18  ;;  %1766 = vmatpush.msrb.mxu1 %v795_v19  ;;  %v1015_v18 = vadd.f32 %v1014_v16, %v995_v15  ;;  %v1844_v16 = vld [vmem:[%s4475_s3 + $0x30] sm:$0xff] }
 0x18d   :  { %1787 = vmatpush.msrb.mxu2 %v810_v20  ;;  %1806 = vmatpush.msrb.mxu3 %v827_v21  ;;  %v1034_v17 = vpop.f32.mrf.mxu0 }
 0x18e   :  { %1748 = vmatpush.msrb.mxu0 %v777_v22  ;;  %1767 = vmatpush.msrb.mxu1 %v794_v23  ;;  %v1035_v19 = vadd.f32 %v1034_v17, %v1015_v18  ;;  %v1843_v18 = vld [vmem:[%s4475_s3 + $0x28] sm:$0xff] }
 0x18f   :  { %1788 = vmatpush.msrb.mxu2 %v809_v24  ;;  %1807 = vmatpush.msrb.mxu3 %v826_v25  ;;  %v1054_v20 = vpop.f32.mrf.mxu1 }
 0x190   :  { %1749 = vmatpush.msrb.mxu0 %v776_v26  ;;  %1768 = vmatpush.msrb.mxu1 %v793_v27  ;;  %v1055_v22 = vadd.f32 %v1054_v20, %v1035_v19  ;;  %v1842_v20 = vld [vmem:[%s4475_s3 + $0x20] sm:$0xff] }
 0x191   :  { %1789 = vmatpush.msrb.mxu2 %v808_v28  ;;  %1808 = vmatpush.msrb.mxu3 %v825_v29  ;;  %v1074_v21 = vpop.f32.mrf.mxu2 }
 0x192   :  { %1750 = vmatpush.msrb.mxu0 %v775_v30  ;;  %1769 = vmatpush.msrb.mxu1 %v792_v31  ;;  %v1075_v23 = vadd.f32 %v1074_v21, %v1055_v22 }
 0x193   :  { %1790 = vmatpush.msrb.mxu2 %v807_v32  ;;  %1809 = vmatpush.msrb.mxu3 %v824_v33  ;;  %v1094_v24 = vpop.f32.mrf.mxu3 }
 0x194   :  { %1751 = vmatpush.msrb.mxu0 %v774_v34  ;;  %1770 = vmatpush.msrb.mxu1 %v791_v35  ;;  %v1095_v26 = vadd.f32 %v1094_v24, %v1075_v23  ;;  %v1841_v23 = vld [vmem:[%s4475_s3 + $0x18] sm:$0xff] }
 0x195   :  { %1791 = vmatpush.msrb.mxu2 %v806_v36  ;;  %1810 = vmatpush.msrb.mxu3 %v823_v37  ;;  %v1114_v25 = vpop.f32.mrf.mxu0 }
 0x196   :  { %1752 = vmatpush.msrb.mxu0 %v773_v38  ;;  %1771 = vmatpush.msrb.mxu1 %v790_v39  ;;  %v1115_v27 = vadd.f32 %v1114_v25, %v1095_v26  ;;  %v1840_v26 = vld [vmem:[%s4475_s3 + $0x10] sm:$0xff] }
 0x197   :  { %1792 = vmatpush.msrb.mxu2 %v805_v40  ;;  %1811 = vmatpush.msrb.mxu3 %v822_v41  ;;  %v1134_v28 = vpop.f32.mrf.mxu1 }
 0x198   :  { %1753 = vmatmul.f32.vlgmr.msrb.gmra.mxu0 %v64_v42  ;;  %1793 = vmatmul.f32.vlgmr.msrb.gmra.mxu2 %v66_v43  ;;  %v1135_v30 = vadd.f32 %v1134_v28, %v1115_v27 }
 0x199   :  { %1817 = vmatpush.msra.mxu0 %v852_v44  ;;  %1772 = vmatpush.msrb.mxu1 %v789_v45  ;;  %v1154_v29 = vpop.f32.mrf.mxu2 }
 0x19a   :  { %1812 = vmatpush.msrb.mxu3 %v821_v46  ;;  %1773 = vmatmul.f32.vlgmr.msrb.gmra.mxu1 %v65_v47  ;;  %v1155_v31 = vadd.f32 %v1154_v29, %v1135_v30  ;;  %v1839_v29 = vld [vmem:[%s4475_s3 + $0x8] sm:$0xff] }
 0x19b   :  { %1813 = vmatmul.f32.vlgmr.msrb.gmra.mxu3 %v67_v48  ;;  %1818 = vmatpush.msra.mxu0 %v851_v49  ;;  %v1174_v32 = vpop.f32.mrf.mxu3 }
 0x19c   :  { %v1175_v34 = vadd.f32 %v1174_v32, %v1155_v31  ;;  %1858 = vmatpush.msra.mxu1 %v1853_v59  ;;  %v1838_v31 = vld [vmem:[%s4475_s3] sm:$0xff] }
 0x19d   :  { %1819 = vmatpush.msra.mxu0 %v850_v50  ;;  %v1194_v33 = vpop.f32.mrf.mxu0 }
 0x19e   :  { %v1195_v35 = vadd.f32 %v1194_v33, %v1175_v34 }
 0x19f   :  { %1820 = vmatpush.msra.mxu0 %v849_v52  ;;  %v1214_v36 = vpop.f32.mrf.mxu1 }
 0x1a0   :  { %v1215_v38 = vadd.f32 %v1214_v36, %v1195_v35 }
 0x1a1   :  { %1821 = vmatpush.msra.mxu0 %v848_v54  ;;  %v1234_v37 = vpop.f32.mrf.mxu2 }
 0x1a2   :  { %v1235_v39 = vadd.f32 %v1234_v37, %v1215_v38 }
 0x1a3   :  { %1822 = vmatpush.msra.mxu0 %v847_v56  ;;  %v1254_v40 = vpop.f32.mrf.mxu3 }
 0x1a4   :  { %v1255_v42 = vadd.f32 %v1254_v40, %v1235_v39 }
 0x1a5   :  { %1823 = vmatpush.msra.mxu0 %v846_v58  ;;  %v1274_v41 = vpop.f32.mrf.mxu0 }
 0x1a6   :  { %v1275_v43 = vadd.f32 %v1274_v41, %v1255_v42 }
 0x1a7   :  { %1824 = vmatpush.msra.mxu0 %v845_v60  ;;  %v1294_v44 = vpop.f32.mrf.mxu1 }
 0x1a8   :  { %v1295_v46 = vadd.f32 %v1294_v44, %v1275_v43 }
 0x1a9   :  { %1825 = vmatpush.msra.mxu0 %v844_v62  ;;  %v1314_v45 = vpop.f32.mrf.mxu2  ;;  %v1852_v62 = vld [vmem:[%s4475_s3 + $0x70] sm:$0xff] }
 0x1aa   :  { %v1315_v47 = vadd.f32 %v1314_v45, %v1295_v46  ;;  %1859 = vmatpush.msra.mxu1 %v1852_v62 }
 0x1ab   :  { %1826 = vmatpush.msra.mxu0 %v843_v0  ;;  %v1334_v48 = vpop.f32.mrf.mxu3 }
 0x1ac   :  { %v1335_v50 = vadd.f32 %v1334_v48, %v1315_v47  ;;  %1860 = vmatpush.msra.mxu1 %v1851_v1 }
 0x1ad   :  { %1827 = vmatpush.msra.mxu0 %v842_v2  ;;  %v1354_v49 = vpop.f32.mrf.mxu0  ;;  %v1850_v2 = vld [vmem:[%s4475_s3 + $0x60] sm:$0xff] }
 0x1ae   :  { %v1355_v51 = vadd.f32 %v1354_v49, %v1335_v50  ;;  %1861 = vmatpush.msra.mxu1 %v1850_v2 }
 0x1af   :  { %1828 = vmatpush.msra.mxu0 %v841_v4  ;;  %v1374_v52 = vpop.f32.mrf.mxu1  ;;  %v1849_v4 = vld [vmem:[%s4475_s3 + $0x58] sm:$0xff] }
 0x1b0   :  { %v1375_v54 = vadd.f32 %v1374_v52, %v1355_v51  ;;  %1862 = vmatpush.msra.mxu1 %v1849_v4 }
 0x1b1   :  { %1829 = vmatpush.msra.mxu0 %v840_v6  ;;  %v1394_v53 = vpop.f32.mrf.mxu2  ;;  %v1848_v6 = vld [vmem:[%s4475_s3 + $0x50] sm:$0xff] }
 0x1b2   :  { %v1395_v55 = vadd.f32 %v1394_v53, %v1375_v54  ;;  %1863 = vmatpush.msra.mxu1 %v1848_v6  ;;  %v1884_v53 = vld [vmem:[%s4474_s4] ss:$0 sm:$0xff] }
 0x1b3   :  { %1830 = vmatpush.msra.mxu0 %v839_v8  ;;  %v1414_v56 = vpop.f32.mrf.mxu3 }
 0x1b4   :  { %v1415_v58 = vadd.f32 %v1414_v56, %v1395_v55  ;;  %1864 = vmatpush.msra.mxu1 %v1847_v9 }
 0x1b5   :  { %1831 = vmatpush.msra.mxu0 %v838_v10  ;;  %v1434_v57 = vpop.f32.mrf.mxu0 }
 0x1b6   :  { %v1435_v60 = vadd.f32 %v1434_v57, %v1415_v58  ;;  %1865 = vmatpush.msra.mxu1 %v1846_v11 }
 0x1b7   :  { %1832 = vmatpush.msra.mxu0 %v837_v12  ;;  %v1454_v61 = vpop.f32.mrf.mxu1 }
 0x1b8   :  { %1833 = vmatmul.f32.vlgmr.msra.gmra.mxu0 %v68_v14  ;;  %v1455_v0 = vadd.f32 %v1454_v61, %v1435_v60  ;;  %1866 = vmatpush.msra.mxu1 %v1845_v13 }
 0x1b9   :  { %v1474_v63 = vpop.f32.mrf.mxu2 }
 0x1ba   :  { %v1475_v3 = vadd.f32 %v1474_v63, %v1455_v0  ;;  %1867 = vmatpush.msra.mxu1 %v1844_v16 }
 0x1bb   :  { %v1494_v5 = vpop.f32.mrf.mxu3 }
 0x1bc   :  { %v1495_v8 = vadd.f32 %v1494_v5, %v1475_v3  ;;  %1868 = vmatpush.msra.mxu1 %v1843_v18 }
 0x1bd   :  { %v1514_v7 = vpop.f32.mrf.mxu0 }
 0x1be   :  { %v1515_v10 = vadd.f32 %v1514_v7, %v1495_v8  ;;  %1869 = vmatpush.msra.mxu1 %v1842_v20 }
 0x1bf   :  { %v1534_v12 = vpop.f32.mrf.mxu1 }
 0x1c0   :  { %v1535_v15 = vadd.f32 %v1534_v12, %v1515_v10  ;;  %1870 = vmatpush.msra.mxu1 %v1841_v23 }
 0x1c1   :  { %v1554_v14 = vpop.f32.mrf.mxu2 }
 0x1c2   :  { %v1555_v17 = vadd.f32 %v1554_v14, %v1535_v15  ;;  %1871 = vmatpush.msra.mxu1 %v1840_v26 }
 0x1c3   :  { %v1574_v19 = vpop.f32.mrf.mxu3 }
 0x1c4   :  { %v1575_v22 = vadd.f32 %v1574_v19, %v1555_v17  ;;  %1872 = vmatpush.msra.mxu1 %v1839_v29 }
 0x1c6   :  { %1873 = vmatpush.msra.mxu1 %v1838_v31 }
 0x1d1   :  { %v1594_v21 = vpop.f32.mrf.mxu0 }
 0x1d2   :  { %v1595_v24 = vadd.f32 %v1594_v21, %v1575_v22 }
 0x1d4   :  { %v1614_v25 = vpop.f32.mrf.mxu1 }
 0x1d5   :  { %v1615_v28 = vadd.f32 %v1614_v25, %v1595_v24 }
 0x1d7   :  { %v1634_v27 = vpop.f32.mrf.mxu2 }
 0x1d8   :  { %v1635_v30 = vadd.f32 %v1634_v27, %v1615_v28 }
 0x1da   :  { %v1654_v32 = vpop.f32.mrf.mxu3 }
 0x1db   :  { %v1655_v34 = vadd.f32 %v1654_v32, %v1635_v30 }
 0x1f3   :  { %v1674_v33 = vpop.f32.mrf.mxu0 }
 0x1f4   :  { %v1675_v35 = vadd.f32 %v1674_v33, %v1655_v34 }
 0x1f6   :  { %v1694_v36 = vpop.f32.mrf.mxu1 }
 0x1f7   :  { %v1695_v38 = vadd.f32 %v1694_v36, %v1675_v35 }
 0x1f9   :  { %v1714_v37 = vpop.f32.mrf.mxu2 }
 0x1fa   :  { %v1715_v39 = vadd.f32 %v1714_v37, %v1695_v38 }
 0x1fc   :  { %v1734_v40 = vpop.f32.mrf.mxu3 }
 0x1fd   :  { %v1735_v42 = vadd.f32 %v1734_v40, %v1715_v39 }
 0x215   :  { %v1754_v41 = vpop.f32.mrf.mxu0 }
 0x216   :  { %v1755_v43 = vadd.f32 %v1754_v41, %v1735_v42 }
 0x217   :  { %v1774_v44 = vpop.f32.mrf.mxu1 }
 0x218   :  { %v1775_v46 = vadd.f32 %v1774_v44, %v1755_v43 }
 0x21b   :  { %v1794_v45 = vpop.f32.mrf.mxu2 }
 0x21c   :  { %v1795_v47 = vadd.f32 %v1794_v45, %v1775_v46 }
 0x21e   :  { %v1814_v48 = vpop.f32.mrf.mxu3 }
 0x21f   :  { %v1815_v49 = vadd.f32 %v1814_v48, %v1795_v47 }
 0x235   :  { %v1834_v50 = vpop.f32.mrf.mxu0 }
 0x236   :  { %v1835_v51 = vadd.f32 %v1834_v50, %v1815_v49 }
 0x238   :  { %v1837_v52 = vmax.f32 %v1835_v51, 0.0 }
 0x23a   :  { %1874 = vmatmul.f32.vlgmr.msra.gmra.mxu1 %v1837_v52 }
 0x2b7   :  { %v1875_v54 = vpop.f32.mrf.mxu1 }
 0x2b8   :  { %v1876_v55 = vadd.f32 %v1884_v53, %v1875_v54 }
 0x2ba   :  { %1878 = vst [vmem:[%s4476_s5] sm:$0xff] %v1876_v55 }

</bundles_post_ra>
